<compile_context>
chip_gen: v5e
topology: v5e:2x2
jax: 0.10.0
libtpu: 0.0.40
codegen_flags: <defaults>
</compile_context>

<pallas_src>
import numpy as np
import jax
import jax.numpy as jnp
from jax.experimental import pallas as pl
from jax.experimental.pallas import tpu as pltpu

# ----------------------- small config consistent with the module ------------
B = 2
IN_CHANS = 3
T = 8                    # num_frames
H = W = 16               # img_size
PATCH = 8                # patch_size
TUBELET = 2
ENC_DIM = 32             # encoder embed_dim
ENC_DEPTH = 2            # encoder depth (Mamba blocks)
D_INNER = 2 * ENC_DIM
D_STATE = 8
DT_RANK = 2
D_CONV = 4
DEC_DIM = 32             # decoder_embed_dim
DEC_DEPTH = 2            # decoder_depth
DEC_HEADS = 4            # -> head_dim 8
MLP_HID = int(DEC_DIM * 4.0)
DEC_CLASSES = 48         # decoder_num_classes
HP, WP = H // PATCH, W // PATCH
N_PATCH_FRAME = HP * WP
N_TOK = N_PATCH_FRAME * T // TUBELET     # tokens fed to decoder (16)
N_MASK = 12
N_VIS = N_TOK - N_MASK
PATCH_DIM = IN_CHANS * TUBELET * PATCH * PATCH
LN_EPS = 1e-5
RMS_EPS = 1e-5


# =========================== in-kernel helpers ==============================
def _ln(x, g, b):
    mu = jnp.mean(x, axis=-1, keepdims=True)
    var = jnp.mean((x - mu) ** 2, axis=-1, keepdims=True)
    return (x - mu) * jax.lax.rsqrt(var + LN_EPS) * g + b


def _rms(x, g):
    return x * jax.lax.rsqrt(jnp.mean(x * x, axis=-1, keepdims=True) + RMS_EPS) * g


def _silu(x):
    return x * (1.0 / (1.0 + jnp.exp(-x)))


def _gelu_tanh(x):
    # TODO(synk): torch nn.GELU default is exact erf; tanh approximation used here.
    return 0.5 * x * (1.0 + jnp.tanh(0.7978845608028654 * (x + 0.044715 * x * x * x)))


def _mdot(a, w):
    # bf16 MXU operands, f32 accumulation (v6e/v7x native; v5e still correct)
    return jnp.dot(a.astype(jnp.bfloat16), w.astype(jnp.bfloat16),
                   preferred_element_type=jnp.float32)


def _fdot(a, b):
    # exact f32 matmul (used for the constant banded shift matrices)
    return jnp.dot(a, b, preferred_element_type=jnp.float32)


# ============================ the fused kernel ===============================
def _fused_forward_kernel(
    # data (already gathered / laid out by the wrapper)
    patches_ref, pos_enc_ref, pos_dvis_ref, pos_dmsk_ref, shift_ref,
    # encoder params (per-layer params are depth-stacked on axis 0)
    patch_w_ref, patch_b_ref,
    rms_w_ref, in_proj_ref, conv_w_ref, conv_b_ref, x_proj_ref,
    dt_w_ref, dt_b_ref, a_log_ref, d_par_ref, out_proj_ref, norm_f_ref,
    # decoder params
    e2d_ref, mask_tok_ref,
    ln1_g_ref, ln1_b_ref, qkv_w_ref, proj_w_ref, proj_b_ref,
    ln2_g_ref, ln2_b_ref, fc1_w_ref, fc1_b_ref, fc2_w_ref, fc2_b_ref,
    dec_ng_ref, dec_nb_ref, head_w_ref, head_b_ref,
    # outputs
    xvis_ref, out_ref,
    # scratch
    y_scr, xf_scr, xl_scr,
):
    f32 = jnp.float32
    bsz = patches_ref.shape[0] // N_VIS
    enc_depth = in_proj_ref.shape[0]
    dec_depth = qkv_w_ref.shape[0]

    # ------------------------------ encoder ---------------------------------
    # patch embed (Conv3d with kernel==stride) as one matmul over visible rows
    # (gather of visible tokens was hoisted to the wrapper; it commutes with
    #  the per-token linear patch embedding).
    xv = (_mdot(patches_ref[...], patch_w_ref[...]) + patch_b_ref[...]
          + pos_enc_ref[...])                                                # (B*N_VIS, E)

    # TODO(synk): EndoMamba internals (bimamba / fused-add-norm) are not in the
    # given source; a standard unidirectional Mamba (S6) block is used instead.
    for d in range(enc_depth):
        h = _rms(xv, rms_w_ref[d])
        xz = _mdot(h, in_proj_ref[d])                                        # (B*N_VIS, 2*DI)
        xin = xz[:, :D_INNER]
        z = xz[:, D_INNER:]

        # causal depthwise conv over the per-sample token axis: each tap is a
        # banded constant matmul (batch boundaries already encoded in shift_ref)
        cw = conv_w_ref[d]                                                   # (D_CONV, DI)
        xc = xin * cw[D_CONV - 1:D_CONV, :]
        for s in range(1, D_CONV):
            xc = xc + _fdot(shift_ref[s], xin) * cw[D_CONV - 1 - s:D_CONV - s, :]
        xc = _silu(xc + conv_b_ref[d])

        x_dbl = _mdot(xc, x_proj_ref[d])                                     # (B*N_VIS, R+2S)
        dt = x_dbl[:, :DT_RANK]
        b_mat = x_dbl[:, DT_RANK:DT_RANK + D_STATE]
        c_mat = x_dbl[:, DT_RANK + D_STATE:]
        raw = _mdot(dt, dt_w_ref[d]) + dt_b_ref[d]
        # numerically stable softplus
        delta = jnp.maximum(raw, 0.0) + jnp.log(1.0 + jnp.exp(-jnp.abs(raw)))
        a_mat = -jnp.exp(a_log_ref[d])                                       # (S, DI)
        d_par = d_par_ref[d]                                                 # (1, DI)

        # selective scan: short unrolled recurrence; per-step outputs are
        # written into a VMEM scratch at static row offsets (no iota masks,
        # no concatenate).
        bT = b_mat.T                                                         # (S, B*N_VIS)
        cT = c_mat.T
        for b in range(bsz):
            hstate = jnp.zeros((D_STATE, D_INNER), f32)
            for t in range(N_VIS):
                r = b * N_VIS + t
                d_r = delta[r:r + 1, :]
                u_r = xc[r:r + 1, :]
                da = jnp.exp(d_r * a_mat)
                hstate = da * hstate + bT[:, r:r + 1] * (d_r * u_r)
                y_scr[pl.ds(r, 1), :] = (
                    jnp.sum(hstate * cT[:, r:r + 1], axis=0, keepdims=True)
                    + d_par * u_r)
        y = y_scr[...] * _silu(z)
        xv = xv + _mdot(y, out_proj_ref[d])

    xv = _rms(xv, norm_f_ref[...])
    xvis_ref[...] = xv                                                       # (B*N_VIS, E)

    # --------------------- encoder -> decoder token assembly ----------------
    xv2 = _mdot(xv, e2d_ref[...])                                            # (B*N_VIS, D)
    vis_full = xv2 + pos_dvis_ref[...]
    msk_full = mask_tok_ref[...] + pos_dmsk_ref[...]                         # (B*N_MASK, D)
    # concat([vis, mask]) per sample via static-offset stores into scratch
    for b in range(bsz):
        xf_scr[pl.ds(b * N_TOK, N_VIS), :] = vis_full[b * N_VIS:(b + 1) * N_VIS, :]
        xf_scr[pl.ds(b * N_TOK + N_VIS, N_MASK), :] = msk_full[b * N_MASK:(b + 1) * N_MASK, :]
    xf = xf_scr[...]                                                         # (B*N_TOK, D)

    # ------------------------------ decoder ---------------------------------
    hd = DEC_DIM // DEC_HEADS
    scale = hd ** -0.5
    for d in range(dec_depth):
        h = _ln(xf, ln1_g_ref[d], ln1_b_ref[d])
        qkv = _mdot(h, qkv_w_ref[d])                                         # (B*N_TOK, 3D)
        q3 = qkv[:, :DEC_DIM].reshape(bsz, N_TOK, DEC_DIM)
        k3 = qkv[:, DEC_DIM:2 * DEC_DIM].reshape(bsz, N_TOK, DEC_DIM)
        v3 = qkv[:, 2 * DEC_DIM:].reshape(bsz, N_TOK, DEC_DIM)
        pw = proj_w_ref[d].astype(jnp.float32)                               # (D, D)
        attn = jnp.zeros((bsz * N_TOK, DEC_DIM), jnp.float32)
        for hh in range(DEC_HEADS):
            lo, hi = hh * hd, (hh + 1) * hd
            qh = (q3[:, :, lo:hi] * scale).astype(jnp.bfloat16)
            kh = k3[:, :, lo:hi].astype(jnp.bfloat16)
            vh = v3[:, :, lo:hi].astype(jnp.bfloat16)
            s = jnp.einsum("bqd,bkd->bqk", qh, kh,
                           preferred_element_type=jnp.float32)               # (B, N, N)
            s = jnp.exp(s - jnp.max(s, axis=-1, keepdims=True))
            p = s * pl.reciprocal(jnp.sum(s, axis=-1, keepdims=True), approx=True)
            oh = jnp.einsum("bqk,bkd->bqd", p.astype(jnp.bfloat16), vh,
                            preferred_element_type=jnp.float32)              # (B, N, hd)
            # fold the head-concat into the output projection: sum_h oh_h @ W_proj[h]
            attn = attn + _mdot(oh.reshape(bsz * N_TOK, hd), pw[lo:hi, :])
        x1 = xf + attn + proj_b_ref[d]
        h2 = _ln(x1, ln2_g_ref[d], ln2_b_ref[d])
        m = _gelu_tanh(_mdot(h2, fc1_w_ref[d]) + fc1_b_ref[d])
        xf = x1 + _mdot(m, fc2_w_ref[d]) + fc2_b_ref[d]

    # last N_MASK tokens of every sample -> final LN -> head
    for b in range(bsz):
        xl_scr[pl.ds(b * N_MASK, N_MASK), :] = xf[b * N_TOK + N_VIS:(b + 1) * N_TOK, :]
    xl = _ln(xl_scr[...], dec_ng_ref[...], dec_nb_ref[...])
    out_ref[...] = _mdot(xl, head_w_ref[...]) + head_b_ref[...]              # (B*N_MASK, C)


# ============================ glue (plain JAX) ==============================
def get_sinusoid_encoding_table(n_position, d_hid):
    # TODO(synk): pre_n_position-based 3D interpolation of a pretrained table is
    # not reproduced; the table is generated directly at n_position.
    position = np.arange(n_position, dtype=np.float64)[:, None]
    div = np.power(10000.0, 2.0 * (np.arange(d_hid) // 2) / d_hid)[None, :]
    table = position / div
    table[:, 0::2] = np.sin(table[:, 0::2])
    table[:, 1::2] = np.cos(table[:, 1::2])
    return jnp.asarray(table, dtype=jnp.float32)          # (n_position, d_hid)


def mask_order_indices(mask):
    # TODO(synk): assumes exactly N_MASK True entries per row (as in the reference usage).
    key = mask.astype(jnp.int32) * N_TOK + jnp.arange(N_TOK, dtype=jnp.int32)[None, :]
    order = jnp.argsort(key, axis=1)
    return order[:, :N_VIS], order[:, N_VIS:]             # original order within each group


def pretrain_endomamba_forward(x, mask, params):
    enc, dec = params["enc"], params["dec"]
    bsz = x.shape[0]

    # patchify: Conv3d with kernel==stride is a reshape/transpose + matmul
    p = x.reshape(bsz, IN_CHANS, T // TUBELET, TUBELET, HP, PATCH, WP, PATCH)
    p = p.transpose(0, 2, 4, 6, 1, 3, 5, 7)
    patches = p.reshape(bsz, N_TOK, PATCH_DIM)

    # data-dependent gathers done once in plain XLA (cheap), kernel sees flat rows
    vis_idx, msk_idx = mask_order_indices(mask)                               # (B,N_VIS),(B,N_MASK)
    patches_vis = jnp.take_along_axis(
        patches, vis_idx[:, :, None], axis=1).reshape(bsz * N_VIS, PATCH_DIM)
    pos_enc_vis = enc["pos"][vis_idx].reshape(bsz * N_VIS, ENC_DIM)
    pos_dec_vis = dec["pos"][vis_idx].reshape(bsz * N_VIS, DEC_DIM)
    pos_dec_msk = dec["pos"][msk_idx].reshape(bsz * N_MASK, DEC_DIM)

    # banded shift matrices for the causal depthwise conv (per-sample causality)
    rows = bsz * N_VIS
    sm = np.zeros((D_CONV, rows, rows), np.float32)
    for s in range(D_CONV):
        for r in range(rows):
            if (r % N_VIS) >= s:
                sm[s, r, r - s] = 1.0
    shift_mats = jnp.asarray(sm)

    # TODO(synk): EndoMamba's learned spatial/temporal pos embeds unknown; sinusoid used.
    inputs = [
        patches_vis, pos_enc_vis, pos_dec_vis, pos_dec_msk, shift_mats,
        enc["patch_w"], enc["patch_b"],
        enc["rms_w"], enc["in_proj"], enc["conv_w"], enc["conv_b"], enc["x_proj"],
        enc["dt_w"], enc["dt_b"], enc["a_logT"], enc["d_param"], enc["out_proj"], enc["norm_f"],
        dec["enc2dec_w"], dec["mask_token"],
        dec["ln1_g"], dec["ln1_b"], dec["qkv_w"], dec["proj_w"], dec["proj_b"],
        dec["ln2_g"], dec["ln2_b"], dec["fc1_w"], dec["fc1_b"], dec["fc2_w"], dec["fc2_b"],
        dec["norm_g"], dec["norm_b"], dec["head_w"], dec["head_b"],
    ]

    out_shapes = (
        jax.ShapeDtypeStruct((bsz * N_VIS, ENC_DIM), jnp.float32),
        jax.ShapeDtypeStruct((bsz * N_MASK, DEC_CLASSES), jnp.float32),
    )
    # Single fused kernel: no grid, all operands + intermediates VMEM-resident
    # (total working set << 1 MiB, fits every TPU generation's VMEM).
    x_vis_flat, out_flat = pl.pallas_call(
        _fused_forward_kernel,
        out_shape=out_shapes,
        scratch_shapes=[
            pltpu.VMEM((bsz * N_VIS, D_INNER), jnp.float32),   # selective-scan outputs
            pltpu.VMEM((bsz * N_TOK, DEC_DIM), jnp.float32),   # [vis|mask] token assembly
            pltpu.VMEM((bsz * N_MASK, DEC_DIM), jnp.float32),  # last-N extraction
        ],
    )(*inputs)

    return (out_flat.reshape(bsz, N_MASK, DEC_CLASSES),
            x_vis_flat.reshape(bsz, N_VIS, ENC_DIM))


# ============================ parameter init ================================
def init_params(key):
    keys = list(jax.random.split(key, 64))
    ki = iter(keys)
    bf16 = jnp.bfloat16

    def rnd(shape, scale):
        return scale * jax.random.normal(next(ki), shape, jnp.float32)

    def xavier(shape, dtype=jnp.float32):
        return rnd(shape, (2.0 / (shape[0] + shape[1])) ** 0.5).astype(dtype)

    enc = {
        "patch_w": xavier((PATCH_DIM, ENC_DIM), bf16),
        "patch_b": jnp.zeros((1, ENC_DIM), jnp.float32),
        "pos": get_sinusoid_encoding_table(N_TOK, ENC_DIM),
        "rms_w": jnp.ones((ENC_DEPTH, 1, ENC_DIM), jnp.float32),
        "in_proj": jnp.stack([xavier((ENC_DIM, 2 * D_INNER), bf16) for _ in range(ENC_DEPTH)]),
        "conv_w": jnp.stack([rnd((D_CONV, D_INNER), 0.2) for _ in range(ENC_DEPTH)]),
        "conv_b": jnp.zeros((ENC_DEPTH, 1, D_INNER), jnp.float32),
        "x_proj": jnp.stack([xavier((D_INNER, DT_RANK + 2 * D_STATE), bf16) for _ in range(ENC_DEPTH)]),
        "dt_w": jnp.stack([xavier((DT_RANK, D_INNER), bf16) for _ in range(ENC_DEPTH)]),
        "dt_b": jnp.zeros((ENC_DEPTH, 1, D_INNER), jnp.float32),
        "a_logT": jnp.stack([jnp.log(jnp.arange(1, D_STATE + 1, dtype=jnp.float32))[:, None]
                             * jnp.ones((1, D_INNER), jnp.float32) for _ in range(ENC_DEPTH)]),
        "d_param": jnp.ones((ENC_DEPTH, 1, D_INNER), jnp.float32),
        "out_proj": jnp.stack([xavier((D_INNER, ENC_DIM), bf16) for _ in range(ENC_DEPTH)]),
        "norm_f": jnp.ones((1, ENC_DIM), jnp.float32),
    }

    dec = {
        "enc2dec_w": xavier((ENC_DIM, DEC_DIM), bf16),                    # bias=False
        "mask_token": jnp.clip(rnd((1, DEC_DIM), 0.02), -0.02, 0.02),     # trunc_normal_(std=.02)
        "pos": get_sinusoid_encoding_table(N_TOK, DEC_DIM),
        "ln1_g": jnp.ones((DEC_DEPTH, 1, DEC_DIM), jnp.float32),
        "ln1_b": jnp.zeros((DEC_DEPTH, 1, DEC_DIM), jnp.float32),
        "qkv_w": jnp.stack([xavier((DEC_DIM, 3 * DEC_DIM), bf16) for _ in range(DEC_DEPTH)]),
        "proj_w": jnp.stack([xavier((DEC_DIM, DEC_DIM), bf16) for _ in range(DEC_DEPTH)]),
        "proj_b": jnp.zeros((DEC_DEPTH, 1, DEC_DIM), jnp.float32),
        "ln2_g": jnp.ones((DEC_DEPTH, 1, DEC_DIM), jnp.float32),
        "ln2_b": jnp.zeros((DEC_DEPTH, 1, DEC_DIM), jnp.float32),
        "fc1_w": jnp.stack([xavier((DEC_DIM, MLP_HID), bf16) for _ in range(DEC_DEPTH)]),
        "fc1_b": jnp.zeros((DEC_DEPTH, 1, MLP_HID), jnp.float32),
        "fc2_w": jnp.stack([xavier((MLP_HID, DEC_DIM), bf16) for _ in range(DEC_DEPTH)]),
        "fc2_b": jnp.zeros((DEC_DEPTH, 1, DEC_DIM), jnp.float32),
        "norm_g": jnp.ones((1, DEC_DIM), jnp.float32),
        "norm_b": jnp.zeros((1, DEC_DIM), jnp.float32),
        "head_w": xavier((DEC_DIM, DEC_CLASSES), bf16),
        "head_b": jnp.zeros((1, DEC_CLASSES), jnp.float32),
    }
    return {"enc": enc, "dec": dec}


# ================================ main ======================================
if __name__ == "__main__":
    key = jax.random.PRNGKey(0)
    kx, kp = jax.random.split(key)

    x = jax.random.normal(kx, (B, IN_CHANS, T, H, W), jnp.float32)

    # deterministic boolean mask with equal masked count per sample
    rng = np.random.RandomState(0)
    mask_np = np.zeros((B, N_TOK), dtype=bool)
    for b in range(B):
        mask_np[b, rng.permutation(N_TOK)[:N_MASK]] = True
    mask = jnp.asarray(mask_np)

    params = init_params(kp)

    fwd = jax.jit(pretrain_endomamba_forward)
    out, x_vis = fwd(x, mask, params)
    jax.block_until_ready((out, x_vis))

    assert out.shape == (B, N_MASK, DEC_CLASSES)
    assert x_vis.shape == (B, N_VIS, ENC_DIM)
    assert bool(jnp.all(jnp.isfinite(out))) and bool(jnp.all(jnp.isfinite(x_vis)))
    print("KERNEL_OK")
</pallas_src>

<mosaic_0001>
module attributes {stable_mosaic.version = 11 : i64} {
  func.func @_fused_forward_kernel(%arg0: memref<8x384xf32, #tpu.memory_space<vmem>>, %arg1: memref<8x32xf32, #tpu.memory_space<vmem>>, %arg2: memref<8x32xf32, #tpu.memory_space<vmem>>, %arg3: memref<24x32xf32, #tpu.memory_space<vmem>>, %arg4: memref<4x8x8xf32, #tpu.memory_space<vmem>>, %arg5: memref<384x32xbf16, #tpu.memory_space<vmem>>, %arg6: memref<1x32xf32, #tpu.memory_space<vmem>>, %arg7: memref<2x1x32xf32, #tpu.memory_space<vmem>>, %arg8: memref<2x32x128xbf16, #tpu.memory_space<vmem>>, %arg9: memref<2x4x64xf32, #tpu.memory_space<vmem>>, %arg10: memref<2x1x64xf32, #tpu.memory_space<vmem>>, %arg11: memref<2x64x18xbf16, #tpu.memory_space<vmem>>, %arg12: memref<2x2x64xbf16, #tpu.memory_space<vmem>>, %arg13: memref<2x1x64xf32, #tpu.memory_space<vmem>>, %arg14: memref<2x8x64xf32, #tpu.memory_space<vmem>>, %arg15: memref<2x1x64xf32, #tpu.memory_space<vmem>>, %arg16: memref<2x64x32xbf16, #tpu.memory_space<vmem>>, %arg17: memref<1x32xf32, #tpu.memory_space<vmem>>, %arg18: memref<32x32xbf16, #tpu.memory_space<vmem>>, %arg19: memref<1x32xf32, #tpu.memory_space<vmem>>, %arg20: memref<2x1x32xf32, #tpu.memory_space<vmem>>, %arg21: memref<2x1x32xf32, #tpu.memory_space<vmem>>, %arg22: memref<2x32x96xbf16, #tpu.memory_space<vmem>>, %arg23: memref<2x32x32xbf16, #tpu.memory_space<vmem>>, %arg24: memref<2x1x32xf32, #tpu.memory_space<vmem>>, %arg25: memref<2x1x32xf32, #tpu.memory_space<vmem>>, %arg26: memref<2x1x32xf32, #tpu.memory_space<vmem>>, %arg27: memref<2x32x128xbf16, #tpu.memory_space<vmem>>, %arg28: memref<2x1x128xf32, #tpu.memory_space<vmem>>, %arg29: memref<2x128x32xbf16, #tpu.memory_space<vmem>>, %arg30: memref<2x1x32xf32, #tpu.memory_space<vmem>>, %arg31: memref<1x32xf32, #tpu.memory_space<vmem>>, %arg32: memref<1x32xf32, #tpu.memory_space<vmem>>, %arg33: memref<32x48xbf16, #tpu.memory_space<vmem>>, %arg34: memref<1x48xf32, #tpu.memory_space<vmem>>, %arg35: memref<8x32xf32, #tpu.memory_space<vmem>>, %arg36: memref<24x48xf32, #tpu.memory_space<vmem>>, %arg37: memref<8x64xf32, #tpu.memory_space<vmem>>, %arg38: memref<32x32xf32, #tpu.memory_space<vmem>>, %arg39: memref<24x32xf32, #tpu.memory_space<vmem>>) attributes {dimension_semantics = [], scalar_prefetch = 0 : i64, scratch_operands = 3 : i64, tpu.core_type = #tpu.core_type<tc>} {
    %c0 = arith.constant 0 : index
    %c0_0 = arith.constant 0 : index
    %0 = vector.load %arg0[%c0, %c0_0] : memref<8x384xf32, #tpu.memory_space<vmem>>, vector<8x384xf32>
    %c0_1 = arith.constant 0 : index
    %c0_2 = arith.constant 0 : index
    %1 = vector.load %arg5[%c0_1, %c0_2] : memref<384x32xbf16, #tpu.memory_space<vmem>>, vector<384x32xbf16>
    %2 = arith.truncf %0 : vector<8x384xf32> to vector<8x384xbf16>
    %cst = arith.constant dense<0.000000e+00> : vector<8x32xf32>
    %3 = tpu.matmul %2, %1, %cst {dimension_numbers = #tpu.dot_dimension_numbers<[1], [0], [0], [1], [0, 0, 1, 1], [], []>} : vector<8x384xbf16>, vector<384x32xbf16>, vector<8x32xf32> -> vector<8x32xf32>
    %c0_3 = arith.constant 0 : index
    %c0_4 = arith.constant 0 : index
    %4 = vector.load %arg6[%c0_3, %c0_4] : memref<1x32xf32, #tpu.memory_space<vmem>>, vector<1x32xf32>
    %5 = vector.broadcast %4 : vector<1x32xf32> to vector<8x32xf32>
    %6 = arith.addf %3, %5 : vector<8x32xf32>
    %c0_5 = arith.constant 0 : index
    %c0_6 = arith.constant 0 : index
    %7 = vector.load %arg1[%c0_5, %c0_6] : memref<8x32xf32, #tpu.memory_space<vmem>>, vector<8x32xf32>
    %8 = arith.addf %6, %7 : vector<8x32xf32>
    %c0_7 = arith.constant 0 : index
    %c0_8 = arith.constant 0 : index
    %c0_9 = arith.constant 0 : index
    %9 = vector.load %arg7[%c0_7, %c0_8, %c0_9] : memref<2x1x32xf32, #tpu.memory_space<vmem>>, vector<1x1x32xf32>
    %10 = vector.shape_cast %9 : vector<1x1x32xf32> to vector<1x32xf32>
    %11 = arith.mulf %8, %8 : vector<8x32xf32>
    %cst_10 = arith.constant dense<0.000000e+00> : vector<8xf32>
    %12 = vector.multi_reduction <add>, %11, %cst_10 [1] : vector<8x32xf32> to vector<8xf32>
    %13 = vector.shape_cast %12 : vector<8xf32> to vector<8x1xf32>
    %cst_11 = arith.constant 3.200000e+01 : f32
    %14 = vector.broadcast %cst_11 : f32 to vector<8x1xf32>
    %15 = arith.divf %13, %14 : vector<8x1xf32>
    %cst_12 = arith.constant 9.99999974E-6 : f32
    %16 = vector.broadcast %cst_12 : f32 to vector<8x1xf32>
    %17 = arith.addf %15, %16 : vector<8x1xf32>
    %18 = math.rsqrt %17 : vector<8x1xf32>
    %19 = vector.broadcast %18 : vector<8x1xf32> to vector<8x32xf32>
    %20 = arith.mulf %8, %19 : vector<8x32xf32>
    %21 = vector.broadcast %10 : vector<1x32xf32> to vector<8x32xf32>
    %22 = arith.mulf %20, %21 : vector<8x32xf32>
    %c0_13 = arith.constant 0 : index
    %c0_14 = arith.constant 0 : index
    %c0_15 = arith.constant 0 : index
    %23 = vector.load %arg8[%c0_13, %c0_14, %c0_15] : memref<2x32x128xbf16, #tpu.memory_space<vmem>>, vector<1x32x128xbf16>
    %24 = vector.shape_cast %23 : vector<1x32x128xbf16> to vector<32x128xbf16>
    %25 = arith.truncf %22 : vector<8x32xf32> to vector<8x32xbf16>
    %cst_16 = arith.constant dense<0.000000e+00> : vector<8x128xf32>
    %26 = tpu.matmul %25, %24, %cst_16 {dimension_numbers = #tpu.dot_dimension_numbers<[1], [0], [0], [1], [0, 0, 1, 1], [], []>} : vector<8x32xbf16>, vector<32x128xbf16>, vector<8x128xf32> -> vector<8x128xf32>
    %27 = vector.extract_strided_slice %26 {offsets = [0, 0], sizes = [8, 64], strides = [1, 1]} : vector<8x128xf32> to vector<8x64xf32>
    %28 = vector.extract_strided_slice %26 {offsets = [0, 64], sizes = [8, 64], strides = [1, 1]} : vector<8x128xf32> to vector<8x64xf32>
    %c0_17 = arith.constant 0 : index
    %c0_18 = arith.constant 0 : index
    %c0_19 = arith.constant 0 : index
    %29 = vector.load %arg9[%c0_17, %c0_18, %c0_19] : memref<2x4x64xf32, #tpu.memory_space<vmem>>, vector<1x4x64xf32>
    %30 = vector.shape_cast %29 : vector<1x4x64xf32> to vector<4x64xf32>
    %31 = vector.extract_strided_slice %30 {offsets = [3, 0], sizes = [1, 64], strides = [1, 1]} : vector<4x64xf32> to vector<1x64xf32>
    %32 = vector.broadcast %31 : vector<1x64xf32> to vector<8x64xf32>
    %33 = arith.mulf %27, %32 : vector<8x64xf32>
    %c1 = arith.constant 1 : index
    %c0_20 = arith.constant 0 : index
    %c0_21 = arith.constant 0 : index
    %34 = vector.load %arg4[%c1, %c0_20, %c0_21] : memref<4x8x8xf32, #tpu.memory_space<vmem>>, vector<1x8x8xf32>
    %35 = vector.shape_cast %34 : vector<1x8x8xf32> to vector<8x8xf32>
    %cst_22 = arith.constant dense<0.000000e+00> : vector<8x64xf32>
    %36 = tpu.matmul %35, %27, %cst_22 {dimension_numbers = #tpu.dot_dimension_numbers<[1], [0], [0], [1], [0, 0, 1, 1], [], []>} : vector<8x8xf32>, vector<8x64xf32>, vector<8x64xf32> -> vector<8x64xf32>
    %37 = vector.extract_strided_slice %30 {offsets = [2, 0], sizes = [1, 64], strides = [1, 1]} : vector<4x64xf32> to vector<1x64xf32>
    %38 = vector.broadcast %37 : vector<1x64xf32> to vector<8x64xf32>
    %39 = arith.mulf %36, %38 : vector<8x64xf32>
    %40 = arith.addf %33, %39 : vector<8x64xf32>
    %c2 = arith.constant 2 : index
    %c0_23 = arith.constant 0 : index
    %c0_24 = arith.constant 0 : index
    %41 = vector.load %arg4[%c2, %c0_23, %c0_24] : memref<4x8x8xf32, #tpu.memory_space<vmem>>, vector<1x8x8xf32>
    %42 = vector.shape_cast %41 : vector<1x8x8xf32> to vector<8x8xf32>
    %cst_25 = arith.constant dense<0.000000e+00> : vector<8x64xf32>
    %43 = tpu.matmul %42, %27, %cst_25 {dimension_numbers = #tpu.dot_dimension_numbers<[1], [0], [0], [1], [0, 0, 1, 1], [], []>} : vector<8x8xf32>, vector<8x64xf32>, vector<8x64xf32> -> vector<8x64xf32>
    %44 = vector.extract_strided_slice %30 {offsets = [1, 0], sizes = [1, 64], strides = [1, 1]} : vector<4x64xf32> to vector<1x64xf32>
    %45 = vector.broadcast %44 : vector<1x64xf32> to vector<8x64xf32>
    %46 = arith.mulf %43, %45 : vector<8x64xf32>
    %47 = arith.addf %40, %46 : vector<8x64xf32>
    %c3 = arith.constant 3 : index
    %c0_26 = arith.constant 0 : index
    %c0_27 = arith.constant 0 : index
    %48 = vector.load %arg4[%c3, %c0_26, %c0_27] : memref<4x8x8xf32, #tpu.memory_space<vmem>>, vector<1x8x8xf32>
    %49 = vector.shape_cast %48 : vector<1x8x8xf32> to vector<8x8xf32>
    %cst_28 = arith.constant dense<0.000000e+00> : vector<8x64xf32>
    %50 = tpu.matmul %49, %27, %cst_28 {dimension_numbers = #tpu.dot_dimension_numbers<[1], [0], [0], [1], [0, 0, 1, 1], [], []>} : vector<8x8xf32>, vector<8x64xf32>, vector<8x64xf32> -> vector<8x64xf32>
    %51 = vector.extract_strided_slice %30 {offsets = [0, 0], sizes = [1, 64], strides = [1, 1]} : vector<4x64xf32> to vector<1x64xf32>
    %52 = vector.broadcast %51 : vector<1x64xf32> to vector<8x64xf32>
    %53 = arith.mulf %50, %52 : vector<8x64xf32>
    %54 = arith.addf %47, %53 : vector<8x64xf32>
    %c0_29 = arith.constant 0 : index
    %c0_30 = arith.constant 0 : index
    %c0_31 = arith.constant 0 : index
    %55 = vector.load %arg10[%c0_29, %c0_30, %c0_31] : memref<2x1x64xf32, #tpu.memory_space<vmem>>, vector<1x1x64xf32>
    %56 = vector.shape_cast %55 : vector<1x1x64xf32> to vector<1x64xf32>
    %57 = vector.broadcast %56 : vector<1x64xf32> to vector<8x64xf32>
    %58 = arith.addf %54, %57 : vector<8x64xf32>
    %cst_32 = arith.constant 0.000000e+00 : f32
    %59 = vector.broadcast %cst_32 : f32 to vector<8x64xf32>
    %60 = arith.subf %59, %58 : vector<8x64xf32>
    %61 = math.exp %60 : vector<8x64xf32>
    %cst_33 = arith.constant 1.000000e+00 : f32
    %62 = vector.broadcast %cst_33 : f32 to vector<8x64xf32>
    %63 = arith.addf %62, %61 : vector<8x64xf32>
    %cst_34 = arith.constant 1.000000e+00 : f32
    %64 = vector.broadcast %cst_34 : f32 to vector<8x64xf32>
    %65 = arith.divf %64, %63 : vector<8x64xf32>
    %66 = arith.mulf %58, %65 : vector<8x64xf32>
    %c0_35 = arith.constant 0 : index
    %c0_36 = arith.constant 0 : index
    %c0_37 = arith.constant 0 : index
    %67 = vector.load %arg11[%c0_35, %c0_36, %c0_37] : memref<2x64x18xbf16, #tpu.memory_space<vmem>>, vector<1x64x18xbf16>
    %68 = vector.shape_cast %67 : vector<1x64x18xbf16> to vector<64x18xbf16>
    %69 = arith.truncf %66 : vector<8x64xf32> to vector<8x64xbf16>
    %cst_38 = arith.constant dense<0.000000e+00> : vector<8x18xf32>
    %70 = tpu.matmul %69, %68, %cst_38 {dimension_numbers = #tpu.dot_dimension_numbers<[1], [0], [0], [1], [0, 0, 1, 1], [], []>} : vector<8x64xbf16>, vector<64x18xbf16>, vector<8x18xf32> -> vector<8x18xf32>
    %71 = vector.extract_strided_slice %70 {offsets = [0, 0], sizes = [8, 2], strides = [1, 1]} : vector<8x18xf32> to vector<8x2xf32>
    %72 = vector.extract_strided_slice %70 {offsets = [0, 2], sizes = [8, 8], strides = [1, 1]} : vector<8x18xf32> to vector<8x8xf32>
    %73 = vector.extract_strided_slice %70 {offsets = [0, 10], sizes = [8, 8], strides = [1, 1]} : vector<8x18xf32> to vector<8x8xf32>
    %c0_39 = arith.constant 0 : index
    %c0_40 = arith.constant 0 : index
    %c0_41 = arith.constant 0 : index
    %74 = vector.load %arg12[%c0_39, %c0_40, %c0_41] : memref<2x2x64xbf16, #tpu.memory_space<vmem>>, vector<1x2x64xbf16>
    %75 = vector.shape_cast %74 : vector<1x2x64xbf16> to vector<2x64xbf16>
    %76 = arith.truncf %71 : vector<8x2xf32> to vector<8x2xbf16>
    %cst_42 = arith.constant dense<0.000000e+00> : vector<8x64xf32>
    %77 = tpu.matmul %76, %75, %cst_42 {dimension_numbers = #tpu.dot_dimension_numbers<[1], [0], [0], [1], [0, 0, 1, 1], [], []>} : vector<8x2xbf16>, vector<2x64xbf16>, vector<8x64xf32> -> vector<8x64xf32>
    %c0_43 = arith.constant 0 : index
    %c0_44 = arith.constant 0 : index
    %c0_45 = arith.constant 0 : index
    %78 = vector.load %arg13[%c0_43, %c0_44, %c0_45] : memref<2x1x64xf32, #tpu.memory_space<vmem>>, vector<1x1x64xf32>
    %79 = vector.shape_cast %78 : vector<1x1x64xf32> to vector<1x64xf32>
    %80 = vector.broadcast %79 : vector<1x64xf32> to vector<8x64xf32>
    %81 = arith.addf %77, %80 : vector<8x64xf32>
    %cst_46 = arith.constant 0.000000e+00 : f32
    %82 = vector.broadcast %cst_46 : f32 to vector<8x64xf32>
    %83 = arith.maximumf %81, %82 : vector<8x64xf32>
    %84 = math.absf %81 : vector<8x64xf32>
    %cst_47 = arith.constant 0.000000e+00 : f32
    %85 = vector.broadcast %cst_47 : f32 to vector<8x64xf32>
    %86 = arith.subf %85, %84 : vector<8x64xf32>
    %87 = math.exp %86 : vector<8x64xf32>
    %cst_48 = arith.constant 1.000000e+00 : f32
    %88 = vector.broadcast %cst_48 : f32 to vector<8x64xf32>
    %89 = arith.addf %88, %87 : vector<8x64xf32>
    %90 = math.log %89 : vector<8x64xf32>
    %91 = arith.addf %83, %90 : vector<8x64xf32>
    %c0_49 = arith.constant 0 : index
    %c0_50 = arith.constant 0 : index
    %c0_51 = arith.constant 0 : index
    %92 = vector.load %arg14[%c0_49, %c0_50, %c0_51] : memref<2x8x64xf32, #tpu.memory_space<vmem>>, vector<1x8x64xf32>
    %93 = vector.shape_cast %92 : vector<1x8x64xf32> to vector<8x64xf32>
    %94 = math.exp %93 : vector<8x64xf32>
    %cst_52 = arith.constant 0.000000e+00 : f32
    %95 = vector.broadcast %cst_52 : f32 to vector<8x64xf32>
    %96 = arith.subf %95, %94 : vector<8x64xf32>
    %c0_53 = arith.constant 0 : index
    %c0_54 = arith.constant 0 : index
    %c0_55 = arith.constant 0 : index
    %97 = vector.load %arg15[%c0_53, %c0_54, %c0_55] : memref<2x1x64xf32, #tpu.memory_space<vmem>>, vector<1x1x64xf32>
    %98 = vector.shape_cast %97 : vector<1x1x64xf32> to vector<1x64xf32>
    %99 = tpu.transpose %72, [1, 0] : vector<8x8xf32> -> vector<8x8xf32>
    %100 = tpu.transpose %73, [1, 0] : vector<8x8xf32> -> vector<8x8xf32>
    %cst_56 = arith.constant 0.000000e+00 : f32
    %101 = vector.broadcast %cst_56 : f32 to vector<8x64xf32>
    %102 = vector.extract_strided_slice %91 {offsets = [0, 0], sizes = [1, 64], strides = [1, 1]} : vector<8x64xf32> to vector<1x64xf32>
    %103 = vector.extract_strided_slice %66 {offsets = [0, 0], sizes = [1, 64], strides = [1, 1]} : vector<8x64xf32> to vector<1x64xf32>
    %104 = vector.broadcast %102 : vector<1x64xf32> to vector<8x64xf32>
    %105 = arith.mulf %104, %96 : vector<8x64xf32>
    %106 = math.exp %105 : vector<8x64xf32>
    %107 = arith.mulf %106, %101 : vector<8x64xf32>
    %108 = vector.extract_strided_slice %99 {offsets = [0, 0], sizes = [8, 1], strides = [1, 1]} : vector<8x8xf32> to vector<8x1xf32>
    %109 = arith.mulf %102, %103 : vector<1x64xf32>
    %110 = vector.broadcast %108 : vector<8x1xf32> to vector<8x64xf32>
    %111 = vector.broadcast %109 : vector<1x64xf32> to vector<8x64xf32>
    %112 = arith.mulf %110, %111 : vector<8x64xf32>
    %113 = arith.addf %107, %112 : vector<8x64xf32>
    %114 = vector.extract_strided_slice %100 {offsets = [0, 0], sizes = [8, 1], strides = [1, 1]} : vector<8x8xf32> to vector<8x1xf32>
    %115 = vector.broadcast %114 : vector<8x1xf32> to vector<8x64xf32>
    %116 = arith.mulf %113, %115 : vector<8x64xf32>
    %cst_57 = arith.constant dense<0.000000e+00> : vector<64xf32>
    %117 = vector.multi_reduction <add>, %116, %cst_57 [0] : vector<8x64xf32> to vector<64xf32>
    %118 = vector.shape_cast %117 : vector<64xf32> to vector<1x64xf32>
    %119 = arith.mulf %98, %103 : vector<1x64xf32>
    %120 = arith.addf %118, %119 : vector<1x64xf32>
    %c0_58 = arith.constant 0 : index
    %c0_59 = arith.constant 0 : index
    %121 = vector.load %arg37[%c0_58, %c0_59] : memref<8x64xf32, #tpu.memory_space<vmem>>, vector<1x64xf32>
    tpu.vector_store %arg37[%c0_58, %c0_59], %120 {strides = array<i32>} : memref<8x64xf32, #tpu.memory_space<vmem>>, vector<1x64xf32>,
    %122 = vector.extract_strided_slice %91 {offsets = [1, 0], sizes = [1, 64], strides = [1, 1]} : vector<8x64xf32> to vector<1x64xf32>
    %123 = vector.extract_strided_slice %66 {offsets = [1, 0], sizes = [1, 64], strides = [1, 1]} : vector<8x64xf32> to vector<1x64xf32>
    %124 = vector.broadcast %122 : vector<1x64xf32> to vector<8x64xf32>
    %125 = arith.mulf %124, %96 : vector<8x64xf32>
    %126 = math.exp %125 : vector<8x64xf32>
    %127 = arith.mulf %126, %113 : vector<8x64xf32>
    %128 = vector.extract_strided_slice %99 {offsets = [0, 1], sizes = [8, 1], strides = [1, 1]} : vector<8x8xf32> to vector<8x1xf32>
    %129 = arith.mulf %122, %123 : vector<1x64xf32>
    %130 = vector.broadcast %128 : vector<8x1xf32> to vector<8x64xf32>
    %131 = vector.broadcast %129 : vector<1x64xf32> to vector<8x64xf32>
    %132 = arith.mulf %130, %131 : vector<8x64xf32>
    %133 = arith.addf %127, %132 : vector<8x64xf32>
    %134 = vector.extract_strided_slice %100 {offsets = [0, 1], sizes = [8, 1], strides = [1, 1]} : vector<8x8xf32> to vector<8x1xf32>
    %135 = vector.broadcast %134 : vector<8x1xf32> to vector<8x64xf32>
    %136 = arith.mulf %133, %135 : vector<8x64xf32>
    %cst_60 = arith.constant dense<0.000000e+00> : vector<64xf32>
    %137 = vector.multi_reduction <add>, %136, %cst_60 [0] : vector<8x64xf32> to vector<64xf32>
    %138 = vector.shape_cast %137 : vector<64xf32> to vector<1x64xf32>
    %139 = arith.mulf %98, %123 : vector<1x64xf32>
    %140 = arith.addf %138, %139 : vector<1x64xf32>
    %c1_61 = arith.constant 1 : index
    %c0_62 = arith.constant 0 : index
    %141 = vector.load %arg37[%c1_61, %c0_62] : memref<8x64xf32, #tpu.memory_space<vmem>>, vector<1x64xf32>
    tpu.vector_store %arg37[%c1_61, %c0_62], %140 {strides = array<i32>} : memref<8x64xf32, #tpu.memory_space<vmem>>, vector<1x64xf32>,
    %142 = vector.extract_strided_slice %91 {offsets = [2, 0], sizes = [1, 64], strides = [1, 1]} : vector<8x64xf32> to vector<1x64xf32>
    %143 = vector.extract_strided_slice %66 {offsets = [2, 0], sizes = [1, 64], strides = [1, 1]} : vector<8x64xf32> to vector<1x64xf32>
    %144 = vector.broadcast %142 : vector<1x64xf32> to vector<8x64xf32>
    %145 = arith.mulf %144, %96 : vector<8x64xf32>
    %146 = math.exp %145 : vector<8x64xf32>
    %147 = arith.mulf %146, %133 : vector<8x64xf32>
    %148 = vector.extract_strided_slice %99 {offsets = [0, 2], sizes = [8, 1], strides = [1, 1]} : vector<8x8xf32> to vector<8x1xf32>
    %149 = arith.mulf %142, %143 : vector<1x64xf32>
    %150 = vector.broadcast %148 : vector<8x1xf32> to vector<8x64xf32>
    %151 = vector.broadcast %149 : vector<1x64xf32> to vector<8x64xf32>
    %152 = arith.mulf %150, %151 : vector<8x64xf32>
    %153 = arith.addf %147, %152 : vector<8x64xf32>
    %154 = vector.extract_strided_slice %100 {offsets = [0, 2], sizes = [8, 1], strides = [1, 1]} : vector<8x8xf32> to vector<8x1xf32>
    %155 = vector.broadcast %154 : vector<8x1xf32> to vector<8x64xf32>
    %156 = arith.mulf %153, %155 : vector<8x64xf32>
    %cst_63 = arith.constant dense<0.000000e+00> : vector<64xf32>
    %157 = vector.multi_reduction <add>, %156, %cst_63 [0] : vector<8x64xf32> to vector<64xf32>
    %158 = vector.shape_cast %157 : vector<64xf32> to vector<1x64xf32>
    %159 = arith.mulf %98, %143 : vector<1x64xf32>
    %160 = arith.addf %158, %159 : vector<1x64xf32>
    %c2_64 = arith.constant 2 : index
    %c0_65 = arith.constant 0 : index
    %161 = vector.load %arg37[%c2_64, %c0_65] : memref<8x64xf32, #tpu.memory_space<vmem>>, vector<1x64xf32>
    tpu.vector_store %arg37[%c2_64, %c0_65], %160 {strides = array<i32>} : memref<8x64xf32, #tpu.memory_space<vmem>>, vector<1x64xf32>,
    %162 = vector.extract_strided_slice %91 {offsets = [3, 0], sizes = [1, 64], strides = [1, 1]} : vector<8x64xf32> to vector<1x64xf32>
    %163 = vector.extract_strided_slice %66 {offsets = [3, 0], sizes = [1, 64], strides = [1, 1]} : vector<8x64xf32> to vector<1x64xf32>
    %164 = vector.broadcast %162 : vector<1x64xf32> to vector<8x64xf32>
    %165 = arith.mulf %164, %96 : vector<8x64xf32>
    %166 = math.exp %165 : vector<8x64xf32>
    %167 = arith.mulf %166, %153 : vector<8x64xf32>
    %168 = vector.extract_strided_slice %99 {offsets = [0, 3], sizes = [8, 1], strides = [1, 1]} : vector<8x8xf32> to vector<8x1xf32>
    %169 = arith.mulf %162, %163 : vector<1x64xf32>
    %170 = vector.broadcast %168 : vector<8x1xf32> to vector<8x64xf32>
    %171 = vector.broadcast %169 : vector<1x64xf32> to vector<8x64xf32>
    %172 = arith.mulf %170, %171 : vector<8x64xf32>
    %173 = arith.addf %167, %172 : vector<8x64xf32>
    %174 = vector.extract_strided_slice %100 {offsets = [0, 3], sizes = [8, 1], strides = [1, 1]} : vector<8x8xf32> to vector<8x1xf32>
    %175 = vector.broadcast %174 : vector<8x1xf32> to vector<8x64xf32>
    %176 = arith.mulf %173, %175 : vector<8x64xf32>
    %cst_66 = arith.constant dense<0.000000e+00> : vector<64xf32>
    %177 = vector.multi_reduction <add>, %176, %cst_66 [0] : vector<8x64xf32> to vector<64xf32>
    %178 = vector.shape_cast %177 : vector<64xf32> to vector<1x64xf32>
    %179 = arith.mulf %98, %163 : vector<1x64xf32>
    %180 = arith.addf %178, %179 : vector<1x64xf32>
    %c3_67 = arith.constant 3 : index
    %c0_68 = arith.constant 0 : index
    %181 = vector.load %arg37[%c3_67, %c0_68] : memref<8x64xf32, #tpu.memory_space<vmem>>, vector<1x64xf32>
    tpu.vector_store %arg37[%c3_67, %c0_68], %180 {strides = array<i32>} : memref<8x64xf32, #tpu.memory_space<vmem>>, vector<1x64xf32>,
    %cst_69 = arith.constant 0.000000e+00 : f32
    %182 = vector.broadcast %cst_69 : f32 to vector<8x64xf32>
    %183 = vector.extract_strided_slice %91 {offsets = [4, 0], sizes = [1, 64], strides = [1, 1]} : vector<8x64xf32> to vector<1x64xf32>
    %184 = vector.extract_strided_slice %66 {offsets = [4, 0], sizes = [1, 64], strides = [1, 1]} : vector<8x64xf32> to vector<1x64xf32>
    %185 = vector.broadcast %183 : vector<1x64xf32> to vector<8x64xf32>
    %186 = arith.mulf %185, %96 : vector<8x64xf32>
    %187 = math.exp %186 : vector<8x64xf32>
    %188 = arith.mulf %187, %182 : vector<8x64xf32>
    %189 = vector.extract_strided_slice %99 {offsets = [0, 4], sizes = [8, 1], strides = [1, 1]} : vector<8x8xf32> to vector<8x1xf32>
    %190 = arith.mulf %183, %184 : vector<1x64xf32>
    %191 = vector.broadcast %189 : vector<8x1xf32> to vector<8x64xf32>
    %192 = vector.broadcast %190 : vector<1x64xf32> to vector<8x64xf32>
    %193 = arith.mulf %191, %192 : vector<8x64xf32>
    %194 = arith.addf %188, %193 : vector<8x64xf32>
    %195 = vector.extract_strided_slice %100 {offsets = [0, 4], sizes = [8, 1], strides = [1, 1]} : vector<8x8xf32> to vector<8x1xf32>
    %196 = vector.broadcast %195 : vector<8x1xf32> to vector<8x64xf32>
    %197 = arith.mulf %194, %196 : vector<8x64xf32>
    %cst_70 = arith.constant dense<0.000000e+00> : vector<64xf32>
    %198 = vector.multi_reduction <add>, %197, %cst_70 [0] : vector<8x64xf32> to vector<64xf32>
    %199 = vector.shape_cast %198 : vector<64xf32> to vector<1x64xf32>
    %200 = arith.mulf %98, %184 : vector<1x64xf32>
    %201 = arith.addf %199, %200 : vector<1x64xf32>
    %c4 = arith.constant 4 : index
    %c0_71 = arith.constant 0 : index
    %202 = vector.load %arg37[%c4, %c0_71] : memref<8x64xf32, #tpu.memory_space<vmem>>, vector<1x64xf32>
    tpu.vector_store %arg37[%c4, %c0_71], %201 {strides = array<i32>} : memref<8x64xf32, #tpu.memory_space<vmem>>, vector<1x64xf32>,
    %203 = vector.extract_strided_slice %91 {offsets = [5, 0], sizes = [1, 64], strides = [1, 1]} : vector<8x64xf32> to vector<1x64xf32>
    %204 = vector.extract_strided_slice %66 {offsets = [5, 0], sizes = [1, 64], strides = [1, 1]} : vector<8x64xf32> to vector<1x64xf32>
    %205 = vector.broadcast %203 : vector<1x64xf32> to vector<8x64xf32>
    %206 = arith.mulf %205, %96 : vector<8x64xf32>
    %207 = math.exp %206 : vector<8x64xf32>
    %208 = arith.mulf %207, %194 : vector<8x64xf32>
    %209 = vector.extract_strided_slice %99 {offsets = [0, 5], sizes = [8, 1], strides = [1, 1]} : vector<8x8xf32> to vector<8x1xf32>
    %210 = arith.mulf %203, %204 : vector<1x64xf32>
    %211 = vector.broadcast %209 : vector<8x1xf32> to vector<8x64xf32>
    %212 = vector.broadcast %210 : vector<1x64xf32> to vector<8x64xf32>
    %213 = arith.mulf %211, %212 : vector<8x64xf32>
    %214 = arith.addf %208, %213 : vector<8x64xf32>
    %215 = vector.extract_strided_slice %100 {offsets = [0, 5], sizes = [8, 1], strides = [1, 1]} : vector<8x8xf32> to vector<8x1xf32>
    %216 = vector.broadcast %215 : vector<8x1xf32> to vector<8x64xf32>
    %217 = arith.mulf %214, %216 : vector<8x64xf32>
    %cst_72 = arith.constant dense<0.000000e+00> : vector<64xf32>
    %218 = vector.multi_reduction <add>, %217, %cst_72 [0] : vector<8x64xf32> to vector<64xf32>
    %219 = vector.shape_cast %218 : vector<64xf32> to vector<1x64xf32>
    %220 = arith.mulf %98, %204 : vector<1x64xf32>
    %221 = arith.addf %219, %220 : vector<1x64xf32>
    %c5 = arith.constant 5 : index
    %c0_73 = arith.constant 0 : index
    %222 = vector.load %arg37[%c5, %c0_73] : memref<8x64xf32, #tpu.memory_space<vmem>>, vector<1x64xf32>
    tpu.vector_store %arg37[%c5, %c0_73], %221 {strides = array<i32>} : memref<8x64xf32, #tpu.memory_space<vmem>>, vector<1x64xf32>,
    %223 = vector.extract_strided_slice %91 {offsets = [6, 0], sizes = [1, 64], strides = [1, 1]} : vector<8x64xf32> to vector<1x64xf32>
    %224 = vector.extract_strided_slice %66 {offsets = [6, 0], sizes = [1, 64], strides = [1, 1]} : vector<8x64xf32> to vector<1x64xf32>
    %225 = vector.broadcast %223 : vector<1x64xf32> to vector<8x64xf32>
    %226 = arith.mulf %225, %96 : vector<8x64xf32>
    %227 = math.exp %226 : vector<8x64xf32>
    %228 = arith.mulf %227, %214 : vector<8x64xf32>
    %229 = vector.extract_strided_slice %99 {offsets = [0, 6], sizes = [8, 1], strides = [1, 1]} : vector<8x8xf32> to vector<8x1xf32>
    %230 = arith.mulf %223, %224 : vector<1x64xf32>
    %231 = vector.broadcast %229 : vector<8x1xf32> to vector<8x64xf32>
    %232 = vector.broadcast %230 : vector<1x64xf32> to vector<8x64xf32>
    %233 = arith.mulf %231, %232 : vector<8x64xf32>
    %234 = arith.addf %228, %233 : vector<8x64xf32>
    %235 = vector.extract_strided_slice %100 {offsets = [0, 6], sizes = [8, 1], strides = [1, 1]} : vector<8x8xf32> to vector<8x1xf32>
    %236 = vector.broadcast %235 : vector<8x1xf32> to vector<8x64xf32>
    %237 = arith.mulf %234, %236 : vector<8x64xf32>
    %cst_74 = arith.constant dense<0.000000e+00> : vector<64xf32>
    %238 = vector.multi_reduction <add>, %237, %cst_74 [0] : vector<8x64xf32> to vector<64xf32>
    %239 = vector.shape_cast %238 : vector<64xf32> to vector<1x64xf32>
    %240 = arith.mulf %98, %224 : vector<1x64xf32>
    %241 = arith.addf %239, %240 : vector<1x64xf32>
    %c6 = arith.constant 6 : index
    %c0_75 = arith.constant 0 : index
    %242 = vector.load %arg37[%c6, %c0_75] : memref<8x64xf32, #tpu.memory_space<vmem>>, vector<1x64xf32>
    tpu.vector_store %arg37[%c6, %c0_75], %241 {strides = array<i32>} : memref<8x64xf32, #tpu.memory_space<vmem>>, vector<1x64xf32>,
    %243 = vector.extract_strided_slice %91 {offsets = [7, 0], sizes = [1, 64], strides = [1, 1]} : vector<8x64xf32> to vector<1x64xf32>
    %244 = vector.extract_strided_slice %66 {offsets = [7, 0], sizes = [1, 64], strides = [1, 1]} : vector<8x64xf32> to vector<1x64xf32>
    %245 = vector.broadcast %243 : vector<1x64xf32> to vector<8x64xf32>
    %246 = arith.mulf %245, %96 : vector<8x64xf32>
    %247 = math.exp %246 : vector<8x64xf32>
    %248 = arith.mulf %247, %234 : vector<8x64xf32>
    %249 = vector.extract_strided_slice %99 {offsets = [0, 7], sizes = [8, 1], strides = [1, 1]} : vector<8x8xf32> to vector<8x1xf32>
    %250 = arith.mulf %243, %244 : vector<1x64xf32>
    %251 = vector.broadcast %249 : vector<8x1xf32> to vector<8x64xf32>
    %252 = vector.broadcast %250 : vector<1x64xf32> to vector<8x64xf32>
    %253 = arith.mulf %251, %252 : vector<8x64xf32>
    %254 = arith.addf %248, %253 : vector<8x64xf32>
    %255 = vector.extract_strided_slice %100 {offsets = [0, 7], sizes = [8, 1], strides = [1, 1]} : vector<8x8xf32> to vector<8x1xf32>
    %256 = vector.broadcast %255 : vector<8x1xf32> to vector<8x64xf32>
    %257 = arith.mulf %254, %256 : vector<8x64xf32>
    %cst_76 = arith.constant dense<0.000000e+00> : vector<64xf32>
    %258 = vector.multi_reduction <add>, %257, %cst_76 [0] : vector<8x64xf32> to vector<64xf32>
    %259 = vector.shape_cast %258 : vector<64xf32> to vector<1x64xf32>
    %260 = arith.mulf %98, %244 : vector<1x64xf32>
    %261 = arith.addf %259, %260 : vector<1x64xf32>
    %c7 = arith.constant 7 : index
    %c0_77 = arith.constant 0 : index
    %262 = vector.load %arg37[%c7, %c0_77] : memref<8x64xf32, #tpu.memory_space<vmem>>, vector<1x64xf32>
    tpu.vector_store %arg37[%c7, %c0_77], %261 {strides = array<i32>} : memref<8x64xf32, #tpu.memory_space<vmem>>, vector<1x64xf32>,
    %c0_78 = arith.constant 0 : index
    %c0_79 = arith.constant 0 : index
    %263 = vector.load %arg37[%c0_78, %c0_79] : memref<8x64xf32, #tpu.memory_space<vmem>>, vector<8x64xf32>
    %cst_80 = arith.constant 0.000000e+00 : f32
    %264 = vector.broadcast %cst_80 : f32 to vector<8x64xf32>
    %265 = arith.subf %264, %28 : vector<8x64xf32>
    %266 = math.exp %265 : vector<8x64xf32>
    %cst_81 = arith.constant 1.000000e+00 : f32
    %267 = vector.broadcast %cst_81 : f32 to vector<8x64xf32>
    %268 = arith.addf %267, %266 : vector<8x64xf32>
    %cst_82 = arith.constant 1.000000e+00 : f32
    %269 = vector.broadcast %cst_82 : f32 to vector<8x64xf32>
    %270 = arith.divf %269, %268 : vector<8x64xf32>
    %271 = arith.mulf %28, %270 : vector<8x64xf32>
    %272 = arith.mulf %263, %271 : vector<8x64xf32>
    %c0_83 = arith.constant 0 : index
    %c0_84 = arith.constant 0 : index
    %c0_85 = arith.constant 0 : index
    %273 = vector.load %arg16[%c0_83, %c0_84, %c0_85] : memref<2x64x32xbf16, #tpu.memory_space<vmem>>, vector<1x64x32xbf16>
    %274 = vector.shape_cast %273 : vector<1x64x32xbf16> to vector<64x32xbf16>
    %275 = arith.truncf %272 : vector<8x64xf32> to vector<8x64xbf16>
    %cst_86 = arith.constant dense<0.000000e+00> : vector<8x32xf32>
    %276 = tpu.matmul %275, %274, %cst_86 {dimension_numbers = #tpu.dot_dimension_numbers<[1], [0], [0], [1], [0, 0, 1, 1], [], []>} : vector<8x64xbf16>, vector<64x32xbf16>, vector<8x32xf32> -> vector<8x32xf32>
    %277 = arith.addf %8, %276 : vector<8x32xf32>
    %c1_87 = arith.constant 1 : index
    %c0_88 = arith.constant 0 : index
    %c0_89 = arith.constant 0 : index
    %278 = vector.load %arg7[%c1_87, %c0_88, %c0_89] : memref<2x1x32xf32, #tpu.memory_space<vmem>>, vector<1x1x32xf32>
    %279 = vector.shape_cast %278 : vector<1x1x32xf32> to vector<1x32xf32>
    %280 = arith.mulf %277, %277 : vector<8x32xf32>
    %cst_90 = arith.constant dense<0.000000e+00> : vector<8xf32>
    %281 = vector.multi_reduction <add>, %280, %cst_90 [1] : vector<8x32xf32> to vector<8xf32>
    %282 = vector.shape_cast %281 : vector<8xf32> to vector<8x1xf32>
    %cst_91 = arith.constant 3.200000e+01 : f32
    %283 = vector.broadcast %cst_91 : f32 to vector<8x1xf32>
    %284 = arith.divf %282, %283 : vector<8x1xf32>
    %cst_92 = arith.constant 9.99999974E-6 : f32
    %285 = vector.broadcast %cst_92 : f32 to vector<8x1xf32>
    %286 = arith.addf %284, %285 : vector<8x1xf32>
    %287 = math.rsqrt %286 : vector<8x1xf32>
    %288 = vector.broadcast %287 : vector<8x1xf32> to vector<8x32xf32>
    %289 = arith.mulf %277, %288 : vector<8x32xf32>
    %290 = vector.broadcast %279 : vector<1x32xf32> to vector<8x32xf32>
    %291 = arith.mulf %289, %290 : vector<8x32xf32>
    %c1_93 = arith.constant 1 : index
    %c0_94 = arith.constant 0 : index
    %c0_95 = arith.constant 0 : index
    %292 = vector.load %arg8[%c1_93, %c0_94, %c0_95] : memref<2x32x128xbf16, #tpu.memory_space<vmem>>, vector<1x32x128xbf16>
    %293 = vector.shape_cast %292 : vector<1x32x128xbf16> to vector<32x128xbf16>
    %294 = arith.truncf %291 : vector<8x32xf32> to vector<8x32xbf16>
    %cst_96 = arith.constant dense<0.000000e+00> : vector<8x128xf32>
    %295 = tpu.matmul %294, %293, %cst_96 {dimension_numbers = #tpu.dot_dimension_numbers<[1], [0], [0], [1], [0, 0, 1, 1], [], []>} : vector<8x32xbf16>, vector<32x128xbf16>, vector<8x128xf32> -> vector<8x128xf32>
    %296 = vector.extract_strided_slice %295 {offsets = [0, 0], sizes = [8, 64], strides = [1, 1]} : vector<8x128xf32> to vector<8x64xf32>
    %297 = vector.extract_strided_slice %295 {offsets = [0, 64], sizes = [8, 64], strides = [1, 1]} : vector<8x128xf32> to vector<8x64xf32>
    %c1_97 = arith.constant 1 : index
    %c0_98 = arith.constant 0 : index
    %c0_99 = arith.constant 0 : index
    %298 = vector.load %arg9[%c1_97, %c0_98, %c0_99] : memref<2x4x64xf32, #tpu.memory_space<vmem>>, vector<1x4x64xf32>
    %299 = vector.shape_cast %298 : vector<1x4x64xf32> to vector<4x64xf32>
    %300 = vector.extract_strided_slice %299 {offsets = [3, 0], sizes = [1, 64], strides = [1, 1]} : vector<4x64xf32> to vector<1x64xf32>
    %301 = vector.broadcast %300 : vector<1x64xf32> to vector<8x64xf32>
    %302 = arith.mulf %296, %301 : vector<8x64xf32>
    %c1_100 = arith.constant 1 : index
    %c0_101 = arith.constant 0 : index
    %c0_102 = arith.constant 0 : index
    %303 = vector.load %arg4[%c1_100, %c0_101, %c0_102] : memref<4x8x8xf32, #tpu.memory_space<vmem>>, vector<1x8x8xf32>
    %304 = vector.shape_cast %303 : vector<1x8x8xf32> to vector<8x8xf32>
    %cst_103 = arith.constant dense<0.000000e+00> : vector<8x64xf32>
    %305 = tpu.matmul %304, %296, %cst_103 {dimension_numbers = #tpu.dot_dimension_numbers<[1], [0], [0], [1], [0, 0, 1, 1], [], []>} : vector<8x8xf32>, vector<8x64xf32>, vector<8x64xf32> -> vector<8x64xf32>
    %306 = vector.extract_strided_slice %299 {offsets = [2, 0], sizes = [1, 64], strides = [1, 1]} : vector<4x64xf32> to vector<1x64xf32>
    %307 = vector.broadcast %306 : vector<1x64xf32> to vector<8x64xf32>
    %308 = arith.mulf %305, %307 : vector<8x64xf32>
    %309 = arith.addf %302, %308 : vector<8x64xf32>
    %c2_104 = arith.constant 2 : index
    %c0_105 = arith.constant 0 : index
    %c0_106 = arith.constant 0 : index
    %310 = vector.load %arg4[%c2_104, %c0_105, %c0_106] : memref<4x8x8xf32, #tpu.memory_space<vmem>>, vector<1x8x8xf32>
    %311 = vector.shape_cast %310 : vector<1x8x8xf32> to vector<8x8xf32>
    %cst_107 = arith.constant dense<0.000000e+00> : vector<8x64xf32>
    %312 = tpu.matmul %311, %296, %cst_107 {dimension_numbers = #tpu.dot_dimension_numbers<[1], [0], [0], [1], [0, 0, 1, 1], [], []>} : vector<8x8xf32>, vector<8x64xf32>, vector<8x64xf32> -> vector<8x64xf32>
    %313 = vector.extract_strided_slice %299 {offsets = [1, 0], sizes = [1, 64], strides = [1, 1]} : vector<4x64xf32> to vector<1x64xf32>
    %314 = vector.broadcast %313 : vector<1x64xf32> to vector<8x64xf32>
    %315 = arith.mulf %312, %314 : vector<8x64xf32>
    %316 = arith.addf %309, %315 : vector<8x64xf32>
    %c3_108 = arith.constant 3 : index
    %c0_109 = arith.constant 0 : index
    %c0_110 = arith.constant 0 : index
    %317 = vector.load %arg4[%c3_108, %c0_109, %c0_110] : memref<4x8x8xf32, #tpu.memory_space<vmem>>, vector<1x8x8xf32>
    %318 = vector.shape_cast %317 : vector<1x8x8xf32> to vector<8x8xf32>
    %cst_111 = arith.constant dense<0.000000e+00> : vector<8x64xf32>
    %319 = tpu.matmul %318, %296, %cst_111 {dimension_numbers = #tpu.dot_dimension_numbers<[1], [0], [0], [1], [0, 0, 1, 1], [], []>} : vector<8x8xf32>, vector<8x64xf32>, vector<8x64xf32> -> vector<8x64xf32>
    %320 = vector.extract_strided_slice %299 {offsets = [0, 0], sizes = [1, 64], strides = [1, 1]} : vector<4x64xf32> to vector<1x64xf32>
    %321 = vector.broadcast %320 : vector<1x64xf32> to vector<8x64xf32>
    %322 = arith.mulf %319, %321 : vector<8x64xf32>
    %323 = arith.addf %316, %322 : vector<8x64xf32>
    %c1_112 = arith.constant 1 : index
    %c0_113 = arith.constant 0 : index
    %c0_114 = arith.constant 0 : index
    %324 = vector.load %arg10[%c1_112, %c0_113, %c0_114] : memref<2x1x64xf32, #tpu.memory_space<vmem>>, vector<1x1x64xf32>
    %325 = vector.shape_cast %324 : vector<1x1x64xf32> to vector<1x64xf32>
    %326 = vector.broadcast %325 : vector<1x64xf32> to vector<8x64xf32>
    %327 = arith.addf %323, %326 : vector<8x64xf32>
    %cst_115 = arith.constant 0.000000e+00 : f32
    %328 = vector.broadcast %cst_115 : f32 to vector<8x64xf32>
    %329 = arith.subf %328, %327 : vector<8x64xf32>
    %330 = math.exp %329 : vector<8x64xf32>
    %cst_116 = arith.constant 1.000000e+00 : f32
    %331 = vector.broadcast %cst_116 : f32 to vector<8x64xf32>
    %332 = arith.addf %331, %330 : vector<8x64xf32>
    %cst_117 = arith.constant 1.000000e+00 : f32
    %333 = vector.broadcast %cst_117 : f32 to vector<8x64xf32>
    %334 = arith.divf %333, %332 : vector<8x64xf32>
    %335 = arith.mulf %327, %334 : vector<8x64xf32>
    %c1_118 = arith.constant 1 : index
    %c0_119 = arith.constant 0 : index
    %c0_120 = arith.constant 0 : index
    %336 = vector.load %arg11[%c1_118, %c0_119, %c0_120] : memref<2x64x18xbf16, #tpu.memory_space<vmem>>, vector<1x64x18xbf16>
    %337 = vector.shape_cast %336 : vector<1x64x18xbf16> to vector<64x18xbf16>
    %338 = arith.truncf %335 : vector<8x64xf32> to vector<8x64xbf16>
    %cst_121 = arith.constant dense<0.000000e+00> : vector<8x18xf32>
    %339 = tpu.matmul %338, %337, %cst_121 {dimension_numbers = #tpu.dot_dimension_numbers<[1], [0], [0], [1], [0, 0, 1, 1], [], []>} : vector<8x64xbf16>, vector<64x18xbf16>, vector<8x18xf32> -> vector<8x18xf32>
    %340 = vector.extract_strided_slice %339 {offsets = [0, 0], sizes = [8, 2], strides = [1, 1]} : vector<8x18xf32> to vector<8x2xf32>
    %341 = vector.extract_strided_slice %339 {offsets = [0, 2], sizes = [8, 8], strides = [1, 1]} : vector<8x18xf32> to vector<8x8xf32>
    %342 = vector.extract_strided_slice %339 {offsets = [0, 10], sizes = [8, 8], strides = [1, 1]} : vector<8x18xf32> to vector<8x8xf32>
    %c1_122 = arith.constant 1 : index
    %c0_123 = arith.constant 0 : index
    %c0_124 = arith.constant 0 : index
    %343 = vector.load %arg12[%c1_122, %c0_123, %c0_124] : memref<2x2x64xbf16, #tpu.memory_space<vmem>>, vector<1x2x64xbf16>
    %344 = vector.shape_cast %343 : vector<1x2x64xbf16> to vector<2x64xbf16>
    %345 = arith.truncf %340 : vector<8x2xf32> to vector<8x2xbf16>
    %cst_125 = arith.constant dense<0.000000e+00> : vector<8x64xf32>
    %346 = tpu.matmul %345, %344, %cst_125 {dimension_numbers = #tpu.dot_dimension_numbers<[1], [0], [0], [1], [0, 0, 1, 1], [], []>} : vector<8x2xbf16>, vector<2x64xbf16>, vector<8x64xf32> -> vector<8x64xf32>
    %c1_126 = arith.constant 1 : index
    %c0_127 = arith.constant 0 : index
    %c0_128 = arith.constant 0 : index
    %347 = vector.load %arg13[%c1_126, %c0_127, %c0_128] : memref<2x1x64xf32, #tpu.memory_space<vmem>>, vector<1x1x64xf32>
    %348 = vector.shape_cast %347 : vector<1x1x64xf32> to vector<1x64xf32>
    %349 = vector.broadcast %348 : vector<1x64xf32> to vector<8x64xf32>
    %350 = arith.addf %346, %349 : vector<8x64xf32>
    %cst_129 = arith.constant 0.000000e+00 : f32
    %351 = vector.broadcast %cst_129 : f32 to vector<8x64xf32>
    %352 = arith.maximumf %350, %351 : vector<8x64xf32>
    %353 = math.absf %350 : vector<8x64xf32>
    %cst_130 = arith.constant 0.000000e+00 : f32
    %354 = vector.broadcast %cst_130 : f32 to vector<8x64xf32>
    %355 = arith.subf %354, %353 : vector<8x64xf32>
    %356 = math.exp %355 : vector<8x64xf32>
    %cst_131 = arith.constant 1.000000e+00 : f32
    %357 = vector.broadcast %cst_131 : f32 to vector<8x64xf32>
    %358 = arith.addf %357, %356 : vector<8x64xf32>
    %359 = math.log %358 : vector<8x64xf32>
    %360 = arith.addf %352, %359 : vector<8x64xf32>
    %c1_132 = arith.constant 1 : index
    %c0_133 = arith.constant 0 : index
    %c0_134 = arith.constant 0 : index
    %361 = vector.load %arg14[%c1_132, %c0_133, %c0_134] : memref<2x8x64xf32, #tpu.memory_space<vmem>>, vector<1x8x64xf32>
    %362 = vector.shape_cast %361 : vector<1x8x64xf32> to vector<8x64xf32>
    %363 = math.exp %362 : vector<8x64xf32>
    %cst_135 = arith.constant 0.000000e+00 : f32
    %364 = vector.broadcast %cst_135 : f32 to vector<8x64xf32>
    %365 = arith.subf %364, %363 : vector<8x64xf32>
    %c1_136 = arith.constant 1 : index
    %c0_137 = arith.constant 0 : index
    %c0_138 = arith.constant 0 : index
    %366 = vector.load %arg15[%c1_136, %c0_137, %c0_138] : memref<2x1x64xf32, #tpu.memory_space<vmem>>, vector<1x1x64xf32>
    %367 = vector.shape_cast %366 : vector<1x1x64xf32> to vector<1x64xf32>
    %368 = tpu.transpose %341, [1, 0] : vector<8x8xf32> -> vector<8x8xf32>
    %369 = tpu.transpose %342, [1, 0] : vector<8x8xf32> -> vector<8x8xf32>
    %cst_139 = arith.constant 0.000000e+00 : f32
    %370 = vector.broadcast %cst_139 : f32 to vector<8x64xf32>
    %371 = vector.extract_strided_slice %360 {offsets = [0, 0], sizes = [1, 64], strides = [1, 1]} : vector<8x64xf32> to vector<1x64xf32>
    %372 = vector.extract_strided_slice %335 {offsets = [0, 0], sizes = [1, 64], strides = [1, 1]} : vector<8x64xf32> to vector<1x64xf32>
    %373 = vector.broadcast %371 : vector<1x64xf32> to vector<8x64xf32>
    %374 = arith.mulf %373, %365 : vector<8x64xf32>
    %375 = math.exp %374 : vector<8x64xf32>
    %376 = arith.mulf %375, %370 : vector<8x64xf32>
    %377 = vector.extract_strided_slice %368 {offsets = [0, 0], sizes = [8, 1], strides = [1, 1]} : vector<8x8xf32> to vector<8x1xf32>
    %378 = arith.mulf %371, %372 : vector<1x64xf32>
    %379 = vector.broadcast %377 : vector<8x1xf32> to vector<8x64xf32>
    %380 = vector.broadcast %378 : vector<1x64xf32> to vector<8x64xf32>
    %381 = arith.mulf %379, %380 : vector<8x64xf32>
    %382 = arith.addf %376, %381 : vector<8x64xf32>
    %383 = vector.extract_strided_slice %369 {offsets = [0, 0], sizes = [8, 1], strides = [1, 1]} : vector<8x8xf32> to vector<8x1xf32>
    %384 = vector.broadcast %383 : vector<8x1xf32> to vector<8x64xf32>
    %385 = arith.mulf %382, %384 : vector<8x64xf32>
    %cst_140 = arith.constant dense<0.000000e+00> : vector<64xf32>
    %386 = vector.multi_reduction <add>, %385, %cst_140 [0] : vector<8x64xf32> to vector<64xf32>
    %387 = vector.shape_cast %386 : vector<64xf32> to vector<1x64xf32>
    %388 = arith.mulf %367, %372 : vector<1x64xf32>
    %389 = arith.addf %387, %388 : vector<1x64xf32>
    %c0_141 = arith.constant 0 : index
    %c0_142 = arith.constant 0 : index
    %390 = vector.load %arg37[%c0_141, %c0_142] : memref<8x64xf32, #tpu.memory_space<vmem>>, vector<1x64xf32>
    tpu.vector_store %arg37[%c0_141, %c0_142], %389 {strides = array<i32>} : memref<8x64xf32, #tpu.memory_space<vmem>>, vector<1x64xf32>,
    %391 = vector.extract_strided_slice %360 {offsets = [1, 0], sizes = [1, 64], strides = [1, 1]} : vector<8x64xf32> to vector<1x64xf32>
    %392 = vector.extract_strided_slice %335 {offsets = [1, 0], sizes = [1, 64], strides = [1, 1]} : vector<8x64xf32> to vector<1x64xf32>
    %393 = vector.broadcast %391 : vector<1x64xf32> to vector<8x64xf32>
    %394 = arith.mulf %393, %365 : vector<8x64xf32>
    %395 = math.exp %394 : vector<8x64xf32>
    %396 = arith.mulf %395, %382 : vector<8x64xf32>
    %397 = vector.extract_strided_slice %368 {offsets = [0, 1], sizes = [8, 1], strides = [1, 1]} : vector<8x8xf32> to vector<8x1xf32>
    %398 = arith.mulf %391, %392 : vector<1x64xf32>
    %399 = vector.broadcast %397 : vector<8x1xf32> to vector<8x64xf32>
    %400 = vector.broadcast %398 : vector<1x64xf32> to vector<8x64xf32>
    %401 = arith.mulf %399, %400 : vector<8x64xf32>
    %402 = arith.addf %396, %401 : vector<8x64xf32>
    %403 = vector.extract_strided_slice %369 {offsets = [0, 1], sizes = [8, 1], strides = [1, 1]} : vector<8x8xf32> to vector<8x1xf32>
    %404 = vector.broadcast %403 : vector<8x1xf32> to vector<8x64xf32>
    %405 = arith.mulf %402, %404 : vector<8x64xf32>
    %cst_143 = arith.constant dense<0.000000e+00> : vector<64xf32>
    %406 = vector.multi_reduction <add>, %405, %cst_143 [0] : vector<8x64xf32> to vector<64xf32>
    %407 = vector.shape_cast %406 : vector<64xf32> to vector<1x64xf32>
    %408 = arith.mulf %367, %392 : vector<1x64xf32>
    %409 = arith.addf %407, %408 : vector<1x64xf32>
    %c1_144 = arith.constant 1 : index
    %c0_145 = arith.constant 0 : index
    %410 = vector.load %arg37[%c1_144, %c0_145] : memref<8x64xf32, #tpu.memory_space<vmem>>, vector<1x64xf32>
    tpu.vector_store %arg37[%c1_144, %c0_145], %409 {strides = array<i32>} : memref<8x64xf32, #tpu.memory_space<vmem>>, vector<1x64xf32>,
    %411 = vector.extract_strided_slice %360 {offsets = [2, 0], sizes = [1, 64], strides = [1, 1]} : vector<8x64xf32> to vector<1x64xf32>
    %412 = vector.extract_strided_slice %335 {offsets = [2, 0], sizes = [1, 64], strides = [1, 1]} : vector<8x64xf32> to vector<1x64xf32>
    %413 = vector.broadcast %411 : vector<1x64xf32> to vector<8x64xf32>
    %414 = arith.mulf %413, %365 : vector<8x64xf32>
    %415 = math.exp %414 : vector<8x64xf32>
    %416 = arith.mulf %415, %402 : vector<8x64xf32>
    %417 = vector.extract_strided_slice %368 {offsets = [0, 2], sizes = [8, 1], strides = [1, 1]} : vector<8x8xf32> to vector<8x1xf32>
    %418 = arith.mulf %411, %412 : vector<1x64xf32>
    %419 = vector.broadcast %417 : vector<8x1xf32> to vector<8x64xf32>
    %420 = vector.broadcast %418 : vector<1x64xf32> to vector<8x64xf32>
    %421 = arith.mulf %419, %420 : vector<8x64xf32>
    %422 = arith.addf %416, %421 : vector<8x64xf32>
    %423 = vector.extract_strided_slice %369 {offsets = [0, 2], sizes = [8, 1], strides = [1, 1]} : vector<8x8xf32> to vector<8x1xf32>
    %424 = vector.broadcast %423 : vector<8x1xf32> to vector<8x64xf32>
    %425 = arith.mulf %422, %424 : vector<8x64xf32>
    %cst_146 = arith.constant dense<0.000000e+00> : vector<64xf32>
    %426 = vector.multi_reduction <add>, %425, %cst_146 [0] : vector<8x64xf32> to vector<64xf32>
    %427 = vector.shape_cast %426 : vector<64xf32> to vector<1x64xf32>
    %428 = arith.mulf %367, %412 : vector<1x64xf32>
    %429 = arith.addf %427, %428 : vector<1x64xf32>
    %c2_147 = arith.constant 2 : index
    %c0_148 = arith.constant 0 : index
    %430 = vector.load %arg37[%c2_147, %c0_148] : memref<8x64xf32, #tpu.memory_space<vmem>>, vector<1x64xf32>
    tpu.vector_store %arg37[%c2_147, %c0_148], %429 {strides = array<i32>} : memref<8x64xf32, #tpu.memory_space<vmem>>, vector<1x64xf32>,
    %431 = vector.extract_strided_slice %360 {offsets = [3, 0], sizes = [1, 64], strides = [1, 1]} : vector<8x64xf32> to vector<1x64xf32>
    %432 = vector.extract_strided_slice %335 {offsets = [3, 0], sizes = [1, 64], strides = [1, 1]} : vector<8x64xf32> to vector<1x64xf32>
    %433 = vector.broadcast %431 : vector<1x64xf32> to vector<8x64xf32>
    %434 = arith.mulf %433, %365 : vector<8x64xf32>
    %435 = math.exp %434 : vector<8x64xf32>
    %436 = arith.mulf %435, %422 : vector<8x64xf32>
    %437 = vector.extract_strided_slice %368 {offsets = [0, 3], sizes = [8, 1], strides = [1, 1]} : vector<8x8xf32> to vector<8x1xf32>
    %438 = arith.mulf %431, %432 : vector<1x64xf32>
    %439 = vector.broadcast %437 : vector<8x1xf32> to vector<8x64xf32>
    %440 = vector.broadcast %438 : vector<1x64xf32> to vector<8x64xf32>
    %441 = arith.mulf %439, %440 : vector<8x64xf32>
    %442 = arith.addf %436, %441 : vector<8x64xf32>
    %443 = vector.extract_strided_slice %369 {offsets = [0, 3], sizes = [8, 1], strides = [1, 1]} : vector<8x8xf32> to vector<8x1xf32>
    %444 = vector.broadcast %443 : vector<8x1xf32> to vector<8x64xf32>
    %445 = arith.mulf %442, %444 : vector<8x64xf32>
    %cst_149 = arith.constant dense<0.000000e+00> : vector<64xf32>
    %446 = vector.multi_reduction <add>, %445, %cst_149 [0] : vector<8x64xf32> to vector<64xf32>
    %447 = vector.shape_cast %446 : vector<64xf32> to vector<1x64xf32>
    %448 = arith.mulf %367, %432 : vector<1x64xf32>
    %449 = arith.addf %447, %448 : vector<1x64xf32>
    %c3_150 = arith.constant 3 : index
    %c0_151 = arith.constant 0 : index
    %450 = vector.load %arg37[%c3_150, %c0_151] : memref<8x64xf32, #tpu.memory_space<vmem>>, vector<1x64xf32>
    tpu.vector_store %arg37[%c3_150, %c0_151], %449 {strides = array<i32>} : memref<8x64xf32, #tpu.memory_space<vmem>>, vector<1x64xf32>,
    %cst_152 = arith.constant 0.000000e+00 : f32
    %451 = vector.broadcast %cst_152 : f32 to vector<8x64xf32>
    %452 = vector.extract_strided_slice %360 {offsets = [4, 0], sizes = [1, 64], strides = [1, 1]} : vector<8x64xf32> to vector<1x64xf32>
    %453 = vector.extract_strided_slice %335 {offsets = [4, 0], sizes = [1, 64], strides = [1, 1]} : vector<8x64xf32> to vector<1x64xf32>
    %454 = vector.broadcast %452 : vector<1x64xf32> to vector<8x64xf32>
    %455 = arith.mulf %454, %365 : vector<8x64xf32>
    %456 = math.exp %455 : vector<8x64xf32>
    %457 = arith.mulf %456, %451 : vector<8x64xf32>
    %458 = vector.extract_strided_slice %368 {offsets = [0, 4], sizes = [8, 1], strides = [1, 1]} : vector<8x8xf32> to vector<8x1xf32>
    %459 = arith.mulf %452, %453 : vector<1x64xf32>
    %460 = vector.broadcast %458 : vector<8x1xf32> to vector<8x64xf32>
    %461 = vector.broadcast %459 : vector<1x64xf32> to vector<8x64xf32>
    %462 = arith.mulf %460, %461 : vector<8x64xf32>
    %463 = arith.addf %457, %462 : vector<8x64xf32>
    %464 = vector.extract_strided_slice %369 {offsets = [0, 4], sizes = [8, 1], strides = [1, 1]} : vector<8x8xf32> to vector<8x1xf32>
    %465 = vector.broadcast %464 : vector<8x1xf32> to vector<8x64xf32>
    %466 = arith.mulf %463, %465 : vector<8x64xf32>
    %cst_153 = arith.constant dense<0.000000e+00> : vector<64xf32>
    %467 = vector.multi_reduction <add>, %466, %cst_153 [0] : vector<8x64xf32> to vector<64xf32>
    %468 = vector.shape_cast %467 : vector<64xf32> to vector<1x64xf32>
    %469 = arith.mulf %367, %453 : vector<1x64xf32>
    %470 = arith.addf %468, %469 : vector<1x64xf32>
    %c4_154 = arith.constant 4 : index
    %c0_155 = arith.constant 0 : index
    %471 = vector.load %arg37[%c4_154, %c0_155] : memref<8x64xf32, #tpu.memory_space<vmem>>, vector<1x64xf32>
    tpu.vector_store %arg37[%c4_154, %c0_155], %470 {strides = array<i32>} : memref<8x64xf32, #tpu.memory_space<vmem>>, vector<1x64xf32>,
    %472 = vector.extract_strided_slice %360 {offsets = [5, 0], sizes = [1, 64], strides = [1, 1]} : vector<8x64xf32> to vector<1x64xf32>
    %473 = vector.extract_strided_slice %335 {offsets = [5, 0], sizes = [1, 64], strides = [1, 1]} : vector<8x64xf32> to vector<1x64xf32>
    %474 = vector.broadcast %472 : vector<1x64xf32> to vector<8x64xf32>
    %475 = arith.mulf %474, %365 : vector<8x64xf32>
    %476 = math.exp %475 : vector<8x64xf32>
    %477 = arith.mulf %476, %463 : vector<8x64xf32>
    %478 = vector.extract_strided_slice %368 {offsets = [0, 5], sizes = [8, 1], strides = [1, 1]} : vector<8x8xf32> to vector<8x1xf32>
    %479 = arith.mulf %472, %473 : vector<1x64xf32>
    %480 = vector.broadcast %478 : vector<8x1xf32> to vector<8x64xf32>
    %481 = vector.broadcast %479 : vector<1x64xf32> to vector<8x64xf32>
    %482 = arith.mulf %480, %481 : vector<8x64xf32>
    %483 = arith.addf %477, %482 : vector<8x64xf32>
    %484 = vector.extract_strided_slice %369 {offsets = [0, 5], sizes = [8, 1], strides = [1, 1]} : vector<8x8xf32> to vector<8x1xf32>
    %485 = vector.broadcast %484 : vector<8x1xf32> to vector<8x64xf32>
    %486 = arith.mulf %483, %485 : vector<8x64xf32>
    %cst_156 = arith.constant dense<0.000000e+00> : vector<64xf32>
    %487 = vector.multi_reduction <add>, %486, %cst_156 [0] : vector<8x64xf32> to vector<64xf32>
    %488 = vector.shape_cast %487 : vector<64xf32> to vector<1x64xf32>
    %489 = arith.mulf %367, %473 : vector<1x64xf32>
    %490 = arith.addf %488, %489 : vector<1x64xf32>
    %c5_157 = arith.constant 5 : index
    %c0_158 = arith.constant 0 : index
    %491 = vector.load %arg37[%c5_157, %c0_158] : memref<8x64xf32, #tpu.memory_space<vmem>>, vector<1x64xf32>
    tpu.vector_store %arg37[%c5_157, %c0_158], %490 {strides = array<i32>} : memref<8x64xf32, #tpu.memory_space<vmem>>, vector<1x64xf32>,
    %492 = vector.extract_strided_slice %360 {offsets = [6, 0], sizes = [1, 64], strides = [1, 1]} : vector<8x64xf32> to vector<1x64xf32>
    %493 = vector.extract_strided_slice %335 {offsets = [6, 0], sizes = [1, 64], strides = [1, 1]} : vector<8x64xf32> to vector<1x64xf32>
    %494 = vector.broadcast %492 : vector<1x64xf32> to vector<8x64xf32>
    %495 = arith.mulf %494, %365 : vector<8x64xf32>
    %496 = math.exp %495 : vector<8x64xf32>
    %497 = arith.mulf %496, %483 : vector<8x64xf32>
    %498 = vector.extract_strided_slice %368 {offsets = [0, 6], sizes = [8, 1], strides = [1, 1]} : vector<8x8xf32> to vector<8x1xf32>
    %499 = arith.mulf %492, %493 : vector<1x64xf32>
    %500 = vector.broadcast %498 : vector<8x1xf32> to vector<8x64xf32>
    %501 = vector.broadcast %499 : vector<1x64xf32> to vector<8x64xf32>
    %502 = arith.mulf %500, %501 : vector<8x64xf32>
    %503 = arith.addf %497, %502 : vector<8x64xf32>
    %504 = vector.extract_strided_slice %369 {offsets = [0, 6], sizes = [8, 1], strides = [1, 1]} : vector<8x8xf32> to vector<8x1xf32>
    %505 = vector.broadcast %504 : vector<8x1xf32> to vector<8x64xf32>
    %506 = arith.mulf %503, %505 : vector<8x64xf32>
    %cst_159 = arith.constant dense<0.000000e+00> : vector<64xf32>
    %507 = vector.multi_reduction <add>, %506, %cst_159 [0] : vector<8x64xf32> to vector<64xf32>
    %508 = vector.shape_cast %507 : vector<64xf32> to vector<1x64xf32>
    %509 = arith.mulf %367, %493 : vector<1x64xf32>
    %510 = arith.addf %508, %509 : vector<1x64xf32>
    %c6_160 = arith.constant 6 : index
    %c0_161 = arith.constant 0 : index
    %511 = vector.load %arg37[%c6_160, %c0_161] : memref<8x64xf32, #tpu.memory_space<vmem>>, vector<1x64xf32>
    tpu.vector_store %arg37[%c6_160, %c0_161], %510 {strides = array<i32>} : memref<8x64xf32, #tpu.memory_space<vmem>>, vector<1x64xf32>,
    %512 = vector.extract_strided_slice %360 {offsets = [7, 0], sizes = [1, 64], strides = [1, 1]} : vector<8x64xf32> to vector<1x64xf32>
    %513 = vector.extract_strided_slice %335 {offsets = [7, 0], sizes = [1, 64], strides = [1, 1]} : vector<8x64xf32> to vector<1x64xf32>
    %514 = vector.broadcast %512 : vector<1x64xf32> to vector<8x64xf32>
    %515 = arith.mulf %514, %365 : vector<8x64xf32>
    %516 = math.exp %515 : vector<8x64xf32>
    %517 = arith.mulf %516, %503 : vector<8x64xf32>
    %518 = vector.extract_strided_slice %368 {offsets = [0, 7], sizes = [8, 1], strides = [1, 1]} : vector<8x8xf32> to vector<8x1xf32>
    %519 = arith.mulf %512, %513 : vector<1x64xf32>
    %520 = vector.broadcast %518 : vector<8x1xf32> to vector<8x64xf32>
    %521 = vector.broadcast %519 : vector<1x64xf32> to vector<8x64xf32>
    %522 = arith.mulf %520, %521 : vector<8x64xf32>
    %523 = arith.addf %517, %522 : vector<8x64xf32>
    %524 = vector.extract_strided_slice %369 {offsets = [0, 7], sizes = [8, 1], strides = [1, 1]} : vector<8x8xf32> to vector<8x1xf32>
    %525 = vector.broadcast %524 : vector<8x1xf32> to vector<8x64xf32>
    %526 = arith.mulf %523, %525 : vector<8x64xf32>
    %cst_162 = arith.constant dense<0.000000e+00> : vector<64xf32>
    %527 = vector.multi_reduction <add>, %526, %cst_162 [0] : vector<8x64xf32> to vector<64xf32>
    %528 = vector.shape_cast %527 : vector<64xf32> to vector<1x64xf32>
    %529 = arith.mulf %367, %513 : vector<1x64xf32>
    %530 = arith.addf %528, %529 : vector<1x64xf32>
    %c7_163 = arith.constant 7 : index
    %c0_164 = arith.constant 0 : index
    %531 = vector.load %arg37[%c7_163, %c0_164] : memref<8x64xf32, #tpu.memory_space<vmem>>, vector<1x64xf32>
    tpu.vector_store %arg37[%c7_163, %c0_164], %530 {strides = array<i32>} : memref<8x64xf32, #tpu.memory_space<vmem>>, vector<1x64xf32>,
    %c0_165 = arith.constant 0 : index
    %c0_166 = arith.constant 0 : index
    %532 = vector.load %arg37[%c0_165, %c0_166] : memref<8x64xf32, #tpu.memory_space<vmem>>, vector<8x64xf32>
    %cst_167 = arith.constant 0.000000e+00 : f32
    %533 = vector.broadcast %cst_167 : f32 to vector<8x64xf32>
    %534 = arith.subf %533, %297 : vector<8x64xf32>
    %535 = math.exp %534 : vector<8x64xf32>
    %cst_168 = arith.constant 1.000000e+00 : f32
    %536 = vector.broadcast %cst_168 : f32 to vector<8x64xf32>
    %537 = arith.addf %536, %535 : vector<8x64xf32>
    %cst_169 = arith.constant 1.000000e+00 : f32
    %538 = vector.broadcast %cst_169 : f32 to vector<8x64xf32>
    %539 = arith.divf %538, %537 : vector<8x64xf32>
    %540 = arith.mulf %297, %539 : vector<8x64xf32>
    %541 = arith.mulf %532, %540 : vector<8x64xf32>
    %c1_170 = arith.constant 1 : index
    %c0_171 = arith.constant 0 : index
    %c0_172 = arith.constant 0 : index
    %542 = vector.load %arg16[%c1_170, %c0_171, %c0_172] : memref<2x64x32xbf16, #tpu.memory_space<vmem>>, vector<1x64x32xbf16>
    %543 = vector.shape_cast %542 : vector<1x64x32xbf16> to vector<64x32xbf16>
    %544 = arith.truncf %541 : vector<8x64xf32> to vector<8x64xbf16>
    %cst_173 = arith.constant dense<0.000000e+00> : vector<8x32xf32>
    %545 = tpu.matmul %544, %543, %cst_173 {dimension_numbers = #tpu.dot_dimension_numbers<[1], [0], [0], [1], [0, 0, 1, 1], [], []>} : vector<8x64xbf16>, vector<64x32xbf16>, vector<8x32xf32> -> vector<8x32xf32>
    %546 = arith.addf %277, %545 : vector<8x32xf32>
    %c0_174 = arith.constant 0 : index
    %c0_175 = arith.constant 0 : index
    %547 = vector.load %arg17[%c0_174, %c0_175] : memref<1x32xf32, #tpu.memory_space<vmem>>, vector<1x32xf32>
    %548 = arith.mulf %546, %546 : vector<8x32xf32>
    %cst_176 = arith.constant dense<0.000000e+00> : vector<8xf32>
    %549 = vector.multi_reduction <add>, %548, %cst_176 [1] : vector<8x32xf32> to vector<8xf32>
    %550 = vector.shape_cast %549 : vector<8xf32> to vector<8x1xf32>
    %cst_177 = arith.constant 3.200000e+01 : f32
    %551 = vector.broadcast %cst_177 : f32 to vector<8x1xf32>
    %552 = arith.divf %550, %551 : vector<8x1xf32>
    %cst_178 = arith.constant 9.99999974E-6 : f32
    %553 = vector.broadcast %cst_178 : f32 to vector<8x1xf32>
    %554 = arith.addf %552, %553 : vector<8x1xf32>
    %555 = math.rsqrt %554 : vector<8x1xf32>
    %556 = vector.broadcast %555 : vector<8x1xf32> to vector<8x32xf32>
    %557 = arith.mulf %546, %556 : vector<8x32xf32>
    %558 = vector.broadcast %547 : vector<1x32xf32> to vector<8x32xf32>
    %559 = arith.mulf %557, %558 : vector<8x32xf32>
    %c0_179 = arith.constant 0 : index
    %c0_180 = arith.constant 0 : index
    %560 = vector.load %arg35[%c0_179, %c0_180] : memref<8x32xf32, #tpu.memory_space<vmem>>, vector<8x32xf32>
    tpu.vector_store %arg35[%c0_179, %c0_180], %559 {strides = array<i32>} : memref<8x32xf32, #tpu.memory_space<vmem>>, vector<8x32xf32>,
    %c0_181 = arith.constant 0 : index
    %c0_182 = arith.constant 0 : index
    %561 = vector.load %arg18[%c0_181, %c0_182] : memref<32x32xbf16, #tpu.memory_space<vmem>>, vector<32x32xbf16>
    %562 = arith.truncf %559 : vector<8x32xf32> to vector<8x32xbf16>
    %cst_183 = arith.constant dense<0.000000e+00> : vector<8x32xf32>
    %563 = tpu.matmul %562, %561, %cst_183 {dimension_numbers = #tpu.dot_dimension_numbers<[1], [0], [0], [1], [0, 0, 1, 1], [], []>} : vector<8x32xbf16>, vector<32x32xbf16>, vector<8x32xf32> -> vector<8x32xf32>
    %c0_184 = arith.constant 0 : index
    %c0_185 = arith.constant 0 : index
    %564 = vector.load %arg2[%c0_184, %c0_185] : memref<8x32xf32, #tpu.memory_space<vmem>>, vector<8x32xf32>
    %565 = arith.addf %563, %564 : vector<8x32xf32>
    %c0_186 = arith.constant 0 : index
    %c0_187 = arith.constant 0 : index
    %566 = vector.load %arg19[%c0_186, %c0_187] : memref<1x32xf32, #tpu.memory_space<vmem>>, vector<1x32xf32>
    %c0_188 = arith.constant 0 : index
    %c0_189 = arith.constant 0 : index
    %567 = vector.load %arg3[%c0_188, %c0_189] : memref<24x32xf32, #tpu.memory_space<vmem>>, vector<24x32xf32>
    %568 = vector.broadcast %566 : vector<1x32xf32> to vector<24x32xf32>
    %569 = arith.addf %568, %567 : vector<24x32xf32>
    %570 = vector.extract_strided_slice %565 {offsets = [0, 0], sizes = [4, 32], strides = [1, 1]} : vector<8x32xf32> to vector<4x32xf32>
    %c0_190 = arith.constant 0 : index
    %c0_191 = arith.constant 0 : index
    %571 = vector.load %arg38[%c0_190, %c0_191] : memref<32x32xf32, #tpu.memory_space<vmem>>, vector<4x32xf32>
    tpu.vector_store %arg38[%c0_190, %c0_191], %570 {strides = array<i32>} : memref<32x32xf32, #tpu.memory_space<vmem>>, vector<4x32xf32>,
    %572 = vector.extract_strided_slice %569 {offsets = [0, 0], sizes = [12, 32], strides = [1, 1]} : vector<24x32xf32> to vector<12x32xf32>
    %c4_192 = arith.constant 4 : index
    %c0_193 = arith.constant 0 : index
    %573 = vector.load %arg38[%c4_192, %c0_193] : memref<32x32xf32, #tpu.memory_space<vmem>>, vector<12x32xf32>
    tpu.vector_store %arg38[%c4_192, %c0_193], %572 {strides = array<i32>} : memref<32x32xf32, #tpu.memory_space<vmem>>, vector<12x32xf32>,
    %574 = vector.extract_strided_slice %565 {offsets = [4, 0], sizes = [4, 32], strides = [1, 1]} : vector<8x32xf32> to vector<4x32xf32>
    %c16 = arith.constant 16 : index
    %c0_194 = arith.constant 0 : index
    %575 = vector.load %arg38[%c16, %c0_194] : memref<32x32xf32, #tpu.memory_space<vmem>>, vector<4x32xf32>
    tpu.vector_store %arg38[%c16, %c0_194], %574 {strides = array<i32>} : memref<32x32xf32, #tpu.memory_space<vmem>>, vector<4x32xf32>,
    %576 = vector.extract_strided_slice %569 {offsets = [12, 0], sizes = [12, 32], strides = [1, 1]} : vector<24x32xf32> to vector<12x32xf32>
    %c20 = arith.constant 20 : index
    %c0_195 = arith.constant 0 : index
    %577 = vector.load %arg38[%c20, %c0_195] : memref<32x32xf32, #tpu.memory_space<vmem>>, vector<12x32xf32>
    tpu.vector_store %arg38[%c20, %c0_195], %576 {strides = array<i32>} : memref<32x32xf32, #tpu.memory_space<vmem>>, vector<12x32xf32>,
    %c0_196 = arith.constant 0 : index
    %c0_197 = arith.constant 0 : index
    %578 = vector.load %arg38[%c0_196, %c0_197] : memref<32x32xf32, #tpu.memory_space<vmem>>, vector<32x32xf32>
    %c0_198 = arith.constant 0 : index
    %c0_199 = arith.constant 0 : index
    %c0_200 = arith.constant 0 : index
    %579 = vector.load %arg20[%c0_198, %c0_199, %c0_200] : memref<2x1x32xf32, #tpu.memory_space<vmem>>, vector<1x1x32xf32>
    %580 = vector.shape_cast %579 : vector<1x1x32xf32> to vector<1x32xf32>
    %c0_201 = arith.constant 0 : index
    %c0_202 = arith.constant 0 : index
    %c0_203 = arith.constant 0 : index
    %581 = vector.load %arg21[%c0_201, %c0_202, %c0_203] : memref<2x1x32xf32, #tpu.memory_space<vmem>>, vector<1x1x32xf32>
    %582 = vector.shape_cast %581 : vector<1x1x32xf32> to vector<1x32xf32>
    %cst_204 = arith.constant dense<0.000000e+00> : vector<32xf32>
    %583 = vector.multi_reduction <add>, %578, %cst_204 [1] : vector<32x32xf32> to vector<32xf32>
    %584 = vector.shape_cast %583 : vector<32xf32> to vector<32x1xf32>
    %cst_205 = arith.constant 3.200000e+01 : f32
    %585 = vector.broadcast %cst_205 : f32 to vector<32x1xf32>
    %586 = arith.divf %584, %585 : vector<32x1xf32>
    %587 = vector.broadcast %586 : vector<32x1xf32> to vector<32x32xf32>
    %588 = arith.subf %578, %587 : vector<32x32xf32>
    %589 = arith.mulf %588, %588 : vector<32x32xf32>
    %cst_206 = arith.constant dense<0.000000e+00> : vector<32xf32>
    %590 = vector.multi_reduction <add>, %589, %cst_206 [1] : vector<32x32xf32> to vector<32xf32>
    %591 = vector.shape_cast %590 : vector<32xf32> to vector<32x1xf32>
    %cst_207 = arith.constant 3.200000e+01 : f32
    %592 = vector.broadcast %cst_207 : f32 to vector<32x1xf32>
    %593 = arith.divf %591, %592 : vector<32x1xf32>
    %594 = vector.broadcast %586 : vector<32x1xf32> to vector<32x32xf32>
    %595 = arith.subf %578, %594 : vector<32x32xf32>
    %cst_208 = arith.constant 9.99999974E-6 : f32
    %596 = vector.broadcast %cst_208 : f32 to vector<32x1xf32>
    %597 = arith.addf %593, %596 : vector<32x1xf32>
    %598 = math.rsqrt %597 : vector<32x1xf32>
    %599 = vector.broadcast %598 : vector<32x1xf32> to vector<32x32xf32>
    %600 = arith.mulf %595, %599 : vector<32x32xf32>
    %601 = vector.broadcast %580 : vector<1x32xf32> to vector<32x32xf32>
    %602 = arith.mulf %600, %601 : vector<32x32xf32>
    %603 = vector.broadcast %582 : vector<1x32xf32> to vector<32x32xf32>
    %604 = arith.addf %602, %603 : vector<32x32xf32>
    %c0_209 = arith.constant 0 : index
    %c0_210 = arith.constant 0 : index
    %c0_211 = arith.constant 0 : index
    %605 = vector.load %arg22[%c0_209, %c0_210, %c0_211] : memref<2x32x96xbf16, #tpu.memory_space<vmem>>, vector<1x32x96xbf16>
    %606 = vector.shape_cast %605 : vector<1x32x96xbf16> to vector<32x96xbf16>
    %607 = arith.truncf %604 : vector<32x32xf32> to vector<32x32xbf16>
    %cst_212 = arith.constant dense<0.000000e+00> : vector<32x96xf32>
    %608 = tpu.matmul %607, %606, %cst_212 {dimension_numbers = #tpu.dot_dimension_numbers<[1], [0], [0], [1], [0, 0, 1, 1], [], []>} : vector<32x32xbf16>, vector<32x96xbf16>, vector<32x96xf32> -> vector<32x96xf32>
    %609 = vector.extract_strided_slice %608 {offsets = [0, 0], sizes = [32, 32], strides = [1, 1]} : vector<32x96xf32> to vector<32x32xf32>
    %610 = vector.shape_cast %609 : vector<32x32xf32> to vector<2x16x32xf32>
    %611 = vector.extract_strided_slice %608 {offsets = [0, 32], sizes = [32, 32], strides = [1, 1]} : vector<32x96xf32> to vector<32x32xf32>
    %612 = vector.shape_cast %611 : vector<32x32xf32> to vector<2x16x32xf32>
    %613 = vector.extract_strided_slice %608 {offsets = [0, 64], sizes = [32, 32], strides = [1, 1]} : vector<32x96xf32> to vector<32x32xf32>
    %614 = vector.shape_cast %613 : vector<32x32xf32> to vector<2x16x32xf32>
    %c0_213 = arith.constant 0 : index
    %c0_214 = arith.constant 0 : index
    %c0_215 = arith.constant 0 : index
    %615 = vector.load %arg23[%c0_213, %c0_214, %c0_215] : memref<2x32x32xbf16, #tpu.memory_space<vmem>>, vector<1x32x32xbf16>
    %616 = vector.shape_cast %615 : vector<1x32x32xbf16> to vector<32x32xbf16>
    %617 = arith.extf %616 : vector<32x32xbf16> to vector<32x32xf32>
    %cst_216 = arith.constant 0.000000e+00 : f32
    %618 = vector.broadcast %cst_216 : f32 to vector<32x32xf32>
    %619 = vector.extract_strided_slice %610 {offsets = [0, 0, 0], sizes = [2, 16, 8], strides = [1, 1, 1]} : vector<2x16x32xf32> to vector<2x16x8xf32>
    %cst_217 = arith.constant 0.353553385 : f32
    %620 = vector.broadcast %cst_217 : f32 to vector<2x16x8xf32>
    %621 = arith.mulf %619, %620 : vector<2x16x8xf32>
    %622 = arith.truncf %621 : vector<2x16x8xf32> to vector<2x16x8xbf16>
    %623 = vector.extract_strided_slice %612 {offsets = [0, 0, 0], sizes = [2, 16, 8], strides = [1, 1, 1]} : vector<2x16x32xf32> to vector<2x16x8xf32>
    %624 = arith.truncf %623 : vector<2x16x8xf32> to vector<2x16x8xbf16>
    %625 = vector.extract_strided_slice %614 {offsets = [0, 0, 0], sizes = [2, 16, 8], strides = [1, 1, 1]} : vector<2x16x32xf32> to vector<2x16x8xf32>
    %626 = arith.truncf %625 : vector<2x16x8xf32> to vector<2x16x8xbf16>
    "tpu.trace_start"() <{level = 10 : i32, message = "bqd,bkd->bqk"}> : () -> ()
    %cst_218 = arith.constant dense<0.000000e+00> : vector<2x16x16xf32>
    %627 = tpu.matmul %622, %624, %cst_218 {dimension_numbers = #tpu.dot_dimension_numbers<[2], [2], [1], [1], [0, 0, 0, 1, 1, 1], [0], [0]>} : vector<2x16x8xbf16>, vector<2x16x8xbf16>, vector<2x16x16xf32> -> vector<2x16x16xf32>
    "tpu.trace_stop"() : () -> ()
    %cst_219 = arith.constant dense<0xFF800000> : vector<2x16xf32>
    %628 = vector.multi_reduction <maximumf>, %627, %cst_219 [2] : vector<2x16x16xf32> to vector<2x16xf32>
    %629 = vector.shape_cast %628 : vector<2x16xf32> to vector<2x16x1xf32>
    %630 = vector.broadcast %629 : vector<2x16x1xf32> to vector<2x16x16xf32>
    %631 = arith.subf %627, %630 : vector<2x16x16xf32>
    %632 = math.exp %631 : vector<2x16x16xf32>
    %cst_220 = arith.constant dense<0.000000e+00> : vector<2x16xf32>
    %633 = vector.multi_reduction <add>, %632, %cst_220 [2] : vector<2x16x16xf32> to vector<2x16xf32>
    %634 = vector.shape_cast %633 : vector<2x16xf32> to vector<2x16x1xf32>
    %635 = tpu.reciprocal %634 {approx = true} : vector<2x16x1xf32> -> vector<2x16x1xf32>
    %636 = vector.broadcast %635 : vector<2x16x1xf32> to vector<2x16x16xf32>
    %637 = arith.mulf %632, %636 : vector<2x16x16xf32>
    %638 = arith.truncf %637 : vector<2x16x16xf32> to vector<2x16x16xbf16>
    "tpu.trace_start"() <{level = 10 : i32, message = "bqk,bkd->bqd"}> : () -> ()
    %cst_221 = arith.constant dense<0.000000e+00> : vector<2x16x8xf32>
    %639 = tpu.matmul %638, %626, %cst_221 {dimension_numbers = #tpu.dot_dimension_numbers<[2], [1], [1], [2], [0, 0, 0, 1, 1, 2], [0], [0]>} : vector<2x16x16xbf16>, vector<2x16x8xbf16>, vector<2x16x8xf32> -> vector<2x16x8xf32>
    "tpu.trace_stop"() : () -> ()
    %640 = vector.shape_cast %639 : vector<2x16x8xf32> to vector<32x8xf32>
    %641 = vector.extract_strided_slice %617 {offsets = [0, 0], sizes = [8, 32], strides = [1, 1]} : vector<32x32xf32> to vector<8x32xf32>
    %642 = arith.truncf %640 : vector<32x8xf32> to vector<32x8xbf16>
    %643 = arith.truncf %641 : vector<8x32xf32> to vector<8x32xbf16>
    %cst_222 = arith.constant dense<0.000000e+00> : vector<32x32xf32>
    %644 = tpu.matmul %642, %643, %cst_222 {dimension_numbers = #tpu.dot_dimension_numbers<[1], [0], [0], [1], [0, 0, 1, 1], [], []>} : vector<32x8xbf16>, vector<8x32xbf16>, vector<32x32xf32> -> vector<32x32xf32>
    %645 = arith.addf %618, %644 : vector<32x32xf32>
    %646 = vector.extract_strided_slice %610 {offsets = [0, 0, 8], sizes = [2, 16, 8], strides = [1, 1, 1]} : vector<2x16x32xf32> to vector<2x16x8xf32>
    %cst_223 = arith.constant 0.353553385 : f32
    %647 = vector.broadcast %cst_223 : f32 to vector<2x16x8xf32>
    %648 = arith.mulf %646, %647 : vector<2x16x8xf32>
    %649 = arith.truncf %648 : vector<2x16x8xf32> to vector<2x16x8xbf16>
    %650 = vector.extract_strided_slice %612 {offsets = [0, 0, 8], sizes = [2, 16, 8], strides = [1, 1, 1]} : vector<2x16x32xf32> to vector<2x16x8xf32>
    %651 = arith.truncf %650 : vector<2x16x8xf32> to vector<2x16x8xbf16>
    %652 = vector.extract_strided_slice %614 {offsets = [0, 0, 8], sizes = [2, 16, 8], strides = [1, 1, 1]} : vector<2x16x32xf32> to vector<2x16x8xf32>
    %653 = arith.truncf %652 : vector<2x16x8xf32> to vector<2x16x8xbf16>
    "tpu.trace_start"() <{level = 10 : i32, message = "bqd,bkd->bqk"}> : () -> ()
    %cst_224 = arith.constant dense<0.000000e+00> : vector<2x16x16xf32>
    %654 = tpu.matmul %649, %651, %cst_224 {dimension_numbers = #tpu.dot_dimension_numbers<[2], [2], [1], [1], [0, 0, 0, 1, 1, 1], [0], [0]>} : vector<2x16x8xbf16>, vector<2x16x8xbf16>, vector<2x16x16xf32> -> vector<2x16x16xf32>
    "tpu.trace_stop"() : () -> ()
    %cst_225 = arith.constant dense<0xFF800000> : vector<2x16xf32>
    %655 = vector.multi_reduction <maximumf>, %654, %cst_225 [2] : vector<2x16x16xf32> to vector<2x16xf32>
    %656 = vector.shape_cast %655 : vector<2x16xf32> to vector<2x16x1xf32>
    %657 = vector.broadcast %656 : vector<2x16x1xf32> to vector<2x16x16xf32>
    %658 = arith.subf %654, %657 : vector<2x16x16xf32>
    %659 = math.exp %658 : vector<2x16x16xf32>
    %cst_226 = arith.constant dense<0.000000e+00> : vector<2x16xf32>
    %660 = vector.multi_reduction <add>, %659, %cst_226 [2] : vector<2x16x16xf32> to vector<2x16xf32>
    %661 = vector.shape_cast %660 : vector<2x16xf32> to vector<2x16x1xf32>
    %662 = tpu.reciprocal %661 {approx = true} : vector<2x16x1xf32> -> vector<2x16x1xf32>
    %663 = vector.broadcast %662 : vector<2x16x1xf32> to vector<2x16x16xf32>
    %664 = arith.mulf %659, %663 : vector<2x16x16xf32>
    %665 = arith.truncf %664 : vector<2x16x16xf32> to vector<2x16x16xbf16>
    "tpu.trace_start"() <{level = 10 : i32, message = "bqk,bkd->bqd"}> : () -> ()
    %cst_227 = arith.constant dense<0.000000e+00> : vector<2x16x8xf32>
    %666 = tpu.matmul %665, %653, %cst_227 {dimension_numbers = #tpu.dot_dimension_numbers<[2], [1], [1], [2], [0, 0, 0, 1, 1, 2], [0], [0]>} : vector<2x16x16xbf16>, vector<2x16x8xbf16>, vector<2x16x8xf32> -> vector<2x16x8xf32>
    "tpu.trace_stop"() : () -> ()
    %667 = vector.shape_cast %666 : vector<2x16x8xf32> to vector<32x8xf32>
    %668 = vector.extract_strided_slice %617 {offsets = [8, 0], sizes = [8, 32], strides = [1, 1]} : vector<32x32xf32> to vector<8x32xf32>
    %669 = arith.truncf %667 : vector<32x8xf32> to vector<32x8xbf16>
    %670 = arith.truncf %668 : vector<8x32xf32> to vector<8x32xbf16>
    %cst_228 = arith.constant dense<0.000000e+00> : vector<32x32xf32>
    %671 = tpu.matmul %669, %670, %cst_228 {dimension_numbers = #tpu.dot_dimension_numbers<[1], [0], [0], [1], [0, 0, 1, 1], [], []>} : vector<32x8xbf16>, vector<8x32xbf16>, vector<32x32xf32> -> vector<32x32xf32>
    %672 = arith.addf %645, %671 : vector<32x32xf32>
    %673 = vector.extract_strided_slice %610 {offsets = [0, 0, 16], sizes = [2, 16, 8], strides = [1, 1, 1]} : vector<2x16x32xf32> to vector<2x16x8xf32>
    %cst_229 = arith.constant 0.353553385 : f32
    %674 = vector.broadcast %cst_229 : f32 to vector<2x16x8xf32>
    %675 = arith.mulf %673, %674 : vector<2x16x8xf32>
    %676 = arith.truncf %675 : vector<2x16x8xf32> to vector<2x16x8xbf16>
    %677 = vector.extract_strided_slice %612 {offsets = [0, 0, 16], sizes = [2, 16, 8], strides = [1, 1, 1]} : vector<2x16x32xf32> to vector<2x16x8xf32>
    %678 = arith.truncf %677 : vector<2x16x8xf32> to vector<2x16x8xbf16>
    %679 = vector.extract_strided_slice %614 {offsets = [0, 0, 16], sizes = [2, 16, 8], strides = [1, 1, 1]} : vector<2x16x32xf32> to vector<2x16x8xf32>
    %680 = arith.truncf %679 : vector<2x16x8xf32> to vector<2x16x8xbf16>
    "tpu.trace_start"() <{level = 10 : i32, message = "bqd,bkd->bqk"}> : () -> ()
    %cst_230 = arith.constant dense<0.000000e+00> : vector<2x16x16xf32>
    %681 = tpu.matmul %676, %678, %cst_230 {dimension_numbers = #tpu.dot_dimension_numbers<[2], [2], [1], [1], [0, 0, 0, 1, 1, 1], [0], [0]>} : vector<2x16x8xbf16>, vector<2x16x8xbf16>, vector<2x16x16xf32> -> vector<2x16x16xf32>
    "tpu.trace_stop"() : () -> ()
    %cst_231 = arith.constant dense<0xFF800000> : vector<2x16xf32>
    %682 = vector.multi_reduction <maximumf>, %681, %cst_231 [2] : vector<2x16x16xf32> to vector<2x16xf32>
    %683 = vector.shape_cast %682 : vector<2x16xf32> to vector<2x16x1xf32>
    %684 = vector.broadcast %683 : vector<2x16x1xf32> to vector<2x16x16xf32>
    %685 = arith.subf %681, %684 : vector<2x16x16xf32>
    %686 = math.exp %685 : vector<2x16x16xf32>
    %cst_232 = arith.constant dense<0.000000e+00> : vector<2x16xf32>
    %687 = vector.multi_reduction <add>, %686, %cst_232 [2] : vector<2x16x16xf32> to vector<2x16xf32>
    %688 = vector.shape_cast %687 : vector<2x16xf32> to vector<2x16x1xf32>
    %689 = tpu.reciprocal %688 {approx = true} : vector<2x16x1xf32> -> vector<2x16x1xf32>
    %690 = vector.broadcast %689 : vector<2x16x1xf32> to vector<2x16x16xf32>
    %691 = arith.mulf %686, %690 : vector<2x16x16xf32>
    %692 = arith.truncf %691 : vector<2x16x16xf32> to vector<2x16x16xbf16>
    "tpu.trace_start"() <{level = 10 : i32, message = "bqk,bkd->bqd"}> : () -> ()
    %cst_233 = arith.constant dense<0.000000e+00> : vector<2x16x8xf32>
    %693 = tpu.matmul %692, %680, %cst_233 {dimension_numbers = #tpu.dot_dimension_numbers<[2], [1], [1], [2], [0, 0, 0, 1, 1, 2], [0], [0]>} : vector<2x16x16xbf16>, vector<2x16x8xbf16>, vector<2x16x8xf32> -> vector<2x16x8xf32>
    "tpu.trace_stop"() : () -> ()
    %694 = vector.shape_cast %693 : vector<2x16x8xf32> to vector<32x8xf32>
    %695 = vector.extract_strided_slice %617 {offsets = [16, 0], sizes = [8, 32], strides = [1, 1]} : vector<32x32xf32> to vector<8x32xf32>
    %696 = arith.truncf %694 : vector<32x8xf32> to vector<32x8xbf16>
    %697 = arith.truncf %695 : vector<8x32xf32> to vector<8x32xbf16>
    %cst_234 = arith.constant dense<0.000000e+00> : vector<32x32xf32>
    %698 = tpu.matmul %696, %697, %cst_234 {dimension_numbers = #tpu.dot_dimension_numbers<[1], [0], [0], [1], [0, 0, 1, 1], [], []>} : vector<32x8xbf16>, vector<8x32xbf16>, vector<32x32xf32> -> vector<32x32xf32>
    %699 = arith.addf %672, %698 : vector<32x32xf32>
    %700 = vector.extract_strided_slice %610 {offsets = [0, 0, 24], sizes = [2, 16, 8], strides = [1, 1, 1]} : vector<2x16x32xf32> to vector<2x16x8xf32>
    %cst_235 = arith.constant 0.353553385 : f32
    %701 = vector.broadcast %cst_235 : f32 to vector<2x16x8xf32>
    %702 = arith.mulf %700, %701 : vector<2x16x8xf32>
    %703 = arith.truncf %702 : vector<2x16x8xf32> to vector<2x16x8xbf16>
    %704 = vector.extract_strided_slice %612 {offsets = [0, 0, 24], sizes = [2, 16, 8], strides = [1, 1, 1]} : vector<2x16x32xf32> to vector<2x16x8xf32>
    %705 = arith.truncf %704 : vector<2x16x8xf32> to vector<2x16x8xbf16>
    %706 = vector.extract_strided_slice %614 {offsets = [0, 0, 24], sizes = [2, 16, 8], strides = [1, 1, 1]} : vector<2x16x32xf32> to vector<2x16x8xf32>
    %707 = arith.truncf %706 : vector<2x16x8xf32> to vector<2x16x8xbf16>
    "tpu.trace_start"() <{level = 10 : i32, message = "bqd,bkd->bqk"}> : () -> ()
    %cst_236 = arith.constant dense<0.000000e+00> : vector<2x16x16xf32>
    %708 = tpu.matmul %703, %705, %cst_236 {dimension_numbers = #tpu.dot_dimension_numbers<[2], [2], [1], [1], [0, 0, 0, 1, 1, 1], [0], [0]>} : vector<2x16x8xbf16>, vector<2x16x8xbf16>, vector<2x16x16xf32> -> vector<2x16x16xf32>
    "tpu.trace_stop"() : () -> ()
    %cst_237 = arith.constant dense<0xFF800000> : vector<2x16xf32>
    %709 = vector.multi_reduction <maximumf>, %708, %cst_237 [2] : vector<2x16x16xf32> to vector<2x16xf32>
    %710 = vector.shape_cast %709 : vector<2x16xf32> to vector<2x16x1xf32>
    %711 = vector.broadcast %710 : vector<2x16x1xf32> to vector<2x16x16xf32>
    %712 = arith.subf %708, %711 : vector<2x16x16xf32>
    %713 = math.exp %712 : vector<2x16x16xf32>
    %cst_238 = arith.constant dense<0.000000e+00> : vector<2x16xf32>
    %714 = vector.multi_reduction <add>, %713, %cst_238 [2] : vector<2x16x16xf32> to vector<2x16xf32>
    %715 = vector.shape_cast %714 : vector<2x16xf32> to vector<2x16x1xf32>
    %716 = tpu.reciprocal %715 {approx = true} : vector<2x16x1xf32> -> vector<2x16x1xf32>
    %717 = vector.broadcast %716 : vector<2x16x1xf32> to vector<2x16x16xf32>
    %718 = arith.mulf %713, %717 : vector<2x16x16xf32>
    %719 = arith.truncf %718 : vector<2x16x16xf32> to vector<2x16x16xbf16>
    "tpu.trace_start"() <{level = 10 : i32, message = "bqk,bkd->bqd"}> : () -> ()
    %cst_239 = arith.constant dense<0.000000e+00> : vector<2x16x8xf32>
    %720 = tpu.matmul %719, %707, %cst_239 {dimension_numbers = #tpu.dot_dimension_numbers<[2], [1], [1], [2], [0, 0, 0, 1, 1, 2], [0], [0]>} : vector<2x16x16xbf16>, vector<2x16x8xbf16>, vector<2x16x8xf32> -> vector<2x16x8xf32>
    "tpu.trace_stop"() : () -> ()
    %721 = vector.shape_cast %720 : vector<2x16x8xf32> to vector<32x8xf32>
    %722 = vector.extract_strided_slice %617 {offsets = [24, 0], sizes = [8, 32], strides = [1, 1]} : vector<32x32xf32> to vector<8x32xf32>
    %723 = arith.truncf %721 : vector<32x8xf32> to vector<32x8xbf16>
    %724 = arith.truncf %722 : vector<8x32xf32> to vector<8x32xbf16>
    %cst_240 = arith.constant dense<0.000000e+00> : vector<32x32xf32>
    %725 = tpu.matmul %723, %724, %cst_240 {dimension_numbers = #tpu.dot_dimension_numbers<[1], [0], [0], [1], [0, 0, 1, 1], [], []>} : vector<32x8xbf16>, vector<8x32xbf16>, vector<32x32xf32> -> vector<32x32xf32>
    %726 = arith.addf %699, %725 : vector<32x32xf32>
    %727 = arith.addf %578, %726 : vector<32x32xf32>
    %c0_241 = arith.constant 0 : index
    %c0_242 = arith.constant 0 : index
    %c0_243 = arith.constant 0 : index
    %728 = vector.load %arg24[%c0_241, %c0_242, %c0_243] : memref<2x1x32xf32, #tpu.memory_space<vmem>>, vector<1x1x32xf32>
    %729 = vector.shape_cast %728 : vector<1x1x32xf32> to vector<1x32xf32>
    %730 = vector.broadcast %729 : vector<1x32xf32> to vector<32x32xf32>
    %731 = arith.addf %727, %730 : vector<32x32xf32>
    %c0_244 = arith.constant 0 : index
    %c0_245 = arith.constant 0 : index
    %c0_246 = arith.constant 0 : index
    %732 = vector.load %arg25[%c0_244, %c0_245, %c0_246] : memref<2x1x32xf32, #tpu.memory_space<vmem>>, vector<1x1x32xf32>
    %733 = vector.shape_cast %732 : vector<1x1x32xf32> to vector<1x32xf32>
    %c0_247 = arith.constant 0 : index
    %c0_248 = arith.constant 0 : index
    %c0_249 = arith.constant 0 : index
    %734 = vector.load %arg26[%c0_247, %c0_248, %c0_249] : memref<2x1x32xf32, #tpu.memory_space<vmem>>, vector<1x1x32xf32>
    %735 = vector.shape_cast %734 : vector<1x1x32xf32> to vector<1x32xf32>
    %cst_250 = arith.constant dense<0.000000e+00> : vector<32xf32>
    %736 = vector.multi_reduction <add>, %731, %cst_250 [1] : vector<32x32xf32> to vector<32xf32>
    %737 = vector.shape_cast %736 : vector<32xf32> to vector<32x1xf32>
    %cst_251 = arith.constant 3.200000e+01 : f32
    %738 = vector.broadcast %cst_251 : f32 to vector<32x1xf32>
    %739 = arith.divf %737, %738 : vector<32x1xf32>
    %740 = vector.broadcast %739 : vector<32x1xf32> to vector<32x32xf32>
    %741 = arith.subf %731, %740 : vector<32x32xf32>
    %742 = arith.mulf %741, %741 : vector<32x32xf32>
    %cst_252 = arith.constant dense<0.000000e+00> : vector<32xf32>
    %743 = vector.multi_reduction <add>, %742, %cst_252 [1] : vector<32x32xf32> to vector<32xf32>
    %744 = vector.shape_cast %743 : vector<32xf32> to vector<32x1xf32>
    %cst_253 = arith.constant 3.200000e+01 : f32
    %745 = vector.broadcast %cst_253 : f32 to vector<32x1xf32>
    %746 = arith.divf %744, %745 : vector<32x1xf32>
    %747 = vector.broadcast %739 : vector<32x1xf32> to vector<32x32xf32>
    %748 = arith.subf %731, %747 : vector<32x32xf32>
    %cst_254 = arith.constant 9.99999974E-6 : f32
    %749 = vector.broadcast %cst_254 : f32 to vector<32x1xf32>
    %750 = arith.addf %746, %749 : vector<32x1xf32>
    %751 = math.rsqrt %750 : vector<32x1xf32>
    %752 = vector.broadcast %751 : vector<32x1xf32> to vector<32x32xf32>
    %753 = arith.mulf %748, %752 : vector<32x32xf32>
    %754 = vector.broadcast %733 : vector<1x32xf32> to vector<32x32xf32>
    %755 = arith.mulf %753, %754 : vector<32x32xf32>
    %756 = vector.broadcast %735 : vector<1x32xf32> to vector<32x32xf32>
    %757 = arith.addf %755, %756 : vector<32x32xf32>
    %c0_255 = arith.constant 0 : index
    %c0_256 = arith.constant 0 : index
    %c0_257 = arith.constant 0 : index
    %758 = vector.load %arg27[%c0_255, %c0_256, %c0_257] : memref<2x32x128xbf16, #tpu.memory_space<vmem>>, vector<1x32x128xbf16>
    %759 = vector.shape_cast %758 : vector<1x32x128xbf16> to vector<32x128xbf16>
    %760 = arith.truncf %757 : vector<32x32xf32> to vector<32x32xbf16>
    %cst_258 = arith.constant dense<0.000000e+00> : vector<32x128xf32>
    %761 = tpu.matmul %760, %759, %cst_258 {dimension_numbers = #tpu.dot_dimension_numbers<[1], [0], [0], [1], [0, 0, 1, 1], [], []>} : vector<32x32xbf16>, vector<32x128xbf16>, vector<32x128xf32> -> vector<32x128xf32>
    %c0_259 = arith.constant 0 : index
    %c0_260 = arith.constant 0 : index
    %c0_261 = arith.constant 0 : index
    %762 = vector.load %arg28[%c0_259, %c0_260, %c0_261] : memref<2x1x128xf32, #tpu.memory_space<vmem>>, vector<1x1x128xf32>
    %763 = vector.shape_cast %762 : vector<1x1x128xf32> to vector<1x128xf32>
    %764 = vector.broadcast %763 : vector<1x128xf32> to vector<32x128xf32>
    %765 = arith.addf %761, %764 : vector<32x128xf32>
    %cst_262 = arith.constant 5.000000e-01 : f32
    %766 = vector.broadcast %cst_262 : f32 to vector<32x128xf32>
    %767 = arith.mulf %766, %765 : vector<32x128xf32>
    %cst_263 = arith.constant 4.471500e-02 : f32
    %768 = vector.broadcast %cst_263 : f32 to vector<32x128xf32>
    %769 = arith.mulf %768, %765 : vector<32x128xf32>
    %770 = arith.mulf %769, %765 : vector<32x128xf32>
    %771 = arith.mulf %770, %765 : vector<32x128xf32>
    %772 = arith.addf %765, %771 : vector<32x128xf32>
    %cst_264 = arith.constant 0.797884583 : f32
    %773 = vector.broadcast %cst_264 : f32 to vector<32x128xf32>
    %774 = arith.mulf %773, %772 : vector<32x128xf32>
    %775 = math.tanh %774 : vector<32x128xf32>
    %cst_265 = arith.constant 1.000000e+00 : f32
    %776 = vector.broadcast %cst_265 : f32 to vector<32x128xf32>
    %777 = arith.addf %776, %775 : vector<32x128xf32>
    %778 = arith.mulf %767, %777 : vector<32x128xf32>
    %c0_266 = arith.constant 0 : index
    %c0_267 = arith.constant 0 : index
    %c0_268 = arith.constant 0 : index
    %779 = vector.load %arg29[%c0_266, %c0_267, %c0_268] : memref<2x128x32xbf16, #tpu.memory_space<vmem>>, vector<1x128x32xbf16>
    %780 = vector.shape_cast %779 : vector<1x128x32xbf16> to vector<128x32xbf16>
    %781 = arith.truncf %778 : vector<32x128xf32> to vector<32x128xbf16>
    %cst_269 = arith.constant dense<0.000000e+00> : vector<32x32xf32>
    %782 = tpu.matmul %781, %780, %cst_269 {dimension_numbers = #tpu.dot_dimension_numbers<[1], [0], [0], [1], [0, 0, 1, 1], [], []>} : vector<32x128xbf16>, vector<128x32xbf16>, vector<32x32xf32> -> vector<32x32xf32>
    %783 = arith.addf %731, %782 : vector<32x32xf32>
    %c0_270 = arith.constant 0 : index
    %c0_271 = arith.constant 0 : index
    %c0_272 = arith.constant 0 : index
    %784 = vector.load %arg30[%c0_270, %c0_271, %c0_272] : memref<2x1x32xf32, #tpu.memory_space<vmem>>, vector<1x1x32xf32>
    %785 = vector.shape_cast %784 : vector<1x1x32xf32> to vector<1x32xf32>
    %786 = vector.broadcast %785 : vector<1x32xf32> to vector<32x32xf32>
    %787 = arith.addf %783, %786 : vector<32x32xf32>
    %c1_273 = arith.constant 1 : index
    %c0_274 = arith.constant 0 : index
    %c0_275 = arith.constant 0 : index
    %788 = vector.load %arg20[%c1_273, %c0_274, %c0_275] : memref<2x1x32xf32, #tpu.memory_space<vmem>>, vector<1x1x32xf32>
    %789 = vector.shape_cast %788 : vector<1x1x32xf32> to vector<1x32xf32>
    %c1_276 = arith.constant 1 : index
    %c0_277 = arith.constant 0 : index
    %c0_278 = arith.constant 0 : index
    %790 = vector.load %arg21[%c1_276, %c0_277, %c0_278] : memref<2x1x32xf32, #tpu.memory_space<vmem>>, vector<1x1x32xf32>
    %791 = vector.shape_cast %790 : vector<1x1x32xf32> to vector<1x32xf32>
    %cst_279 = arith.constant dense<0.000000e+00> : vector<32xf32>
    %792 = vector.multi_reduction <add>, %787, %cst_279 [1] : vector<32x32xf32> to vector<32xf32>
    %793 = vector.shape_cast %792 : vector<32xf32> to vector<32x1xf32>
    %cst_280 = arith.constant 3.200000e+01 : f32
    %794 = vector.broadcast %cst_280 : f32 to vector<32x1xf32>
    %795 = arith.divf %793, %794 : vector<32x1xf32>
    %796 = vector.broadcast %795 : vector<32x1xf32> to vector<32x32xf32>
    %797 = arith.subf %787, %796 : vector<32x32xf32>
    %798 = arith.mulf %797, %797 : vector<32x32xf32>
    %cst_281 = arith.constant dense<0.000000e+00> : vector<32xf32>
    %799 = vector.multi_reduction <add>, %798, %cst_281 [1] : vector<32x32xf32> to vector<32xf32>
    %800 = vector.shape_cast %799 : vector<32xf32> to vector<32x1xf32>
    %cst_282 = arith.constant 3.200000e+01 : f32
    %801 = vector.broadcast %cst_282 : f32 to vector<32x1xf32>
    %802 = arith.divf %800, %801 : vector<32x1xf32>
    %803 = vector.broadcast %795 : vector<32x1xf32> to vector<32x32xf32>
    %804 = arith.subf %787, %803 : vector<32x32xf32>
    %cst_283 = arith.constant 9.99999974E-6 : f32
    %805 = vector.broadcast %cst_283 : f32 to vector<32x1xf32>
    %806 = arith.addf %802, %805 : vector<32x1xf32>
    %807 = math.rsqrt %806 : vector<32x1xf32>
    %808 = vector.broadcast %807 : vector<32x1xf32> to vector<32x32xf32>
    %809 = arith.mulf %804, %808 : vector<32x32xf32>
    %810 = vector.broadcast %789 : vector<1x32xf32> to vector<32x32xf32>
    %811 = arith.mulf %809, %810 : vector<32x32xf32>
    %812 = vector.broadcast %791 : vector<1x32xf32> to vector<32x32xf32>
    %813 = arith.addf %811, %812 : vector<32x32xf32>
    %c1_284 = arith.constant 1 : index
    %c0_285 = arith.constant 0 : index
    %c0_286 = arith.constant 0 : index
    %814 = vector.load %arg22[%c1_284, %c0_285, %c0_286] : memref<2x32x96xbf16, #tpu.memory_space<vmem>>, vector<1x32x96xbf16>
    %815 = vector.shape_cast %814 : vector<1x32x96xbf16> to vector<32x96xbf16>
    %816 = arith.truncf %813 : vector<32x32xf32> to vector<32x32xbf16>
    %cst_287 = arith.constant dense<0.000000e+00> : vector<32x96xf32>
    %817 = tpu.matmul %816, %815, %cst_287 {dimension_numbers = #tpu.dot_dimension_numbers<[1], [0], [0], [1], [0, 0, 1, 1], [], []>} : vector<32x32xbf16>, vector<32x96xbf16>, vector<32x96xf32> -> vector<32x96xf32>
    %818 = vector.extract_strided_slice %817 {offsets = [0, 0], sizes = [32, 32], strides = [1, 1]} : vector<32x96xf32> to vector<32x32xf32>
    %819 = vector.shape_cast %818 : vector<32x32xf32> to vector<2x16x32xf32>
    %820 = vector.extract_strided_slice %817 {offsets = [0, 32], sizes = [32, 32], strides = [1, 1]} : vector<32x96xf32> to vector<32x32xf32>
    %821 = vector.shape_cast %820 : vector<32x32xf32> to vector<2x16x32xf32>
    %822 = vector.extract_strided_slice %817 {offsets = [0, 64], sizes = [32, 32], strides = [1, 1]} : vector<32x96xf32> to vector<32x32xf32>
    %823 = vector.shape_cast %822 : vector<32x32xf32> to vector<2x16x32xf32>
    %c1_288 = arith.constant 1 : index
    %c0_289 = arith.constant 0 : index
    %c0_290 = arith.constant 0 : index
    %824 = vector.load %arg23[%c1_288, %c0_289, %c0_290] : memref<2x32x32xbf16, #tpu.memory_space<vmem>>, vector<1x32x32xbf16>
    %825 = vector.shape_cast %824 : vector<1x32x32xbf16> to vector<32x32xbf16>
    %826 = arith.extf %825 : vector<32x32xbf16> to vector<32x32xf32>
    %cst_291 = arith.constant 0.000000e+00 : f32
    %827 = vector.broadcast %cst_291 : f32 to vector<32x32xf32>
    %828 = vector.extract_strided_slice %819 {offsets = [0, 0, 0], sizes = [2, 16, 8], strides = [1, 1, 1]} : vector<2x16x32xf32> to vector<2x16x8xf32>
    %cst_292 = arith.constant 0.353553385 : f32
    %829 = vector.broadcast %cst_292 : f32 to vector<2x16x8xf32>
    %830 = arith.mulf %828, %829 : vector<2x16x8xf32>
    %831 = arith.truncf %830 : vector<2x16x8xf32> to vector<2x16x8xbf16>
    %832 = vector.extract_strided_slice %821 {offsets = [0, 0, 0], sizes = [2, 16, 8], strides = [1, 1, 1]} : vector<2x16x32xf32> to vector<2x16x8xf32>
    %833 = arith.truncf %832 : vector<2x16x8xf32> to vector<2x16x8xbf16>
    %834 = vector.extract_strided_slice %823 {offsets = [0, 0, 0], sizes = [2, 16, 8], strides = [1, 1, 1]} : vector<2x16x32xf32> to vector<2x16x8xf32>
    %835 = arith.truncf %834 : vector<2x16x8xf32> to vector<2x16x8xbf16>
    "tpu.trace_start"() <{level = 10 : i32, message = "bqd,bkd->bqk"}> : () -> ()
    %cst_293 = arith.constant dense<0.000000e+00> : vector<2x16x16xf32>
    %836 = tpu.matmul %831, %833, %cst_293 {dimension_numbers = #tpu.dot_dimension_numbers<[2], [2], [1], [1], [0, 0, 0, 1, 1, 1], [0], [0]>} : vector<2x16x8xbf16>, vector<2x16x8xbf16>, vector<2x16x16xf32> -> vector<2x16x16xf32>
    "tpu.trace_stop"() : () -> ()
    %cst_294 = arith.constant dense<0xFF800000> : vector<2x16xf32>
    %837 = vector.multi_reduction <maximumf>, %836, %cst_294 [2] : vector<2x16x16xf32> to vector<2x16xf32>
    %838 = vector.shape_cast %837 : vector<2x16xf32> to vector<2x16x1xf32>
    %839 = vector.broadcast %838 : vector<2x16x1xf32> to vector<2x16x16xf32>
    %840 = arith.subf %836, %839 : vector<2x16x16xf32>
    %841 = math.exp %840 : vector<2x16x16xf32>
    %cst_295 = arith.constant dense<0.000000e+00> : vector<2x16xf32>
    %842 = vector.multi_reduction <add>, %841, %cst_295 [2] : vector<2x16x16xf32> to vector<2x16xf32>
    %843 = vector.shape_cast %842 : vector<2x16xf32> to vector<2x16x1xf32>
    %844 = tpu.reciprocal %843 {approx = true} : vector<2x16x1xf32> -> vector<2x16x1xf32>
    %845 = vector.broadcast %844 : vector<2x16x1xf32> to vector<2x16x16xf32>
    %846 = arith.mulf %841, %845 : vector<2x16x16xf32>
    %847 = arith.truncf %846 : vector<2x16x16xf32> to vector<2x16x16xbf16>
    "tpu.trace_start"() <{level = 10 : i32, message = "bqk,bkd->bqd"}> : () -> ()
    %cst_296 = arith.constant dense<0.000000e+00> : vector<2x16x8xf32>
    %848 = tpu.matmul %847, %835, %cst_296 {dimension_numbers = #tpu.dot_dimension_numbers<[2], [1], [1], [2], [0, 0, 0, 1, 1, 2], [0], [0]>} : vector<2x16x16xbf16>, vector<2x16x8xbf16>, vector<2x16x8xf32> -> vector<2x16x8xf32>
    "tpu.trace_stop"() : () -> ()
    %849 = vector.shape_cast %848 : vector<2x16x8xf32> to vector<32x8xf32>
    %850 = vector.extract_strided_slice %826 {offsets = [0, 0], sizes = [8, 32], strides = [1, 1]} : vector<32x32xf32> to vector<8x32xf32>
    %851 = arith.truncf %849 : vector<32x8xf32> to vector<32x8xbf16>
    %852 = arith.truncf %850 : vector<8x32xf32> to vector<8x32xbf16>
    %cst_297 = arith.constant dense<0.000000e+00> : vector<32x32xf32>
    %853 = tpu.matmul %851, %852, %cst_297 {dimension_numbers = #tpu.dot_dimension_numbers<[1], [0], [0], [1], [0, 0, 1, 1], [], []>} : vector<32x8xbf16>, vector<8x32xbf16>, vector<32x32xf32> -> vector<32x32xf32>
    %854 = arith.addf %827, %853 : vector<32x32xf32>
    %855 = vector.extract_strided_slice %819 {offsets = [0, 0, 8], sizes = [2, 16, 8], strides = [1, 1, 1]} : vector<2x16x32xf32> to vector<2x16x8xf32>
    %cst_298 = arith.constant 0.353553385 : f32
    %856 = vector.broadcast %cst_298 : f32 to vector<2x16x8xf32>
    %857 = arith.mulf %855, %856 : vector<2x16x8xf32>
    %858 = arith.truncf %857 : vector<2x16x8xf32> to vector<2x16x8xbf16>
    %859 = vector.extract_strided_slice %821 {offsets = [0, 0, 8], sizes = [2, 16, 8], strides = [1, 1, 1]} : vector<2x16x32xf32> to vector<2x16x8xf32>
    %860 = arith.truncf %859 : vector<2x16x8xf32> to vector<2x16x8xbf16>
    %861 = vector.extract_strided_slice %823 {offsets = [0, 0, 8], sizes = [2, 16, 8], strides = [1, 1, 1]} : vector<2x16x32xf32> to vector<2x16x8xf32>
    %862 = arith.truncf %861 : vector<2x16x8xf32> to vector<2x16x8xbf16>
    "tpu.trace_start"() <{level = 10 : i32, message = "bqd,bkd->bqk"}> : () -> ()
    %cst_299 = arith.constant dense<0.000000e+00> : vector<2x16x16xf32>
    %863 = tpu.matmul %858, %860, %cst_299 {dimension_numbers = #tpu.dot_dimension_numbers<[2], [2], [1], [1], [0, 0, 0, 1, 1, 1], [0], [0]>} : vector<2x16x8xbf16>, vector<2x16x8xbf16>, vector<2x16x16xf32> -> vector<2x16x16xf32>
    "tpu.trace_stop"() : () -> ()
    %cst_300 = arith.constant dense<0xFF800000> : vector<2x16xf32>
    %864 = vector.multi_reduction <maximumf>, %863, %cst_300 [2] : vector<2x16x16xf32> to vector<2x16xf32>
    %865 = vector.shape_cast %864 : vector<2x16xf32> to vector<2x16x1xf32>
    %866 = vector.broadcast %865 : vector<2x16x1xf32> to vector<2x16x16xf32>
    %867 = arith.subf %863, %866 : vector<2x16x16xf32>
    %868 = math.exp %867 : vector<2x16x16xf32>
    %cst_301 = arith.constant dense<0.000000e+00> : vector<2x16xf32>
    %869 = vector.multi_reduction <add>, %868, %cst_301 [2] : vector<2x16x16xf32> to vector<2x16xf32>
    %870 = vector.shape_cast %869 : vector<2x16xf32> to vector<2x16x1xf32>
    %871 = tpu.reciprocal %870 {approx = true} : vector<2x16x1xf32> -> vector<2x16x1xf32>
    %872 = vector.broadcast %871 : vector<2x16x1xf32> to vector<2x16x16xf32>
    %873 = arith.mulf %868, %872 : vector<2x16x16xf32>
    %874 = arith.truncf %873 : vector<2x16x16xf32> to vector<2x16x16xbf16>
    "tpu.trace_start"() <{level = 10 : i32, message = "bqk,bkd->bqd"}> : () -> ()
    %cst_302 = arith.constant dense<0.000000e+00> : vector<2x16x8xf32>
    %875 = tpu.matmul %874, %862, %cst_302 {dimension_numbers = #tpu.dot_dimension_numbers<[2], [1], [1], [2], [0, 0, 0, 1, 1, 2], [0], [0]>} : vector<2x16x16xbf16>, vector<2x16x8xbf16>, vector<2x16x8xf32> -> vector<2x16x8xf32>
    "tpu.trace_stop"() : () -> ()
    %876 = vector.shape_cast %875 : vector<2x16x8xf32> to vector<32x8xf32>
    %877 = vector.extract_strided_slice %826 {offsets = [8, 0], sizes = [8, 32], strides = [1, 1]} : vector<32x32xf32> to vector<8x32xf32>
    %878 = arith.truncf %876 : vector<32x8xf32> to vector<32x8xbf16>
    %879 = arith.truncf %877 : vector<8x32xf32> to vector<8x32xbf16>
    %cst_303 = arith.constant dense<0.000000e+00> : vector<32x32xf32>
    %880 = tpu.matmul %878, %879, %cst_303 {dimension_numbers = #tpu.dot_dimension_numbers<[1], [0], [0], [1], [0, 0, 1, 1], [], []>} : vector<32x8xbf16>, vector<8x32xbf16>, vector<32x32xf32> -> vector<32x32xf32>
    %881 = arith.addf %854, %880 : vector<32x32xf32>
    %882 = vector.extract_strided_slice %819 {offsets = [0, 0, 16], sizes = [2, 16, 8], strides = [1, 1, 1]} : vector<2x16x32xf32> to vector<2x16x8xf32>
    %cst_304 = arith.constant 0.353553385 : f32
    %883 = vector.broadcast %cst_304 : f32 to vector<2x16x8xf32>
    %884 = arith.mulf %882, %883 : vector<2x16x8xf32>
    %885 = arith.truncf %884 : vector<2x16x8xf32> to vector<2x16x8xbf16>
    %886 = vector.extract_strided_slice %821 {offsets = [0, 0, 16], sizes = [2, 16, 8], strides = [1, 1, 1]} : vector<2x16x32xf32> to vector<2x16x8xf32>
    %887 = arith.truncf %886 : vector<2x16x8xf32> to vector<2x16x8xbf16>
    %888 = vector.extract_strided_slice %823 {offsets = [0, 0, 16], sizes = [2, 16, 8], strides = [1, 1, 1]} : vector<2x16x32xf32> to vector<2x16x8xf32>
    %889 = arith.truncf %888 : vector<2x16x8xf32> to vector<2x16x8xbf16>
    "tpu.trace_start"() <{level = 10 : i32, message = "bqd,bkd->bqk"}> : () -> ()
    %cst_305 = arith.constant dense<0.000000e+00> : vector<2x16x16xf32>
    %890 = tpu.matmul %885, %887, %cst_305 {dimension_numbers = #tpu.dot_dimension_numbers<[2], [2], [1], [1], [0, 0, 0, 1, 1, 1], [0], [0]>} : vector<2x16x8xbf16>, vector<2x16x8xbf16>, vector<2x16x16xf32> -> vector<2x16x16xf32>
    "tpu.trace_stop"() : () -> ()
    %cst_306 = arith.constant dense<0xFF800000> : vector<2x16xf32>
    %891 = vector.multi_reduction <maximumf>, %890, %cst_306 [2] : vector<2x16x16xf32> to vector<2x16xf32>
    %892 = vector.shape_cast %891 : vector<2x16xf32> to vector<2x16x1xf32>
    %893 = vector.broadcast %892 : vector<2x16x1xf32> to vector<2x16x16xf32>
    %894 = arith.subf %890, %893 : vector<2x16x16xf32>
    %895 = math.exp %894 : vector<2x16x16xf32>
    %cst_307 = arith.constant dense<0.000000e+00> : vector<2x16xf32>
    %896 = vector.multi_reduction <add>, %895, %cst_307 [2] : vector<2x16x16xf32> to vector<2x16xf32>
    %897 = vector.shape_cast %896 : vector<2x16xf32> to vector<2x16x1xf32>
    %898 = tpu.reciprocal %897 {approx = true} : vector<2x16x1xf32> -> vector<2x16x1xf32>
    %899 = vector.broadcast %898 : vector<2x16x1xf32> to vector<2x16x16xf32>
    %900 = arith.mulf %895, %899 : vector<2x16x16xf32>
    %901 = arith.truncf %900 : vector<2x16x16xf32> to vector<2x16x16xbf16>
    "tpu.trace_start"() <{level = 10 : i32, message = "bqk,bkd->bqd"}> : () -> ()
    %cst_308 = arith.constant dense<0.000000e+00> : vector<2x16x8xf32>
    %902 = tpu.matmul %901, %889, %cst_308 {dimension_numbers = #tpu.dot_dimension_numbers<[2], [1], [1], [2], [0, 0, 0, 1, 1, 2], [0], [0]>} : vector<2x16x16xbf16>, vector<2x16x8xbf16>, vector<2x16x8xf32> -> vector<2x16x8xf32>
    "tpu.trace_stop"() : () -> ()
    %903 = vector.shape_cast %902 : vector<2x16x8xf32> to vector<32x8xf32>
    %904 = vector.extract_strided_slice %826 {offsets = [16, 0], sizes = [8, 32], strides = [1, 1]} : vector<32x32xf32> to vector<8x32xf32>
    %905 = arith.truncf %903 : vector<32x8xf32> to vector<32x8xbf16>
    %906 = arith.truncf %904 : vector<8x32xf32> to vector<8x32xbf16>
    %cst_309 = arith.constant dense<0.000000e+00> : vector<32x32xf32>
    %907 = tpu.matmul %905, %906, %cst_309 {dimension_numbers = #tpu.dot_dimension_numbers<[1], [0], [0], [1], [0, 0, 1, 1], [], []>} : vector<32x8xbf16>, vector<8x32xbf16>, vector<32x32xf32> -> vector<32x32xf32>
    %908 = arith.addf %881, %907 : vector<32x32xf32>
    %909 = vector.extract_strided_slice %819 {offsets = [0, 0, 24], sizes = [2, 16, 8], strides = [1, 1, 1]} : vector<2x16x32xf32> to vector<2x16x8xf32>
    %cst_310 = arith.constant 0.353553385 : f32
    %910 = vector.broadcast %cst_310 : f32 to vector<2x16x8xf32>
    %911 = arith.mulf %909, %910 : vector<2x16x8xf32>
    %912 = arith.truncf %911 : vector<2x16x8xf32> to vector<2x16x8xbf16>
    %913 = vector.extract_strided_slice %821 {offsets = [0, 0, 24], sizes = [2, 16, 8], strides = [1, 1, 1]} : vector<2x16x32xf32> to vector<2x16x8xf32>
    %914 = arith.truncf %913 : vector<2x16x8xf32> to vector<2x16x8xbf16>
    %915 = vector.extract_strided_slice %823 {offsets = [0, 0, 24], sizes = [2, 16, 8], strides = [1, 1, 1]} : vector<2x16x32xf32> to vector<2x16x8xf32>
    %916 = arith.truncf %915 : vector<2x16x8xf32> to vector<2x16x8xbf16>
    "tpu.trace_start"() <{level = 10 : i32, message = "bqd,bkd->bqk"}> : () -> ()
    %cst_311 = arith.constant dense<0.000000e+00> : vector<2x16x16xf32>
    %917 = tpu.matmul %912, %914, %cst_311 {dimension_numbers = #tpu.dot_dimension_numbers<[2], [2], [1], [1], [0, 0, 0, 1, 1, 1], [0], [0]>} : vector<2x16x8xbf16>, vector<2x16x8xbf16>, vector<2x16x16xf32> -> vector<2x16x16xf32>
    "tpu.trace_stop"() : () -> ()
    %cst_312 = arith.constant dense<0xFF800000> : vector<2x16xf32>
    %918 = vector.multi_reduction <maximumf>, %917, %cst_312 [2] : vector<2x16x16xf32> to vector<2x16xf32>
    %919 = vector.shape_cast %918 : vector<2x16xf32> to vector<2x16x1xf32>
    %920 = vector.broadcast %919 : vector<2x16x1xf32> to vector<2x16x16xf32>
    %921 = arith.subf %917, %920 : vector<2x16x16xf32>
    %922 = math.exp %921 : vector<2x16x16xf32>
    %cst_313 = arith.constant dense<0.000000e+00> : vector<2x16xf32>
    %923 = vector.multi_reduction <add>, %922, %cst_313 [2] : vector<2x16x16xf32> to vector<2x16xf32>
    %924 = vector.shape_cast %923 : vector<2x16xf32> to vector<2x16x1xf32>
    %925 = tpu.reciprocal %924 {approx = true} : vector<2x16x1xf32> -> vector<2x16x1xf32>
    %926 = vector.broadcast %925 : vector<2x16x1xf32> to vector<2x16x16xf32>
    %927 = arith.mulf %922, %926 : vector<2x16x16xf32>
    %928 = arith.truncf %927 : vector<2x16x16xf32> to vector<2x16x16xbf16>
    "tpu.trace_start"() <{level = 10 : i32, message = "bqk,bkd->bqd"}> : () -> ()
    %cst_314 = arith.constant dense<0.000000e+00> : vector<2x16x8xf32>
    %929 = tpu.matmul %928, %916, %cst_314 {dimension_numbers = #tpu.dot_dimension_numbers<[2], [1], [1], [2], [0, 0, 0, 1, 1, 2], [0], [0]>} : vector<2x16x16xbf16>, vector<2x16x8xbf16>, vector<2x16x8xf32> -> vector<2x16x8xf32>
    "tpu.trace_stop"() : () -> ()
    %930 = vector.shape_cast %929 : vector<2x16x8xf32> to vector<32x8xf32>
    %931 = vector.extract_strided_slice %826 {offsets = [24, 0], sizes = [8, 32], strides = [1, 1]} : vector<32x32xf32> to vector<8x32xf32>
    %932 = arith.truncf %930 : vector<32x8xf32> to vector<32x8xbf16>
    %933 = arith.truncf %931 : vector<8x32xf32> to vector<8x32xbf16>
    %cst_315 = arith.constant dense<0.000000e+00> : vector<32x32xf32>
    %934 = tpu.matmul %932, %933, %cst_315 {dimension_numbers = #tpu.dot_dimension_numbers<[1], [0], [0], [1], [0, 0, 1, 1], [], []>} : vector<32x8xbf16>, vector<8x32xbf16>, vector<32x32xf32> -> vector<32x32xf32>
    %935 = arith.addf %908, %934 : vector<32x32xf32>
    %936 = arith.addf %787, %935 : vector<32x32xf32>
    %c1_316 = arith.constant 1 : index
    %c0_317 = arith.constant 0 : index
    %c0_318 = arith.constant 0 : index
    %937 = vector.load %arg24[%c1_316, %c0_317, %c0_318] : memref<2x1x32xf32, #tpu.memory_space<vmem>>, vector<1x1x32xf32>
    %938 = vector.shape_cast %937 : vector<1x1x32xf32> to vector<1x32xf32>
    %939 = vector.broadcast %938 : vector<1x32xf32> to vector<32x32xf32>
    %940 = arith.addf %936, %939 : vector<32x32xf32>
    %c1_319 = arith.constant 1 : index
    %c0_320 = arith.constant 0 : index
    %c0_321 = arith.constant 0 : index
    %941 = vector.load %arg25[%c1_319, %c0_320, %c0_321] : memref<2x1x32xf32, #tpu.memory_space<vmem>>, vector<1x1x32xf32>
    %942 = vector.shape_cast %941 : vector<1x1x32xf32> to vector<1x32xf32>
    %c1_322 = arith.constant 1 : index
    %c0_323 = arith.constant 0 : index
    %c0_324 = arith.constant 0 : index
    %943 = vector.load %arg26[%c1_322, %c0_323, %c0_324] : memref<2x1x32xf32, #tpu.memory_space<vmem>>, vector<1x1x32xf32>
    %944 = vector.shape_cast %943 : vector<1x1x32xf32> to vector<1x32xf32>
    %cst_325 = arith.constant dense<0.000000e+00> : vector<32xf32>
    %945 = vector.multi_reduction <add>, %940, %cst_325 [1] : vector<32x32xf32> to vector<32xf32>
    %946 = vector.shape_cast %945 : vector<32xf32> to vector<32x1xf32>
    %cst_326 = arith.constant 3.200000e+01 : f32
    %947 = vector.broadcast %cst_326 : f32 to vector<32x1xf32>
    %948 = arith.divf %946, %947 : vector<32x1xf32>
    %949 = vector.broadcast %948 : vector<32x1xf32> to vector<32x32xf32>
    %950 = arith.subf %940, %949 : vector<32x32xf32>
    %951 = arith.mulf %950, %950 : vector<32x32xf32>
    %cst_327 = arith.constant dense<0.000000e+00> : vector<32xf32>
    %952 = vector.multi_reduction <add>, %951, %cst_327 [1] : vector<32x32xf32> to vector<32xf32>
    %953 = vector.shape_cast %952 : vector<32xf32> to vector<32x1xf32>
    %cst_328 = arith.constant 3.200000e+01 : f32
    %954 = vector.broadcast %cst_328 : f32 to vector<32x1xf32>
    %955 = arith.divf %953, %954 : vector<32x1xf32>
    %956 = vector.broadcast %948 : vector<32x1xf32> to vector<32x32xf32>
    %957 = arith.subf %940, %956 : vector<32x32xf32>
    %cst_329 = arith.constant 9.99999974E-6 : f32
    %958 = vector.broadcast %cst_329 : f32 to vector<32x1xf32>
    %959 = arith.addf %955, %958 : vector<32x1xf32>
    %960 = math.rsqrt %959 : vector<32x1xf32>
    %961 = vector.broadcast %960 : vector<32x1xf32> to vector<32x32xf32>
    %962 = arith.mulf %957, %961 : vector<32x32xf32>
    %963 = vector.broadcast %942 : vector<1x32xf32> to vector<32x32xf32>
    %964 = arith.mulf %962, %963 : vector<32x32xf32>
    %965 = vector.broadcast %944 : vector<1x32xf32> to vector<32x32xf32>
    %966 = arith.addf %964, %965 : vector<32x32xf32>
    %c1_330 = arith.constant 1 : index
    %c0_331 = arith.constant 0 : index
    %c0_332 = arith.constant 0 : index
    %967 = vector.load %arg27[%c1_330, %c0_331, %c0_332] : memref<2x32x128xbf16, #tpu.memory_space<vmem>>, vector<1x32x128xbf16>
    %968 = vector.shape_cast %967 : vector<1x32x128xbf16> to vector<32x128xbf16>
    %969 = arith.truncf %966 : vector<32x32xf32> to vector<32x32xbf16>
    %cst_333 = arith.constant dense<0.000000e+00> : vector<32x128xf32>
    %970 = tpu.matmul %969, %968, %cst_333 {dimension_numbers = #tpu.dot_dimension_numbers<[1], [0], [0], [1], [0, 0, 1, 1], [], []>} : vector<32x32xbf16>, vector<32x128xbf16>, vector<32x128xf32> -> vector<32x128xf32>
    %c1_334 = arith.constant 1 : index
    %c0_335 = arith.constant 0 : index
    %c0_336 = arith.constant 0 : index
    %971 = vector.load %arg28[%c1_334, %c0_335, %c0_336] : memref<2x1x128xf32, #tpu.memory_space<vmem>>, vector<1x1x128xf32>
    %972 = vector.shape_cast %971 : vector<1x1x128xf32> to vector<1x128xf32>
    %973 = vector.broadcast %972 : vector<1x128xf32> to vector<32x128xf32>
    %974 = arith.addf %970, %973 : vector<32x128xf32>
    %cst_337 = arith.constant 5.000000e-01 : f32
    %975 = vector.broadcast %cst_337 : f32 to vector<32x128xf32>
    %976 = arith.mulf %975, %974 : vector<32x128xf32>
    %cst_338 = arith.constant 4.471500e-02 : f32
    %977 = vector.broadcast %cst_338 : f32 to vector<32x128xf32>
    %978 = arith.mulf %977, %974 : vector<32x128xf32>
    %979 = arith.mulf %978, %974 : vector<32x128xf32>
    %980 = arith.mulf %979, %974 : vector<32x128xf32>
    %981 = arith.addf %974, %980 : vector<32x128xf32>
    %cst_339 = arith.constant 0.797884583 : f32
    %982 = vector.broadcast %cst_339 : f32 to vector<32x128xf32>
    %983 = arith.mulf %982, %981 : vector<32x128xf32>
    %984 = math.tanh %983 : vector<32x128xf32>
    %cst_340 = arith.constant 1.000000e+00 : f32
    %985 = vector.broadcast %cst_340 : f32 to vector<32x128xf32>
    %986 = arith.addf %985, %984 : vector<32x128xf32>
    %987 = arith.mulf %976, %986 : vector<32x128xf32>
    %c1_341 = arith.constant 1 : index
    %c0_342 = arith.constant 0 : index
    %c0_343 = arith.constant 0 : index
    %988 = vector.load %arg29[%c1_341, %c0_342, %c0_343] : memref<2x128x32xbf16, #tpu.memory_space<vmem>>, vector<1x128x32xbf16>
    %989 = vector.shape_cast %988 : vector<1x128x32xbf16> to vector<128x32xbf16>
    %990 = arith.truncf %987 : vector<32x128xf32> to vector<32x128xbf16>
    %cst_344 = arith.constant dense<0.000000e+00> : vector<32x32xf32>
    %991 = tpu.matmul %990, %989, %cst_344 {dimension_numbers = #tpu.dot_dimension_numbers<[1], [0], [0], [1], [0, 0, 1, 1], [], []>} : vector<32x128xbf16>, vector<128x32xbf16>, vector<32x32xf32> -> vector<32x32xf32>
    %992 = arith.addf %940, %991 : vector<32x32xf32>
    %c1_345 = arith.constant 1 : index
    %c0_346 = arith.constant 0 : index
    %c0_347 = arith.constant 0 : index
    %993 = vector.load %arg30[%c1_345, %c0_346, %c0_347] : memref<2x1x32xf32, #tpu.memory_space<vmem>>, vector<1x1x32xf32>
    %994 = vector.shape_cast %993 : vector<1x1x32xf32> to vector<1x32xf32>
    %995 = vector.broadcast %994 : vector<1x32xf32> to vector<32x32xf32>
    %996 = arith.addf %992, %995 : vector<32x32xf32>
    %997 = vector.extract_strided_slice %996 {offsets = [4, 0], sizes = [12, 32], strides = [1, 1]} : vector<32x32xf32> to vector<12x32xf32>
    %c0_348 = arith.constant 0 : index
    %c0_349 = arith.constant 0 : index
    %998 = vector.load %arg39[%c0_348, %c0_349] : memref<24x32xf32, #tpu.memory_space<vmem>>, vector<12x32xf32>
    tpu.vector_store %arg39[%c0_348, %c0_349], %997 {strides = array<i32>} : memref<24x32xf32, #tpu.memory_space<vmem>>, vector<12x32xf32>,
    %999 = vector.extract_strided_slice %996 {offsets = [20, 0], sizes = [12, 32], strides = [1, 1]} : vector<32x32xf32> to vector<12x32xf32>
    %c12 = arith.constant 12 : index
    %c0_350 = arith.constant 0 : index
    %1000 = vector.load %arg39[%c12, %c0_350] : memref<24x32xf32, #tpu.memory_space<vmem>>, vector<12x32xf32>
    tpu.vector_store %arg39[%c12, %c0_350], %999 {strides = array<i32>} : memref<24x32xf32, #tpu.memory_space<vmem>>, vector<12x32xf32>,
    %c0_351 = arith.constant 0 : index
    %c0_352 = arith.constant 0 : index
    %1001 = vector.load %arg39[%c0_351, %c0_352] : memref<24x32xf32, #tpu.memory_space<vmem>>, vector<24x32xf32>
    %c0_353 = arith.constant 0 : index
    %c0_354 = arith.constant 0 : index
    %1002 = vector.load %arg31[%c0_353, %c0_354] : memref<1x32xf32, #tpu.memory_space<vmem>>, vector<1x32xf32>
    %c0_355 = arith.constant 0 : index
    %c0_356 = arith.constant 0 : index
    %1003 = vector.load %arg32[%c0_355, %c0_356] : memref<1x32xf32, #tpu.memory_space<vmem>>, vector<1x32xf32>
    %cst_357 = arith.constant dense<0.000000e+00> : vector<24xf32>
    %1004 = vector.multi_reduction <add>, %1001, %cst_357 [1] : vector<24x32xf32> to vector<24xf32>
    %1005 = vector.shape_cast %1004 : vector<24xf32> to vector<24x1xf32>
    %cst_358 = arith.constant 3.200000e+01 : f32
    %1006 = vector.broadcast %cst_358 : f32 to vector<24x1xf32>
    %1007 = arith.divf %1005, %1006 : vector<24x1xf32>
    %1008 = vector.broadcast %1007 : vector<24x1xf32> to vector<24x32xf32>
    %1009 = arith.subf %1001, %1008 : vector<24x32xf32>
    %1010 = arith.mulf %1009, %1009 : vector<24x32xf32>
    %cst_359 = arith.constant dense<0.000000e+00> : vector<24xf32>
    %1011 = vector.multi_reduction <add>, %1010, %cst_359 [1] : vector<24x32xf32> to vector<24xf32>
    %1012 = vector.shape_cast %1011 : vector<24xf32> to vector<24x1xf32>
    %cst_360 = arith.constant 3.200000e+01 : f32
    %1013 = vector.broadcast %cst_360 : f32 to vector<24x1xf32>
    %1014 = arith.divf %1012, %1013 : vector<24x1xf32>
    %1015 = vector.broadcast %1007 : vector<24x1xf32> to vector<24x32xf32>
    %1016 = arith.subf %1001, %1015 : vector<24x32xf32>
    %cst_361 = arith.constant 9.99999974E-6 : f32
    %1017 = vector.broadcast %cst_361 : f32 to vector<24x1xf32>
    %1018 = arith.addf %1014, %1017 : vector<24x1xf32>
    %1019 = math.rsqrt %1018 : vector<24x1xf32>
    %1020 = vector.broadcast %1019 : vector<24x1xf32> to vector<24x32xf32>
    %1021 = arith.mulf %1016, %1020 : vector<24x32xf32>
    %1022 = vector.broadcast %1002 : vector<1x32xf32> to vector<24x32xf32>
    %1023 = arith.mulf %1021, %1022 : vector<24x32xf32>
    %1024 = vector.broadcast %1003 : vector<1x32xf32> to vector<24x32xf32>
    %1025 = arith.addf %1023, %1024 : vector<24x32xf32>
    %c0_362 = arith.constant 0 : index
    %c0_363 = arith.constant 0 : index
    %1026 = vector.load %arg33[%c0_362, %c0_363] : memref<32x48xbf16, #tpu.memory_space<vmem>>, vector<32x48xbf16>
    %1027 = arith.truncf %1025 : vector<24x32xf32> to vector<24x32xbf16>
    %cst_364 = arith.constant dense<0.000000e+00> : vector<24x48xf32>
    %1028 = tpu.matmul %1027, %1026, %cst_364 {dimension_numbers = #tpu.dot_dimension_numbers<[1], [0], [0], [1], [0, 0, 1, 1], [], []>} : vector<24x32xbf16>, vector<32x48xbf16>, vector<24x48xf32> -> vector<24x48xf32>
    %c0_365 = arith.constant 0 : index
    %c0_366 = arith.constant 0 : index
    %1029 = vector.load %arg34[%c0_365, %c0_366] : memref<1x48xf32, #tpu.memory_space<vmem>>, vector<1x48xf32>
    %1030 = vector.broadcast %1029 : vector<1x48xf32> to vector<24x48xf32>
    %1031 = arith.addf %1028, %1030 : vector<24x48xf32>
    %c0_367 = arith.constant 0 : index
    %c0_368 = arith.constant 0 : index
    %1032 = vector.load %arg36[%c0_367, %c0_368] : memref<24x48xf32, #tpu.memory_space<vmem>>, vector<24x48xf32>
    tpu.vector_store %arg36[%c0_367, %c0_368], %1031 {strides = array<i32>} : memref<24x48xf32, #tpu.memory_space<vmem>>, vector<24x48xf32>,
    return
  }
}

</mosaic_0001>

<bundles_post_ra>
// kernel: pretrain_endomamba_forward.1
= control target key start
LH: loop header
LB: loop body
LE: loop exit
PB: predicated region body
PF: predicated region fallthrough
CT: control target
= control target key end

     0   :  { %s5306_s6 = smov 1   ;;  %s5307_s10 = smov 2   ;;  %s6474_s0 = inlined_call_operand.smem [shape: u32[37], index: -1, kind: input, shape index: {}] }
   0x1   :  { %s5373_s5 = sld [smem:[%s6474_s0]]   ;;  %s5308_s14 = smov 3  }
   0x2   :  { %s5378_s9 = sld [smem:[%s6474_s0 + %s5306_s6]]   ;;  %s5309_s18 = smov 4  }
   0x3   :  { %s5383_s13 = sld [smem:[%s6474_s0 + %s5307_s10]]   ;;  %s5310_s22 = smov 5  }
   0x4   :  { %s5388_s17 = sld [smem:[%s6474_s0 + %s5308_s14]]   ;;  %s5311_s26 = smov 6  }
   0x5   :  { %s5393_s21 = sld [smem:[%s6474_s0 + %s5309_s18]]   ;;  %s5312_s30 = smov 7  }
   0x6   :  { %s5398_s25 = sld [smem:[%s6474_s0 + %s5310_s22]]   ;;  %s5313_s4 = smov 8  }
   0x7   :  { %s5403_s29 = sld [smem:[%s6474_s0 + %s5311_s26]]   ;;  %s5314_s10 = smov 9  }
   0x8   :  { %s5408_s3 = sld [smem:[%s6474_s0 + %s5312_s30]]   ;;  %s5315_s15 = smov 10  }
   0x9   :  { %6489 = sst [smem:[#allocation8_spill]] %s5383_s13  ;;  %s5316_s20 = smov 11  }
   0xa   :  { %6490 = sst [smem:[#allocation9_spill]] %s5388_s17  ;;  %s5317_s26 = smov 12  }
   0xb   :  { %s5413_s8 = sld [smem:[%s6474_s0 + %s5313_s4]]   ;;  %s5318_s1 = smov 13  }
   0xc   :  { %s5418_s14 = sld [smem:[%s6474_s0 + %s5314_s10]]   ;;  %s5319_s7 = smov 14  }
   0xd   :  { %s5423_s19 = sld [smem:[%s6474_s0 + %s5315_s15]]   ;;  %s5320_s15 = smov 15  }
   0xe   :  { %s5428_s24 = sld [smem:[%s6474_s0 + %s5316_s20]]   ;;  %s5321_s22 = smov 16  }
   0xf   :  { %s5433_s30 = sld [smem:[%s6474_s0 + %s5317_s26]]   ;;  %s5322_s28 = smov 17  }
  0x10   :  { %s5438_s6 = sld [smem:[%s6474_s0 + %s5318_s1]]  }
  0x11   :  { %s5443_s12 = sld [smem:[%s6474_s0 + %s5319_s7]]   ;;  %s5323_s7 = smov 18  }
  0x12   :  { %s5448_s20 = sld [smem:[%s6474_s0 + %s5320_s15]]   ;;  %s5324_s15 = smov 19  }
  0x13   :  { %s5453_s27 = sld [smem:[%s6474_s0 + %s5321_s22]]   ;;  %s5325_s22 = smov 20  }
  0x14   :  { %s5458_s4 = sld [smem:[%s6474_s0 + %s5322_s28]]   ;;  %s5326_s28 = smov 21  }
  0x15   :  { %s5463_s13 = sld [smem:[%s6474_s0 + %s5323_s7]]   ;;  %s5327_s7 = smov 22  }
  0x16   :  { %s5468_s17 = sld [smem:[%s6474_s0 + %s5324_s15]]   ;;  %s5328_s15 = smov 23  }
  0x19   :  { %6491 = sst [smem:[#allocation10_spill]] %s5453_s27 }
  0x1a   :  { %6492 = sst [smem:[#allocation11_spill]] %s5458_s4 }
  0x1b   :  { %6493 = sst [smem:[#allocation12_spill]] %s5463_s13 }
  0x1c   :  { %6494 = sst [smem:[#allocation13_spill]] %s5468_s17 }
  0x1d   :  { %s5473_s27 = sld [smem:[%s6474_s0 + %s5325_s22]]   ;;  %s5329_s22 = smov 24  }
  0x1e   :  { %s5478_s4 = sld [smem:[%s6474_s0 + %s5326_s28]]   ;;  %s5330_s28 = smov 25  }
  0x1f   :  { %s5483_s13 = sld [smem:[%s6474_s0 + %s5327_s7]]   ;;  %s5331_s7 = smov 26  }
  0x20   :  { %s5488_s17 = sld [smem:[%s6474_s0 + %s5328_s15]]   ;;  %s5332_s15 = smov 27  }
  0x23   :  { %6495 = sst [smem:[#allocation14_spill]] %s5473_s27 }
  0x24   :  { %6496 = sst [smem:[#allocation15_spill]] %s5478_s4 }
  0x25   :  { %6497 = sst [smem:[#allocation16_spill]] %s5483_s13 }
  0x26   :  { %6498 = sst [smem:[#allocation17_spill]] %s5488_s17 }
  0x27   :  { %s5493_s27 = sld [smem:[%s6474_s0 + %s5329_s22]]   ;;  %s5333_s22 = smov 28  }
  0x28   :  { %s5498_s4 = sld [smem:[%s6474_s0 + %s5330_s28]]   ;;  %s5334_s28 = smov 29  }
  0x29   :  { %s5503_s13 = sld [smem:[%s6474_s0 + %s5331_s7]]   ;;  %s5335_s7 = smov 30  }
  0x2a   :  { %s5508_s17 = sld [smem:[%s6474_s0 + %s5332_s15]]   ;;  %s5336_s15 = smov 31  }
  0x2d   :  { %6499 = sst [smem:[#allocation18_spill]] %s5493_s27 }
  0x2e   :  { %6500 = sst [smem:[#allocation19_spill]] %s5498_s4 }
  0x2f   :  { %6501 = sst [smem:[#allocation20_spill]] %s5503_s13 }
  0x30   :  { %6502 = sst [smem:[#allocation21_spill]] %s5508_s17 }
  0x31   :  { %s5513_s27 = sld [smem:[%s6474_s0 + %s5333_s22]]   ;;  %s5337_s22 = smov 32  }
  0x32   :  { %s5518_s4 = sld [smem:[%s6474_s0 + %s5334_s28]]   ;;  %s5338_s28 = smov 33  }
  0x33   :  { %s5523_s13 = sld [smem:[%s6474_s0 + %s5335_s7]]   ;;  %s5339_s7 = smov 34  }
  0x34   :  { %s5528_s17 = sld [smem:[%s6474_s0 + %s5336_s15]]   ;;  %s5340_s15 = smov 35  }
  0x37   :  { %6503 = sst [smem:[#allocation22_spill]] %s5513_s27 }
  0x38   :  { %6504 = sst [smem:[#allocation23_spill]] %s5518_s4 }
  0x39   :  { %6505 = sst [smem:[#allocation24_spill]] %s5523_s13 }
  0x3a   :  { %6506 = sst [smem:[#allocation25_spill]] %s5528_s17 }
  0x3b   :  { %s5533_s27 = sld [smem:[%s6474_s0 + %s5337_s22]]   ;;  %s5341_s22 = smov 36  }
  0x3c   :  { %s5538_s4 = sld [smem:[%s6474_s0 + %s5338_s28]]  }
  0x3d   :  { %s5543_s13 = sld [smem:[%s6474_s0 + %s5339_s7]]  }
  0x3e   :  { %s5548_s17 = sld [smem:[%s6474_s0 + %s5340_s15]]  }
  0x41   :  { %6507 = sst [smem:[#allocation26_spill]] %s5533_s27 }
  0x42   :  { %s5553_s27 = sld [smem:[%s6474_s0 + %s5341_s22]]  }
  0x43   :  { %v4825_v0 = vld [vmem:[%s5398_s25 + $0x38] sm:$0xff]  ;;  %v4824_v3 = vld [vmem:[%s5398_s25 + $0x30] sm:$0xff]  ;;  %v4823_v6 = vld [vmem:[%s5398_s25 + $0x28] sm:$0xff] }
  0x44   :  { %v4833_v1 = vld [vmem:[%s5398_s25 + $0x78] sm:$0xff]  ;;  %353 = vmatpush.bf16.msra.mxu0 %v4825_v0  ;;  %v4832_v4 = vld [vmem:[%s5398_s25 + $0x70] sm:$0xff]  ;;  %v4831_v7 = vld [vmem:[%s5398_s25 + $0x68] sm:$0xff] }
  0x45   :  { %v4841_v2 = vld [vmem:[%s5398_s25 + $0xb8] sm:$0xff]  ;;  %366 = vmatpush.bf16.msra.mxu1 %v4833_v1  ;;  %v4840_v5 = vld [vmem:[%s5398_s25 + $0xb0] sm:$0xff]  ;;  %v4839_v8 = vld [vmem:[%s5398_s25 + $0xa8] sm:$0xff] }
  0x46   :  { %379 = vmatpush.bf16.msra.mxu2 %v4841_v2  ;;  %v4822_v9 = vld [vmem:[%s5398_s25 + $0x20] sm:$0xff]  ;;  %v4821_v12 = vld [vmem:[%s5398_s25 + $0x18] sm:$0xff]  ;;  %v4820_v15 = vld [vmem:[%s5398_s25 + $0x10] sm:$0xff] }
  0x47   :  { %v4830_v10 = vld [vmem:[%s5398_s25 + $0x60] sm:$0xff]  ;;  %v4829_v13 = vld [vmem:[%s5398_s25 + $0x58] sm:$0xff]  ;;  %v4828_v16 = vld [vmem:[%s5398_s25 + $0x50] sm:$0xff] }
  0x48   :  { %354 = vmatpush.bf16.msra.mxu0 %v4824_v3  ;;  %v4838_v11 = vld [vmem:[%s5398_s25 + $0xa0] sm:$0xff]  ;;  %v4837_v14 = vld [vmem:[%s5398_s25 + $0x98] sm:$0xff] }
  0x49   :  { %367 = vmatpush.bf16.msra.mxu1 %v4832_v4 }
  0x4a   :  { %380 = vmatpush.bf16.msra.mxu2 %v4840_v5 }
  0x4c   :  { %355 = vmatpush.bf16.msra.mxu0 %v4823_v6 }
  0x4d   :  { %368 = vmatpush.bf16.msra.mxu1 %v4831_v7 }
  0x4e   :  { %381 = vmatpush.bf16.msra.mxu2 %v4839_v8 }
  0x50   :  { %356 = vmatpush.bf16.msra.mxu0 %v4822_v9 }
  0x51   :  { %369 = vmatpush.bf16.msra.mxu1 %v4830_v10 }
  0x52   :  { %382 = vmatpush.bf16.msra.mxu2 %v4838_v11 }
  0x54   :  { %357 = vmatpush.bf16.msra.mxu0 %v4821_v12 }
  0x55   :  { %370 = vmatpush.bf16.msra.mxu1 %v4829_v13 }
  0x56   :  { %79 = vsyncpa [#allocation6], 0  ;;  %383 = vmatpush.bf16.msra.mxu2 %v4837_v14  ;;  %v4836_v17 = vld [vmem:[%s5398_s25 + $0x90] sm:$0xff]  ;;  %v4819_v18 = vld [vmem:[%s5398_s25 + $0x8] sm:$0xff]  ;;  %vm396_vm0 = vcmask 261120   ;;  %v5342_v44 = vmov 32.0  }
  0x57   :  { %v4827_v19 = vld [vmem:[%s5398_s25 + $0x48] sm:$0xff]  ;;  %v4818_v21 = vld [vmem:[%s5398_s25] sm:$0xff]  ;;  %v153_v26 = vld [vmem:[%s5373_s5 + $0x10] sm:$0xff]  ;;  %5026 = vrcp.f32 %v5342_v44  ;;  %vm462_vm5 = vcmask 64512   ;;  %vm603_vm10 = vcmask 523264   ;;  %vm630_vm11 = vcmask 1040384  }
  0x58   :  { %358 = vmatpush.bf16.msra.mxu0 %v4820_v15  ;;  %v4835_v20 = vld [vmem:[%s5398_s25 + $0x88] sm:$0xff]  ;;  %v4826_v22 = vld [vmem:[%s5398_s25 + $0x40] sm:$0xff]  ;;  %v204_v29 = vpack.c.bf16 %v153_v26, %v153_v26  ;;  %v5608_v5 = vld [vmem:[%s5393_s21 + $0x10] sm:$0xff]  ;;  %vm626_vm12 = vcmask 15360   ;;  %s5343_s0 = smov 118   ;;  %s5357_s28 = smov 56  }
  0x59   :  { %371 = vmatpush.bf16.msra.mxu1 %v4828_v16  ;;  %v151_v23 = vld [vmem:[%s5373_s5] sm:$0xff]  ;;  %v152_v24 = vld [vmem:[%s5373_s5 + $0x8] sm:$0xff]  ;;  %v5613_v7 = vld [vmem:[%s5393_s21 + $0x18] sm:$0xff]  ;;  %s5344_s5 = smov 126   ;;  %s6517_s1 = sld [smem:[#allocation17_spill]] }
  0x5a   :  { %384 = vmatpush.bf16.msra.mxu2 %v4836_v17  ;;  %v4834_v25 = vld [vmem:[%s5398_s25 + $0x80] sm:$0xff]  ;;  %v202_v27 = vpack.c.bf16 %v151_v23, %v151_v23  ;;  %v203_v28 = vpack.c.bf16 %v152_v24, %v152_v24  ;;  %v4843_v48 = vld [vmem:[%s5413_s8 + $0x8] sm:$0xff]  ;;  %v4847_v14 = vld [vmem:[%s5428_s24 + $0x18] sm:$0xff]  ;;  %s6509_s25 = sld [smem:[#allocation12_spill]]  ;;  %s5358_s2 = smov 112  }
  0x5b   :  { %v5000_v30 = vld [vmem:[%s5403_s29] ss:$0 sm:$0xff]  ;;  %450 = vmatpush.bf16.msra.mxu3 %v4843_v48  ;;  %v5598_v3 = vld [vmem:[%s5393_s21 + $0x8] sm:$0xff]  ;;  %s6508_s21 = sld [smem:[#allocation10_spill]]  ;;  %s5359_s7 = smov 80  }
  0x5c   :  { %359 = vmatpush.bf16.msra.mxu0 %v4819_v18  ;;  %v392_v36 = vld [vmem:[%s5378_s9] sm:$0xff]  ;;  %s5353_s9 = smov 64   ;;  %s6510_s29 = sld [smem:[#allocation9_spill]] }
  0x5d   :  { %372 = vmatpush.bf16.msra.mxu1 %v4827_v19  ;;  %v5027_v45 = vpop.eup %5026  ;;  %v4842_v50 = vld [vmem:[%s5413_s8] sm:$0xff]  ;;  %v4846_v19 = vld [vmem:[%s5428_s24 + $0x10] sm:$0xff]  ;;  %s5360_s10 = smov 104   ;;  %s5361_s11 = smov 72  }
  0x5e   :  { %385 = vmatpush.bf16.msra.mxu2 %v4835_v20  ;;  %v401_v46 = vmul.f32 32.0, %v5027_v45  ;;  %vm405_vm1 = vweird.f32 %v5027_v45  ;;  %v5001_v62 = vld [vmem:[%s5408_s3] ss:$0 sm:$0xff]  ;;  %s5362_s15 = smov 48   ;;  %s5363_s16 = smov 40  }
  0x5f   :  { %451 = vmatpush.bf16.msra.mxu3 %v4842_v50  ;;  %v457_v9 = vld [vmem:[%s5418_s14] sm:$0xf]  ;;  %s6518_s18 = sld [smem:[#allocation18_spill]] }
  0x60   :  { %360 = vmatpush.bf16.msra.mxu0 %v4818_v21  ;;  %v402_v47 = vsub.f32 1.0, %v401_v46  ;;  %v486_v10 = vperm.slane %v457_v9, 2  ;;  %v458_v12 = vperm.slane %v457_v9, 3  ;;  %v514_v13 = vperm.slane %v457_v9, 1  ;;  %v5002_v24 = vld [vmem:[%s5423_s19] ss:$0 sm:$0xff] }
  0x61   :  { %373 = vmatpush.bf16.msra.mxu1 %v4826_v22  ;;  %v542_v18 = vperm.slane %v457_v9, 0  ;;  %s6519_s22 = sld [smem:[#allocation21_spill]] }
  0x62   :  { %386 = vmatpush.bf16.msra.mxu2 %v4834_v25  ;;  %v403_v49 = vmul.f32 %v5027_v45, %v402_v47  ;;  %v4845_v25 = vld [vmem:[%s5428_s24 + $0x8] sm:$0xff]  ;;  %s6520_s23 = sld [smem:[#allocation19_spill]] }
  0x63   :  { %361 = vmatmul.bf16.vlgmr.msra.gmra.mxu0 %v202_v27  ;;  %s6521_s26 = sld [smem:[#allocation20_spill]] }
  0x64   :  { %374 = vmatmul.bf16.vlgmr.msra.gmra.mxu1 %v203_v28  ;;  %v404_v51 = vadd.f32 %v5027_v45, %v403_v49  ;;  %611 = vmatpush.bf16.msrb.mxu0 %v4847_v14  ;;  %v4844_v28 = vld [vmem:[%s5428_s24] sm:$0xff] }
  0x65   :  { %387 = vmatmul.bf16.vlgmr.msra.gmra.mxu2 %v204_v29 }
  0x66   :  { %v5591_v52 = vsel %vm405_vm1, %v5027_v45, %v404_v51 }
  0x68   :  { %612 = vmatpush.bf16.msrb.mxu0 %v4846_v19 }
  0x6c   :  { %613 = vmatpush.bf16.msrb.mxu0 %v4845_v25 }
  0x70   :  { %614 = vmatpush.bf16.msrb.mxu0 %v4844_v28  ;;  %v5348_v28 = vmov 1  }
  0xe0   :  { %v362_v31 = vpop.f32.mrf.mxu0 }
  0xe1   :  { %v375_v32 = vpop.f32.mrf.mxu1  ;;  %v363_v33 = vadd.f32 %v5000_v30, %v362_v31 }
  0xe3   :  { %v376_v34 = vadd.f32 %v375_v32, %v363_v33 }
  0xe8   :  { %v388_v35 = vpop.f32.mrf.mxu2  ;;  %v364_v38 = vpop.f32.mrf.mxu0 }
  0xe9   :  { %v389_v37 = vadd.f32 %v388_v35, %v376_v34  ;;  %v377_v39 = vpop.f32.mrf.mxu1 }
  0xeb   :  { %v5584_v40 = vadd.f32 %v392_v36, %v389_v37 }
  0xed   :  { %v395_v41 = vmul.f32 %v5584_v40, %v5584_v40 }
  0xef   :  { %v397_v42 = vsel %vm396_vm0, %v395_v41, 0.0 }
  0xf0   :  { %v390_v43 = vpop.f32.mrf.mxu2  ;;  %398 = vadd.xlane.f32.xlu0 %v397_v42 }
 0x163   :  { %v399_v53 = vpop.xlane.xlu0 %398 }
 0x164   :  { %v407_v54 = vmul.f32 %v5591_v52, %v399_v53  ;;  %v620_v53 = vld [vmem:[%s5433_s30] sm:$0x1] }
 0x166   :  { %v408_v55 = vadd.f32 1e-05, %v407_v54  ;;  %v632_v54 = vsel %vm630_vm11, %v620_v53, 0 }
 0x167   :  { %641 = vmatpush.bf16.msrb.mxu1 %v632_v54 }
 0x168   :  { %5028 = vrsqrt.f32 %v408_v55  ;;  %vm415_vm3 = vweird.f32 %v408_v55 }
 0x16e   :  { %v5029_v56 = vpop.eup %5028 }
 0x16f   :  { %v410_v57 = vmul.f32 %v5029_v56, %v408_v55  ;;  %vm416_vm2 = vweird.f32 %v5029_v56  ;;  %v4582_v55 = vld [vmem:[%s5433_s30 + $0x1] sm:$0x1]  ;;  %s6516_s30 = sld [smem:[#allocation15_spill]] }
 0x170   :  { %vm417_vm4 = vmor %vm415_vm3, %vm416_vm2  ;;  %vm761_vm2 = vcmask 516096  }
 0x171   :  { %v411_v58 = vmul.f32 %v5029_v56, %v410_v57 }
 0x173   :  { %v412_v59 = vmul.f32 0.5, %v411_v58 }
 0x175   :  { %v413_v60 = vsub.f32 1.5, %v412_v59 }
 0x177   :  { %v414_v61 = vmul.f32 %v5029_v56, %v413_v60 }
 0x179   :  { %v418_v63 = vsel %vm417_vm4, %v5029_v56, %v414_v61  ;;  %v1287_v56 = vsel %vm630_vm11, %v4582_v55, 0 }
 0x17a   :  { %v419_v0 = vmul.f32 %v418_v63, %v5584_v40  ;;  %1296 = vmatpush.bf16.msra.mxu0 %v1287_v56  ;;  %v5003_v63 = vld [vmem:[%s5438_s6] ss:$0 sm:$0xff] }
 0x17c   :  { %v423_v1 = vmul.f32 %v5001_v62, %v419_v0  ;;  %v5345_v62 = vmov 4  }
 0x17d   :  { %4970 = vset.pattern.permute.xlu0 %v5345_v62 }
 0x17e   :  { %v428_v2 = vpack.c.bf16 %v423_v1, %v423_v1 }
 0x180   :  { %4493 = vmatmul.msk.bf16.vlgmr.msra.gmra.mxu3 %vm396_vm0, %v428_v2 }
 0x203   :  { %v5600_v4 = vpop.f32.mrf.mxu3 }
 0x204   :  { %481 = vmatpush.msrb.mxu3 %v5600_v4  ;;  %v459_v16 = vmul.f32 %v458_v12, %v5600_v4  ;;  %v656_v12 = vld [vmem:[%s5443_s12] sm:$0xff] }
 0x205   :  { %4495 = vmatmul.msk.f32.vlgmr.msrb.gmra.mxu3 %vm462_vm5, %v5598_v3 }
 0x206   :  { %509 = vmatpush.msra.mxu3 %v5600_v4 }
 0x208   :  { %537 = vmatpush.msrb.mxu3 %v5600_v4 }
 0x20b   :  { %v455_v6 = vpop.f32.mrf.mxu3 }
 0x20d   :  { %4497 = vmatmul.msk.f32.vlgmr.msra.gmra.mxu3 %vm462_vm5, %v5608_v5 }
 0x215   :  { %4499 = vmatmul.msk.f32.vlgmr.msrb.gmra.mxu3 %vm462_vm5, %v5613_v7 }
 0x288   :  { %v483_v8 = vpop.f32.mrf.mxu3 }
 0x289   :  { %v487_v15 = vmul.f32 %v486_v10, %v483_v8 }
 0x28b   :  { %v488_v20 = vadd.f32 %v487_v15, %v459_v16 }
 0x290   :  { %v511_v11 = vpop.f32.mrf.mxu3 }
 0x291   :  { %v515_v17 = vmul.f32 %v514_v13, %v511_v11  ;;  %v657_v13 = vmul.f32 1.442695, %v656_v12 }
 0x293   :  { %v516_v22 = vadd.f32 %v515_v17, %v488_v20 }
 0x298   :  { %v539_v21 = vpop.f32.mrf.mxu3 }
 0x299   :  { %v543_v23 = vmul.f32 %v542_v18, %v539_v21 }
 0x29b   :  { %v544_v26 = vadd.f32 %v543_v23, %v516_v22  ;;  %v5346_v22 = vmov 2   ;;  %v5347_v23 = vmov 0  }
 0x29d   :  { %v549_v27 = vadd.f32 %v5002_v24, %v544_v26  ;;  %v982_v24 = vsub.f32 0.0, %v5600_v4 }
 0x29f   :  { %v550_v29 = vsub.f32 0.0, %v549_v27  ;;  %v983_v26 = vmul.f32 1.442695, %v982_v24 }
 0x2a1   :  { %v551_v30 = vmul.f32 1.442695, %v550_v29 }
 0x2a3   :  { %5030 = vpow2.f32 %v551_v30  ;;  %v5349_v30 = vmov 7  }
 0x2a9   :  { %v5031_v31 = vpop.eup %5030 }
 0x2aa   :  { %v553_v32 = vadd.f32 1.0, %v5031_v31 }
 0x2ac   :  { %5032 = vrcp.f32 %v553_v32  ;;  %v565_v36 = vand.u32 2147483648, %v553_v32  ;;  %v563_v38 = vand.u32 2147483647, %v553_v32  ;;  %vm559_vm7 = vweird.f32 %v553_v32 }
 0x2ae   :  { %v566_v41 = vor.u32 1.1754944e-38, %v565_v36  ;;  %vm564_vm9 = vcmp.eq.f32.partialorder %v563_v38, 8.507059e+37 }
 0x2b2   :  { %v5033_v33 = vpop.eup %5032 }
 0x2b3   :  { %v555_v34 = vmul.f32 %v5033_v33, %v553_v32  ;;  %vm560_vm6 = vweird.f32 %v5033_v33  ;;  %v5350_v32 = vmov 5  }
 0x2b4   :  { %vm561_vm8 = vmor %vm559_vm7, %vm560_vm6 }
 0x2b5   :  { %v556_v35 = vsub.f32 1.0, %v555_v34  ;;  %v5351_v34 = vmov 3  }
 0x2b7   :  { %v557_v37 = vmul.f32 %v5033_v33, %v556_v35  ;;  %v5352_v35 = vmov 6  }
 0x2b9   :  { %v558_v39 = vadd.f32 %v5033_v33, %v557_v37 }
 0x2bb   :  { %v562_v42 = vsel %vm561_vm8, %v5033_v33, %v558_v39 }
 0x2bc   :  { %v567_v43 = vsel %vm564_vm9, %v566_v41, %v562_v42 }
 0x2bd   :  { %v5624_v44 = vmul.f32 %v567_v43, %v549_v27 }
 0x2bf   :  { %788 = vst [vmem:[#allocation1] sm:$0xff] %v5624_v44  ;;  %v578_v45 = vpack.c.bf16 %v5624_v44, %v5624_v44 }
 0x2c1   :  { %4516 = vmatmul.msk.bf16.vlgmr.msrb.gmra.mxu0 %vm603_vm10, %v578_v45 }
 0x2c6   :  { %v5630_v46 = vld [vmem:[#allocation1 + $0x1] ss:$9 sm:$0xff] }
 0x2c7   :  { %819 = vst [vmem:[#allocation1] sm:$0xff] %v5624_v44 }
 0x2ce   :  { %v5633_v47 = vld [vmem:[#allocation1 + $0x2] ss:$9 sm:$0xff] }
 0x2cf   :  { %850 = vst [vmem:[#allocation1] sm:$0xff] %v5624_v44 }
 0x2d6   :  { %v5636_v48 = vld [vmem:[#allocation1 + $0x3] ss:$9 sm:$0xff] }
 0x2d7   :  { %881 = vst [vmem:[#allocation1] sm:$0xff] %v5624_v44 }
 0x2de   :  { %v5639_v49 = vld [vmem:[#allocation1 + $0x4] ss:$9 sm:$0xff] }
 0x2df   :  { %912 = vst [vmem:[#allocation1] sm:$0xff] %v5624_v44 }
 0x2e6   :  { %v5642_v50 = vld [vmem:[#allocation1 + $0x5] ss:$9 sm:$0xff] }
 0x2e7   :  { %943 = vst [vmem:[#allocation1] sm:$0xff] %v5624_v44 }
 0x2ee   :  { %v5645_v51 = vld [vmem:[#allocation1 + $0x6] ss:$9 sm:$0xff] }
 0x2ef   :  { %974 = vst [vmem:[#allocation1] sm:$0xff] %v5624_v44 }
 0x33e   :  { %v616_v57 = vpop.f32.mrf.mxu0 }
 0x33f   :  { %v621_v58 = vpack.c.bf16 %v616_v57, %v616_v57  ;;  %697 = vrot.lane.b32.xlu1 %v616_v57, %s5343_s0  ;;  %662 = vrot.lane.b32.xlu0 %v616_v57, %s5344_s5 }
 0x341   :  { %4517 = vmatmul.msk.bf16.vlgmr.msrb.gmra.mxu1 %vm626_vm12, %v621_v58 }
 0x346   :  { %v618_v59 = vpop.f32.mrf.mxu0 }
 0x3b1   :  { %v698_v60 = vpop.permute.xlu1 %697  ;;  %v663_v61 = vpop.permute.xlu0 %662 }
 0x3b2   :  { %700 = vxpose.xlu2.b32.start.end [1/1] (short) (narrow) %v698_v60, 8  ;;  %665 = vxpose.xlu1.b32.start.end [1/1] (short) (narrow) %v663_v61, 8 }
 0x3be   :  { %v643_v0 = vpop.f32.mrf.mxu1 }
 0x3bf   :  { %v644_v1 = vadd.f32 %v5003_v63, %v643_v0 }
 0x3c1   :  { %v648_v2 = vand.u32 2147483647, %v644_v1  ;;  %v647_v16 = vmax.f32 %v644_v1, 0.0 }
 0x3c3   :  { %v649_v6 = vsub.f32 0.0, %v648_v2 }
 0x3c5   :  { %v650_v8 = vmul.f32 1.442695, %v649_v6 }
 0x3c6   :  { %v645_v9 = vpop.f32.mrf.mxu1 }
 0x3c7   :  { %5034 = vpow2.f32 %v650_v8 }
 0x3cd   :  { %v5035_v10 = vpop.eup %5034 }
 0x3ce   :  { %v652_v11 = vadd.f32 1.0, %v5035_v10 }
 0x3d0   :  { %5036 = vlog2.f32 %v652_v11 }
 0x3d1   :  { %5038 = vpow2.f32 %v657_v13 }
 0x3d2   :  { %5040 = vpow2.f32 %v983_v26 }
 0x3d6   :  { %v5037_v14 = vpop.eup %5036 }
 0x3d7   :  { %v654_v15 = vmul.f32 0.6931472, %v5037_v14  ;;  %v5039_v17 = vpop.eup %5038 }
 0x3d8   :  { %v5658_v19 = vsub.f32 0.0, %v5039_v17  ;;  %v5041_v29 = vpop.eup %5040  ;;  %v5695_v17 = vld [vmem:[%s5448_s20] sm:$0x1] }
 0x3d9   :  { %v5656_v18 = vadd.f32 %v654_v15, %v647_v16  ;;  %v985_v31 = vadd.f32 1.0, %v5041_v29 }
 0x3db   :  { %v950_v20 = vperm.slane %v5656_v18, 7  ;;  %5042 = vrcp.f32 %v985_v31  ;;  %v997_v41 = vand.u32 2147483648, %v985_v31  ;;  %vm991_vm14 = vweird.f32 %v985_v31 }
 0x3dc   :  { %v995_v42 = vand.u32 2147483647, %v985_v31  ;;  %v732_v55 = vperm.slane %v5656_v18, 0  ;;  %v857_v8 = vperm.slane %v5656_v18, 4  ;;  %v763_v11 = vperm.slane %v5656_v18, 1 }
 0x3dd   :  { %v5662_v21 = vmul.f32 %v950_v20, %v5658_v19  ;;  %v998_v45 = vor.u32 1.1754944e-38, %v997_v41 }
 0x3de   :  { %vm996_vm1 = vcmp.eq.f32.partialorder %v995_v42, 8.507059e+37  ;;  %v733_v56 = vmul.f32 %v732_v55, %v5658_v19  ;;  %v858_v12 = vmul.f32 %v857_v8, %v5658_v19  ;;  %v764_v16 = vmul.f32 %v763_v11, %v5658_v19 }
 0x3e0   :  { %v734_v57 = vmul.f32 1.442695, %v733_v56  ;;  %v859_v20 = vmul.f32 1.442695, %v858_v12  ;;  %v795_v56 = vperm.slane %v5656_v18, 2 }
 0x3e1   :  { %v5043_v33 = vpop.eup %5042 }
 0x3e2   :  { %v987_v36 = vmul.f32 %v5043_v33, %v985_v31  ;;  %vm992_vm13 = vweird.f32 %v5043_v33  ;;  %5044 = vpow2.f32 %v734_v57 }
 0x3e3   :  { %vm993_vm15 = vmor %vm991_vm14, %vm992_vm13  ;;  %5046 = vpow2.f32 %v859_v20 }
 0x3e4   :  { %v988_v37 = vsub.f32 1.0, %v987_v36  ;;  %v888_v36 = vperm.slane %v5656_v18, 5 }
 0x3e6   :  { %v989_v38 = vmul.f32 %v5043_v33, %v988_v37  ;;  %v889_v41 = vmul.f32 %v888_v36, %v5658_v19 }
 0x3e8   :  { %v990_v39 = vadd.f32 %v5043_v33, %v989_v38  ;;  %v5045_v60 = vpop.eup %5044 }
 0x3e9   :  { %v736_v63 = vmul.f32 0.0, %v5045_v60  ;;  %v5047_v38 = vpop.eup %5046 }
 0x3ea   :  { %v994_v43 = vsel %vm993_vm15, %v5043_v33, %v990_v39 }
 0x3eb   :  { %v999_v53 = vsel %vm996_vm1, %v998_v45, %v994_v43  ;;  %v861_v45 = vmul.f32 0.0, %v5047_v38  ;;  %vm1781_vm1 = vcmask 257024  }
 0x3ec   :  { %v1001_v54 = vmul.f32 %v999_v53, %v5600_v4  ;;  %v5686_v4 = vmul.f32 %v5656_v18, %v5624_v44  ;;  %v919_v53 = vperm.slane %v5656_v18, 6 }
 0x3ee   :  { %v743_v59 = vperm.slane %v5686_v4, 0  ;;  %v866_v37 = vperm.slane %v5686_v4, 4 }
 0x405   :  { %4973 = vset.pattern.permute.xlu1 %v5346_v22 }
 0x414   :  { %4969 = vset.pattern.permute.xlu2 %v5347_v23 }
 0x44b   :  { %v716_v27 = vpop.trf.xlu2 }
 0x456   :  { %v681_v25 = vpop.trf.xlu1 }
 0x457   :  { %801 = vperm.xlu1 %4973, %v681_v25   ;;  %863 = vperm.xlu0 %4970, %v681_v25  }
 0x458   :  { %740 = vperm.xlu2 %4969, %v681_v25  }
 0x45f   :  { %4971 = vset.pattern.permute.xlu0 %v5348_v28  ;;  %4983 = vset.pattern.permute.xlu1 %v5349_v30 }
 0x460   :  { %748 = vperm.xlu2 %4969, %v716_v27   ;;  %769 = vperm.xlu0 %4971, %v681_v25  }
 0x461   :  { %963 = vperm.xlu1 %4983, %v716_v27  }
 0x468   :  { %4977 = vset.pattern.permute.xlu2 %v5348_v28  ;;  %4972 = vset.pattern.permute.xlu0 %v5350_v32 }
 0x469   :  { %776 = vperm.xlu2 %4977, %v716_v27   ;;  %894 = vperm.xlu0 %4972, %v681_v25  }
 0x471   :  { %4979 = vset.pattern.permute.xlu2 %v5351_v34  ;;  %4974 = vset.pattern.permute.xlu0 %v5352_v35 }
 0x472   :  { %839 = vperm.xlu2 %4979, %v716_v27   ;;  %925 = vperm.xlu0 %4974, %v681_v25  }
 0x47a   :  { %4980 = vset.pattern.permute.xlu2 %v5345_v62  ;;  %4975 = vset.pattern.permute.xlu0 %v5351_v34 }
 0x47b   :  { %870 = vperm.xlu2 %4980, %v716_v27   ;;  %832 = vperm.xlu0 %4975, %v681_v25  }
 0x483   :  { %4982 = vset.pattern.permute.xlu2 %v5352_v35  ;;  %4976 = vset.pattern.permute.xlu0 %v5349_v30 }
 0x484   :  { %932 = vperm.xlu2 %4982, %v716_v27   ;;  %956 = vperm.xlu0 %4976, %v681_v25   ;;  %v759_v25 = vmul.f32 %v5695_v17, %v5624_v44  ;;  %v772_v44 = vperm.slane %v5686_v4, 1 }
 0x48c   :  { %1003 = vrot.lane.b32.xlu2 %v1001_v54, %s5353_s9  ;;  %4978 = vset.pattern.permute.xlu0 %v5346_v22 }
 0x48d   :  { %808 = vperm.xlu0 %4978, %v716_v27  }
 0x495   :  { %4981 = vset.pattern.permute.xlu0 %v5350_v32 }
 0x496   :  { %901 = vperm.xlu0 %4981, %v716_v27   ;;  %v765_v27 = vmul.f32 1.442695, %v764_v16  ;;  %v826_v16 = vperm.slane %v5656_v18, 3 }
 0x498   :  { %5048 = vpow2.f32 %v765_v27 }
 0x49e   :  { %4984 = vset.pattern.permute.xlu0 %v5347_v23  ;;  %v5049_v42 = vpop.eup %5048 }
 0x4b2   :  { %v741_v58 = vpop.permute.xlu2 %740 }
 0x4b3   :  { %v744_v61 = vmul.f32 %v743_v59, %v741_v58  ;;  %v890_v58 = vmul.f32 1.442695, %v889_v41  ;;  %v885_v41 = vmul.f32 %v5639_v49, %v5695_v17 }
 0x4b5   :  { %v745_v0 = vadd.f32 %v744_v61, %v736_v63  ;;  %v920_v63 = vmul.f32 %v919_v53, %v5658_v19  ;;  %5050 = vpow2.f32 %v890_v58 }
 0x4b7   :  { %v767_v54 = vmul.f32 %v5049_v42, %v745_v0 }
 0x4ba   :  { %v749_v1 = vpop.permute.xlu2 %748 }
 0x4bb   :  { %v751_v2 = vmul.f32 %v749_v1, %v745_v0 }
 0x4bd   :  { %v752_v6 = vsel %vm603_vm10, %v751_v2, 0.0  ;;  %v796_v2 = vmul.f32 %v795_v56, %v5658_v19 }
 0x4be   :  { %v753_v9 = vrot.slane %v752_v6, 4 }
 0x4bf   :  { %v797_v11 = vmul.f32 1.442695, %v796_v2 }
 0x4c0   :  { %v754_v10 = vadd.f32 %v753_v9, %v752_v6 }
 0x4c2   :  { %v755_v13 = vrot.slane %v754_v10, 2 }
 0x4c3   :  { %v777_v14 = vpop.permute.xlu2 %776 }
 0x4c4   :  { %v756_v15 = vadd.f32 %v755_v13, %v754_v10  ;;  %v921_v10 = vmul.f32 1.442695, %v920_v63 }
 0x4c6   :  { %v757_v24 = vrot.slane %v756_v15, 1  ;;  %5052 = vpow2.f32 %v921_v10  ;;  %v952_v10 = vmul.f32 1.442695, %v5662_v21  ;;  %v947_v21 = vmul.f32 %v5645_v51, %v5695_v17 }
 0x4c7   :  { %5054 = vpow2.f32 %v797_v11 }
 0x4c8   :  { %v758_v26 = vadd.f32 %v757_v24, %v756_v15  ;;  %v897_v15 = vperm.slane %v5686_v4, 5 }
 0x4c9   :  { %v864_v29 = vpop.permute.xlu0 %863 }
 0x4ca   :  { %v760_v31 = vadd.f32 %v759_v25, %v758_v26  ;;  %v867_v39 = vmul.f32 %v866_v37, %v864_v29  ;;  %v5051_v25 = vpop.eup %5050 }
 0x4cc   :  { %762 = vst.msk [vmem:[#allocation2] sm:$0x1] %vm761_vm2, %v760_v31  ;;  %v5700_v33 = vpop.permute.xlu2 %839  ;;  %v868_v57 = vadd.f32 %v867_v39, %v861_v45  ;;  %v827_v31 = vmul.f32 %v826_v16, %v5658_v19  ;;  %v792_v45 = vmul.f32 %v5630_v46, %v5695_v17  ;;  %v802_v19 = vpop.permute.xlu1 %801 }
 0x4ce   :  { %v892_v29 = vmul.f32 %v5051_v25, %v868_v57  ;;  %v828_v42 = vmul.f32 1.442695, %v827_v31 }
 0x4d0   :  { %5056 = vpow2.f32 %v828_v42 }
 0x4d1   :  { %5058 = vpow2.f32 %v952_v10 }
 0x4d2   :  { %v770_v43 = vpop.permute.xlu0 %769 }
 0x4d3   :  { %v773_v55 = vmul.f32 %v772_v44, %v770_v43  ;;  %v928_v44 = vperm.slane %v5686_v4, 6  ;;  %v5053_v43 = vpop.eup %5052 }
 0x4d4   :  { %v964_v42 = vpop.permute.xlu1 %963 }
 0x4d5   :  { %v774_v59 = vadd.f32 %v773_v55, %v767_v54  ;;  %v871_v60 = vpop.permute.xlu2 %870  ;;  %v5055_v55 = vpop.eup %5054 }
 0x4d6   :  { %v873_v61 = vmul.f32 %v871_v60, %v868_v57  ;;  %v804_v60 = vperm.slane %v5686_v4, 2  ;;  %v5057_v11 = vpop.eup %5056 }
 0x4d7   :  { %v779_v1 = vmul.f32 %v777_v14, %v774_v59  ;;  %v799_v49 = vmul.f32 %v5055_v55, %v774_v59  ;;  %v5059_v31 = vpop.eup %5058 }
 0x4d8   :  { %v874_v6 = vsel %vm603_vm10, %v873_v61, 0.0 }
 0x4d9   :  { %v780_v8 = vsel %vm603_vm10, %v779_v1, 0.0  ;;  %v875_v9 = vrot.slane %v874_v6, 4  ;;  %v805_v1 = vmul.f32 %v804_v60, %v802_v19 }
 0x4da   :  { %v781_v0 = vrot.slane %v780_v8, 4 }
 0x4db   :  { %v876_v12 = vadd.f32 %v875_v9, %v874_v6  ;;  %v895_v13 = vpop.permute.xlu0 %894  ;;  %v806_v6 = vadd.f32 %v805_v1, %v799_v49  ;;  %v4849_v49 = vld [vmem:[%s6508_s21 + $0x8] sm:$0xff] }
 0x4dc   :  { %v782_v20 = vadd.f32 %v781_v0, %v780_v8  ;;  %v898_v14 = vmul.f32 %v897_v15, %v895_v13  ;;  %v835_v0 = vperm.slane %v5686_v4, 3 }
 0x4dd   :  { %v877_v24 = vrot.slane %v876_v12, 2  ;;  %v830_v13 = vmul.f32 %v5057_v11, %v806_v6 }
 0x4de   :  { %v783_v26 = vrot.slane %v782_v20, 2  ;;  %v5715_v38 = vadd.f32 %v898_v14, %v892_v29  ;;  %v933_v46 = vpop.permute.xlu2 %932  ;;  %v959_v29 = vperm.slane %v5686_v4, 7 }
 0x4df   :  { %v878_v27 = vadd.f32 %v877_v24, %v876_v12 }
 0x4e0   :  { %v784_v36 = vadd.f32 %v783_v26, %v782_v20  ;;  %v923_v57 = vmul.f32 %v5053_v43, %v5715_v38 }
 0x4e1   :  { %v879_v37 = vrot.slane %v878_v27, 1 }
 0x4e2   :  { %v785_v39 = vrot.slane %v784_v36, 1 }
 0x4e3   :  { %v880_v18 = vadd.f32 %v879_v37, %v878_v27 }
 0x4e4   :  { %v786_v53 = vadd.f32 %v785_v39, %v784_v36  ;;  %v926_v54 = vpop.permute.xlu0 %925 }
 0x4e5   :  { %v886_v56 = vadd.f32 %v885_v41, %v880_v18  ;;  %v929_v58 = vmul.f32 %v928_v44, %v926_v54  ;;  %v4850_v54 = vld [vmem:[%s6508_s21 + $0x10] sm:$0xff] }
 0x4e6   :  { %v793_v61 = vadd.f32 %v792_v45, %v786_v53  ;;  %v4851_v45 = vld [vmem:[%s6508_s21 + $0x18] sm:$0xff] }
 0x4e7   :  { %887 = vst.msk [vmem:[#allocation2 + $0x4] sm:$0x1] %vm761_vm2, %v886_v56  ;;  %v930_v63 = vadd.f32 %v929_v58, %v923_v57  ;;  %1047 = vmatpush.bf16.msrb.mxu2 %v4851_v45  ;;  %v854_v56 = vmul.f32 %v5636_v48, %v5695_v17  ;;  %v4853_v45 = vld [vmem:[%s5413_s8 + $0x18] sm:$0xff] }
 0x4e8   :  { %794 = vst.msk [vmem:[#allocation2 + $0x1] sm:$0x1] %vm761_vm2, %v793_v61  ;;  %1107 = vmatpush.bf16.msra.mxu3 %v4853_v45 }
 0x4e9   :  { %v935_v2 = vmul.f32 %v933_v46, %v930_v63  ;;  %v954_v18 = vmul.f32 %v5059_v31, %v930_v63 }
 0x4eb   :  { %v936_v8 = vsel %vm603_vm10, %v935_v2, 0.0  ;;  %1048 = vmatpush.bf16.msrb.mxu2 %v4850_v54 }
 0x4ec   :  { %v937_v9 = vrot.slane %v936_v8, 4 }
 0x4ed   :  { %v833_v12 = vpop.permute.xlu0 %832 }
 0x4ee   :  { %v938_v59 = vadd.f32 %v937_v9, %v936_v8  ;;  %v836_v15 = vmul.f32 %v835_v0, %v833_v12  ;;  %v4848_v9 = vld [vmem:[%s6508_s21] sm:$0xff] }
 0x4ef   :  { %1049 = vmatpush.bf16.msrb.mxu2 %v4849_v49  ;;  %v976_v0 = vld [vmem:[#allocation1 + $0x7] ss:$9 sm:$0xff] }
 0x4f0   :  { %v939_v16 = vrot.slane %v938_v59, 2  ;;  %v837_v20 = vadd.f32 %v836_v15, %v830_v13  ;;  %v978_v12 = vmul.f32 %v976_v0, %v5695_v17 }
 0x4f2   :  { %v940_v24 = vadd.f32 %v939_v16, %v938_v59  ;;  %v842_v14 = vmul.f32 %v5700_v33, %v837_v20 }
 0x4f3   :  { %1050 = vmatpush.bf16.msrb.mxu2 %v4848_v9 }
 0x4f4   :  { %v941_v25 = vrot.slane %v940_v24, 1  ;;  %v843_v26 = vsel %vm603_vm10, %v842_v14, 0.0 }
 0x4f5   :  { %v844_v27 = vrot.slane %v843_v26, 4 }
 0x4f6   :  { %v942_v36 = vadd.f32 %v941_v25, %v940_v24  ;;  %v957_v37 = vpop.permute.xlu0 %956  ;;  %v823_v25 = vmul.f32 %v5633_v47, %v5695_v17 }
 0x4f7   :  { %v845_v39 = vadd.f32 %v844_v27, %v843_v26  ;;  %v960_v41 = vmul.f32 %v959_v29, %v957_v37 }
 0x4f8   :  { %v948_v44 = vadd.f32 %v947_v21, %v942_v36 }
 0x4f9   :  { %v846_v33 = vrot.slane %v845_v39, 2  ;;  %v961_v43 = vadd.f32 %v960_v41, %v954_v18  ;;  %v1004_v41 = vpop.permute.xlu2 %1003 }
 0x4fa   :  { %949 = vst.msk [vmem:[#allocation2 + $0x6] sm:$0x1] %vm761_vm2, %v948_v44 }
 0x4fb   :  { %v847_v53 = vadd.f32 %v846_v33, %v845_v39  ;;  %v966_v4 = vmul.f32 %v964_v42, %v961_v43 }
 0x4fd   :  { %v848_v55 = vrot.slane %v847_v53, 1  ;;  %v967_v51 = vsel %vm603_vm10, %v966_v4, 0.0 }
 0x4fe   :  { %v968_v19 = vrot.slane %v967_v51, 4 }
 0x4ff   :  { %v849_v57 = vadd.f32 %v848_v55, %v847_v53  ;;  %v809_v58 = vpop.permute.xlu0 %808  ;;  %v4852_v53 = vld [vmem:[%s5413_s8 + $0x10] sm:$0xff]  ;;  %s6512_s8 = sld [smem:[#allocation11_spill]] }
 0x500   :  { %v969_v60 = vadd.f32 %v968_v19, %v967_v51  ;;  %v811_v61 = vmul.f32 %v809_v58, %v806_v6  ;;  %1108 = vmatpush.bf16.msra.mxu3 %v4852_v53 }
 0x501   :  { %v855_v63 = vadd.f32 %v854_v56, %v849_v57 }
 0x502   :  { %v970_v1 = vrot.slane %v969_v60, 2  ;;  %v812_v46 = vsel %vm603_vm10, %v811_v61, 0.0 }
 0x503   :  { %856 = vst.msk [vmem:[#allocation2 + $0x3] sm:$0x1] %vm761_vm2, %v855_v63  ;;  %v813_v2 = vrot.slane %v812_v46, 4 }
 0x504   :  { %v971_v8 = vadd.f32 %v970_v1, %v969_v60  ;;  %v5004_v60 = vld [vmem:[%s5408_s3 + $0x1] ss:$0 sm:$0xff]  ;;  %s6511_s3 = sld [smem:[#allocation13_spill]] }
 0x505   :  { %v814_v10 = vadd.f32 %v813_v2, %v812_v46 }
 0x506   :  { %v972_v11 = vrot.slane %v971_v8, 1 }
 0x507   :  { %v815_v48 = vrot.slane %v814_v10, 2 }
 0x508   :  { %v973_v59 = vadd.f32 %v972_v11, %v971_v8  ;;  %v902_v6 = vpop.permute.xlu0 %901  ;;  %v4549_v8 = vld [vmem:[%s5418_s14 + $0x4] sm:$0xf]  ;;  %s6513_s14 = sld [smem:[#allocation8_spill]] }
 0x509   :  { %v816_v13 = vadd.f32 %v815_v48, %v814_v10  ;;  %v904_v15 = vmul.f32 %v902_v6, %v5715_v38  ;;  %v916_v38 = vmul.f32 %v5642_v50, %v5695_v17  ;;  %v1142_v9 = vperm.slane %v4549_v8, 2 }
 0x50a   :  { %v979_v16 = vadd.f32 %v978_v12, %v973_v59  ;;  %v1116_v0 = vperm.slane %v4549_v8, 3  ;;  %v1169_v48 = vperm.slane %v4549_v8, 1  ;;  %v1196_v6 = vperm.slane %v4549_v8, 0 }
 0x50b   :  { %v817_v20 = vrot.slane %v816_v13, 1  ;;  %v905_v24 = vsel %vm603_vm10, %v904_v15, 0.0  ;;  %v4857_v15 = vld [vmem:[%s5428_s24 + $0x38] sm:$0xff] }
 0x50c   :  { %980 = vst.msk [vmem:[#allocation2 + $0x7] sm:$0x1] %vm761_vm2, %v979_v16  ;;  %v906_v14 = vrot.slane %v905_v24, 4  ;;  %1266 = vmatpush.bf16.msrb.mxu3 %v4857_v15 }
 0x50d   :  { %v818_v26 = vadd.f32 %v817_v20, %v816_v13  ;;  %v5005_v20 = vld [vmem:[%s5423_s19 + $0x1] ss:$0 sm:$0xff]  ;;  %s6514_s19 = sld [smem:[#allocation16_spill]] }
 0x50e   :  { %v907_v27 = vadd.f32 %v906_v14, %v905_v24  ;;  %v4856_v14 = vld [vmem:[%s5428_s24 + $0x30] sm:$0xff] }
 0x50f   :  { %v824_v29 = vadd.f32 %v823_v25, %v818_v26 }
 0x510   :  { %v908_v31 = vrot.slane %v907_v27, 2  ;;  %1267 = vmatpush.bf16.msrb.mxu3 %v4856_v14 }
 0x511   :  { %825 = vst.msk [vmem:[#allocation2 + $0x2] sm:$0x1] %vm761_vm2, %v824_v29 }
 0x512   :  { %v909_v21 = vadd.f32 %v908_v31, %v907_v27  ;;  %v4855_v27 = vld [vmem:[%s5428_s24 + $0x28] sm:$0xff]  ;;  %v4854_v31 = vld [vmem:[%s5428_s24 + $0x20] sm:$0xff]  ;;  %s6515_s24 = sld [smem:[#allocation14_spill]] }
 0x514   :  { %v910_v36 = vrot.slane %v909_v21, 1  ;;  %1268 = vmatpush.bf16.msrb.mxu3 %v4855_v27 }
 0x516   :  { %v911_v37 = vadd.f32 %v910_v36, %v909_v21 }
 0x518   :  { %v917_v39 = vadd.f32 %v916_v38, %v911_v37  ;;  %1269 = vmatpush.bf16.msrb.mxu3 %v4854_v31 }
 0x51a   :  { %918 = vst.msk [vmem:[#allocation2 + $0x5] sm:$0x1] %vm761_vm2, %v917_v39 }
 0x521   :  { %v981_v18 = vld [vmem:[#allocation2] sm:$0xff] }
 0x522   :  { %v1006_v47 = vmul.f32 %v1004_v41, %v981_v18 }
 0x524   :  { %v1015_v44 = vpack.c.bf16 %v1006_v47, %v1006_v47 }
 0x526   :  { %4534 = vmatmul.msk.bf16.vlgmr.msrb.gmra.mxu2 %vm603_vm10, %v1015_v44 }
 0x5a9   :  { %v1052_v42 = vpop.f32.mrf.mxu2 }
 0x5aa   :  { %v5756_v33 = vadd.f32 %v1052_v42, %v5584_v40 }
 0x5ac   :  { %v1059_v43 = vmul.f32 %v5756_v33, %v5756_v33 }
 0x5ae   :  { %v1060_v50 = vsel %vm396_vm0, %v1059_v43, 0.0 }
 0x5af   :  { %1061 = vadd.xlane.f32.xlu0 %v1060_v50 }
 0x5b1   :  { %v1054_v17 = vpop.f32.mrf.mxu2 }
 0x622   :  { %v1062_v4 = vpop.xlane.xlu0 %1061 }
 0x623   :  { %v1063_v54 = vmul.f32 %v1062_v4, %v5591_v52 }
 0x625   :  { %v1064_v55 = vadd.f32 1e-05, %v1063_v54 }
 0x627   :  { %5060 = vrsqrt.f32 %v1064_v55  ;;  %vm1071_vm4 = vweird.f32 %v1064_v55 }
 0x62d   :  { %v5061_v51 = vpop.eup %5060 }
 0x62e   :  { %v1066_v40 = vmul.f32 %v5061_v51, %v1064_v55  ;;  %vm1072_vm3 = vweird.f32 %v5061_v51 }
 0x62f   :  { %vm1073_vm6 = vmor %vm1071_vm4, %vm1072_vm3  ;;  %vm1785_vm4 = vcmask 261124  }
 0x630   :  { %v1067_v19 = vmul.f32 %v5061_v51, %v1066_v40 }
 0x632   :  { %v1068_v56 = vmul.f32 0.5, %v1067_v19 }
 0x634   :  { %v1069_v57 = vsub.f32 1.5, %v1068_v56 }
 0x636   :  { %v1070_v58 = vmul.f32 %v5061_v51, %v1069_v57 }
 0x638   :  { %v1074_v61 = vsel %vm1073_vm6, %v5061_v51, %v1070_v58 }
 0x639   :  { %v1075_v49 = vmul.f32 %v1074_v61, %v5756_v33  ;;  %v5006_v61 = vld [vmem:[%s5438_s6 + $0x1] ss:$0 sm:$0xff]  ;;  %s5354_s6 = smov 88  }
 0x63b   :  { %v1079_v63 = vmul.f32 %v5004_v60, %v1075_v49 }
 0x63d   :  { %v1085_v1 = vpack.c.bf16 %v1079_v63, %v1079_v63 }
 0x63f   :  { %4548 = vmatmul.msk.bf16.vlgmr.msra.gmra.mxu3 %vm396_vm0, %v1085_v1 }
 0x6c2   :  { %v5767_v46 = vpop.f32.mrf.mxu3 }
 0x6c3   :  { %1137 = vmatpush.msra.mxu2 %v5767_v46  ;;  %1164 = vmatpush.msra.mxu1 %v5767_v46 }
 0x6c4   :  { %4551 = vmatmul.msk.f32.vlgmr.msra.gmra.mxu2 %vm462_vm5, %v5598_v3  ;;  %4553 = vmatmul.msk.f32.vlgmr.msra.gmra.mxu1 %vm462_vm5, %v5608_v5  ;;  %v1117_v3 = vmul.f32 %v1116_v0, %v5767_v46 }
 0x6c5   :  { %1191 = vmatpush.msrb.mxu2 %v5767_v46 }
 0x6ca   :  { %v1112_v2 = vpop.f32.mrf.mxu3 }
 0x6cc   :  { %4555 = vmatmul.msk.f32.vlgmr.msrb.gmra.mxu2 %vm462_vm5, %v5613_v7 }
 0x741   :  { %v1166_v12 = vpop.f32.mrf.mxu1 }
 0x742   :  { %v1170_v59 = vmul.f32 %v1169_v48, %v1166_v12 }
 0x747   :  { %v1139_v10 = vpop.f32.mrf.mxu2 }
 0x748   :  { %v1143_v11 = vmul.f32 %v1142_v9, %v1139_v10 }
 0x74a   :  { %v1144_v5 = vadd.f32 %v1143_v11, %v1117_v3  ;;  %v4585_v11 = vld [vmem:[%s5443_s12 + $0x8] sm:$0xff]  ;;  %s5355_s12 = smov 96  }
 0x74b   :  { %v1313_v48 = vmul.f32 1.442695, %v4585_v11 }
 0x74c   :  { %v1171_v16 = vadd.f32 %v1170_v59, %v1144_v5 }
 0x74f   :  { %v1193_v13 = vpop.f32.mrf.mxu2 }
 0x750   :  { %v1197_v7 = vmul.f32 %v1196_v6, %v1193_v13 }
 0x752   :  { %v1198_v24 = vadd.f32 %v1197_v7, %v1171_v16  ;;  %v1638_v7 = vsub.f32 0.0, %v5767_v46 }
 0x754   :  { %v1204_v25 = vadd.f32 %v5005_v20, %v1198_v24  ;;  %v1639_v20 = vmul.f32 1.442695, %v1638_v7 }
 0x756   :  { %v1205_v26 = vsub.f32 0.0, %v1204_v25 }
 0x758   :  { %v1206_v29 = vmul.f32 1.442695, %v1205_v26 }
 0x75a   :  { %5062 = vpow2.f32 %v1206_v29 }
 0x760   :  { %v5063_v21 = vpop.eup %5062 }
 0x761   :  { %v1208_v36 = vadd.f32 1.0, %v5063_v21 }
 0x763   :  { %5064 = vrcp.f32 %v1208_v36  ;;  %v1220_v41 = vand.u32 2147483648, %v1208_v36  ;;  %v1218_v47 = vand.u32 2147483647, %v1208_v36  ;;  %vm1214_vm8 = vweird.f32 %v1208_v36 }
 0x765   :  { %v1221_v42 = vor.u32 1.1754944e-38, %v1220_v41  ;;  %vm1219_vm11 = vcmp.eq.f32.partialorder %v1218_v47, 8.507059e+37 }
 0x769   :  { %v5065_v38 = vpop.eup %5064 }
 0x76a   :  { %v1210_v37 = vmul.f32 %v5065_v38, %v1208_v36  ;;  %vm1215_vm7 = vweird.f32 %v5065_v38 }
 0x76b   :  { %vm1216_vm9 = vmor %vm1214_vm8, %vm1215_vm7 }
 0x76c   :  { %v1211_v39 = vsub.f32 1.0, %v1210_v37 }
 0x76e   :  { %v1212_v18 = vmul.f32 %v5065_v38, %v1211_v39 }
 0x770   :  { %v1213_v44 = vadd.f32 %v5065_v38, %v1212_v18 }
 0x772   :  { %v1217_v43 = vsel %vm1216_vm9, %v5065_v38, %v1213_v44 }
 0x773   :  { %v1222_v50 = vsel %vm1219_vm11, %v1221_v42, %v1217_v43 }
 0x774   :  { %v5785_v17 = vmul.f32 %v1222_v50, %v1204_v25 }
 0x776   :  { %1444 = vst [vmem:[#allocation1] sm:$0xff] %v5785_v17  ;;  %v1234_v45 = vpack.c.bf16 %v5785_v17, %v5785_v17 }
 0x778   :  { %4581 = vmatmul.msk.bf16.vlgmr.msrb.gmra.mxu3 %vm603_vm10, %v1234_v45 }
 0x77d   :  { %v5791_v53 = vld [vmem:[#allocation1 + $0x1] ss:$9 sm:$0xff] }
 0x77e   :  { %1475 = vst [vmem:[#allocation1] sm:$0xff] %v5785_v17 }
 0x785   :  { %v5794_v4 = vld [vmem:[#allocation1 + $0x2] ss:$9 sm:$0xff] }
 0x786   :  { %1506 = vst [vmem:[#allocation1] sm:$0xff] %v5785_v17 }
 0x78d   :  { %v5797_v54 = vld [vmem:[#allocation1 + $0x3] ss:$9 sm:$0xff] }
 0x78e   :  { %1537 = vst [vmem:[#allocation1] sm:$0xff] %v5785_v17 }
 0x795   :  { %v5800_v55 = vld [vmem:[#allocation1 + $0x4] ss:$9 sm:$0xff] }
 0x796   :  { %1568 = vst [vmem:[#allocation1] sm:$0xff] %v5785_v17 }
 0x79d   :  { %v5803_v51 = vld [vmem:[#allocation1 + $0x5] ss:$9 sm:$0xff] }
 0x79e   :  { %1599 = vst [vmem:[#allocation1] sm:$0xff] %v5785_v17 }
 0x7a5   :  { %v5806_v40 = vld [vmem:[#allocation1 + $0x6] ss:$9 sm:$0xff] }
 0x7a6   :  { %1630 = vst [vmem:[#allocation1] sm:$0xff] %v5785_v17 }
 0x7fb   :  { %v1271_v19 = vpop.f32.mrf.mxu3 }
 0x7fc   :  { %v1277_v56 = vpack.c.bf16 %v1271_v19, %v1271_v19  ;;  %1354 = vrot.lane.b32.xlu2 %v1271_v19, %s5343_s0  ;;  %1319 = vrot.lane.b32.xlu1 %v1271_v19, %s5344_s5  ;;  %s6522_s0 = sld [smem:[#allocation23_spill]] }
 0x7fd   :  { %s6523_s5 = sld [smem:[#allocation22_spill]] }
 0x7fe   :  { %4584 = vmatmul.msk.bf16.vlgmr.msra.gmra.mxu0 %vm626_vm12, %v1277_v56 }
 0x803   :  { %v1273_v57 = vpop.f32.mrf.mxu3 }
 0x856   :  { %v1355_v58 = vpop.permute.xlu2 %1354 }
 0x857   :  { %1357 = vxpose.xlu2.b32.start.end [1/1] (short) (narrow) %v1355_v58, 8 }
 0x86e   :  { %v1320_v60 = vpop.permute.xlu1 %1319 }
 0x86f   :  { %1322 = vxpose.xlu1.b32.start.end [1/1] (short) (narrow) %v1320_v60, 8 }
 0x87b   :  { %v1298_v49 = vpop.f32.mrf.mxu0 }
 0x87c   :  { %v1299_v63 = vadd.f32 %v5006_v61, %v1298_v49 }
 0x87e   :  { %v1303_v1 = vand.u32 2147483647, %v1299_v63  ;;  %v1302_v5 = vmax.f32 %v1299_v63, 0.0 }
 0x880   :  { %v1304_v2 = vsub.f32 0.0, %v1303_v1 }
 0x882   :  { %v1305_v8 = vmul.f32 1.442695, %v1304_v2 }
 0x883   :  { %v1300_v9 = vpop.f32.mrf.mxu0 }
 0x884   :  { %5066 = vpow2.f32 %v1305_v8 }
 0x88a   :  { %v5067_v0 = vpop.eup %5066 }
 0x88b   :  { %v1307_v10 = vadd.f32 1.0, %v5067_v0 }
 0x88d   :  { %5068 = vlog2.f32 %v1307_v10 }
 0x88e   :  { %5070 = vpow2.f32 %v1313_v48 }
 0x88f   :  { %5072 = vpow2.f32 %v1639_v20 }
 0x893   :  { %v5069_v12 = vpop.eup %5068 }
 0x894   :  { %v1309_v3 = vmul.f32 0.6931472, %v5069_v12  ;;  %v5071_v59 = vpop.eup %5070 }
 0x895   :  { %v5816_v13 = vsub.f32 0.0, %v5071_v59  ;;  %v5073_v24 = vpop.eup %5072 }
 0x896   :  { %v5814_v6 = vadd.f32 %v1309_v3, %v1302_v5  ;;  %v1641_v14 = vadd.f32 1.0, %v5073_v24  ;;  %v5859_v24 = vld [vmem:[%s5448_s20 + $0x1] sm:$0x1]  ;;  %s5356_s20 = smov 120  }
 0x898   :  { %v1606_v15 = vperm.slane %v5814_v6, 7  ;;  %5074 = vrcp.f32 %v1641_v14  ;;  %vm1647_vm13 = vweird.f32 %v1641_v14  ;;  %v1651_v36 = vand.u32 2147483647, %v1641_v14 }
 0x899   :  { %v1389_v18 = vperm.slane %v5814_v6, 0  ;;  %v1419_v44 = vperm.slane %v5814_v6, 1  ;;  %v1544_v59 = vperm.slane %v5814_v6, 5 }
 0x89a   :  { %v5820_v16 = vmul.f32 %v1606_v15, %v5816_v13  ;;  %vm1652_vm15 = vcmp.eq.f32.partialorder %v1651_v36, 8.507059e+37  ;;  %v1575_v36 = vperm.slane %v5814_v6, 6 }
 0x89b   :  { %v1390_v47 = vmul.f32 %v1389_v18, %v5816_v13  ;;  %v1420_v45 = vmul.f32 %v1419_v44, %v5816_v13 }
 0x89d   :  { %v1391_v43 = vmul.f32 1.442695, %v1390_v47  ;;  %v1421_v58 = vmul.f32 1.442695, %v1420_v45 }
 0x89e   :  { %v5075_v27 = vpop.eup %5074 }
 0x89f   :  { %v1643_v29 = vmul.f32 %v5075_v27, %v1641_v14  ;;  %vm1648_vm12 = vweird.f32 %v5075_v27 }
 0x8a0   :  { %vm1649_vm14 = vmor %vm1647_vm13, %vm1648_vm12 }
 0x8a1   :  { %v1644_v31 = vsub.f32 1.0, %v1643_v29  ;;  %v1545_v29 = vmul.f32 %v1544_v59, %v5816_v13 }
 0x8b9   :  { %4985 = vset.pattern.permute.xlu2 %v5345_v62 }
 0x8c2   :  { %4986 = vset.pattern.permute.xlu1 %v5348_v28 }
 0x8f0   :  { %v1373_v26 = vpop.trf.xlu2 }
 0x913   :  { %v1338_v25 = vpop.trf.xlu1 }
 0x914   :  { %1425 = vperm.xlu1 %4986, %v1338_v25   ;;  %1519 = vperm.xlu2 %4985, %v1338_v25  }
 0x915   :  { %1397 = vperm.xlu0 %4984, %v1338_v25  }
 0x91c   :  { %4992 = vset.pattern.permute.xlu1 %v5347_v23  ;;  %4993 = vset.pattern.permute.xlu2 %v5348_v28  ;;  %v1645_v23 = vmul.f32 %v5075_v27, %v1644_v31  ;;  %v1653_v28 = vand.u32 2147483648, %v1641_v14 }
 0x91d   :  { %4987 = vset.pattern.permute.xlu0 %v5350_v32  ;;  %1405 = vperm.xlu1 %4992, %v1373_v26  }
 0x91e   :  { %1432 = vperm.xlu2 %4993, %v1373_v26   ;;  %1550 = vperm.xlu0 %4987, %v1338_v25   ;;  %v1646_v21 = vadd.f32 %v5075_v27, %v1645_v23  ;;  %v1654_v38 = vor.u32 1.1754944e-38, %v1653_v28 }
 0x925   :  { %4995 = vset.pattern.permute.xlu1 %v5351_v34 }
 0x926   :  { %4996 = vset.pattern.permute.xlu2 %v5345_v62  ;;  %4988 = vset.pattern.permute.xlu0 %v5346_v22  ;;  %v1650_v62 = vsel %vm1649_vm14, %v5075_v27, %v1646_v21 }
 0x927   :  { %1495 = vperm.xlu1 %4995, %v1373_v26   ;;  %1526 = vperm.xlu2 %4996, %v1373_v26   ;;  %v1655_v37 = vsel %vm1652_vm15, %v1654_v38, %v1650_v62 }
 0x928   :  { %1457 = vperm.xlu0 %4988, %v1338_v25   ;;  %v1657_v39 = vmul.f32 %v1655_v37, %v5767_v46 }
 0x92f   :  { %4997 = vset.pattern.permute.xlu1 %v5350_v32  ;;  %4998 = vset.pattern.permute.xlu2 %v5352_v35  ;;  %v1513_v32 = vperm.slane %v5814_v6, 4 }
 0x930   :  { %4989 = vset.pattern.permute.xlu0 %v5352_v35  ;;  %1557 = vperm.xlu1 %4997, %v1373_v26  }
 0x931   :  { %1581 = vperm.xlu0 %4989, %v1338_v25   ;;  %1588 = vperm.xlu2 %4998, %v1373_v26   ;;  %v1514_v35 = vmul.f32 %v1513_v32, %v5816_v13  ;;  %v1451_v32 = vperm.slane %v5814_v6, 2 }
 0x933   :  { %v1515_v46 = vmul.f32 1.442695, %v1514_v35 }
 0x935   :  { %5076 = vpow2.f32 %v1515_v46 }
 0x936   :  { %5078 = vpow2.f32 %v1391_v43 }
 0x937   :  { %5080 = vpow2.f32 %v1421_v58 }
 0x938   :  { %1659 = vrot.lane.b32.xlu1 %v1657_v39, %s5353_s9  ;;  %v1546_v39 = vmul.f32 1.442695, %v1545_v29 }
 0x939   :  { %4990 = vset.pattern.permute.xlu0 %v5351_v34  ;;  %v5845_v34 = vmul.f32 %v5814_v6, %v5785_v17 }
 0x93a   :  { %1488 = vperm.xlu0 %4990, %v1338_v25   ;;  %5082 = vpow2.f32 %v1546_v39 }
 0x93b   :  { %v5077_v42 = vpop.eup %5076  ;;  %v1400_v2 = vperm.slane %v5845_v34, 0  ;;  %v1428_v48 = vperm.slane %v5845_v34, 1  ;;  %v1491_v39 = vperm.slane %v5845_v34, 3 }
 0x93c   :  { %v1517_v19 = vmul.f32 0.0, %v5077_v42  ;;  %v5079_v49 = vpop.eup %5078 }
 0x93d   :  { %v1393_v10 = vmul.f32 0.0, %v5079_v49  ;;  %v5081_v3 = vpop.eup %5080  ;;  %v1448_v49 = vmul.f32 %v5859_v24, %v5791_v53  ;;  %v1584_v53 = vperm.slane %v5845_v34, 6 }
 0x942   :  { %4991 = vset.pattern.permute.xlu0 %v5349_v30 }
 0x943   :  { %1612 = vperm.xlu0 %4991, %v1338_v25   ;;  %v1541_v25 = vmul.f32 %v5859_v24, %v5800_v55 }
 0x94b   :  { %4994 = vset.pattern.permute.xlu0 %v5346_v22 }
 0x94c   :  { %1464 = vperm.xlu0 %4994, %v1373_v26  }
 0x954   :  { %4999 = vset.pattern.permute.xlu0 %v5349_v30  ;;  %v1522_v30 = vperm.slane %v5845_v34, 4 }
 0x955   :  { %1619 = vperm.xlu0 %4999, %v1373_v26  }
 0x96e   :  { %v1520_v41 = vpop.permute.xlu2 %1519 }
 0x96f   :  { %v1523_v50 = vmul.f32 %v1522_v30, %v1520_v41  ;;  %v1576_v41 = vmul.f32 %v1575_v36, %v5816_v13 }
 0x971   :  { %v5851_v56 = vadd.f32 %v1523_v50, %v1517_v19  ;;  %v1577_v42 = vmul.f32 1.442695, %v1576_v41  ;;  %v1553_v50 = vperm.slane %v5845_v34, 5  ;;  %v1482_v19 = vperm.slane %v5814_v6, 3 }
 0x973   :  { %5084 = vpow2.f32 %v1577_v42  ;;  %v1483_v6 = vmul.f32 %v1482_v19, %v5816_v13 }
 0x978   :  { %v1433_v22 = vpop.permute.xlu2 %1432 }
 0x981   :  { %v1527_v57 = vpop.permute.xlu2 %1526 }
 0x982   :  { %v1529_v60 = vmul.f32 %v1527_v57, %v5851_v56 }
 0x984   :  { %v1530_v61 = vsel %vm603_vm10, %v1529_v60, 0.0  ;;  %v1416_v60 = vmul.f32 %v5859_v24, %v5785_v17 }
 0x985   :  { %v1531_v63 = vrot.slane %v1530_v61, 4 }
 0x986   :  { %v1426_v1 = vpop.permute.xlu1 %1425 }
 0x987   :  { %v1532_v8 = vadd.f32 %v1531_v63, %v1530_v61  ;;  %v1398_v9 = vpop.permute.xlu0 %1397  ;;  %v1429_v15 = vmul.f32 %v1428_v48, %v1426_v1  ;;  %v5083_v1 = vpop.eup %5082 }
 0x988   :  { %v1401_v0 = vmul.f32 %v1400_v2, %v1398_v9  ;;  %v1608_v9 = vmul.f32 1.442695, %v5820_v16  ;;  %v1460_v16 = vperm.slane %v5845_v34, 2 }
 0x989   :  { %v1533_v11 = vrot.slane %v1532_v8, 2 }
 0x98a   :  { %v1402_v12 = vadd.f32 %v1401_v0, %v1393_v10  ;;  %v1548_v0 = vmul.f32 %v5083_v1, %v5851_v56 }
 0x98b   :  { %v1534_v5 = vadd.f32 %v1533_v11, %v1532_v8  ;;  %v1589_v29 = vpop.permute.xlu2 %1588 }
 0x98c   :  { %v1423_v7 = vmul.f32 %v5081_v3, %v1402_v12  ;;  %v5085_v3 = vpop.eup %5084 }
 0x98d   :  { %v1535_v20 = vrot.slane %v1534_v5, 1 }
 0x98e   :  { %v5861_v14 = vadd.f32 %v1429_v15, %v1423_v7 }
 0x98f   :  { %v1536_v26 = vadd.f32 %v1535_v20, %v1534_v5  ;;  %v1406_v27 = vpop.permute.xlu1 %1405 }
 0x990   :  { %v1408_v31 = vmul.f32 %v1406_v27, %v1402_v12  ;;  %v1551_v23 = vpop.permute.xlu0 %1550  ;;  %v1435_v21 = vmul.f32 %v1433_v22, %v5861_v14  ;;  %v1452_v22 = vmul.f32 %v1451_v32, %v5816_v13  ;;  %v1484_v12 = vmul.f32 1.442695, %v1483_v6  ;;  %v4860_v6 = vld [vmem:[%s6508_s21 + $0x30] sm:$0xff] }
 0x991   :  { %v1542_v28 = vadd.f32 %v1541_v25, %v1536_v26  ;;  %v1554_v61 = vmul.f32 %v1553_v50, %v1551_v23 }
 0x992   :  { %v1409_v62 = vsel %vm603_vm10, %v1408_v31, 0.0  ;;  %v1436_v38 = vsel %vm603_vm10, %v1435_v21, 0.0  ;;  %v1453_v63 = vmul.f32 1.442695, %v1452_v22 }
 0x993   :  { %1543 = vst.msk [vmem:[#allocation2 + $0x4] sm:$0x1] %vm761_vm2, %v1542_v28  ;;  %v1410_v37 = vrot.slane %v1409_v62, 4  ;;  %v1437_v55 = vrot.slane %v1436_v38, 4  ;;  %v1555_v48 = vadd.f32 %v1554_v61, %v1548_v0  ;;  %v1603_v61 = vmul.f32 %v5859_v24, %v5806_v40 }
 0x994   :  { %5086 = vpow2.f32 %v1453_v63 }
 0x995   :  { %v1411_v35 = vadd.f32 %v1410_v37, %v1409_v62  ;;  %v1438_v46 = vadd.f32 %v1437_v55, %v1436_v38  ;;  %5088 = vpow2.f32 %v1608_v9  ;;  %v1579_v59 = vmul.f32 %v5085_v3, %v1555_v48  ;;  %v4861_v9 = vld [vmem:[%s6508_s21 + $0x38] sm:$0xff] }
 0x996   :  { %5090 = vpow2.f32 %v1484_v12  ;;  %1704 = vmatpush.bf16.msrb.mxu1 %v4861_v9 }
 0x997   :  { %v1412_v18 = vrot.slane %v1411_v35, 2  ;;  %v1439_v47 = vrot.slane %v1438_v46, 2 }
 0x999   :  { %v1413_v44 = vadd.f32 %v1412_v18, %v1411_v35  ;;  %v5874_v30 = vpop.permute.xlu1 %1495  ;;  %v1440_v43 = vadd.f32 %v1439_v47, %v1438_v46 }
 0x99a   :  { %v1458_v45 = vpop.permute.xlu0 %1457  ;;  %v5087_v20 = vpop.eup %5086  ;;  %1705 = vmatpush.bf16.msrb.mxu1 %v4860_v6 }
 0x99b   :  { %v1414_v57 = vrot.slane %v1413_v44, 1  ;;  %v1441_v58 = vrot.slane %v1440_v43, 1  ;;  %v1461_v15 = vmul.f32 %v1460_v16, %v1458_v45  ;;  %v5089_v27 = vpop.eup %5088  ;;  %v1455_v31 = vmul.f32 %v5087_v20, %v5861_v14  ;;  %v4858_v16 = vld [vmem:[%s6508_s21 + $0x20] sm:$0xff] }
 0x99c   :  { %v5091_v55 = vpop.eup %5090  ;;  %v1572_v14 = vmul.f32 %v5859_v24, %v5803_v51 }
 0x99d   :  { %v1415_v2 = vadd.f32 %v1414_v57, %v1413_v44  ;;  %v1442_v8 = vadd.f32 %v1441_v58, %v1440_v43  ;;  %v1462_v36 = vadd.f32 %v1461_v15, %v1455_v31  ;;  %v1615_v58 = vperm.slane %v5845_v34, 7 }
 0x99f   :  { %v1417_v10 = vadd.f32 %v1416_v60, %v1415_v2  ;;  %v1449_v11 = vadd.f32 %v1448_v49, %v1442_v8  ;;  %v1486_v18 = vmul.f32 %v5091_v55, %v1462_v36 }
 0x9a1   :  { %1418 = vst.msk [vmem:[#allocation2] sm:$0x1] %vm761_vm2, %v1417_v10  ;;  %v1510_v10 = vmul.f32 %v5859_v24, %v5797_v54 }
 0x9a2   :  { %v1558_v17 = vpop.permute.xlu1 %1557  ;;  %1450 = vst.msk [vmem:[#allocation2 + $0x1] sm:$0x1] %vm761_vm2, %v1449_v11 }
 0x9a3   :  { %v1560_v5 = vmul.f32 %v1558_v17, %v1555_v48  ;;  %v1582_v56 = vpop.permute.xlu0 %1581  ;;  %v4859_v17 = vld [vmem:[%s6508_s21 + $0x28] sm:$0xff]  ;;  %s6524_s21 = sld [smem:[#allocation24_spill]] }
 0x9a4   :  { %v1585_v13 = vmul.f32 %v1584_v53, %v1582_v56  ;;  %1706 = vmatpush.bf16.msrb.mxu1 %v4859_v17 }
 0x9a5   :  { %v1561_v7 = vsel %vm603_vm10, %v1560_v5, 0.0 }
 0x9a6   :  { %v1562_v25 = vrot.slane %v1561_v7, 4  ;;  %v1586_v26 = vadd.f32 %v1585_v13, %v1579_v59 }
 0x9a8   :  { %v1563_v23 = vadd.f32 %v1562_v25, %v1561_v7  ;;  %v1591_v21 = vmul.f32 %v1589_v29, %v1586_v26  ;;  %v1610_v28 = vmul.f32 %v5089_v27, %v1586_v26  ;;  %1707 = vmatpush.bf16.msrb.mxu1 %v4858_v16  ;;  %v1479_v25 = vmul.f32 %v5859_v24, %v5794_v4 }
 0x9aa   :  { %v1564_v62 = vrot.slane %v1563_v23, 2  ;;  %v1592_v38 = vsel %vm603_vm10, %v1591_v21, 0.0  ;;  %v1632_v21 = vld [vmem:[#allocation1 + $0x7] ss:$9 sm:$0xff]  ;;  %v1660_v4 = vpop.permute.xlu1 %1659 }
 0x9ab   :  { %v1593_v37 = vrot.slane %v1592_v38, 4 }
 0x9ac   :  { %v1565_v32 = vadd.f32 %v1564_v62, %v1563_v23  ;;  %v1489_v35 = vpop.permute.xlu0 %1488 }
 0x9ad   :  { %v1594_v41 = vadd.f32 %v1593_v37, %v1592_v38  ;;  %v1492_v46 = vmul.f32 %v1491_v39, %v1489_v35 }
 0x9ae   :  { %v1566_v47 = vrot.slane %v1565_v32, 1 }
 0x9af   :  { %v1595_v22 = vrot.slane %v1594_v41, 2  ;;  %v1493_v44 = vadd.f32 %v1492_v46, %v1486_v18  ;;  %v4863_v18 = vld [vmem:[%s6509_s25 + $0x8] sm:$0xff] }
 0x9b0   :  { %v1567_v42 = vadd.f32 %v1566_v47, %v1565_v32  ;;  %1764 = vmatpush.bf16.msra.mxu2 %v4863_v18  ;;  %v4862_v47 = vld [vmem:[%s6509_s25] sm:$0xff]  ;;  %s4340_s25 = sshll.u32 %s5548_s17, 4  ;;  %s4341_s25 = int_to_ptr.hbm [resolvable:$true] %s4340_s25 }
 0x9b1   :  { %v1596_v43 = vadd.f32 %v1595_v22, %v1594_v41  ;;  %v1498_v50 = vmul.f32 %v5874_v30, %v1493_v44  ;;  %v1772_v22 = vld [vmem:[%s6510_s29] sm:$0xff]  ;;  %v1773_v44 = vld [vmem:[%s6510_s29 + $0x8] sm:$0xff] }
 0x9b2   :  { %v1573_v45 = vadd.f32 %v1572_v14, %v1567_v42  ;;  %v5008_v14 = vld [vmem:[%s6511_s3] ss:$0 sm:$0xff] }
 0x9b3   :  { %v1597_v19 = vrot.slane %v1596_v43, 1  ;;  %v1499_v57 = vsel %vm603_vm10, %v1498_v50, 0.0  ;;  %v1778_v42 = vadd.f32 %v5008_v14, %v1772_v22 }
 0x9b4   :  { %1574 = vst.msk [vmem:[#allocation2 + $0x5] sm:$0x1] %vm761_vm2, %v1573_v45  ;;  %v1500_v60 = vrot.slane %v1499_v57, 4  ;;  %1765 = vmatpush.bf16.msra.mxu2 %v4862_v47 }
 0x9b5   :  { %v1598_v49 = vadd.f32 %v1597_v19, %v1596_v43  ;;  %v1613_v51 = vpop.permute.xlu0 %1612  ;;  %v1779_v43 = vadd.f32 %v5008_v14, %v1773_v44  ;;  %1783 = vst.msk [vmem:[#allocation3 + $0x4] sm:$0xff] %vm396_vm0, %v1778_v42 }
 0x9b6   :  { %v1616_v63 = vmul.f32 %v1615_v58, %v1613_v51  ;;  %v1501_v1 = vadd.f32 %v1500_v60, %v1499_v57 }
 0x9b7   :  { %v1604_v30 = vadd.f32 %v1603_v61, %v1598_v49  ;;  %1784 = vst.msk [vmem:[#allocation3 + $0xc] sm:$0xf] %vm1781_vm1, %v1779_v43 }
 0x9b8   :  { %v1502_v2 = vrot.slane %v1501_v1, 2  ;;  %v1617_v8 = vadd.f32 %v1616_v63, %v1610_v28  ;;  %1787 = vst.msk [vmem:[#allocation3 + $0x10] sm:$0xf0] %vm1785_vm4, %v1779_v43 }
 0x9b9   :  { %1605 = vst.msk [vmem:[#allocation2 + $0x6] sm:$0x1] %vm761_vm2, %v1604_v30 }
 0x9ba   :  { %v1503_v0 = vadd.f32 %v1502_v2, %v1501_v1  ;;  %v5007_v1 = vld [vmem:[%s6512_s8] ss:$0 sm:$0xff]  ;;  %s5292_s8 = sshra.s32 %s4341_s25, 4  ;;  %s5293_s8 = int_to_ptr.hbm [resolvable:$true] %s5292_s8 }
 0x9bb   :  { %p5297_p1 = scmp.lt.s32.totalorder %s5293_s8, %s5548_s17 }
 0x9bc   :  { %v1504_v34 = vrot.slane %v1503_v0, 1 }
 0x9be   :  { %v1465_v40 = vpop.permute.xlu0 %1464  ;;  %v1505_v11 = vadd.f32 %v1504_v34, %v1503_v0  ;;  %v1790_v19 = vld [vmem:[#allocation3 + $0x8] sm:$0xff]  ;;  %v1774_v0 = vld [vmem:[%s6510_s29 + $0x10] sm:$0xff]  ;;  %v1742_v34 = vld [vmem:[%s6513_s14] sm:$0xff]  ;;  %s5364_s29 = smov [#allocation5]   ;;  %s5294_s14 = scalar_lea.hbm %s5293_s8, 8 }
 0x9bf   :  { %v1467_v48 = vmul.f32 %v1465_v40, %v1462_v36  ;;  %v1634_v36 = vmul.f32 %v5859_v24, %v1632_v21  ;;  %v1798_v57 = vsel %vm396_vm0, %v1790_v19, 0.0  ;;  %v1780_v6 = vadd.f32 %v5008_v14, %v1774_v0  ;;  %s4338_s3 = sshll.u32 %s5364_s29, 4  ;;  %p5295_p0 = scmp.ne.s32.totalorder %s5293_s8, %s5294_s14  ;;  %s4339_s3 = int_to_ptr.vmem [resolvable:$true] %s4338_s3 }
 0x9c0   :  { %v1511_v53 = vadd.f32 %v1510_v10, %v1505_v11  ;;  %1799 = vadd.xlane.f32.xlu0 %v1798_v57 }
 0x9c1   :  { %v1468_v12 = vsel %vm603_vm10, %v1467_v48, 0.0  ;;  %1788 = vst.msk [vmem:[#allocation3 + $0x18] sm:$0xff] %vm396_vm0, %v1780_v6 }
 0x9c2   :  { %v1469_v3 = vrot.slane %v1468_v12, 4  ;;  %1512 = vst.msk [vmem:[#allocation2 + $0x3] sm:$0x1] %vm761_vm2, %v1511_v53 }
 0x9c4   :  { %v1470_v5 = vadd.f32 %v1469_v3, %v1468_v12 }
 0x9c6   :  { %v1471_v56 = vrot.slane %v1470_v5, 2 }
 0x9c7   :  { %v1620_v59 = vpop.permute.xlu0 %1619 }
 0x9c8   :  { %v1472_v13 = vadd.f32 %v1471_v56, %v1470_v5  ;;  %v1622_v15 = vmul.f32 %v1620_v59, %v1617_v8  ;;  %v1792_v10 = vld [vmem:[#allocation3 + $0x18] sm:$0xff] }
 0x9c9   :  { %v1804_v40 = vsel %vm396_vm0, %v1792_v10, 0.0 }
 0x9ca   :  { %v1473_v54 = vrot.slane %v1472_v13, 1  ;;  %v1623_v7 = vsel %vm603_vm10, %v1622_v15, 0.0  ;;  %1805 = vadd.xlane.f32.xlu0 %v1804_v40 }
 0x9cb   :  { %v1624_v20 = vrot.slane %v1623_v7, 4 }
 0x9cc   :  { %v1474_v26 = vadd.f32 %v1473_v54, %v1472_v13 }
 0x9cd   :  { %v1625_v27 = vadd.f32 %v1624_v20, %v1623_v7 }
 0x9ce   :  { %v1480_v29 = vadd.f32 %v1479_v25, %v1474_v26 }
 0x9cf   :  { %v1626_v31 = vrot.slane %v1625_v27, 2 }
 0x9d0   :  { %1481 = vst.msk [vmem:[#allocation2 + $0x2] sm:$0x1] %vm761_vm2, %v1480_v29 }
 0x9d1   :  { %v1627_v23 = vadd.f32 %v1626_v31, %v1625_v27 }
 0x9d3   :  { %v1628_v28 = vrot.slane %v1627_v23, 1 }
 0x9d5   :  { %v1629_v62 = vadd.f32 %v1628_v28, %v1627_v23 }
 0x9d7   :  { %v1635_v38 = vadd.f32 %v1634_v36, %v1629_v62 }
 0x9d9   :  { %1636 = vst.msk [vmem:[#allocation2 + $0x7] sm:$0x1] %vm761_vm2, %v1635_v38 }
 0x9e0   :  { %v1637_v37 = vld [vmem:[#allocation2] sm:$0xff] }
 0x9e1   :  { %v1662_v39 = vmul.f32 %v1660_v4, %v1637_v37  ;;  %v4865_v4 = vld [vmem:[%s6514_s19 + $0x8] sm:$0xff]  ;;  %v4864_v37 = vld [vmem:[%s6514_s19] sm:$0xff] }
 0x9e2   :  { %1927 = vmatpush.bf16.msra.mxu3 %v4865_v4 }
 0x9e3   :  { %v1672_v55 = vpack.c.bf16 %v1662_v39, %v1662_v39 }
 0x9e5   :  { %4611 = vmatmul.msk.bf16.vlgmr.msrb.gmra.mxu1 %vm603_vm10, %v1672_v55 }
 0x9e6   :  { %1928 = vmatpush.bf16.msra.mxu3 %v4864_v37 }
 0xa33   :  { %v1800_v17 = vpop.xlane.xlu0 %1799 }
 0xa34   :  { %v1808_v53 = vmul.f32 %v1800_v17, %v5591_v52 }
 0xa36   :  { %v1812_v3 = vsub.f32 %v1790_v19, %v1808_v53 }
 0xa38   :  { %v1816_v56 = vmul.f32 %v1812_v3, %v1812_v3 }
 0xa3a   :  { %v1822_v59 = vsel %vm396_vm0, %v1816_v56, 0.0 }
 0xa3d   :  { %v1806_v20 = vpop.xlane.xlu0 %1805 }
 0xa3e   :  { %v1810_v26 = vmul.f32 %v1806_v20, %v5591_v52 }
 0xa40   :  { %v5944_v29 = vsub.f32 %v1792_v10, %v1810_v26 }
 0xa42   :  { %v1818_v23 = vmul.f32 %v5944_v29, %v5944_v29 }
 0xa44   :  { %v1828_v21 = vsel %vm396_vm0, %v1818_v23, 0.0 }
 0xa62   :  { %v1709_v32 = vpop.f32.mrf.mxu1 }
 0xa63   :  { %v1713_v35 = vadd.f32 %v1709_v32, %v5756_v33 }
 0xa65   :  { %v1715_v41 = vmul.f32 %v1713_v35, %v1713_v35 }
 0xa67   :  { %v1716_v24 = vsel %vm396_vm0, %v1715_v41, 0.0 }
 0xa68   :  { %1717 = vadd.xlane.f32.xlu2 %v1716_v24 }
 0xa6a   :  { %v1711_v46 = vpop.f32.mrf.mxu1 }
 0xadb   :  { %v1718_v50 = vpop.xlane.xlu2 %1717 }
 0xadc   :  { %v1719_v45 = vmul.f32 %v1718_v50, %v5591_v52 }
 0xade   :  { %v1720_v33 = vadd.f32 1e-05, %v1719_v45 }
 0xae0   :  { %5092 = vrsqrt.f32 %v1720_v33  ;;  %vm1727_vm2 = vweird.f32 %v1720_v33 }
 0xae6   :  { %v5093_v58 = vpop.eup %5092 }
 0xae7   :  { %v1722_v60 = vmul.f32 %v5093_v58, %v1720_v33  ;;  %vm1728_vm10 = vweird.f32 %v5093_v58 }
 0xae8   :  { %vm1729_vm3 = vmor %vm1727_vm2, %vm1728_vm10 }
 0xae9   :  { %v1723_v61 = vmul.f32 %v5093_v58, %v1722_v60 }
 0xaeb   :  { %v1724_v49 = vmul.f32 0.5, %v1723_v61 }
 0xaed   :  { %v1725_v51 = vsub.f32 1.5, %v1724_v49 }
 0xaef   :  { %v1726_v63 = vmul.f32 %v5093_v58, %v1725_v51  ;;  %v5010_v51 = vld [vmem:[%s6516_s30] ss:$0 sm:$0xff] }
 0xaf1   :  { %v1730_v30 = vsel %vm1729_vm3, %v5093_v58, %v1726_v63  ;;  %v5009_v58 = vld [vmem:[%s6515_s24] ss:$0 sm:$0xff]  ;;  %vm2024_vm3 = vcmask 130048  }
 0xaf2   :  { %v1731_v2 = vmul.f32 %v1730_v30, %v1713_v35 }
 0xaf4   :  { %v1735_v8 = vmul.f32 %v5007_v1, %v1731_v2 }
 0xaf6   :  { %1736 = vst.msk [vmem:[#allocation5] sm:$0xff] %vm396_vm0, %v1735_v8  ;;  %v1741_v9 = vpack.c.bf16 %v1735_v8, %v1735_v8 }
 0xaf8   :  { %4620 = vmatmul.msk.bf16.vlgmr.msra.gmra.mxu2 %vm396_vm0, %v1741_v9 }
 0xb7b   :  { %v1767_v11 = vpop.f32.mrf.mxu2 }
 0xb7c   :  { %v1768_v48 = vadd.f32 %v1767_v11, %v1742_v34 }
 0xb7e   :  { %1782 = vst.msk [vmem:[#allocation3] sm:$0xf] %vm1781_vm1, %v1768_v48 }
 0xb7f   :  { %1786 = vst.msk [vmem:[#allocation3 + $0xc] sm:$0xf0] %vm1785_vm4, %v1768_v48 }
 0xb83   :  { %v1769_v12 = vpop.f32.mrf.mxu2 }
 0xb85   :  { %v1789_v16 = vld [vmem:[#allocation3] sm:$0xff] }
 0xb86   :  { %v1795_v5 = vsel %vm396_vm0, %v1789_v16, 0.0  ;;  %v1791_v27 = vld [vmem:[#allocation3 + $0x10] sm:$0xff] }
 0xb87   :  { %1796 = vadd.xlane.f32.xlu1 %v1795_v5  ;;  %v1801_v31 = vsel %vm396_vm0, %v1791_v27, 0.0 }
 0xb8f   :  { %1823 = vadd.xlane.f32.xlu1 %v1822_v59 }
 0xbfa   :  { %v1797_v13 = vpop.xlane.xlu1 %1796 }
 0xbfb   :  { %v1807_v15 = vmul.f32 %v1797_v13, %v5591_v52 }
 0xbfd   :  { %v1811_v54 = vsub.f32 %v1789_v16, %v1807_v15 }
 0xbff   :  { %v1815_v7 = vmul.f32 %v1811_v54, %v1811_v54 }
 0xc01   :  { %v1819_v25 = vsel %vm396_vm0, %v1815_v7, 0.0 }
 0xc02   :  { %1820 = vadd.xlane.f32.xlu2 %v1819_v25  ;;  %v1824_v28 = vpop.xlane.xlu1 %1823 }
 0xc03   :  { %v1832_v36 = vmul.f32 %v1824_v28, %v5591_v52 }
 0xc05   :  { %v1836_v62 = vadd.f32 1e-05, %v1832_v36 }
 0xc07   :  { %5094 = vrsqrt.f32 %v1836_v62  ;;  %vm1855_vm6 = vweird.f32 %v1836_v62 }
 0xc0a   :  { %1802 = vadd.xlane.f32.xlu2 %v1801_v31 }
 0xc0d   :  { %v5095_v38 = vpop.eup %5094 }
 0xc0e   :  { %v1850_v39 = vmul.f32 %v5095_v38, %v1836_v62  ;;  %vm1856_vm7 = vweird.f32 %v5095_v38 }
 0xc0f   :  { %vm1857_vm8 = vmor %vm1855_vm6, %vm1856_vm7  ;;  %vm2281_vm6 = vcmask 1043456  }
 0xc10   :  { %v1851_v55 = vmul.f32 %v5095_v38, %v1850_v39 }
 0xc12   :  { %1829 = vadd.xlane.f32.xlu2 %v1828_v21  ;;  %v1852_v24 = vmul.f32 0.5, %v1851_v55 }
 0xc14   :  { %v1853_v46 = vsub.f32 1.5, %v1852_v24 }
 0xc16   :  { %v1854_v14 = vmul.f32 %v5095_v38, %v1853_v46 }
 0xc18   :  { %v1858_v33 = vsel %vm1857_vm8, %v5095_v38, %v1854_v14 }
 0xc19   :  { %v1880_v60 = vmul.f32 %v1858_v33, %v1812_v3 }
 0xc1b   :  { %v1887_v63 = vmul.f32 %v5009_v58, %v1880_v60 }
 0xc1d   :  { %v1894_v2 = vadd.f32 %v5010_v51, %v1887_v63 }
 0xc75   :  { %v1821_v32 = vpop.xlane.xlu2 %1820 }
 0xc76   :  { %v1831_v35 = vmul.f32 %v1821_v32, %v5591_v52 }
 0xc78   :  { %v1835_v41 = vadd.f32 1e-05, %v1831_v35 }
 0xc7a   :  { %5096 = vrsqrt.f32 %v1835_v41  ;;  %vm1845_vm11 = vweird.f32 %v1835_v41 }
 0xc7d   :  { %v1803_v18 = vpop.xlane.xlu2 %1802 }
 0xc7e   :  { %v1809_v47 = vmul.f32 %v1803_v18, %v5591_v52 }
 0xc80   :  { %v5097_v22 = vpop.eup %5096  ;;  %v1813_v44 = vsub.f32 %v1791_v27, %v1809_v47 }
 0xc81   :  { %v1840_v42 = vmul.f32 %v5097_v22, %v1835_v41  ;;  %vm1846_vm9 = vweird.f32 %v5097_v22 }
 0xc82   :  { %v1817_v43 = vmul.f32 %v1813_v44, %v1813_v44  ;;  %vm1847_vm12 = vmor %vm1845_vm11, %vm1846_vm9 }
 0xc83   :  { %v1841_v50 = vmul.f32 %v5097_v22, %v1840_v42 }
 0xc84   :  { %v1825_v45 = vsel %vm396_vm0, %v1817_v43, 0.0 }
 0xc85   :  { %v1842_v19 = vmul.f32 0.5, %v1841_v50  ;;  %1826 = vadd.xlane.f32.xlu1 %v1825_v45  ;;  %v1830_v0 = vpop.xlane.xlu2 %1829 }
 0xc86   :  { %v1834_v6 = vmul.f32 %v1830_v0, %v5591_v52 }
 0xc87   :  { %v1843_v57 = vsub.f32 1.5, %v1842_v19 }
 0xc88   :  { %v1838_v34 = vadd.f32 1e-05, %v1834_v6 }
 0xc89   :  { %v1844_v61 = vmul.f32 %v5097_v22, %v1843_v57 }
 0xc8a   :  { %5098 = vrsqrt.f32 %v1838_v34  ;;  %vm1875_vm13 = vweird.f32 %v1838_v34 }
 0xc8b   :  { %v1848_v49 = vsel %vm1847_vm12, %v5097_v22, %v1844_v61 }
 0xc8c   :  { %v1879_v1 = vmul.f32 %v1848_v49, %v1811_v54 }
 0xc8e   :  { %v1886_v30 = vmul.f32 %v5009_v58, %v1879_v1 }
 0xc90   :  { %v1893_v8 = vadd.f32 %v5010_v51, %v1886_v30  ;;  %v5099_v10 = vpop.eup %5098 }
 0xc91   :  { %v1870_v40 = vmul.f32 %v5099_v10, %v1838_v34  ;;  %vm1876_vm14 = vweird.f32 %v5099_v10 }
 0xc92   :  { %v1901_v9 = vpack.c.bf16 %v1894_v2, %v1893_v8  ;;  %vm1877_vm15 = vmor %vm1875_vm13, %vm1876_vm14 }
 0xc93   :  { %v1871_v11 = vmul.f32 %v5099_v10, %v1870_v40 }
 0xc94   :  { %4629 = vmatmul.msk.bf16.vlgmr.msra.gmra.mxu3 %vm396_vm0, %v1901_v9 }
 0xc95   :  { %v1872_v12 = vmul.f32 0.5, %v1871_v11 }
 0xc97   :  { %v1873_v3 = vsub.f32 1.5, %v1872_v12 }
 0xc99   :  { %v1874_v5 = vmul.f32 %v5099_v10, %v1873_v3 }
 0xc9b   :  { %v1878_v13 = vsel %vm1877_vm15, %v5099_v10, %v1874_v5 }
 0xc9c   :  { %v1882_v7 = vmul.f32 %v1878_v13, %v5944_v29 }
 0xc9e   :  { %v1889_v27 = vmul.f32 %v5009_v58, %v1882_v7 }
 0xca0   :  { %v1896_v21 = vadd.f32 %v5010_v51, %v1889_v27 }
 0xcf8   :  { %v1827_v48 = vpop.xlane.xlu1 %1826 }
 0xcf9   :  { %v1833_v17 = vmul.f32 %v1827_v48, %v5591_v52 }
 0xcfb   :  { %v1837_v53 = vadd.f32 1e-05, %v1833_v17 }
 0xcfd   :  { %5100 = vrsqrt.f32 %v1837_v53  ;;  %vm1865_vm10 = vweird.f32 %v1837_v53 }
 0xd03   :  { %v5101_v16 = vpop.eup %5100 }
 0xd04   :  { %v1860_v56 = vmul.f32 %v5101_v16, %v1837_v53  ;;  %vm1866_vm1 = vweird.f32 %v5101_v16 }
 0xd05   :  { %vm1867_vm2 = vmor %vm1865_vm10, %vm1866_vm1 }
 0xd06   :  { %v1861_v59 = vmul.f32 %v5101_v16, %v1860_v56 }
 0xd08   :  { %v1862_v15 = vmul.f32 0.5, %v1861_v59 }
 0xd0a   :  { %v1863_v54 = vsub.f32 1.5, %v1862_v15 }
 0xd0c   :  { %v1864_v20 = vmul.f32 %v5101_v16, %v1863_v54 }
 0xd0e   :  { %v1868_v25 = vsel %vm1867_vm2, %v5101_v16, %v1864_v20 }
 0xd0f   :  { %v1881_v26 = vmul.f32 %v1868_v25, %v1813_v44 }
 0xd11   :  { %v1888_v31 = vmul.f32 %v5009_v58, %v1881_v26 }
 0xd13   :  { %v1895_v23 = vadd.f32 %v5010_v51, %v1888_v31 }
 0xd15   :  { %v1902_v28 = vpack.c.bf16 %v1896_v21, %v1895_v23 }
 0xd17   :  { %v1930_v36 = vpop.f32.mrf.mxu3  ;;  %4630 = vmatmul.msk.bf16.gmra.mxu3 %vm396_vm0, %v1902_v28 }
 0xd18   :  { %v1956_v62 = vpack.c.bf16 %v1930_v36, %v1930_v36  ;;  %v1948_v39 = vmul.f32 0.35355338, %v1930_v36 }
 0xd1a   :  { %v1967_v55 = vunpack.c.l.b16 %v1956_v62  ;;  %v1952_v41 = vpack.c.bf16 %v1948_v39, %v1948_v39 }
 0xd1c   :  { %v1962_v46 = vunpack.c.l.b16 %v1952_v41 }
 0xd1f   :  { %v1932_v38 = vpop.f32.mrf.mxu3 }
 0xd20   :  { %v1949_v4 = vmul.f32 0.35355338, %v1932_v38  ;;  %v1957_v37 = vpack.c.bf16 %v1932_v38, %v1932_v38 }
 0xd22   :  { %v1968_v29 = vunpack.c.l.b16 %v1957_v37  ;;  %v1953_v32 = vpack.c.bf16 %v1949_v4, %v1949_v4 }
 0xd24   :  { %v5963_v35 = vpack.c.b16 %v1968_v29, %v1967_v55  ;;  %v1963_v24 = vunpack.c.l.b16 %v1953_v32 }
 0xd26   :  { %2128 = vrot.lane.b32.xlu2 %v5963_v35, %s5354_s6  ;;  %1970 = vrot.lane.b32.xlu0 %v5963_v35, %s5355_s12  ;;  %v5969_v18 = vpack.c.b16 %v1963_v24, %v1962_v46 }
 0xd2e   :  { %2126 = vrot.lane.b32.xlu0 %v5969_v18, %s5356_s20 }
 0xd80   :  { %v2129_v58 = vpop.permute.xlu2 %2128 }
 0xd81   :  { %v2134_v63 = vsel %vm462_vm5, %v2129_v58, 0 }
 0xd98   :  { %v1971_v47 = vpop.permute.xlu0 %1970 }
 0xd99   :  { %v1976_v22 = vsel %vm462_vm5, %v1971_v47, 0 }
 0xd9a   :  { %v1935_v44 = vpop.f32.mrf.mxu3  ;;  %1985 = vmatpush.bf16.xpose.msrb.mxu0 %v1976_v22 }
 0xd9b   :  { %v1958_v14 = vpack.c.bf16 %v1935_v44, %v1935_v44  ;;  %v1950_v57 = vmul.f32 0.35355338, %v1935_v44 }
 0xd9d   :  { %v1999_v50 = vunpack.c.l.b16 %v1958_v14  ;;  %v1954_v49 = vpack.c.bf16 %v1950_v57, %v1950_v57 }
 0xd9f   :  { %v1994_v8 = vunpack.c.l.b16 %v1954_v49 }
 0xda0   :  { %v2127_v34 = vpop.permute.xlu0 %2126 }
 0xda1   :  { %4631 = vmatmul.msk.bf16.vlgmr.msrb.gmra.mxu0 %vm462_vm5, %v5969_v18 }
 0xda2   :  { %v1937_v42 = vpop.f32.mrf.mxu3 }
 0xda3   :  { %v1959_v43 = vpack.c.bf16 %v1937_v42, %v1937_v42  ;;  %v1951_v19 = vmul.f32 0.35355338, %v1937_v42 }
 0xda5   :  { %v2000_v45 = vunpack.c.l.b16 %v1959_v43  ;;  %v1955_v60 = vpack.c.bf16 %v1951_v19, %v1951_v19 }
 0xda7   :  { %v5976_v33 = vpack.c.b16 %v2000_v45, %v1999_v50  ;;  %v1995_v1 = vunpack.c.l.b16 %v1955_v60 }
 0xda9   :  { %2002 = vrot.lane.b32.xlu1 %v5976_v33, %s5355_s12  ;;  %v5983_v9 = vpack.c.b16 %v1995_v1, %v1994_v8 }
 0xe1b   :  { %v2003_v61 = vpop.permute.xlu1 %2002 }
 0xe1c   :  { %v2008_v51 = vsel %vm462_vm5, %v2003_v61, 0 }
 0xe1d   :  { %2017 = vmatpush.bf16.xpose.msrb.mxu2 %v2008_v51 }
 0xe1e   :  { %v1987_v30 = vpop.f32.mrf.mxu0 }
 0xe1f   :  { %v2025_v2 = vsel %vm2024_vm3, %v1987_v30, -inf }
 0xe20   :  { %2026 = vmax.xlane.f32.xlu1 %v2025_v2  ;;  %v6019_v2 = vld [vmem:[%s6517_s1] sm:$0xff]  }
 0xe21   :  { %v4892_v8 = vunpack.c.l.bf16 %v6019_v2 }
 0xe24   :  { %4632 = vmatmul.msk.bf16.vlgmr.msrb.gmra.mxu2 %vm462_vm5, %v5983_v9 }
 0xe25   :  { %2143 = vmatpush.bf16.xpose.msra.mxu2 %v2134_v63 }
 0xe26   :  { %v1989_v0 = vpop.f32.mrf.mxu0 }
 0xe27   :  { %v2028_v6 = vsel %vm2024_vm3, %v1989_v0, -inf }
 0xe28   :  { %2029 = vmax.xlane.f32.xlu2 %v2028_v6 }
 0xe34   :  { %4635 = vmatmul.msk.bf16.vlgmr.msra.gmra.mxu2 %vm462_vm5, %v2127_v34 }
 0xe39   :  { %2078 = vrot.lane.b32.xlu1 %v5963_v35, %s5353_s9 }
 0xe93   :  { %v2027_v10 = vpop.xlane.xlu1 %2026 }
 0xe94   :  { %v2037_v40 = vsub.f32 %v1987_v30, %v2027_v10 }
 0xe96   :  { %v2041_v11 = vmul.f32 1.442695, %v2037_v40 }
 0xe98   :  { %5102 = vpow2.f32 %v2041_v11 }
 0xe9b   :  { %v2030_v48 = vpop.xlane.xlu2 %2029 }
 0xe9c   :  { %v2038_v17 = vsub.f32 %v1989_v0, %v2030_v48  ;;  %v2125_v0 = vpack.c.bf16 %v4892_v8, %v4892_v8 }
 0xe9e   :  { %v5103_v53 = vpop.eup %5102  ;;  %v2043_v12 = vmul.f32 1.442695, %v2038_v17  ;;  %v2311_v6 = vsel %vm2281_vm6, %v2125_v0, 0 }
 0xe9f   :  { %v2049_v3 = vsel %vm2024_vm3, %v5103_v53, 0.0 }
 0xea0   :  { %5104 = vpow2.f32 %v2043_v12  ;;  %2050 = vadd.xlane.f32.xlu0 %v2049_v3 }
 0xea6   :  { %v5105_v16 = vpop.eup %5104 }
 0xea7   :  { %v2019_v5 = vpop.f32.mrf.mxu2  ;;  %v2052_v56 = vsel %vm2024_vm3, %v5105_v16, 0.0 }
 0xea8   :  { %2053 = vadd.xlane.f32.xlu2 %v2052_v56  ;;  %v2031_v7 = vsel %vm2024_vm3, %v2019_v5, -inf }
 0xeab   :  { %v2079_v59 = vpop.permute.xlu1 %2078 }
 0xeac   :  { %2091 = vmatpush.bf16.msra.mxu1 %v2079_v59 }
 0xeaf   :  { %v2021_v13 = vpop.f32.mrf.mxu2 }
 0xeb0   :  { %v2034_v15 = vsel %vm2024_vm3, %v2021_v13, -inf }
 0xeb1   :  { %2035 = vmax.xlane.f32.xlu1 %v2034_v15 }
 0xeb4   :  { %2152 = vrot.lane.b32.xlu0 %v5976_v33, %s5354_s6 }
 0xeb7   :  { %v2145_v54 = vpop.f32.mrf.mxu2 }
 0xeb8   :  { %v2174_v26 = vsel %vm2024_vm3, %v2145_v54, -inf }
 0xebf   :  { %v2147_v20 = vpop.f32.mrf.mxu2 }
 0xec0   :  { %2150 = vrot.lane.b32.xlu2 %v5983_v9, %s5356_s20  ;;  %v2177_v25 = vsel %vm2024_vm3, %v2147_v20, -inf }
 0xede   :  { %2032 = vmax.xlane.f32.xlu0 %v2031_v7 }
 0xee6   :  { %2178 = vmax.xlane.f32.xlu0 %v2177_v25 }
 0xee9   :  { %2175 = vmax.xlane.f32.xlu2 %v2174_v26 }
 0xefa   :  { %2227 = vrot.lane.b32.xlu0 %v5963_v35, %s5357_s28 }
 0xf13   :  { %v2051_v27 = vpop.xlane.xlu0 %2050 }
 0xf14   :  { %5106 = vrcp.f32 %v2051_v27 }
 0xf1a   :  { %v5107_v23 = vpop.eup %5106 }
 0xf1b   :  { %v2054_v31 = vpop.xlane.xlu2 %2053  ;;  %v2065_v21 = vmul.f32 %v5107_v23, %v5103_v53 }
 0xf1c   :  { %5108 = vrcp.f32 %v2054_v31 }
 0xf1d   :  { %v2069_v36 = vpack.c.bf16 %v2065_v21, %v2065_v21 }
 0xf1f   :  { %v2075_v55 = vunpack.c.l.b16 %v2069_v36 }
 0xf22   :  { %v5109_v28 = vpop.eup %5108 }
 0xf23   :  { %v2066_v62 = vmul.f32 %v5109_v28, %v5105_v16  ;;  %v2151_v22 = vpop.permute.xlu2 %2150 }
 0xf24   :  { %v2036_v38 = vpop.xlane.xlu1 %2035 }
 0xf25   :  { %v2070_v4 = vpack.c.bf16 %v2066_v62, %v2066_v62  ;;  %v2040_v37 = vsub.f32 %v2021_v13, %v2036_v38 }
 0xf26   :  { %v2153_v39 = vpop.permute.xlu0 %2152 }
 0xf27   :  { %v2076_v29 = vunpack.c.l.b16 %v2070_v4  ;;  %v2047_v32 = vmul.f32 1.442695, %v2040_v37  ;;  %v2158_v41 = vsel %vm462_vm5, %v2153_v39, 0 }
 0xf28   :  { %2167 = vmatpush.bf16.xpose.msrb.mxu1 %v2158_v41 }
 0xf29   :  { %v2077_v24 = vpack.c.b16 %v2076_v29, %v2075_v55  ;;  %5110 = vpow2.f32 %v2047_v32 }
 0xf2b   :  { %4633 = vmatmul.msk.bf16.vlgmr.msra.gmra.mxu1 %vm2024_vm3, %v2077_v24 }
 0xf2f   :  { %v5111_v46 = vpop.eup %5110 }
 0xf30   :  { %v2058_v47 = vsel %vm2024_vm3, %v5111_v46, 0.0  ;;  %2320 = vmatpush.bf16.msra.mxu1 %v2311_v6 }
 0xf31   :  { %2059 = vadd.xlane.f32.xlu2 %v2058_v47 }
 0xf3b   :  { %4636 = vmatmul.msk.bf16.vlgmr.msrb.gmra.mxu1 %vm462_vm5, %v2151_v22 }
 0xf49   :  { %2103 = vrot.lane.b32.xlu2 %v5976_v33, %s5353_s9 }
 0xf51   :  { %v2033_v44 = vpop.xlane.xlu0 %2032 }
 0xf52   :  { %v2039_v14 = vsub.f32 %v2019_v5, %v2033_v44 }
 0xf54   :  { %v2045_v42 = vmul.f32 1.442695, %v2039_v14 }
 0xf56   :  { %5112 = vpow2.f32 %v2045_v42 }
 0xf59   :  { %v2179_v43 = vpop.xlane.xlu0 %2178 }
 0xf5a   :  { %v2187_v50 = vsub.f32 %v2147_v20, %v2179_v43 }
 0xf5c   :  { %v5113_v45 = vpop.eup %5112  ;;  %v2192_v19 = vmul.f32 1.442695, %v2187_v50  ;;  %v2176_v57 = vpop.xlane.xlu2 %2175 }
 0xf5d   :  { %v2186_v58 = vsub.f32 %v2145_v54, %v2176_v57  ;;  %v2055_v60 = vsel %vm2024_vm3, %v5113_v45, 0.0 }
 0xf5e   :  { %5114 = vpow2.f32 %v2192_v19  ;;  %2056 = vadd.xlane.f32.xlu1 %v2055_v60  ;;  %v4893_v19 = vunpack.c.h.bf16 %v6019_v2 }
 0xf5f   :  { %v2190_v61 = vmul.f32 1.442695, %v2186_v58 }
 0xf60   :  { %v2274_v57 = vpack.c.bf16 %v4893_v19, %v4893_v19 }
 0xf61   :  { %5116 = vpow2.f32 %v2190_v61 }
 0xf62   :  { %v2283_v58 = vsel %vm2281_vm6, %v2274_v57, 0 }
 0xf63   :  { %2292 = vmatpush.bf16.msrb.mxu2 %v2283_v58 }
 0xf64   :  { %v5115_v49 = vpop.eup %5114 }
 0xf65   :  { %v2201_v51 = vsel %vm2024_vm3, %v5115_v49, 0.0 }
 0xf66   :  { %2202 = vadd.xlane.f32.xlu1 %v2201_v51 }
 0xf67   :  { %v5117_v63 = vpop.eup %5116 }
 0xf68   :  { %v2198_v1 = vsel %vm2024_vm3, %v5117_v63, 0.0 }
 0xf69   :  { %2199 = vadd.xlane.f32.xlu0 %v2198_v1 }
 0xf6c   :  { %v2228_v30 = vpop.permute.xlu0 %2227 }
 0xf6d   :  { %2240 = vmatpush.bf16.msrb.mxu3 %v2228_v30 }
 0xf7d   :  { %2332 = vrot.lane.b32.xlu0 %v5969_v18, %s5358_s2 }
 0xf7f   :  { %2334 = vrot.lane.b32.xlu1 %v5963_v35, %s5359_s7 }
 0xf85   :  { %2358 = vrot.lane.b32.xlu0 %v5976_v33, %s5359_s7 }
 0xfa4   :  { %v2060_v34 = vpop.xlane.xlu2 %2059 }
 0xfa5   :  { %5118 = vrcp.f32 %v2060_v34 }
 0xfa8   :  { %v2093_v10 = vpop.f32.mrf.mxu1 }
 0xfab   :  { %v5119_v5 = vpop.eup %5118 }
 0xfac   :  { %v2104_v40 = vpop.permute.xlu2 %2103  ;;  %v2068_v56 = vmul.f32 %v5119_v5, %v5111_v46 }
 0xfad   :  { %2116 = vmatpush.bf16.msra.mxu0 %v2104_v40 }
 0xfae   :  { %v2072_v13 = vpack.c.bf16 %v2068_v56, %v2068_v56 }
 0xfb0   :  { %v2095_v11 = vpop.f32.mrf.mxu1  ;;  %v2101_v25 = vunpack.c.l.b16 %v2072_v13 }
 0xfb1   :  { %v2123_v48 = vpack.c.bf16 %v2095_v11, %v2093_v10 }
 0xfb3   :  { %4641 = vmatmul.msk.bf16.vlgmr.msra.gmra.mxu1 %vm462_vm5, %v2123_v48 }
 0xfb8   :  { %v2169_v17 = vpop.f32.mrf.mxu1 }
 0xfb9   :  { %v2180_v53 = vsel %vm2024_vm3, %v2169_v17, -inf }
 0xfba   :  { %2181 = vmax.xlane.f32.xlu2 %v2180_v53 }
 0xfc0   :  { %v2171_v12 = vpop.f32.mrf.mxu1 }
 0xfc1   :  { %v2183_v3 = vsel %vm2024_vm3, %v2171_v12, -inf }
 0xfc2   :  { %2184 = vmax.xlane.f32.xlu1 %v2183_v3 }
 0xfd1   :  { %v2057_v16 = vpop.xlane.xlu1 %2056 }
 0xfd2   :  { %5120 = vrcp.f32 %v2057_v16 }
 0xfd8   :  { %v5121_v59 = vpop.eup %5120 }
 0xfd9   :  { %v2067_v15 = vmul.f32 %v5121_v59, %v5113_v45  ;;  %v2203_v54 = vpop.xlane.xlu1 %2202 }
 0xfda   :  { %5122 = vrcp.f32 %v2203_v54 }
 0xfdb   :  { %v2071_v7 = vpack.c.bf16 %v2067_v15, %v2067_v15  ;;  %2252 = vrot.lane.b32.xlu1 %v5976_v33, %s5357_s28 }
 0xfdc   :  { %v2200_v20 = vpop.xlane.xlu0 %2199 }
 0xfdd   :  { %v2100_v26 = vunpack.c.l.b16 %v2071_v7  ;;  %5124 = vrcp.f32 %v2200_v20 }
 0xfdf   :  { %v2102_v27 = vpack.c.b16 %v2101_v25, %v2100_v26 }
 0xfe0   :  { %v5123_v31 = vpop.eup %5122 }
 0xfe1   :  { %v2215_v23 = vmul.f32 %v5123_v31, %v5115_v49  ;;  %4634 = vmatmul.msk.bf16.vlgmr.msra.gmra.mxu0 %vm2024_vm3, %v2102_v27 }
 0xfe3   :  { %v5125_v21 = vpop.eup %5124  ;;  %2513 = vrot.lane.b32.xlu1 %v5969_v18, %s5360_s10  ;;  %v2219_v28 = vpack.c.bf16 %v2215_v23, %v2215_v23 }
 0xfe4   :  { %v2214_v36 = vmul.f32 %v5125_v21, %v5117_v63 }
 0xfe5   :  { %v2225_v38 = vunpack.c.l.b16 %v2219_v28 }
 0xfe6   :  { %v2218_v62 = vpack.c.bf16 %v2214_v36, %v2214_v36 }
 0xfe8   :  { %v2224_v4 = vunpack.c.l.b16 %v2218_v62 }
 0xfea   :  { %v2226_v37 = vpack.c.b16 %v2225_v38, %v2224_v4 }
 0xfec   :  { %4637 = vmatmul.msk.bf16.vlgmr.msrb.gmra.mxu3 %vm2024_vm3, %v2226_v37 }
 0xfef   :  { %v2333_v29 = vpop.permute.xlu0 %2332 }
 0xff1   :  { %v2335_v39 = vpop.permute.xlu1 %2334 }
 0xff2   :  { %v2340_v55 = vsel %vm462_vm5, %v2335_v39, 0 }
 0xff3   :  { %2349 = vmatpush.bf16.xpose.msra.mxu3 %v2340_v55 }
 0xff7   :  { %v2359_v43 = vpop.permute.xlu0 %2358 }
 0xff8   :  { %v2364_v45 = vsel %vm462_vm5, %v2359_v43, 0 }
 0xffc   :  { %4643 = vmatmul.msk.bf16.vlgmr.msra.gmra.mxu3 %vm462_vm5, %v2333_v29 }
0x102d   :  { %v2182_v32 = vpop.xlane.xlu2 %2181 }
0x102e   :  { %v2188_v41 = vsub.f32 %v2169_v17, %v2182_v32 }
0x1030   :  { %v2194_v24 = vmul.f32 1.442695, %v2188_v41  ;;  %v6059_v36 = vpop.f32.mrf.mxu1 }
0x1032   :  { %5126 = vpow2.f32 %v2194_v24 }
0x1035   :  { %v2185_v18 = vpop.xlane.xlu1 %2184 }
0x1036   :  { %v2189_v46 = vsub.f32 %v2171_v12, %v2185_v18 }
0x1038   :  { %v5127_v47 = vpop.eup %5126  ;;  %v2196_v22 = vmul.f32 1.442695, %v2189_v46  ;;  %v6061_v62 = vpop.f32.mrf.mxu1 }
0x1039   :  { %v2204_v44 = vsel %vm2024_vm3, %v5127_v47, 0.0 }
0x103a   :  { %5128 = vpow2.f32 %v2196_v22  ;;  %2205 = vadd.xlane.f32.xlu0 %v2204_v44 }
0x1040   :  { %v5129_v14 = vpop.eup %5128 }
0x1041   :  { %v2207_v42 = vsel %vm2024_vm3, %v5129_v14, 0.0 }
0x1042   :  { %2208 = vadd.xlane.f32.xlu2 %v2207_v42 }
0x104d   :  { %v2253_v50 = vpop.permute.xlu1 %2252 }
0x104e   :  { %2515 = vrot.lane.b32.xlu0 %v5963_v35, %s5361_s11  ;;  %2265 = vmatpush.bf16.msrb.mxu0 %v2253_v50 }
0x1052   :  { %2373 = vmatpush.bf16.xpose.msra.mxu0 %v2364_v45 }
0x1055   :  { %v2514_v59 = vpop.permute.xlu1 %2513 }
0x105a   :  { %2356 = vrot.lane.b32.xlu2 %v5983_v9, %s5358_s2 }
0x105e   :  { %v2118_v60 = vpop.f32.mrf.mxu0 }
0x1066   :  { %v2120_v61 = vpop.f32.mrf.mxu0 }
0x1067   :  { %v2124_v49 = vpack.c.bf16 %v2120_v61, %v2118_v60 }
0x1069   :  { %4642 = vmatmul.msk.bf16.gmra.mxu1 %vm462_vm5, %v2124_v49 }
0x106f   :  { %v2242_v51 = vpop.f32.mrf.mxu3 }
0x1077   :  { %v2244_v63 = vpop.f32.mrf.mxu3 }
0x1078   :  { %v2272_v1 = vpack.c.bf16 %v2244_v63, %v2242_v51 }
0x107a   :  { %4639 = vmatmul.msk.bf16.vlgmr.msrb.gmra.mxu2 %vm462_vm5, %v2272_v1 }
0x107f   :  { %v2351_v30 = vpop.f32.mrf.mxu3 }
0x1080   :  { %v2380_v2 = vsel %vm2024_vm3, %v2351_v30, -inf }
0x1083   :  { %2381 = vmax.xlane.f32.xlu2 %v2380_v2 }
0x1087   :  { %v2353_v8 = vpop.f32.mrf.mxu3 }
0x1088   :  { %v2383_v0 = vsel %vm2024_vm3, %v2353_v8, -inf }
0x1089   :  { %2384 = vmax.xlane.f32.xlu0 %v2383_v0 }
0x109d   :  { %2433 = vrot.lane.b32.xlu0 %v5963_v35, %s5362_s15 }
0x10ad   :  { %v2206_v6 = vpop.xlane.xlu0 %2205 }
0x10ae   :  { %5130 = vrcp.f32 %v2206_v6 }
0x10b4   :  { %v5131_v10 = vpop.eup %5130 }
0x10b5   :  { %v2209_v34 = vpop.xlane.xlu2 %2208  ;;  %v2216_v40 = vmul.f32 %v5131_v10, %v5127_v47 }
0x10b6   :  { %5132 = vrcp.f32 %v2209_v34 }
0x10b7   :  { %v2220_v48 = vpack.c.bf16 %v2216_v40, %v2216_v40 }
0x10b9   :  { %v2249_v3 = vunpack.c.l.b16 %v2220_v48 }
0x10bc   :  { %v5133_v11 = vpop.eup %5132 }
0x10bd   :  { %v2217_v17 = vmul.f32 %v5133_v11, %v5129_v14  ;;  %v2357_v13 = vpop.permute.xlu2 %2356 }
0x10bf   :  { %v2221_v53 = vpack.c.bf16 %v2217_v17, %v2217_v17 }
0x10c0   :  { %v2516_v12 = vpop.permute.xlu0 %2515 }
0x10c1   :  { %v2250_v16 = vunpack.c.l.b16 %v2221_v53  ;;  %v2521_v5 = vsel %vm462_vm5, %v2516_v12, 0 }
0x10c2   :  { %2530 = vmatpush.bf16.xpose.msrb.mxu1 %v2521_v5 }
0x10c3   :  { %v2251_v56 = vpack.c.b16 %v2250_v16, %v2249_v3 }
0x10c5   :  { %4638 = vmatmul.msk.bf16.vlgmr.msrb.gmra.mxu0 %vm2024_vm3, %v2251_v56 }
0x10c9   :  { %4649 = vmatmul.msk.bf16.vlgmr.msrb.gmra.mxu1 %vm462_vm5, %v2514_v59 }
0x10d5   :  { %4644 = vmatmul.msk.bf16.vlgmr.msra.gmra.mxu0 %vm462_vm5, %v2357_v13 }
0x10e6   :  { %v6063_v38 = vpop.f32.mrf.mxu1 }
0x10ee   :  { %v6065_v4 = vpop.f32.mrf.mxu1 }
0x10f6   :  { %v2382_v15 = vpop.xlane.xlu2 %2381 }
0x10f7   :  { %v2392_v54 = vsub.f32 %v2351_v30, %v2382_v15  ;;  %v6084_v15 = vld [vmem:[%s6517_s1 + $0x8] sm:$0xff]  }
0x10f9   :  { %v2396_v7 = vmul.f32 1.442695, %v2392_v54  ;;  %v4896_v54 = vunpack.c.l.bf16 %v6084_v15 }
0x10fb   :  { %5134 = vpow2.f32 %v2396_v7  ;;  %v2480_v7 = vpack.c.bf16 %v4896_v54, %v4896_v54 }
0x10fc   :  { %v2385_v20 = vpop.xlane.xlu0 %2384 }
0x10fd   :  { %v2393_v25 = vsub.f32 %v2353_v8, %v2385_v20  ;;  %v2488_v20 = vsel %vm2281_vm6, %v2480_v7, 0 }
0x10fe   :  { %2497 = vmatpush.bf16.msra.mxu2 %v2488_v20 }
0x10ff   :  { %v2398_v26 = vmul.f32 1.442695, %v2393_v25 }
0x1101   :  { %v5135_v27 = vpop.eup %5134  ;;  %5136 = vpow2.f32 %v2398_v26 }
0x1102   :  { %v2404_v31 = vsel %vm2024_vm3, %v5135_v27, 0.0 }
0x1103   :  { %2405 = vadd.xlane.f32.xlu1 %v2404_v31 }
0x1107   :  { %v5137_v23 = vpop.eup %5136 }
0x1108   :  { %v2407_v21 = vsel %vm2024_vm3, %v5137_v23, 0.0 }
0x1109   :  { %2408 = vadd.xlane.f32.xlu2 %v2407_v21 }
0x110f   :  { %v2434_v28 = vpop.permute.xlu0 %2433 }
0x1110   :  { %2446 = vmatpush.bf16.msrb.mxu3 %v2434_v28 }
0x111c   :  { %2539 = vrot.lane.b32.xlu1 %v5976_v33, %s5361_s11 }
0x1121   :  { %2537 = vrot.lane.b32.xlu2 %v5983_v9, %s5360_s10 }
0x1142   :  { %v2267_v37 = vpop.f32.mrf.mxu0 }
0x1146   :  { %v2532_v39 = vpop.f32.mrf.mxu1 }
0x1147   :  { %v2561_v55 = vsel %vm2024_vm3, %v2532_v39, -inf }
0x114a   :  { %v2269_v29 = vpop.f32.mrf.mxu0  ;;  %2562 = vmax.xlane.f32.xlu2 %v2561_v55 }
0x114b   :  { %v2273_v32 = vpack.c.bf16 %v2269_v29, %v2267_v37 }
0x114d   :  { %4640 = vmatmul.msk.bf16.gmra.mxu2 %vm462_vm5, %v2273_v32 }
0x114e   :  { %v2534_v24 = vpop.f32.mrf.mxu1 }
0x114f   :  { %v2564_v47 = vsel %vm2024_vm3, %v2534_v24, -inf }
0x1152   :  { %v2375_v41 = vpop.f32.mrf.mxu0 }
0x1153   :  { %v2386_v9 = vsel %vm2024_vm3, %v2375_v41, -inf }
0x1154   :  { %2387 = vmax.xlane.f32.xlu0 %v2386_v9 }
0x115a   :  { %v2377_v18 = vpop.f32.mrf.mxu0 }
0x115b   :  { %v2389_v46 = vsel %vm2024_vm3, %v2377_v18, -inf }
0x115c   :  { %2390 = vmax.xlane.f32.xlu1 %v2389_v46  ;;  %2565 = vmax.xlane.f32.xlu0 %v2564_v47 }
0x1175   :  { %2458 = vrot.lane.b32.xlu1 %v5976_v33, %s5362_s15 }
0x1176   :  { %v2406_v22 = vpop.xlane.xlu1 %2405 }
0x1177   :  { %5138 = vrcp.f32 %v2406_v22 }
0x117c   :  { %v2409_v44 = vpop.xlane.xlu2 %2408 }
0x117d   :  { %v5139_v14 = vpop.eup %5138  ;;  %5140 = vrcp.f32 %v2409_v44 }
0x117e   :  { %v2420_v42 = vmul.f32 %v5139_v14, %v5135_v27 }
0x1180   :  { %v2424_v50 = vpack.c.bf16 %v2420_v42, %v2420_v42 }
0x1182   :  { %v2430_v57 = vunpack.c.l.b16 %v2424_v50 }
0x1183   :  { %v5141_v43 = vpop.eup %5140 }
0x1184   :  { %v2421_v45 = vmul.f32 %v5141_v43, %v5137_v23  ;;  %v2538_v51 = vpop.permute.xlu2 %2537 }
0x1186   :  { %v2425_v19 = vpack.c.bf16 %v2421_v45, %v2421_v45 }
0x1188   :  { %v2431_v58 = vunpack.c.l.b16 %v2425_v19 }
0x118a   :  { %v2432_v60 = vpack.c.b16 %v2431_v58, %v2430_v57 }
0x118c   :  { %4645 = vmatmul.msk.bf16.vlgmr.msrb.gmra.mxu3 %vm2024_vm3, %v2432_v60 }
0x118e   :  { %v2540_v61 = vpop.permute.xlu1 %2539 }
0x118f   :  { %v2545_v49 = vsel %vm462_vm5, %v2540_v61, 0 }
0x1190   :  { %2554 = vmatpush.bf16.xpose.msra.mxu3 %v2545_v49 }
0x119c   :  { %4650 = vmatmul.msk.bf16.vlgmr.msra.gmra.mxu3 %vm462_vm5, %v2538_v51 }
0x11bd   :  { %v2563_v63 = vpop.xlane.xlu2 %2562 }
0x11be   :  { %v2573_v2 = vsub.f32 %v2532_v39, %v2563_v63 }
0x11c0   :  { %v2577_v0 = vmul.f32 1.442695, %v2573_v2 }
0x11c7   :  { %v2388_v1 = vpop.xlane.xlu0 %2387 }
0x11c8   :  { %v2394_v30 = vsub.f32 %v2375_v41, %v2388_v1 }
0x11ca   :  { %v2400_v8 = vmul.f32 1.442695, %v2394_v30 }
0x11cc   :  { %5142 = vpow2.f32 %v2400_v8 }
0x11cd   :  { %5144 = vpow2.f32 %v2577_v0 }
0x11cf   :  { %v2391_v6 = vpop.xlane.xlu1 %2390  ;;  %v2566_v34 = vpop.xlane.xlu0 %2565 }
0x11d0   :  { %v2395_v10 = vsub.f32 %v2377_v18, %v2391_v6  ;;  %v2574_v48 = vsub.f32 %v2534_v24, %v2566_v34  ;;  %v4897_v34 = vunpack.c.h.bf16 %v6084_v15 }
0x11d2   :  { %v5143_v40 = vpop.eup %5142  ;;  %v2402_v11 = vmul.f32 1.442695, %v2395_v10  ;;  %v2579_v53 = vmul.f32 1.442695, %v2574_v48  ;;  %v2661_v10 = vpack.c.bf16 %v4897_v34, %v4897_v34  ;;  %v5278_v34 = vld [vmem:[#allocation3 + $0x10] sm:$0xff] }
0x11d3   :  { %v2410_v17 = vsel %vm2024_vm3, %v5143_v40, 0.0  ;;  %v5145_v12 = vpop.eup %5144 }
0x11d4   :  { %5146 = vpow2.f32 %v2402_v11  ;;  %2411 = vadd.xlane.f32.xlu0 %v2410_v17  ;;  %v2585_v5 = vsel %vm2024_vm3, %v5145_v12, 0.0 }
0x11d5   :  { %5148 = vpow2.f32 %v2579_v53 }
0x11da   :  { %v5147_v3 = vpop.eup %5146 }
0x11db   :  { %v2413_v16 = vsel %vm2024_vm3, %v5147_v3, 0.0  ;;  %v5149_v56 = vpop.eup %5148 }
0x11dc   :  { %2414 = vadd.xlane.f32.xlu2 %v2413_v16  ;;  %2586 = vadd.xlane.f32.xlu0 %v2585_v5  ;;  %v2588_v59 = vsel %vm2024_vm3, %v5149_v56, 0.0 }
0x11e4   :  { %2589 = vadd.xlane.f32.xlu2 %v2588_v59 }
0x11e7   :  { %v2459_v13 = vpop.permute.xlu1 %2458 }
0x11e8   :  { %2471 = vmatpush.bf16.msrb.mxu0 %v2459_v13 }
0x11f0   :  { %2614 = vrot.lane.b32.xlu0 %v5963_v35, %s5363_s16 }
0x11f8   :  { %2639 = vrot.lane.b32.xlu0 %v5976_v33, %s5363_s16 }
0x120f   :  { %v2448_v25 = vpop.f32.mrf.mxu3 }
0x1217   :  { %v2450_v26 = vpop.f32.mrf.mxu3 }
0x1218   :  { %v2478_v27 = vpack.c.bf16 %v2450_v26, %v2448_v25 }
0x121a   :  { %4647 = vmatmul.msk.bf16.vlgmr.msra.gmra.mxu2 %vm462_vm5, %v2478_v27  ;;  %v2294_v27 = vpop.f32.mrf.mxu2 }
0x121f   :  { %v2556_v31 = vpop.f32.mrf.mxu3 }
0x1220   :  { %v2567_v23 = vsel %vm2024_vm3, %v2556_v31, -inf }
0x1221   :  { %2568 = vmax.xlane.f32.xlu2 %v2567_v23 }
0x1227   :  { %v2558_v35 = vpop.f32.mrf.mxu3 }
0x1228   :  { %v2570_v21 = vsel %vm2024_vm3, %v2558_v35, -inf }
0x1229   :  { %2571 = vmax.xlane.f32.xlu2 %v2570_v21 }
0x1247   :  { %v2412_v33 = vpop.xlane.xlu0 %2411 }
0x1248   :  { %5150 = vrcp.f32 %v2412_v33  ;;  %v2323_v33 = vadd.f32 %v6059_v36, %v2294_v27 }
0x124e   :  { %v5151_v37 = vpop.eup %5150 }
0x124f   :  { %v2415_v28 = vpop.xlane.xlu2 %2414  ;;  %v2422_v39 = vmul.f32 %v5151_v37, %v5143_v40  ;;  %v2587_v41 = vpop.xlane.xlu0 %2586  ;;  %v2669_v40 = vsel %vm2281_vm6, %v2661_v10, 0 }
0x1250   :  { %5152 = vrcp.f32 %v2415_v28  ;;  %2678 = vmatpush.bf16.msrb.mxu3 %v2669_v40 }
0x1251   :  { %v2426_v29 = vpack.c.bf16 %v2422_v39, %v2422_v39 }
0x1253   :  { %v2455_v18 = vunpack.c.l.b16 %v2426_v29  ;;  %v5276_v29 = vld [vmem:[#allocation3] sm:$0xff] }
0x1256   :  { %v5153_v55 = vpop.eup %5152 }
0x1257   :  { %v2423_v32 = vmul.f32 %v5153_v55, %v5147_v3  ;;  %v2590_v9 = vpop.xlane.xlu2 %2589  ;;  %v5011_v55 = vld [vmem:[%s6518_s18] ss:$0 sm:$0xff] }
0x1258   :  { %5154 = vrcp.f32 %v2590_v9 }
0x1259   :  { %v2427_v24 = vpack.c.bf16 %v2423_v32, %v2423_v32  ;;  %5156 = vrcp.f32 %v2587_v41 }
0x125b   :  { %v2456_v46 = vunpack.c.l.b16 %v2427_v24 }
0x125d   :  { %v2457_v47 = vpack.c.b16 %v2456_v46, %v2455_v18 }
0x125e   :  { %v5155_v22 = vpop.eup %5154 }
0x125f   :  { %4646 = vmatmul.msk.bf16.vlgmr.msrb.gmra.mxu0 %vm2024_vm3, %v2457_v47  ;;  %v5157_v44 = vpop.eup %5156  ;;  %v2602_v14 = vmul.f32 %v5155_v22, %v5149_v56 }
0x1260   :  { %v2601_v43 = vmul.f32 %v5157_v44, %v5145_v12  ;;  %v5277_v44 = vld [vmem:[#allocation3 + $0x8] sm:$0xff] }
0x1261   :  { %v2606_v50 = vpack.c.bf16 %v2602_v14, %v2602_v14 }
0x1262   :  { %v2615_v42 = vpop.permute.xlu0 %2614  ;;  %v2605_v45 = vpack.c.bf16 %v2601_v43, %v2601_v43 }
0x1263   :  { %2627 = vmatpush.bf16.msra.mxu0 %v2615_v42  ;;  %v2612_v19 = vunpack.c.l.b16 %v2606_v50 }
0x1264   :  { %v2611_v58 = vunpack.c.l.b16 %v2605_v45 }
0x1266   :  { %v2613_v60 = vpack.c.b16 %v2612_v19, %v2611_v58 }
0x126a   :  { %v2640_v57 = vpop.permute.xlu0 %2639 }
0x126b   :  { %2652 = vmatpush.bf16.msra.mxu1 %v2640_v57 }
0x126f   :  { %4651 = vmatmul.msk.bf16.vlgmr.msra.gmra.mxu0 %vm2024_vm3, %v2613_v60 }
0x1294   :  { %v2569_v61 = vpop.xlane.xlu2 %2568 }
0x1295   :  { %v2575_v49 = vsub.f32 %v2556_v31, %v2569_v61  ;;  %v2296_v31 = vpop.f32.mrf.mxu2 }
0x1296   :  { %v2325_v9 = vadd.f32 %v6061_v62, %v2296_v31 }
0x1297   :  { %v2581_v51 = vmul.f32 1.442695, %v2575_v49 }
0x1299   :  { %5158 = vpow2.f32 %v2581_v51 }
0x129c   :  { %v2572_v63 = vpop.xlane.xlu2 %2571 }
0x129d   :  { %v2576_v1 = vsub.f32 %v2558_v35, %v2572_v63  ;;  %v2299_v23 = vpop.f32.mrf.mxu2 }
0x129f   :  { %v5159_v30 = vpop.eup %5158  ;;  %v2583_v2 = vmul.f32 1.442695, %v2576_v1 }
0x12a0   :  { %v2591_v8 = vsel %vm2024_vm3, %v5159_v30, 0.0 }
0x12a1   :  { %5160 = vpow2.f32 %v2583_v2  ;;  %2592 = vadd.xlane.f32.xlu1 %v2591_v8  ;;  %v2328_v2 = vadd.f32 %v6063_v38, %v2299_v23  ;;  %v5279_v38 = vld [vmem:[#allocation3 + $0x18] sm:$0xff] }
0x12a5   :  { %v2301_v35 = vpop.f32.mrf.mxu2 }
0x12a7   :  { %v5161_v0 = vpop.eup %5160 }
0x12a8   :  { %v2594_v6 = vsel %vm2024_vm3, %v5161_v0, 0.0 }
0x12a9   :  { %2595 = vadd.xlane.f32.xlu2 %v2594_v6 }
0x12ad   :  { %v2499_v21 = vpop.f32.mrf.mxu2 }
0x12ae   :  { %v2509_v28 = vadd.f32 %v2499_v21, %v2323_v33 }
0x12b5   :  { %v2501_v41 = vpop.f32.mrf.mxu2 }
0x12b6   :  { %v2510_v18 = vadd.f32 %v2501_v41, %v2325_v9 }
0x12dc   :  { %v2473_v11 = vpop.f32.mrf.mxu0 }
0x12e4   :  { %v2475_v48 = vpop.f32.mrf.mxu0 }
0x12e5   :  { %v2479_v17 = vpack.c.bf16 %v2475_v48, %v2473_v11  ;;  %v2330_v11 = vadd.f32 %v6065_v4, %v2301_v35 }
0x12e7   :  { %4648 = vmatmul.msk.bf16.gmra.mxu2 %vm462_vm5, %v2479_v17 }
0x12ec   :  { %v2629_v53 = vpop.f32.mrf.mxu0 }
0x12f4   :  { %v2631_v12 = vpop.f32.mrf.mxu0 }
0x12f5   :  { %v2659_v3 = vpack.c.bf16 %v2631_v12, %v2629_v53 }
0x12f7   :  { %4653 = vmatmul.msk.bf16.vlgmr.msrb.gmra.mxu3 %vm462_vm5, %v2659_v3 }
0x1314   :  { %v2593_v16 = vpop.xlane.xlu1 %2592 }
0x1315   :  { %5162 = vrcp.f32 %v2593_v16 }
0x131b   :  { %v5163_v56 = vpop.eup %5162 }
0x131c   :  { %v2596_v5 = vpop.xlane.xlu2 %2595  ;;  %v2603_v59 = vmul.f32 %v5163_v56, %v5159_v30 }
0x131d   :  { %5164 = vrcp.f32 %v2596_v5 }
0x131e   :  { %v2607_v15 = vpack.c.bf16 %v2603_v59, %v2603_v59 }
0x1320   :  { %v2636_v20 = vunpack.c.l.b16 %v2607_v15  ;;  %v4867_v15 = vld [vmem:[%s6519_s22 + $0x8] sm:$0xff] }
0x1321   :  { %2844 = vmatpush.bf16.msrb.mxu0 %v4867_v15 }
0x1323   :  { %v5165_v13 = vpop.eup %5164 }
0x1324   :  { %v2604_v54 = vmul.f32 %v5165_v13, %v5161_v0 }
0x1326   :  { %v2608_v7 = vpack.c.bf16 %v2604_v54, %v2604_v54  ;;  %v4866_v54 = vld [vmem:[%s6519_s22] sm:$0xff] }
0x1327   :  { %2845 = vmatpush.bf16.msrb.mxu0 %v4866_v54 }
0x1328   :  { %v2637_v25 = vunpack.c.l.b16 %v2608_v7 }
0x132a   :  { %v2638_v26 = vpack.c.b16 %v2637_v25, %v2636_v20 }
0x132c   :  { %4652 = vmatmul.msk.bf16.vlgmr.msra.gmra.mxu1 %vm2024_vm3, %v2638_v26 }
0x136a   :  { %v2504_v30 = vpop.f32.mrf.mxu2 }
0x136b   :  { %v2511_v8 = vadd.f32 %v2504_v30, %v2328_v2  ;;  %v4873_v30 = vld [vmem:[%s6522_s0 + $0x28] sm:$0xff]  ;;  %v4872_v2 = vld [vmem:[%s6522_s0 + $0x20] sm:$0xff] }
0x1372   :  { %v2506_v40 = vpop.f32.mrf.mxu2 }
0x1373   :  { %v2512_v17 = vadd.f32 %v2506_v40, %v2330_v11 }
0x137a   :  { %v2680_v37 = vpop.f32.mrf.mxu3 }
0x137b   :  { %v2690_v39 = vadd.f32 %v2680_v37, %v2509_v28 }
0x137d   :  { %v2694_v32 = vadd.f32 %v5276_v29, %v2690_v39 }
0x137f   :  { %v6105_v24 = vadd.f32 %v5011_v55, %v2694_v32  ;;  %v6135_v32 = vld [vmem:[%s6520_s23] ss:$0 sm:$0xff] }
0x1381   :  { %v2708_v46 = vsel %vm396_vm0, %v6105_v24, 0.0 }
0x1382   :  { %v2682_v47 = vpop.f32.mrf.mxu3  ;;  %2709 = vadd.xlane.f32.xlu2 %v2708_v46  ;;  %v6138_v46 = vld [vmem:[%s6521_s26] ss:$0 sm:$0xff] }
0x1383   :  { %v2691_v22 = vadd.f32 %v2682_v47, %v2510_v18 }
0x1385   :  { %v2695_v36 = vadd.f32 %v5277_v44, %v2691_v22 }
0x1387   :  { %v6109_v14 = vadd.f32 %v5011_v55, %v2695_v36 }
0x1389   :  { %v2711_v42 = vsel %vm396_vm0, %v6109_v14, 0.0 }
0x138a   :  { %2712 = vadd.xlane.f32.xlu0 %v2711_v42 }
0x13a9   :  { %v2654_v43 = vpop.f32.mrf.mxu1 }
0x13b1   :  { %v2656_v50 = vpop.f32.mrf.mxu1 }
0x13b2   :  { %v2660_v62 = vpack.c.bf16 %v2656_v50, %v2654_v43 }
0x13b4   :  { %4654 = vmatmul.msk.bf16.gmra.mxu3 %vm462_vm5, %v2660_v62 }
0x13f5   :  { %v2710_v45 = vpop.xlane.xlu2 %2709 }
0x13f6   :  { %v2720_v19 = vmul.f32 %v2710_v45, %v5591_v52 }
0x13f8   :  { %v2724_v57 = vsub.f32 %v6105_v24, %v2720_v19 }
0x13fa   :  { %v2728_v58 = vmul.f32 %v2724_v57, %v2724_v57 }
0x13fc   :  { %v2732_v60 = vsel %vm396_vm0, %v2728_v58, 0.0 }
0x13fd   :  { %v2713_v61 = vpop.xlane.xlu0 %2712  ;;  %2733 = vadd.xlane.f32.xlu2 %v2732_v60 }
0x13fe   :  { %v2721_v49 = vmul.f32 %v2713_v61, %v5591_v52 }
0x1400   :  { %v2725_v51 = vsub.f32 %v6109_v14, %v2721_v49 }
0x1402   :  { %v2729_v63 = vmul.f32 %v2725_v51, %v2725_v51 }
0x1404   :  { %v2735_v1 = vsel %vm396_vm0, %v2729_v63, 0.0  ;;  %v4875_v63 = vld [vmem:[%s6522_s0 + $0x38] sm:$0xff] }
0x1405   :  { %2736 = vadd.xlane.f32.xlu2 %v2735_v1  ;;  %2959 = vmatpush.bf16.msrb.mxu2 %v4875_v63  ;;  %v4874_v1 = vld [vmem:[%s6522_s0 + $0x30] sm:$0xff] }
0x1409   :  { %2960 = vmatpush.bf16.msrb.mxu2 %v4874_v1 }
0x140d   :  { %2961 = vmatpush.bf16.msrb.mxu2 %v4873_v30 }
0x1411   :  { %2962 = vmatpush.bf16.msrb.mxu2 %v4872_v2 }
0x1437   :  { %v2685_v0 = vpop.f32.mrf.mxu3 }
0x1438   :  { %v2692_v6 = vadd.f32 %v2685_v0, %v2511_v8  ;;  %v4871_v8 = vld [vmem:[%s6522_s0 + $0x18] sm:$0xff]  ;;  %v4870_v0 = vld [vmem:[%s6522_s0 + $0x10] sm:$0xff] }
0x1439   :  { %2963 = vmatpush.bf16.msrb.mxu2 %v4871_v8  ;;  %v5015_v8 = vld [vmem:[%s6524_s21] ss:$0 sm:$0xff] }
0x143a   :  { %v2696_v10 = vadd.f32 %v5278_v34, %v2692_v6  ;;  %v6166_v6 = vld [vmem:[%s6523_s5] ss:$0 sm:$0xff]  ;;  %v4869_v34 = vld [vmem:[%s6522_s0 + $0x8] sm:$0xff] }
0x143c   :  { %v6122_v48 = vadd.f32 %v5011_v55, %v2696_v10 }
0x143d   :  { %2964 = vmatpush.bf16.msrb.mxu2 %v4870_v0 }
0x143e   :  { %v2714_v53 = vsel %vm396_vm0, %v6122_v48, 0.0 }
0x143f   :  { %v2687_v12 = vpop.f32.mrf.mxu3  ;;  %2715 = vadd.xlane.f32.xlu2 %v2714_v53 }
0x1440   :  { %v2693_v3 = vadd.f32 %v2687_v12, %v2512_v17  ;;  %v4868_v17 = vld [vmem:[%s6522_s0] sm:$0xff] }
0x1441   :  { %2965 = vmatpush.bf16.msrb.mxu2 %v4869_v34 }
0x1442   :  { %v2697_v16 = vadd.f32 %v5279_v38, %v2693_v3 }
0x1444   :  { %v6126_v5 = vadd.f32 %v5011_v55, %v2697_v16 }
0x1445   :  { %2966 = vmatpush.bf16.msrb.mxu2 %v4868_v17 }
0x1446   :  { %v2717_v56 = vsel %vm396_vm0, %v6126_v5, 0.0 }
0x1447   :  { %2718 = vadd.xlane.f32.xlu1 %v2717_v56 }
0x1470   :  { %v2734_v59 = vpop.xlane.xlu2 %2733 }
0x1471   :  { %v2744_v4 = vmul.f32 %v2734_v59, %v5591_v52 }
0x1473   :  { %v2748_v13 = vadd.f32 1e-05, %v2744_v4 }
0x1475   :  { %5166 = vrsqrt.f32 %v2748_v13  ;;  %vm2758_vm8 = vweird.f32 %v2748_v13 }
0x1478   :  { %v2737_v7 = vpop.xlane.xlu2 %2736 }
0x1479   :  { %v2745_v20 = vmul.f32 %v2737_v7, %v5591_v52 }
0x147b   :  { %v5167_v25 = vpop.eup %5166  ;;  %v2749_v26 = vadd.f32 1e-05, %v2745_v20 }
0x147c   :  { %v2753_v27 = vmul.f32 %v5167_v25, %v2748_v13  ;;  %vm2759_vm7 = vweird.f32 %v5167_v25 }
0x147d   :  { %5168 = vrsqrt.f32 %v2749_v26  ;;  %vm2760_vm9 = vmor %vm2758_vm8, %vm2759_vm7  ;;  %vm2768_vm12 = vweird.f32 %v2749_v26 }
0x147e   :  { %v2754_v31 = vmul.f32 %v5167_v25, %v2753_v27 }
0x1480   :  { %v2755_v23 = vmul.f32 0.5, %v2754_v31 }
0x1482   :  { %v2756_v35 = vsub.f32 1.5, %v2755_v23 }
0x1483   :  { %v5169_v21 = vpop.eup %5168 }
0x1484   :  { %v2757_v33 = vmul.f32 %v5167_v25, %v2756_v35  ;;  %v2763_v28 = vmul.f32 %v5169_v21, %v2749_v26  ;;  %vm2769_vm11 = vweird.f32 %v5169_v21 }
0x1485   :  { %vm2770_vm13 = vmor %vm2768_vm12, %vm2769_vm11 }
0x1486   :  { %v2764_v37 = vmul.f32 %v5169_v21, %v2763_v28  ;;  %v2761_v39 = vsel %vm2760_vm9, %v5167_v25, %v2757_v33 }
0x1487   :  { %v2792_v41 = vmul.f32 %v2761_v39, %v2724_v57 }
0x1488   :  { %v2765_v55 = vmul.f32 0.5, %v2764_v37 }
0x1489   :  { %v2799_v47 = vmul.f32 %v6135_v32, %v2792_v41 }
0x148a   :  { %v2766_v29 = vsub.f32 1.5, %v2765_v55 }
0x148b   :  { %v2806_v36 = vadd.f32 %v6138_v46, %v2799_v47 }
0x148c   :  { %v2767_v9 = vmul.f32 %v5169_v21, %v2766_v29 }
0x148e   :  { %v2771_v18 = vsel %vm2770_vm13, %v5169_v21, %v2767_v9 }
0x148f   :  { %v2793_v22 = vmul.f32 %v2771_v18, %v2725_v51 }
0x1491   :  { %v2800_v44 = vmul.f32 %v6135_v32, %v2793_v22 }
0x1493   :  { %v2807_v42 = vadd.f32 %v6138_v46, %v2800_v44 }
0x1495   :  { %v2814_v43 = vpack.c.bf16 %v2807_v42, %v2806_v36 }
0x1497   :  { %4663 = vmatmul.msk.bf16.vlgmr.msrb.gmra.mxu0 %vm396_vm0, %v2814_v43 }
0x14b2   :  { %v2716_v50 = vpop.xlane.xlu2 %2715 }
0x14b3   :  { %v2722_v62 = vmul.f32 %v2716_v50, %v5591_v52 }
0x14b5   :  { %v6147_v45 = vsub.f32 %v6122_v48, %v2722_v62 }
0x14b7   :  { %v2730_v19 = vmul.f32 %v6147_v45, %v6147_v45 }
0x14b9   :  { %v2738_v57 = vsel %vm396_vm0, %v2730_v19, 0.0 }
0x14ba   :  { %v2719_v58 = vpop.xlane.xlu1 %2718  ;;  %2739 = vadd.xlane.f32.xlu2 %v2738_v57 }
0x14bb   :  { %v2723_v60 = vmul.f32 %v2719_v58, %v5591_v52 }
0x14bd   :  { %v6154_v61 = vsub.f32 %v6126_v5, %v2723_v60 }
0x14bf   :  { %v2731_v49 = vmul.f32 %v6154_v61, %v6154_v61 }
0x14c1   :  { %v2741_v51 = vsel %vm396_vm0, %v2731_v49, 0.0 }
0x14c2   :  { %2742 = vadd.xlane.f32.xlu1 %v2741_v51 }
0x1514   :  { %v2847_v10 = vpop.f32.mrf.mxu0 }
0x1515   :  { %v2848_v40 = vadd.f32 %v6166_v6, %v2847_v10 }
0x1517   :  { %v2861_v11 = vmul.f32 0.044715, %v2848_v40  ;;  %v2857_v23 = vmul.f32 0.5, %v2848_v40 }
0x1519   :  { %v2865_v53 = vmul.f32 %v2861_v11, %v2848_v40 }
0x151b   :  { %v2869_v12 = vmul.f32 %v2865_v53, %v2848_v40 }
0x151c   :  { %v2849_v3 = vpop.f32.mrf.mxu0 }
0x151d   :  { %v2873_v38 = vadd.f32 %v2869_v12, %v2848_v40  ;;  %v2850_v16 = vadd.f32 %v6166_v6, %v2849_v3 }
0x151f   :  { %v2862_v56 = vmul.f32 0.044715, %v2850_v16  ;;  %v2877_v59 = vmul.f32 0.7978846, %v2873_v38  ;;  %v2858_v35 = vmul.f32 0.5, %v2850_v16 }
0x1521   :  { %v2866_v4 = vmul.f32 %v2862_v56, %v2850_v16  ;;  %5170 = vtanh.f32 %v2877_v59 }
0x1523   :  { %v2870_v13 = vmul.f32 %v2866_v4, %v2850_v16 }
0x1525   :  { %v2874_v15 = vadd.f32 %v2870_v13, %v2850_v16 }
0x1527   :  { %v2878_v54 = vmul.f32 0.7978846, %v2874_v15  ;;  %v5171_v7 = vpop.eup %5170 }
0x1528   :  { %v2885_v26 = vadd.f32 1.0, %v5171_v7 }
0x1529   :  { %5172 = vtanh.f32 %v2878_v54 }
0x152a   :  { %v2889_v33 = vmul.f32 %v2885_v26, %v2857_v23 }
0x152d   :  { %v2740_v20 = vpop.xlane.xlu2 %2739 }
0x152e   :  { %v2746_v25 = vmul.f32 %v2740_v20, %v5591_v52 }
0x152f   :  { %v5173_v27 = vpop.eup %5172 }
0x1530   :  { %v2750_v31 = vadd.f32 1e-05, %v2746_v25  ;;  %v2886_v21 = vadd.f32 1.0, %v5173_v27 }
0x1532   :  { %5174 = vrsqrt.f32 %v2750_v31  ;;  %v2890_v28 = vmul.f32 %v2886_v21, %v2858_v35  ;;  %vm2778_vm15 = vweird.f32 %v2750_v31 }
0x1534   :  { %v2909_v37 = vpack.c.bf16 %v2890_v28, %v2889_v33 }
0x1535   :  { %v2743_v39 = vpop.xlane.xlu1 %2742 }
0x1536   :  { %v2747_v55 = vmul.f32 %v2743_v39, %v5591_v52  ;;  %2967 = vmatmul.bf16.vlgmr.msrb.gmra.mxu2 %v2909_v37 }
0x1538   :  { %v5175_v29 = vpop.eup %5174  ;;  %v2751_v41 = vadd.f32 1e-05, %v2747_v55 }
0x1539   :  { %v2773_v9 = vmul.f32 %v5175_v29, %v2750_v31  ;;  %vm2779_vm14 = vweird.f32 %v5175_v29 }
0x153a   :  { %5176 = vrsqrt.f32 %v2751_v41  ;;  %vm2780_vm1 = vmor %vm2778_vm15, %vm2779_vm14  ;;  %vm2788_vm2 = vweird.f32 %v2751_v41 }
0x153b   :  { %v2774_v18 = vmul.f32 %v5175_v29, %v2773_v9 }
0x153d   :  { %v2775_v47 = vmul.f32 0.5, %v2774_v18 }
0x153f   :  { %v2776_v22 = vsub.f32 1.5, %v2775_v47 }
0x1540   :  { %v5177_v44 = vpop.eup %5176 }
0x1541   :  { %v2777_v36 = vmul.f32 %v5175_v29, %v2776_v22  ;;  %v2783_v42 = vmul.f32 %v5177_v44, %v2751_v41  ;;  %vm2789_vm10 = vweird.f32 %v5177_v44 }
0x1542   :  { %vm2790_vm7 = vmor %vm2788_vm2, %vm2789_vm10 }
0x1543   :  { %v2784_v43 = vmul.f32 %v5177_v44, %v2783_v42  ;;  %v2781_v50 = vsel %vm2780_vm1, %v5175_v29, %v2777_v36 }
0x1544   :  { %v2794_v57 = vmul.f32 %v2781_v50, %v6147_v45 }
0x1545   :  { %v2785_v62 = vmul.f32 0.5, %v2784_v43 }
0x1546   :  { %v2801_v51 = vmul.f32 %v6135_v32, %v2794_v57 }
0x1547   :  { %v2786_v19 = vsub.f32 1.5, %v2785_v62 }
0x1548   :  { %v2808_v1 = vadd.f32 %v6138_v46, %v2801_v51 }
0x1549   :  { %v2787_v58 = vmul.f32 %v5177_v44, %v2786_v19 }
0x154b   :  { %v2791_v60 = vsel %vm2790_vm7, %v5177_v44, %v2787_v58  ;;  %v4876_v58 = vld [vmem:[%s6514_s19 + $0x10] sm:$0xff] }
0x154c   :  { %v2795_v49 = vmul.f32 %v2791_v60, %v6154_v61 }
0x154e   :  { %v2802_v63 = vmul.f32 %v6135_v32, %v2795_v49 }
0x1550   :  { %v2809_v30 = vadd.f32 %v6138_v46, %v2802_v63 }
0x1552   :  { %v2815_v2 = vpack.c.bf16 %v2809_v30, %v2808_v1 }
0x1554   :  { %4664 = vmatmul.msk.bf16.gmra.mxu0 %vm396_vm0, %v2815_v2 }
0x15b9   :  { %v2968_v0 = vpop.f32.mrf.mxu2 }
0x15ba   :  { %v2978_v45 = vadd.f32 %v2968_v0, %v6105_v24 }
0x15bc   :  { %v6183_v34 = vadd.f32 %v5015_v8, %v2978_v45 }
0x15be   :  { %v2994_v61 = vsel %vm396_vm0, %v6183_v34, 0.0 }
0x15bf   :  { %2995 = vadd.xlane.f32.xlu2 %v2994_v61 }
0x15c1   :  { %v2970_v10 = vpop.f32.mrf.mxu2 }
0x15c2   :  { %v2979_v32 = vadd.f32 %v2970_v10, %v6109_v14 }
0x15c4   :  { %v6188_v40 = vadd.f32 %v5015_v8, %v2979_v32 }
0x15c6   :  { %v2997_v46 = vsel %vm396_vm0, %v6188_v40, 0.0 }
0x15c7   :  { %2998 = vadd.xlane.f32.xlu1 %v2997_v46 }
0x15d1   :  { %v2852_v11 = vpop.f32.mrf.mxu0 }
0x15d2   :  { %v2853_v17 = vadd.f32 %v6166_v6, %v2852_v11  ;;  %v6215_v11 = vld [vmem:[%s6515_s24 + $0x1] ss:$0 sm:$0xff] }
0x15d4   :  { %v2863_v53 = vmul.f32 0.044715, %v2853_v17  ;;  %v2859_v25 = vmul.f32 0.5, %v2853_v17 }
0x15d6   :  { %v2867_v24 = vmul.f32 %v2863_v53, %v2853_v17 }
0x15d8   :  { %v2871_v12 = vmul.f32 %v2867_v24, %v2853_v17 }
0x15d9   :  { %v2854_v3 = vpop.f32.mrf.mxu0 }
0x15da   :  { %v2855_v38 = vadd.f32 %v6166_v6, %v2854_v3  ;;  %v2875_v16 = vadd.f32 %v2871_v12, %v2853_v17  ;;  %v6218_v12 = vld [vmem:[%s6516_s30 + $0x1] ss:$0 sm:$0xff] }
0x15dc   :  { %v2864_v56 = vmul.f32 0.044715, %v2855_v38  ;;  %v2879_v4 = vmul.f32 0.7978846, %v2875_v16  ;;  %v2860_v26 = vmul.f32 0.5, %v2855_v38 }
0x15de   :  { %v2868_v59 = vmul.f32 %v2864_v56, %v2855_v38  ;;  %5178 = vtanh.f32 %v2879_v4 }
0x15e0   :  { %v2872_v14 = vmul.f32 %v2868_v59, %v2855_v38 }
0x15e2   :  { %v2876_v13 = vadd.f32 %v2872_v14, %v2855_v38 }
0x15e4   :  { %v2880_v15 = vmul.f32 0.7978846, %v2876_v13  ;;  %v5179_v54 = vpop.eup %5178 }
0x15e5   :  { %v2887_v7 = vadd.f32 1.0, %v5179_v54 }
0x15e6   :  { %5180 = vtanh.f32 %v2880_v15 }
0x15e7   :  { %v2891_v31 = vmul.f32 %v2887_v7, %v2859_v25 }
0x15ec   :  { %v5181_v20 = vpop.eup %5180 }
0x15ed   :  { %v2888_v27 = vadd.f32 1.0, %v5181_v20 }
0x15ef   :  { %v2892_v23 = vmul.f32 %v2888_v27, %v2860_v26 }
0x15f1   :  { %v2910_v35 = vpack.c.bf16 %v2892_v23, %v2891_v31 }
0x15f3   :  { %2972 = vmatmul.bf16.gmra.mxu2 %v2910_v35 }
0x1632   :  { %v2996_v6 = vpop.xlane.xlu2 %2995 }
0x1633   :  { %v3006_v21 = vmul.f32 %v2996_v6, %v5591_v52 }
0x1635   :  { %v3010_v33 = vsub.f32 %v6183_v34, %v3006_v21 }
0x1637   :  { %v3014_v28 = vmul.f32 %v3010_v33, %v3010_v33 }
0x1639   :  { %v3018_v37 = vsel %vm396_vm0, %v3014_v28, 0.0 }
0x163a   :  { %v2999_v39 = vpop.xlane.xlu1 %2998  ;;  %3019 = vadd.xlane.f32.xlu0 %v3018_v37 }
0x163b   :  { %v3007_v55 = vmul.f32 %v2999_v39, %v5591_v52 }
0x163d   :  { %v3011_v29 = vsub.f32 %v6188_v40, %v3007_v55 }
0x163f   :  { %v3015_v41 = vmul.f32 %v3011_v29, %v3011_v29 }
0x1641   :  { %v3021_v9 = vsel %vm396_vm0, %v3015_v41, 0.0 }
0x1642   :  { %3022 = vadd.xlane.f32.xlu2 %v3021_v9 }
0x1676   :  { %v2973_v18 = vpop.f32.mrf.mxu2 }
0x1677   :  { %v2980_v47 = vadd.f32 %v2973_v18, %v6122_v48  ;;  %v4877_v48 = vld [vmem:[%s6514_s19 + $0x18] sm:$0xff]  ;;  %s5296_s19 = scalar_lea.hbm %s5548_s17, 8 }
0x1678   :  { %3127 = vmatpush.bf16.msrb.mxu1 %v4877_v48  ;;  %p5298_p2 = scmp.lt.s32.totalorder %s5296_s19, %s5294_s14 }
0x1679   :  { %v6201_v22 = vadd.f32 %v5015_v8, %v2980_v47 }
0x167a   :  { %p5299_p3 = por %p5298_p2, %p5297_p1 }
0x167b   :  { %v3000_v44 = vsel %vm396_vm0, %v6201_v22, 0.0 }
0x167c   :  { %3001 = vadd.xlane.f32.xlu1 %v3000_v44  ;;  %3128 = vmatpush.bf16.msrb.mxu1 %v4876_v58  ;;  %p5300_p4 = pnand %p5299_p3, %p5295_p0 }
0x167e   :  { %v2975_v36 = vpop.f32.mrf.mxu2 }
0x167f   :  { %v2981_v42 = vadd.f32 %v2975_v36, %v6126_v5 }
0x1681   :  { %v6206_v43 = vadd.f32 %v5015_v8, %v2981_v42 }
0x1683   :  { %v3003_v50 = vsel %vm396_vm0, %v6206_v43, 0.0 }
0x1684   :  { %3004 = vadd.xlane.f32.xlu0 %v3003_v50 }
0x16ad   :  { %v3020_v62 = vpop.xlane.xlu0 %3019 }
0x16ae   :  { %v3030_v19 = vmul.f32 %v3020_v62, %v5591_v52 }
0x16b0   :  { %v3034_v57 = vadd.f32 1e-05, %v3030_v19 }
0x16b2   :  { %5182 = vrsqrt.f32 %v3034_v57  ;;  %vm3044_vm9 = vweird.f32 %v3034_v57 }
0x16b5   :  { %v3023_v60 = vpop.xlane.xlu2 %3022 }
0x16b6   :  { %v3031_v49 = vmul.f32 %v3023_v60, %v5591_v52 }
0x16b8   :  { %v5183_v51 = vpop.eup %5182  ;;  %v3035_v5 = vadd.f32 1e-05, %v3031_v49 }
0x16b9   :  { %v3039_v63 = vmul.f32 %v5183_v51, %v3034_v57  ;;  %vm3045_vm8 = vweird.f32 %v5183_v51 }
0x16ba   :  { %5184 = vrsqrt.f32 %v3035_v5  ;;  %vm3046_vm11 = vmor %vm3044_vm9, %vm3045_vm8  ;;  %vm3054_vm13 = vweird.f32 %v3035_v5 }
0x16bb   :  { %v3040_v1 = vmul.f32 %v5183_v51, %v3039_v63 }
0x16bd   :  { %v3041_v30 = vmul.f32 0.5, %v3040_v1 }
0x16bf   :  { %v3042_v2 = vsub.f32 1.5, %v3041_v30 }
0x16c0   :  { %v5185_v8 = vpop.eup %5184 }
0x16c1   :  { %v3043_v0 = vmul.f32 %v5183_v51, %v3042_v2  ;;  %v3049_v45 = vmul.f32 %v5185_v8, %v3035_v5  ;;  %vm3055_vm12 = vweird.f32 %v5185_v8 }
0x16c2   :  { %vm3056_vm14 = vmor %vm3054_vm13, %vm3055_vm12 }
0x16c3   :  { %v3050_v61 = vmul.f32 %v5185_v8, %v3049_v45  ;;  %v3047_v10 = vsel %vm3046_vm11, %v5183_v51, %v3043_v0 }
0x16c4   :  { %v3078_v17 = vmul.f32 %v3047_v10, %v3010_v33 }
0x16c5   :  { %v3051_v32 = vmul.f32 0.5, %v3050_v61 }
0x16c6   :  { %v3085_v3 = vmul.f32 %v6215_v11, %v3078_v17 }
0x16c7   :  { %v3052_v46 = vsub.f32 1.5, %v3051_v32 }
0x16c8   :  { %v3092_v56 = vadd.f32 %v6218_v12, %v3085_v3 }
0x16c9   :  { %v3053_v53 = vmul.f32 %v5185_v8, %v3052_v46 }
0x16cb   :  { %v3057_v24 = vsel %vm3056_vm14, %v5185_v8, %v3053_v53 }
0x16cc   :  { %v3079_v38 = vmul.f32 %v3057_v24, %v3011_v29 }
0x16ce   :  { %v3086_v16 = vmul.f32 %v6215_v11, %v3079_v38 }
0x16d0   :  { %v3093_v59 = vadd.f32 %v6218_v12, %v3086_v16 }
0x16d2   :  { %v3101_v4 = vpack.c.bf16 %v3093_v59, %v3092_v56 }
0x16d4   :  { %4711 = vmatmul.msk.bf16.vlgmr.msrb.gmra.mxu1 %vm396_vm0, %v3101_v4 }
0x16ef   :  { %v3002_v14 = vpop.xlane.xlu1 %3001 }
0x16f0   :  { %v3008_v13 = vmul.f32 %v3002_v14, %v5591_v52 }
0x16f2   :  { %v3012_v15 = vsub.f32 %v6201_v22, %v3008_v13 }
0x16f4   :  { %v3016_v54 = vmul.f32 %v3012_v15, %v3012_v15 }
0x16f6   :  { %v3024_v7 = vsel %vm396_vm0, %v3016_v54, 0.0 }
0x16f7   :  { %3025 = vadd.xlane.f32.xlu2 %v3024_v7  ;;  %v3005_v20 = vpop.xlane.xlu0 %3004 }
0x16f8   :  { %v3009_v25 = vmul.f32 %v3005_v20, %v5591_v52 }
0x16fa   :  { %v3013_v26 = vsub.f32 %v6206_v43, %v3009_v25 }
0x16fc   :  { %v3017_v27 = vmul.f32 %v3013_v26, %v3013_v26 }
0x16fe   :  { %v3027_v31 = vsel %vm396_vm0, %v3017_v27, 0.0 }
0x16ff   :  { %3028 = vadd.xlane.f32.xlu1 %v3027_v31 }
0x1751   :  { %v3130_v23 = vpop.f32.mrf.mxu1 }
0x1752   :  { %v3149_v35 = vmul.f32 0.35355338, %v3130_v23  ;;  %v3157_v6 = vpack.c.bf16 %v3130_v23, %v3130_v23 }
0x1754   :  { %v3153_v33 = vpack.c.bf16 %v3149_v35, %v3149_v35  ;;  %v3168_v39 = vunpack.c.l.b16 %v3157_v6 }
0x1756   :  { %v3163_v41 = vunpack.c.l.b16 %v3153_v33 }
0x1759   :  { %v3132_v21 = vpop.f32.mrf.mxu1 }
0x175a   :  { %v3150_v28 = vmul.f32 0.35355338, %v3132_v21  ;;  %v3158_v37 = vpack.c.bf16 %v3132_v21, %v3132_v21 }
0x175c   :  { %v3154_v55 = vpack.c.bf16 %v3150_v28, %v3150_v28  ;;  %v3169_v29 = vunpack.c.l.b16 %v3158_v37 }
0x175e   :  { %v3164_v9 = vunpack.c.l.b16 %v3154_v55  ;;  %v6231_v18 = vpack.c.b16 %v3169_v29, %v3168_v39 }
0x1760   :  { %v6233_v47 = vpack.c.b16 %v3164_v9, %v3163_v41  ;;  %3328 = vrot.lane.b32.xlu2 %v6231_v18, %s5354_s6  ;;  %3171 = vrot.lane.b32.xlu0 %v6231_v18, %s5355_s12 }
0x1762   :  { %3326 = vrot.lane.b32.xlu1 %v6233_v47, %s5356_s20 }
0x176a   :  { %v3026_v44 = vpop.xlane.xlu2 %3025 }
0x176b   :  { %v3032_v36 = vmul.f32 %v3026_v44, %v5591_v52 }
0x176d   :  { %v3036_v42 = vadd.f32 1e-05, %v3032_v36 }
0x176f   :  { %5186 = vrsqrt.f32 %v3036_v42  ;;  %vm3064_vm1 = vweird.f32 %v3036_v42 }
0x1772   :  { %v3029_v50 = vpop.xlane.xlu1 %3028 }
0x1773   :  { %v3033_v62 = vmul.f32 %v3029_v50, %v5591_v52 }
0x1775   :  { %v5187_v19 = vpop.eup %5186  ;;  %v3037_v57 = vadd.f32 1e-05, %v3033_v62 }
0x1776   :  { %v3059_v48 = vmul.f32 %v5187_v19, %v3036_v42  ;;  %vm3065_vm15 = vweird.f32 %v5187_v19 }
0x1777   :  { %5188 = vrsqrt.f32 %v3037_v57  ;;  %vm3066_vm10 = vmor %vm3064_vm1, %vm3065_vm15  ;;  %vm3074_vm7 = vweird.f32 %v3037_v57 }
0x1778   :  { %v3060_v58 = vmul.f32 %v5187_v19, %v3059_v48 }
0x177a   :  { %v3061_v60 = vmul.f32 0.5, %v3060_v58 }
0x177c   :  { %v3062_v49 = vsub.f32 1.5, %v3061_v60 }
0x177d   :  { %v5189_v51 = vpop.eup %5188 }
0x177e   :  { %v3063_v5 = vmul.f32 %v5187_v19, %v3062_v49  ;;  %v3069_v63 = vmul.f32 %v5189_v51, %v3037_v57  ;;  %vm3075_vm2 = vweird.f32 %v5189_v51 }
0x177f   :  { %vm3076_vm8 = vmor %vm3074_vm7, %vm3075_vm2 }
0x1780   :  { %v3070_v1 = vmul.f32 %v5189_v51, %v3069_v63  ;;  %v3067_v30 = vsel %vm3066_vm10, %v5187_v19, %v3063_v5 }
0x1781   :  { %v3080_v0 = vmul.f32 %v3067_v30, %v3012_v15 }
0x1782   :  { %v3071_v2 = vmul.f32 0.5, %v3070_v1 }
0x1783   :  { %v3087_v32 = vmul.f32 %v6215_v11, %v3080_v0 }
0x1784   :  { %v3072_v8 = vsub.f32 1.5, %v3071_v2 }
0x1785   :  { %v3094_v17 = vadd.f32 %v6218_v12, %v3087_v32 }
0x1786   :  { %v3073_v45 = vmul.f32 %v5189_v51, %v3072_v8 }
0x1788   :  { %v3077_v61 = vsel %vm3076_vm8, %v5189_v51, %v3073_v45 }
0x1789   :  { %v3081_v10 = vmul.f32 %v3077_v61, %v3013_v26 }
0x178b   :  { %v3088_v46 = vmul.f32 %v6215_v11, %v3081_v10 }
0x178d   :  { %v3095_v53 = vadd.f32 %v6218_v12, %v3088_v46 }
0x178f   :  { %v3102_v24 = vpack.c.bf16 %v3095_v53, %v3094_v17 }
0x1791   :  { %4712 = vmatmul.msk.bf16.gmra.mxu1 %vm396_vm0, %v3102_v24 }
0x17ba   :  { %v3329_v3 = vpop.permute.xlu2 %3328 }
0x17bb   :  { %v3334_v56 = vsel %vm462_vm5, %v3329_v3, 0 }
0x17d2   :  { %v3172_v38 = vpop.permute.xlu0 %3171 }
0x17d3   :  { %v3177_v16 = vsel %vm462_vm5, %v3172_v38, 0 }
0x17d4   :  { %3186 = vmatpush.bf16.xpose.msra.mxu3 %v3177_v16  ;;  %v3327_v59 = vpop.permute.xlu1 %3326 }
0x17db   :  { %4717 = vmatmul.msk.bf16.vlgmr.msra.gmra.mxu3 %vm462_vm5, %v6233_v47 }
0x17dc   :  { %3343 = vmatpush.bf16.xpose.msrb.mxu3 %v3334_v56 }
0x17eb   :  { %4721 = vmatmul.msk.bf16.vlgmr.msrb.gmra.mxu3 %vm462_vm5, %v3327_v59 }
0x180e   :  { %v3135_v11 = vpop.f32.mrf.mxu1 }
0x180f   :  { %v3159_v4 = vpack.c.bf16 %v3135_v11, %v3135_v11  ;;  %v3151_v21 = vmul.f32 0.35355338, %v3135_v11 }
0x1811   :  { %v3200_v13 = vunpack.c.l.b16 %v3159_v4  ;;  %v3155_v37 = vpack.c.bf16 %v3151_v21, %v3151_v21 }
0x1813   :  { %v3195_v29 = vunpack.c.l.b16 %v3155_v37 }
0x1816   :  { %v3137_v12 = vpop.f32.mrf.mxu1 }
0x1817   :  { %v3160_v14 = vpack.c.bf16 %v3137_v12, %v3137_v12  ;;  %v3152_v6 = vmul.f32 0.35355338, %v3137_v12 }
0x1819   :  { %v3201_v15 = vunpack.c.l.b16 %v3160_v14  ;;  %v3156_v33 = vpack.c.bf16 %v3152_v6, %v3152_v6 }
0x181b   :  { %v6253_v54 = vpack.c.b16 %v3201_v15, %v3200_v13  ;;  %v3196_v55 = vunpack.c.l.b16 %v3156_v33 }
0x181d   :  { %3203 = vrot.lane.b32.xlu0 %v6253_v54, %s5355_s12  ;;  %v6266_v41 = vpack.c.b16 %v3196_v55, %v3195_v29 }
0x185e   :  { %v3188_v7 = vpop.f32.mrf.mxu3 }
0x185f   :  { %v3225_v20 = vsel %vm2024_vm3, %v3188_v7, -inf }
0x1860   :  { %3226 = vmax.xlane.f32.xlu2 %v3225_v20 }
0x1866   :  { %v3190_v25 = vpop.f32.mrf.mxu3 }
0x1867   :  { %v3228_v26 = vsel %vm2024_vm3, %v3190_v25, -inf }
0x1868   :  { %3229 = vmax.xlane.f32.xlu0 %v3228_v26 }
0x186e   :  { %v3345_v27 = vpop.f32.mrf.mxu3 }
0x186f   :  { %v3374_v31 = vsel %vm2024_vm3, %v3345_v27, -inf }
0x1870   :  { %3375 = vmax.xlane.f32.xlu1 %v3374_v31 }
0x1876   :  { %v3347_v23 = vpop.f32.mrf.mxu3 }
0x1877   :  { %v3377_v35 = vsel %vm2024_vm3, %v3347_v23, -inf }
0x1878   :  { %3378 = vmax.xlane.f32.xlu2 %v3377_v35 }
0x187c   :  { %3352 = vrot.lane.b32.xlu0 %v6253_v54, %s5354_s6 }
0x188f   :  { %v3204_v28 = vpop.permute.xlu0 %3203 }
0x1890   :  { %v3209_v39 = vsel %vm462_vm5, %v3204_v28, 0  ;;  %3278 = vrot.lane.b32.xlu2 %v6231_v18, %s5353_s9 }
0x1891   :  { %3218 = vmatpush.bf16.xpose.msra.mxu0 %v3209_v39 }
0x1898   :  { %4718 = vmatmul.msk.bf16.vlgmr.msra.gmra.mxu0 %vm462_vm5, %v6266_v41  ;;  %3427 = vrot.lane.b32.xlu2 %v6231_v18, %s5357_s28 }
0x18a0   :  { %3531 = vrot.lane.b32.xlu2 %v6233_v47, %s5358_s2 }
0x18d3   :  { %v3227_v9 = vpop.xlane.xlu2 %3226 }
0x18d4   :  { %v3237_v44 = vsub.f32 %v3188_v7, %v3227_v9 }
0x18d6   :  { %v3241_v36 = vmul.f32 1.442695, %v3237_v44 }
0x18d8   :  { %5190 = vpow2.f32 %v3241_v36 }
0x18db   :  { %v3230_v42 = vpop.xlane.xlu0 %3229 }
0x18dc   :  { %v3238_v50 = vsub.f32 %v3190_v25, %v3230_v42 }
0x18de   :  { %v5191_v62 = vpop.eup %5190  ;;  %v3243_v19 = vmul.f32 1.442695, %v3238_v50 }
0x18df   :  { %v3249_v57 = vsel %vm2024_vm3, %v5191_v62, 0.0 }
0x18e0   :  { %5192 = vpow2.f32 %v3243_v19  ;;  %3250 = vadd.xlane.f32.xlu0 %v3249_v57 }
0x18e3   :  { %v3376_v48 = vpop.xlane.xlu1 %3375 }
0x18e4   :  { %v3386_v58 = vsub.f32 %v3345_v27, %v3376_v48 }
0x18e6   :  { %v5193_v60 = vpop.eup %5192  ;;  %v3390_v49 = vmul.f32 1.442695, %v3386_v58 }
0x18e7   :  { %v3252_v51 = vsel %vm2024_vm3, %v5193_v60, 0.0 }
0x18e8   :  { %5194 = vpow2.f32 %v3390_v49  ;;  %3253 = vadd.xlane.f32.xlu1 %v3252_v51 }
0x18eb   :  { %v3379_v5 = vpop.xlane.xlu2 %3378 }
0x18ec   :  { %v3387_v63 = vsub.f32 %v3347_v23, %v3379_v5 }
0x18ee   :  { %v5195_v1 = vpop.eup %5194  ;;  %v3392_v30 = vmul.f32 1.442695, %v3387_v63  ;;  %v3353_v2 = vpop.permute.xlu0 %3352 }
0x18ef   :  { %v3358_v8 = vsel %vm462_vm5, %v3353_v2, 0  ;;  %v3398_v0 = vsel %vm2024_vm3, %v5195_v1, 0.0 }
0x18f0   :  { %5196 = vpow2.f32 %v3392_v30  ;;  %3367 = vmatpush.bf16.xpose.msrb.mxu0 %v3358_v8  ;;  %3399 = vadd.xlane.f32.xlu0 %v3398_v0 }
0x18f3   :  { %v3279_v45 = vpop.permute.xlu2 %3278 }
0x18f4   :  { %3291 = vmatpush.bf16.msra.mxu2 %v3279_v45 }
0x18f6   :  { %v5197_v61 = vpop.eup %5196 }
0x18f7   :  { %v3401_v10 = vsel %vm2024_vm3, %v5197_v61, 0.0 }
0x18f8   :  { %3402 = vadd.xlane.f32.xlu1 %v3401_v10 }
0x18fb   :  { %v3428_v32 = vpop.permute.xlu2 %3427 }
0x18fc   :  { %3440 = vmatpush.bf16.msrb.mxu2 %v3428_v32 }
0x1903   :  { %v3532_v55 = vpop.permute.xlu2 %3531 }
0x1904   :  { %3533 = vrot.lane.b32.xlu0 %v6231_v18, %s5359_s7 }
0x1911   :  { %3350 = vrot.lane.b32.xlu1 %v6266_v41, %s5356_s20 }
0x1915   :  { %v3220_v46 = vpop.f32.mrf.mxu0 }
0x1916   :  { %v3231_v17 = vsel %vm2024_vm3, %v3220_v46, -inf }
0x191d   :  { %v3222_v53 = vpop.f32.mrf.mxu0 }
0x191e   :  { %v3234_v24 = vsel %vm2024_vm3, %v3222_v53, -inf }
0x192e   :  { %3232 = vmax.xlane.f32.xlu0 %v3231_v17 }
0x193b   :  { %3235 = vmax.xlane.f32.xlu1 %v3234_v24 }
0x1953   :  { %v3251_v3 = vpop.xlane.xlu0 %3250 }
0x1954   :  { %3303 = vrot.lane.b32.xlu1 %v6253_v54, %s5353_s9  ;;  %5198 = vrcp.f32 %v3251_v3  ;;  %s6525_s9 = sld [smem:[#allocation25_spill]] }
0x195a   :  { %v5199_v16 = vpop.eup %5198 }
0x195b   :  { %v3254_v38 = vpop.xlane.xlu1 %3253  ;;  %v3265_v56 = vmul.f32 %v5199_v16, %v5191_v62 }
0x195c   :  { %5200 = vrcp.f32 %v3254_v38  ;;  %3557 = vrot.lane.b32.xlu1 %v6253_v54, %s5359_s7 }
0x195d   :  { %v3269_v11 = vpack.c.bf16 %v3265_v56, %v3265_v56 }
0x195f   :  { %v3275_v13 = vunpack.c.l.b16 %v3269_v11 }
0x1962   :  { %v5201_v59 = vpop.eup %5200 }
0x1963   :  { %v3266_v4 = vmul.f32 %v5201_v59, %v5193_v60  ;;  %v3400_v12 = vpop.xlane.xlu0 %3399  ;;  %v4907_v60 = vld [vmem:[%s6517_s1 + $0x10] sm:$0xff]  }
0x1964   :  { %5202 = vrcp.f32 %v3400_v12  ;;  %v4900_v49 = vunpack.c.l.bf16 %v4907_v60  ;;  %v4901_v63 = vunpack.c.h.bf16 %v4907_v60 }
0x1965   :  { %v3270_v14 = vpack.c.bf16 %v3266_v4, %v3266_v4 }
0x1966   :  { %v3325_v51 = vpack.c.bf16 %v4900_v49, %v4900_v49 }
0x1967   :  { %v3276_v15 = vunpack.c.l.b16 %v3270_v14 }
0x1968   :  { %v3510_v5 = vsel %vm2281_vm6, %v3325_v51, 0 }
0x1969   :  { %v3277_v7 = vpack.c.b16 %v3276_v15, %v3275_v13  ;;  %3519 = vmatpush.bf16.msra.mxu0 %v3510_v5 }
0x196a   :  { %v5203_v25 = vpop.eup %5202 }
0x196b   :  { %v3403_v20 = vpop.xlane.xlu1 %3402  ;;  %4719 = vmatmul.msk.bf16.vlgmr.msra.gmra.mxu2 %vm2024_vm3, %v3277_v7  ;;  %v3414_v26 = vmul.f32 %v5203_v25, %v5195_v1  ;;  %v3474_v1 = vpack.c.bf16 %v4901_v63, %v4901_v63 }
0x196c   :  { %5204 = vrcp.f32 %v3403_v20 }
0x196d   :  { %v3418_v31 = vpack.c.bf16 %v3414_v26, %v3414_v26  ;;  %v3482_v30 = vsel %vm2281_vm6, %v3474_v1, 0 }
0x196e   :  { %3491 = vmatpush.bf16.msra.mxu3 %v3482_v30 }
0x196f   :  { %v3424_v21 = vunpack.c.l.b16 %v3418_v31 }
0x1972   :  { %v5205_v27 = vpop.eup %5204 }
0x1973   :  { %v3415_v23 = vmul.f32 %v5205_v27, %v5197_v61 }
0x1975   :  { %v3419_v35 = vpack.c.bf16 %v3415_v23, %v3415_v23 }
0x1976   :  { %v3534_v6 = vpop.permute.xlu0 %3533 }
0x1977   :  { %v3425_v33 = vunpack.c.l.b16 %v3419_v35  ;;  %v3539_v28 = vsel %vm462_vm5, %v3534_v6, 0 }
0x1978   :  { %3548 = vmatpush.bf16.xpose.msra.mxu2 %v3539_v28 }
0x1979   :  { %v3426_v37 = vpack.c.b16 %v3425_v33, %v3424_v21 }
0x197b   :  { %4723 = vmatmul.msk.bf16.vlgmr.msrb.gmra.mxu2 %vm2024_vm3, %v3426_v37 }
0x1983   :  { %v3351_v39 = vpop.permute.xlu1 %3350 }
0x1984   :  { %4722 = vmatmul.msk.bf16.vlgmr.msrb.gmra.mxu0 %vm462_vm5, %v3351_v39 }
0x198b   :  { %4729 = vmatmul.msk.bf16.vlgmr.msra.gmra.mxu2 %vm462_vm5, %v3532_v55 }
0x19a1   :  { %v3233_v29 = vpop.xlane.xlu0 %3232 }
0x19a2   :  { %v3239_v9 = vsub.f32 %v3220_v46, %v3233_v29 }
0x19a4   :  { %v3245_v44 = vmul.f32 1.442695, %v3239_v9 }
0x19a6   :  { %5206 = vpow2.f32 %v3245_v44 }
0x19ac   :  { %v5207_v36 = vpop.eup %5206 }
0x19ad   :  { %v3255_v42 = vsel %vm2024_vm3, %v5207_v36, 0.0 }
0x19ae   :  { %3256 = vadd.xlane.f32.xlu2 %v3255_v42  ;;  %v3236_v50 = vpop.xlane.xlu1 %3235 }
0x19af   :  { %v3240_v62 = vsub.f32 %v3222_v53, %v3236_v50 }
0x19b1   :  { %v3247_v19 = vmul.f32 1.442695, %v3240_v62 }
0x19b3   :  { %5208 = vpow2.f32 %v3247_v19 }
0x19b9   :  { %v5209_v57 = vpop.eup %5208 }
0x19ba   :  { %v3258_v48 = vsel %vm2024_vm3, %v5209_v57, 0.0 }
0x19bb   :  { %3259 = vadd.xlane.f32.xlu0 %v3258_v48 }
0x19c6   :  { %v3304_v58 = vpop.permute.xlu1 %3303 }
0x19c7   :  { %3316 = vmatpush.bf16.msra.mxu1 %v3304_v58 }
0x19ce   :  { %v3558_v51 = vpop.permute.xlu1 %3557 }
0x19ee   :  { %v3293_v2 = vpop.f32.mrf.mxu2 }
0x19f6   :  { %v3295_v8 = vpop.f32.mrf.mxu2 }
0x19f7   :  { %v3323_v0 = vpack.c.bf16 %v3295_v8, %v3293_v2  ;;  %v3563_v2 = vsel %vm462_vm5, %v3558_v51, 0 }
0x19f9   :  { %4727 = vmatmul.msk.bf16.vlgmr.msra.gmra.mxu0 %vm462_vm5, %v3323_v0 }
0x19fe   :  { %v3442_v45 = vpop.f32.mrf.mxu2 }
0x1a01   :  { %v3369_v61 = vpop.f32.mrf.mxu0 }
0x1a02   :  { %v3380_v10 = vsel %vm2024_vm3, %v3369_v61, -inf }
0x1a03   :  { %3381 = vmax.xlane.f32.xlu2 %v3380_v10 }
0x1a06   :  { %v3444_v32 = vpop.f32.mrf.mxu2 }
0x1a07   :  { %v3472_v46 = vpack.c.bf16 %v3444_v32, %v3442_v45 }
0x1a09   :  { %v3371_v17 = vpop.f32.mrf.mxu0  ;;  %4725 = vmatmul.msk.bf16.vlgmr.msra.gmra.mxu3 %vm462_vm5, %v3472_v46 }
0x1a0a   :  { %v3383_v53 = vsel %vm2024_vm3, %v3371_v17, -inf }
0x1a0b   :  { %3384 = vmax.xlane.f32.xlu0 %v3383_v53 }
0x1a0e   :  { %v3550_v24 = vpop.f32.mrf.mxu2 }
0x1a0f   :  { %v3579_v37 = vsel %vm2024_vm3, %v3550_v24, -inf }
0x1a16   :  { %v3552_v3 = vpop.f32.mrf.mxu2 }
0x1a17   :  { %v3582_v38 = vsel %vm2024_vm3, %v3552_v3, -inf }
0x1a18   :  { %3583 = vmax.xlane.f32.xlu0 %v3582_v38 }
0x1a21   :  { %v3257_v16 = vpop.xlane.xlu2 %3256 }
0x1a22   :  { %5210 = vrcp.f32 %v3257_v16 }
0x1a28   :  { %v5211_v59 = vpop.eup %5210 }
0x1a29   :  { %v3267_v11 = vmul.f32 %v5211_v59, %v5207_v36 }
0x1a2b   :  { %v3271_v12 = vpack.c.bf16 %v3267_v11, %v3267_v11 }
0x1a2d   :  { %v3300_v15 = vunpack.c.l.b16 %v3271_v12 }
0x1a2e   :  { %v3260_v56 = vpop.xlane.xlu0 %3259 }
0x1a2f   :  { %5212 = vrcp.f32 %v3260_v56 }
0x1a35   :  { %v5213_v4 = vpop.eup %5212 }
0x1a36   :  { %v3268_v14 = vmul.f32 %v5213_v4, %v5209_v57 }
0x1a38   :  { %v3272_v13 = vpack.c.bf16 %v3268_v14, %v3268_v14 }
0x1a3a   :  { %v3301_v7 = vunpack.c.l.b16 %v3272_v13 }
0x1a3c   :  { %v3302_v20 = vpack.c.b16 %v3301_v7, %v3300_v15 }
0x1a3e   :  { %4720 = vmatmul.msk.bf16.vlgmr.msra.gmra.mxu1 %vm2024_vm3, %v3302_v20 }
0x1a76   :  { %v3382_v25 = vpop.xlane.xlu2 %3381 }
0x1a77   :  { %v3388_v26 = vsub.f32 %v3369_v61, %v3382_v25 }
0x1a79   :  { %v3394_v27 = vmul.f32 1.442695, %v3388_v26 }
0x1a7b   :  { %5214 = vpow2.f32 %v3394_v27 }
0x1a7e   :  { %v3385_v31 = vpop.xlane.xlu0 %3384 }
0x1a7f   :  { %v3389_v23 = vsub.f32 %v3371_v17, %v3385_v31  ;;  %v6334_v31 = vpop.f32.mrf.mxu0 }
0x1a81   :  { %v5215_v35 = vpop.eup %5214  ;;  %v3396_v6 = vmul.f32 1.442695, %v3389_v23  ;;  %v6337_v23 = vld [vmem:[%s6517_s1 + $0x18] sm:$0xff]  }
0x1a82   :  { %v3404_v21 = vsel %vm2024_vm3, %v5215_v35, 0.0 }
0x1a83   :  { %5216 = vpow2.f32 %v3396_v6  ;;  %3405 = vadd.xlane.f32.xlu2 %v3404_v21 }
0x1a89   :  { %v5217_v33 = vpop.eup %5216 }
0x1a8a   :  { %v3407_v28 = vsel %vm2024_vm3, %v5217_v33, 0.0 }
0x1a8b   :  { %3408 = vadd.xlane.f32.xlu0 %v3407_v28  ;;  %v3584_v39 = vpop.xlane.xlu0 %3583  ;;  %3580 = vmax.xlane.f32.xlu2 %v3579_v37 }
0x1a8c   :  { %v3592_v55 = vsub.f32 %v3552_v3, %v3584_v39 }
0x1a8e   :  { %v3597_v29 = vmul.f32 1.442695, %v3592_v55 }
0x1a90   :  { %5218 = vpow2.f32 %v3597_v29 }
0x1a96   :  { %v5219_v9 = vpop.eup %5218 }
0x1a97   :  { %v3606_v44 = vsel %vm2024_vm3, %v5219_v9, 0.0 }
0x1a98   :  { %3607 = vadd.xlane.f32.xlu1 %v3606_v44 }
0x1aa3   :  { %3452 = vrot.lane.b32.xlu2 %v6253_v54, %s5357_s28 }
0x1aab   :  { %3632 = vrot.lane.b32.xlu2 %v6231_v18, %s5362_s15 }
0x1ab3   :  { %3714 = vrot.lane.b32.xlu2 %v6231_v18, %s5361_s11 }
0x1abb   :  { %v3318_v36 = vpop.f32.mrf.mxu1  ;;  %3738 = vrot.lane.b32.xlu2 %v6253_v54, %s5361_s11 }
0x1ac3   :  { %v3320_v42 = vpop.f32.mrf.mxu1 }
0x1ac4   :  { %v3324_v50 = vpack.c.bf16 %v3320_v42, %v3318_v36 }
0x1ac6   :  { %4728 = vmatmul.msk.bf16.gmra.mxu0 %vm462_vm5, %v3324_v50 }
0x1af6   :  { %v3406_v62 = vpop.xlane.xlu2 %3405 }
0x1af7   :  { %5220 = vrcp.f32 %v3406_v62 }
0x1afd   :  { %v5221_v48 = vpop.eup %5220 }
0x1afe   :  { %v3409_v19 = vpop.xlane.xlu0 %3408  ;;  %v3581_v57 = vpop.xlane.xlu2 %3580  ;;  %v3416_v49 = vmul.f32 %v5221_v48, %v5215_v35  ;;  %v4904_v35 = vunpack.c.l.bf16 %v6337_v23 }
0x1aff   :  { %5222 = vrcp.f32 %v3409_v19  ;;  %v3591_v58 = vsub.f32 %v3550_v24, %v3581_v57 }
0x1b00   :  { %v3420_v63 = vpack.c.bf16 %v3416_v49, %v3416_v49  ;;  %v3679_v6 = vpack.c.bf16 %v4904_v35, %v4904_v35 }
0x1b01   :  { %v3595_v60 = vmul.f32 1.442695, %v3591_v58 }
0x1b02   :  { %v3449_v45 = vunpack.c.l.b16 %v3420_v63  ;;  %v3687_v21 = vsel %vm2281_vm6, %v3679_v6, 0 }
0x1b03   :  { %5224 = vpow2.f32 %v3595_v60  ;;  %3696 = vmatpush.bf16.msrb.mxu3 %v3687_v21 }
0x1b05   :  { %v5223_v5 = vpop.eup %5222 }
0x1b06   :  { %v3417_v1 = vmul.f32 %v5223_v5, %v5217_v33  ;;  %v3453_v30 = vpop.permute.xlu2 %3452  ;;  %v6341_v33 = vpop.f32.mrf.mxu0 }
0x1b07   :  { %3465 = vmatpush.bf16.msrb.mxu1 %v3453_v30 }
0x1b08   :  { %v3421_v8 = vpack.c.bf16 %v3417_v1, %v3417_v1 }
0x1b09   :  { %v5225_v0 = vpop.eup %5224 }
0x1b0a   :  { %v3450_v61 = vunpack.c.l.b16 %v3421_v8  ;;  %v3603_v10 = vsel %vm2024_vm3, %v5225_v0, 0.0 }
0x1b0b   :  { %3572 = vmatpush.bf16.xpose.msra.mxu1 %v3563_v2  ;;  %3604 = vadd.xlane.f32.xlu0 %v3603_v10  ;;  %v3608_v38 = vpop.xlane.xlu1 %3607 }
0x1b0c   :  { %v3451_v32 = vpack.c.b16 %v3450_v61, %v3449_v45  ;;  %5226 = vrcp.f32 %v3608_v38 }
0x1b0e   :  { %4724 = vmatmul.msk.bf16.vlgmr.msrb.gmra.mxu1 %vm2024_vm3, %v3451_v32  ;;  %v3633_v46 = vpop.permute.xlu2 %3632 }
0x1b0f   :  { %3645 = vmatpush.bf16.msrb.mxu2 %v3633_v46 }
0x1b12   :  { %v5227_v56 = vpop.eup %5226 }
0x1b13   :  { %v3620_v59 = vmul.f32 %v5227_v56, %v5219_v9 }
0x1b15   :  { %v3624_v4 = vpack.c.bf16 %v3620_v59, %v3620_v59 }
0x1b16   :  { %v3715_v17 = vpop.permute.xlu2 %3714 }
0x1b17   :  { %v3720_v53 = vsel %vm462_vm5, %v3715_v17, 0  ;;  %v3630_v13 = vunpack.c.l.b16 %v3624_v4 }
0x1b18   :  { %3729 = vmatpush.bf16.xpose.msrb.mxu0 %v3720_v53 }
0x1b1e   :  { %v3739_v24 = vpop.permute.xlu2 %3738 }
0x1b1f   :  { %v3744_v3 = vsel %vm462_vm5, %v3739_v24, 0  ;;  %3555 = vrot.lane.b32.xlu0 %v6266_v41, %s5358_s2 }
0x1b20   :  { %3753 = vmatpush.bf16.xpose.msra.mxu2 %v3744_v3 }
0x1b27   :  { %3712 = vrot.lane.b32.xlu0 %v6233_v47, %s5360_s10 }
0x1b2f   :  { %3736 = vrot.lane.b32.xlu0 %v6266_v41, %s5360_s10 }
0x1b43   :  { %v6343_v28 = vpop.f32.mrf.mxu0 }
0x1b4b   :  { %v6345_v37 = vpop.f32.mrf.mxu0 }
0x1b7e   :  { %v3605_v16 = vpop.xlane.xlu0 %3604 }
0x1b7f   :  { %5228 = vrcp.f32 %v3605_v16 }
0x1b85   :  { %v5229_v11 = vpop.eup %5228 }
0x1b86   :  { %v3619_v12 = vmul.f32 %v5229_v11, %v5225_v0 }
0x1b88   :  { %v3623_v14 = vpack.c.bf16 %v3619_v12, %v3619_v12 }
0x1b8a   :  { %v3629_v15 = vunpack.c.l.b16 %v3623_v14 }
0x1b8b   :  { %v3467_v7 = vpop.f32.mrf.mxu1 }
0x1b8c   :  { %v3631_v20 = vpack.c.b16 %v3630_v13, %v3629_v15 }
0x1b8e   :  { %4731 = vmatmul.msk.bf16.vlgmr.msrb.gmra.mxu2 %vm2024_vm3, %v3631_v20 }
0x1b91   :  { %v3556_v47 = vpop.permute.xlu0 %3555 }
0x1b92   :  { %4730 = vmatmul.msk.bf16.vlgmr.msra.gmra.mxu1 %vm462_vm5, %v3556_v47 }
0x1b93   :  { %v3469_v41 = vpop.f32.mrf.mxu1 }
0x1b94   :  { %v3473_v25 = vpack.c.bf16 %v3469_v41, %v3467_v7 }
0x1b96   :  { %4726 = vmatmul.msk.bf16.gmra.mxu3 %vm462_vm5, %v3473_v25 }
0x1b99   :  { %v3713_v26 = vpop.permute.xlu0 %3712 }
0x1b9a   :  { %4735 = vmatmul.msk.bf16.vlgmr.msrb.gmra.mxu0 %vm462_vm5, %v3713_v26 }
0x1ba1   :  { %v3737_v27 = vpop.permute.xlu0 %3736 }
0x1ba2   :  { %4736 = vmatmul.msk.bf16.vlgmr.msra.gmra.mxu2 %vm462_vm5, %v3737_v27 }
0x1c0f   :  { %v3574_v39 = vpop.f32.mrf.mxu1 }
0x1c10   :  { %v3585_v55 = vsel %vm2024_vm3, %v3574_v39, -inf }
0x1c11   :  { %3586 = vmax.xlane.f32.xlu2 %v3585_v55  ;;  %v3647_v29 = vpop.f32.mrf.mxu2 }
0x1c17   :  { %v3576_v9 = vpop.f32.mrf.mxu1  ;;  %v3731_v44 = vpop.f32.mrf.mxu0 }
0x1c18   :  { %v3588_v36 = vsel %vm2024_vm3, %v3576_v9, -inf  ;;  %v3760_v42 = vsel %vm2024_vm3, %v3731_v44, -inf }
0x1c19   :  { %3589 = vmax.xlane.f32.xlu1 %v3588_v36  ;;  %v3649_v50 = vpop.f32.mrf.mxu2  ;;  %3761 = vmax.xlane.f32.xlu0 %v3760_v42 }
0x1c1a   :  { %v3677_v62 = vpack.c.bf16 %v3649_v50, %v3647_v29 }
0x1c1c   :  { %4733 = vmatmul.msk.bf16.vlgmr.msrb.gmra.mxu3 %vm462_vm5, %v3677_v62 }
0x1c1f   :  { %v3733_v19 = vpop.f32.mrf.mxu0 }
0x1c20   :  { %v3763_v57 = vsel %vm2024_vm3, %v3733_v19, -inf }
0x1c21   :  { %3764 = vmax.xlane.f32.xlu1 %v3763_v57 }
0x1c25   :  { %v3755_v0 = vpop.f32.mrf.mxu2 }
0x1c26   :  { %v3766_v53 = vsel %vm2024_vm3, %v3755_v0, -inf }
0x1c2d   :  { %v3757_v3 = vpop.f32.mrf.mxu2 }
0x1c2e   :  { %v3769_v56 = vsel %vm2024_vm3, %v3757_v3, -inf }
0x1c84   :  { %v3587_v48 = vpop.xlane.xlu2 %3586 }
0x1c85   :  { %v3593_v58 = vsub.f32 %v3574_v39, %v3587_v48 }
0x1c87   :  { %v3599_v60 = vmul.f32 1.442695, %v3593_v58 }
0x1c89   :  { %5230 = vpow2.f32 %v3599_v60 }
0x1c8c   :  { %v3590_v49 = vpop.xlane.xlu1 %3589  ;;  %v3762_v51 = vpop.xlane.xlu0 %3761 }
0x1c8d   :  { %v3594_v5 = vsub.f32 %v3576_v9, %v3590_v49  ;;  %v3772_v63 = vsub.f32 %v3731_v44, %v3762_v51 }
0x1c8f   :  { %v5231_v1 = vpop.eup %5230  ;;  %v3601_v30 = vmul.f32 1.442695, %v3594_v5  ;;  %v3776_v2 = vmul.f32 1.442695, %v3772_v63 }
0x1c90   :  { %v3609_v8 = vsel %vm2024_vm3, %v5231_v1, 0.0 }
0x1c91   :  { %5232 = vpow2.f32 %v3601_v30  ;;  %3610 = vadd.xlane.f32.xlu1 %v3609_v8 }
0x1c92   :  { %5234 = vpow2.f32 %v3776_v2 }
0x1c94   :  { %v3765_v45 = vpop.xlane.xlu1 %3764 }
0x1c95   :  { %v3773_v61 = vsub.f32 %v3733_v19, %v3765_v45 }
0x1c97   :  { %v5233_v10 = vpop.eup %5232  ;;  %v3778_v32 = vmul.f32 1.442695, %v3773_v61 }
0x1c98   :  { %v5235_v46 = vpop.eup %5234  ;;  %v3612_v17 = vsel %vm2024_vm3, %v5233_v10, 0.0 }
0x1c99   :  { %5236 = vpow2.f32 %v3778_v32  ;;  %3613 = vadd.xlane.f32.xlu2 %v3612_v17  ;;  %v3784_v24 = vsel %vm2024_vm3, %v5235_v46, 0.0  ;;  %3767 = vmax.xlane.f32.xlu1 %v3766_v53 }
0x1c9a   :  { %3785 = vadd.xlane.f32.xlu0 %v3784_v24 }
0x1c9f   :  { %v5237_v38 = vpop.eup %5236 }
0x1ca0   :  { %v3787_v16 = vsel %vm2024_vm3, %v5237_v38, 0.0 }
0x1ca1   :  { %3788 = vadd.xlane.f32.xlu2 %v3787_v16  ;;  %3770 = vmax.xlane.f32.xlu1 %v3769_v56 }
0x1cae   :  { %3813 = vrot.lane.b32.xlu0 %v6231_v18, %s5363_s16 }
0x1cba   :  { %3657 = vrot.lane.b32.xlu1 %v6253_v54, %s5362_s15 }
0x1cc2   :  { %3838 = vrot.lane.b32.xlu1 %v6253_v54, %s5363_s16 }
0x1d04   :  { %v3611_v59 = vpop.xlane.xlu1 %3610 }
0x1d0c   :  { %v3768_v11 = vpop.xlane.xlu1 %3767  ;;  %v3614_v13 = vpop.xlane.xlu2 %3613 }
0x1d0d   :  { %v3774_v4 = vsub.f32 %v3755_v0, %v3768_v11  ;;  %v3786_v35 = vpop.xlane.xlu0 %3785  ;;  %v3493_v11 = vpop.f32.mrf.mxu3 }
0x1d0f   :  { %v3780_v12 = vmul.f32 1.442695, %v3774_v4 }
0x1d11   :  { %5238 = vpow2.f32 %v3780_v12 }
0x1d12   :  { %5240 = vrcp.f32 %v3614_v13 }
0x1d14   :  { %v3771_v14 = vpop.xlane.xlu1 %3770  ;;  %v3789_v21 = vpop.xlane.xlu2 %3788 }
0x1d15   :  { %v3775_v15 = vsub.f32 %v3757_v3, %v3771_v14 }
0x1d17   :  { %v5239_v7 = vpop.eup %5238  ;;  %v3782_v20 = vmul.f32 1.442695, %v3775_v15 }
0x1d18   :  { %v3790_v47 = vsel %vm2024_vm3, %v5239_v7, 0.0  ;;  %v5241_v18 = vpop.eup %5240 }
0x1d19   :  { %5242 = vpow2.f32 %v3782_v20  ;;  %3791 = vadd.xlane.f32.xlu2 %v3790_v47  ;;  %v3622_v26 = vmul.f32 %v5241_v18, %v5233_v10  ;;  %v3522_v20 = vadd.f32 %v6334_v31, %v3493_v11  ;;  %v4879_v11 = vld [vmem:[%s6519_s22 + $0x18] sm:$0xff] }
0x1d1a   :  { %5244 = vrcp.f32 %v3611_v59 }
0x1d1b   :  { %v3626_v6 = vpack.c.bf16 %v3622_v26, %v3622_v26  ;;  %5246 = vrcp.f32 %v3789_v21 }
0x1d1c   :  { %5248 = vrcp.f32 %v3786_v35 }
0x1d1d   :  { %v3655_v55 = vunpack.c.l.b16 %v3626_v6 }
0x1d1f   :  { %v5243_v41 = vpop.eup %5242 }
0x1d20   :  { %v3793_v54 = vsel %vm2024_vm3, %v5243_v41, 0.0  ;;  %v5245_v25 = vpop.eup %5244  ;;  %v3814_v44 = vpop.permute.xlu0 %3813 }
0x1d21   :  { %3794 = vadd.xlane.f32.xlu2 %v3793_v54  ;;  %v3621_v27 = vmul.f32 %v5245_v25, %v5231_v1  ;;  %v5247_v42 = vpop.eup %5246  ;;  %v5018_v54 = vld [vmem:[%s6518_s18 + $0x1] ss:$0 sm:$0xff] }
0x1d22   :  { %v5249_v50 = vpop.eup %5248  ;;  %v3801_v62 = vmul.f32 %v5247_v42, %v5237_v38 }
0x1d23   :  { %v3625_v39 = vpack.c.bf16 %v3621_v27, %v3621_v27  ;;  %v3800_v19 = vmul.f32 %v5249_v50, %v5235_v46  ;;  %v4905_v46 = vunpack.c.h.bf16 %v6337_v23  ;;  %v3495_v23 = vpop.f32.mrf.mxu3 }
0x1d24   :  { %v3805_v48 = vpack.c.bf16 %v3801_v62, %v3801_v62  ;;  %v3524_v27 = vadd.f32 %v6341_v33, %v3495_v23 }
0x1d25   :  { %v3654_v29 = vunpack.c.l.b16 %v3625_v39  ;;  %v3804_v58 = vpack.c.bf16 %v3800_v19, %v3800_v19  ;;  %v3860_v17 = vpack.c.bf16 %v4905_v46, %v4905_v46 }
0x1d26   :  { %v3811_v60 = vunpack.c.l.b16 %v3805_v48 }
0x1d27   :  { %v3656_v36 = vpack.c.b16 %v3655_v55, %v3654_v29  ;;  %v3810_v49 = vunpack.c.l.b16 %v3804_v58  ;;  %v3868_v53 = vsel %vm2281_vm6, %v3860_v17, 0 }
0x1d28   :  { %3877 = vmatpush.bf16.msrb.mxu2 %v3868_v53 }
0x1d29   :  { %v3812_v51 = vpack.c.b16 %v3811_v60, %v3810_v49 }
0x1d2b   :  { %v3498_v13 = vpop.f32.mrf.mxu3 }
0x1d2c   :  { %v3658_v9 = vpop.permute.xlu1 %3657  ;;  %v3527_v33 = vadd.f32 %v6343_v28, %v3498_v13 }
0x1d2d   :  { %3670 = vmatpush.bf16.msrb.mxu1 %v3658_v9 }
0x1d30   :  { %4732 = vmatmul.msk.bf16.vlgmr.msrb.gmra.mxu1 %vm2024_vm3, %v3656_v36 }
0x1d31   :  { %3826 = vmatpush.bf16.msra.mxu1 %v3814_v44 }
0x1d33   :  { %v3500_v15 = vpop.f32.mrf.mxu3 }
0x1d34   :  { %v3839_v57 = vpop.permute.xlu1 %3838  ;;  %v3529_v19 = vadd.f32 %v6345_v37, %v3500_v15 }
0x1d35   :  { %3851 = vmatpush.bf16.msra.mxu0 %v3839_v57  ;;  %4048 = vmatpush.bf16.msrb.mxu1 %v4879_v11  ;;  %v4884_v11 = vld [vmem:[%s6522_s0 + $0x60] sm:$0xff] }
0x1d40   :  { %4737 = vmatmul.msk.bf16.vlgmr.msra.gmra.mxu1 %vm2024_vm3, %v3812_v51 }
0x1d8c   :  { %v3792_v5 = vpop.xlane.xlu2 %3791 }
0x1d8d   :  { %5250 = vrcp.f32 %v3792_v5 }
0x1d93   :  { %v5251_v1 = vpop.eup %5250 }
0x1d94   :  { %v3795_v63 = vpop.xlane.xlu2 %3794  ;;  %v3802_v30 = vmul.f32 %v5251_v1, %v5239_v7  ;;  %v3698_v7 = vpop.f32.mrf.mxu3 }
0x1d95   :  { %5252 = vrcp.f32 %v3795_v63  ;;  %v3708_v47 = vadd.f32 %v3698_v7, %v3522_v20 }
0x1d96   :  { %v3806_v8 = vpack.c.bf16 %v3802_v30, %v3802_v30 }
0x1d98   :  { %v3835_v61 = vunpack.c.l.b16 %v3806_v8 }
0x1d9b   :  { %v5253_v2 = vpop.eup %5252 }
0x1d9c   :  { %v3803_v0 = vmul.f32 %v5253_v2, %v5243_v41  ;;  %v3700_v26 = vpop.f32.mrf.mxu3 }
0x1d9d   :  { %v3709_v6 = vadd.f32 %v3700_v26, %v3524_v27 }
0x1d9e   :  { %v3807_v45 = vpack.c.bf16 %v3803_v0, %v3803_v0 }
0x1da0   :  { %v3836_v10 = vunpack.c.l.b16 %v3807_v45 }
0x1da2   :  { %v3837_v32 = vpack.c.b16 %v3836_v10, %v3835_v61 }
0x1da4   :  { %4738 = vmatmul.msk.bf16.vlgmr.msra.gmra.mxu0 %vm2024_vm3, %v3837_v32 }
0x1dad   :  { %v3672_v24 = vpop.f32.mrf.mxu1 }
0x1db5   :  { %v3674_v3 = vpop.f32.mrf.mxu1 }
0x1db6   :  { %v3678_v38 = vpack.c.bf16 %v3674_v3, %v3672_v24 }
0x1db8   :  { %4734 = vmatmul.msk.bf16.gmra.mxu3 %vm462_vm5, %v3678_v38 }
0x1dbd   :  { %v3828_v16 = vpop.f32.mrf.mxu1 }
0x1dc5   :  { %v3830_v56 = vpop.f32.mrf.mxu1 }
0x1dc6   :  { %v3858_v59 = vpack.c.bf16 %v3830_v56, %v3828_v16 }
0x1dc8   :  { %4739 = vmatmul.msk.bf16.vlgmr.msrb.gmra.mxu2 %vm462_vm5, %v3858_v59 }
0x1e21   :  { %v3853_v4 = vpop.f32.mrf.mxu0 }
0x1e29   :  { %v3855_v12 = vpop.f32.mrf.mxu0 }
0x1e2a   :  { %v3859_v14 = vpack.c.bf16 %v3855_v12, %v3853_v4  ;;  %v4878_v4 = vld [vmem:[%s6519_s22 + $0x10] sm:$0xff] }
0x1e2b   :  { %4049 = vmatpush.bf16.msrb.mxu1 %v4878_v4  ;;  %v4882_v4 = vld [vmem:[%s6522_s0 + $0x50] sm:$0xff] }
0x1e2c   :  { %4740 = vmatmul.msk.bf16.gmra.mxu2 %vm462_vm5, %v3859_v14 }
0x1e4b   :  { %v3879_v18 = vpop.f32.mrf.mxu2 }
0x1e4c   :  { %v3889_v41 = vadd.f32 %v3879_v18, %v3708_v47 }
0x1e4e   :  { %v3893_v25 = vadd.f32 %v3889_v41, %v6183_v34  ;;  %v3703_v34 = vpop.f32.mrf.mxu3 }
0x1e4f   :  { %v3710_v44 = vadd.f32 %v3703_v34, %v3527_v33 }
0x1e50   :  { %v6378_v35 = vadd.f32 %v5018_v54, %v3893_v25 }
0x1e52   :  { %v3910_v21 = vsel %vm396_vm0, %v6378_v35, 0.0 }
0x1e53   :  { %3911 = vadd.xlane.f32.xlu2 %v3910_v21  ;;  %v3881_v39 = vpop.f32.mrf.mxu2  ;;  %v5019_v21 = vld [vmem:[%s6520_s23 + $0x1] ss:$0 sm:$0xff] }
0x1e54   :  { %v3890_v55 = vadd.f32 %v3881_v39, %v3709_v6 }
0x1e56   :  { %v3894_v31 = vadd.f32 %v3890_v55, %v6188_v40  ;;  %v3705_v62 = vpop.f32.mrf.mxu3 }
0x1e57   :  { %v3711_v40 = vadd.f32 %v3705_v62, %v3529_v19 }
0x1e58   :  { %v6383_v29 = vadd.f32 %v5018_v54, %v3894_v31 }
0x1e5a   :  { %v3913_v9 = vsel %vm396_vm0, %v6383_v29, 0.0 }
0x1e5b   :  { %3914 = vadd.xlane.f32.xlu0 %v3913_v9  ;;  %v5020_v9 = vld [vmem:[%s6521_s26 + $0x1] ss:$0 sm:$0xff] }
0x1eaf   :  { %v3884_v36 = vpop.f32.mrf.mxu2 }
0x1eb0   :  { %v3891_v42 = vadd.f32 %v3884_v36, %v3710_v44 }
0x1eb2   :  { %v3895_v50 = vadd.f32 %v3891_v42, %v6201_v22 }
0x1eb4   :  { %v6390_v57 = vadd.f32 %v5018_v54, %v3895_v50 }
0x1eb6   :  { %v3916_v48 = vsel %vm396_vm0, %v6390_v57, 0.0 }
0x1eb7   :  { %3917 = vadd.xlane.f32.xlu1 %v3916_v48  ;;  %v3886_v58 = vpop.f32.mrf.mxu2 }
0x1eb8   :  { %v3892_v60 = vadd.f32 %v3886_v58, %v3711_v40 }
0x1eba   :  { %v3896_v49 = vadd.f32 %v3892_v60, %v6206_v43 }
0x1ebc   :  { %v6395_v28 = vadd.f32 %v5018_v54, %v3896_v49 }
0x1ebe   :  { %v3919_v51 = vsel %vm396_vm0, %v6395_v28, 0.0 }
0x1ebf   :  { %3920 = vadd.xlane.f32.xlu2 %v3919_v51 }
0x1ec6   :  { %v3912_v22 = vpop.xlane.xlu2 %3911 }
0x1ec7   :  { %v3922_v37 = vmul.f32 %v3912_v22, %v5591_v52 }
0x1ec9   :  { %v3926_v5 = vsub.f32 %v6378_v35, %v3922_v37 }
0x1ecb   :  { %v3930_v63 = vmul.f32 %v3926_v5, %v3926_v5 }
0x1ecd   :  { %v3934_v1 = vsel %vm396_vm0, %v3930_v63, 0.0 }
0x1ece   :  { %v3915_v30 = vpop.xlane.xlu0 %3914  ;;  %3935 = vadd.xlane.f32.xlu2 %v3934_v1 }
0x1ecf   :  { %v3923_v2 = vmul.f32 %v3915_v30, %v5591_v52 }
0x1ed1   :  { %v3927_v43 = vsub.f32 %v6383_v29, %v3923_v2 }
0x1ed3   :  { %v3931_v8 = vmul.f32 %v3927_v43, %v3927_v43 }
0x1ed5   :  { %v3937_v0 = vsel %vm396_vm0, %v3931_v8, 0.0 }
0x1ed6   :  { %3938 = vadd.xlane.f32.xlu2 %v3937_v0 }
0x1f2a   :  { %v3918_v45 = vpop.xlane.xlu1 %3917 }
0x1f2b   :  { %v3924_v61 = vmul.f32 %v3918_v45, %v5591_v52 }
0x1f2d   :  { %v6407_v10 = vsub.f32 %v6390_v57, %v3924_v61 }
0x1f2f   :  { %v3932_v32 = vmul.f32 %v6407_v10, %v6407_v10 }
0x1f31   :  { %v3940_v46 = vsel %vm396_vm0, %v3932_v32, 0.0 }
0x1f32   :  { %3941 = vadd.xlane.f32.xlu2 %v3940_v46  ;;  %v3921_v17 = vpop.xlane.xlu2 %3920 }
0x1f33   :  { %v3925_v53 = vmul.f32 %v3921_v17, %v5591_v52 }
0x1f35   :  { %v6414_v24 = vsub.f32 %v6395_v28, %v3925_v53 }
0x1f37   :  { %v3933_v3 = vmul.f32 %v6414_v24, %v6414_v24 }
0x1f39   :  { %v3943_v38 = vsel %vm396_vm0, %v3933_v3, 0.0 }
0x1f3a   :  { %3944 = vadd.xlane.f32.xlu2 %v3943_v38 }
0x1f41   :  { %v3936_v16 = vpop.xlane.xlu2 %3935 }
0x1f42   :  { %v3946_v56 = vmul.f32 %v3936_v16, %v5591_v52 }
0x1f44   :  { %v3950_v59 = vadd.f32 1e-05, %v3946_v56  ;;  %v4886_v56 = vld [vmem:[%s6522_s0 + $0x70] sm:$0xff] }
0x1f46   :  { %5254 = vrsqrt.f32 %v3950_v59  ;;  %vm3960_vm3 = vweird.f32 %v3950_v59 }
0x1f49   :  { %v3939_v12 = vpop.xlane.xlu2 %3938 }
0x1f4a   :  { %v3947_v14 = vmul.f32 %v3939_v12, %v5591_v52  ;;  %v5021_v12 = vld [vmem:[%s6523_s5 + $0x1] ss:$0 sm:$0xff] }
0x1f4c   :  { %v5255_v23 = vpop.eup %5254  ;;  %v3951_v13 = vadd.f32 1e-05, %v3947_v14  ;;  %v4881_v14 = vld [vmem:[%s6522_s0 + $0x48] sm:$0xff] }
0x1f4d   :  { %v3955_v15 = vmul.f32 %v5255_v23, %v3950_v59  ;;  %vm3961_vm5 = vweird.f32 %v5255_v23  ;;  %v4885_v59 = vld [vmem:[%s6522_s0 + $0x68] sm:$0xff] }
0x1f4e   :  { %5256 = vrsqrt.f32 %v3951_v13  ;;  %vm3962_vm6 = vmor %vm3960_vm3, %vm3961_vm5  ;;  %vm3970_vm11 = vweird.f32 %v3951_v13 }
0x1f4f   :  { %v3956_v7 = vmul.f32 %v5255_v23, %v3955_v15  ;;  %v4880_v15 = vld [vmem:[%s6522_s0 + $0x40] sm:$0xff] }
0x1f51   :  { %v3957_v20 = vmul.f32 0.5, %v3956_v7 }
0x1f53   :  { %v3958_v47 = vsub.f32 1.5, %v3957_v20 }
0x1f54   :  { %v5257_v18 = vpop.eup %5256 }
0x1f55   :  { %v3959_v41 = vmul.f32 %v5255_v23, %v3958_v47  ;;  %v3965_v54 = vmul.f32 %v5257_v18, %v3951_v13  ;;  %vm3971_vm9 = vweird.f32 %v5257_v18 }
0x1f56   :  { %vm3972_vm12 = vmor %vm3970_vm11, %vm3971_vm9 }
0x1f57   :  { %v3966_v25 = vmul.f32 %v5257_v18, %v3965_v54  ;;  %v3963_v26 = vsel %vm3962_vm6, %v5255_v23, %v3959_v41 }
0x1f58   :  { %v3994_v39 = vmul.f32 %v3963_v26, %v3926_v5 }
0x1f59   :  { %v3967_v27 = vmul.f32 0.5, %v3966_v25 }
0x1f5a   :  { %v4001_v34 = vmul.f32 %v5019_v21, %v3994_v39 }
0x1f5b   :  { %v3968_v6 = vsub.f32 1.5, %v3967_v27 }
0x1f5c   :  { %v4008_v36 = vadd.f32 %v5020_v9, %v4001_v34 }
0x1f5d   :  { %v3969_v55 = vmul.f32 %v5257_v18, %v3968_v6 }
0x1f5f   :  { %v3973_v31 = vsel %vm3972_vm12, %v5257_v18, %v3969_v55 }
0x1f60   :  { %v3995_v33 = vmul.f32 %v3973_v31, %v3927_v43 }
0x1f62   :  { %v4002_v44 = vmul.f32 %v5019_v21, %v3995_v33 }
0x1f64   :  { %v4009_v42 = vadd.f32 %v5020_v9, %v4002_v44 }
0x1f66   :  { %v4017_v50 = vpack.c.bf16 %v4009_v42, %v4008_v36 }
0x1f68   :  { %4757 = vmatmul.msk.bf16.vlgmr.msrb.gmra.mxu1 %vm396_vm0, %v4017_v50 }
0x1fa5   :  { %v3942_v62 = vpop.xlane.xlu2 %3941 }
0x1fa6   :  { %v3948_v19 = vmul.f32 %v3942_v62, %v5591_v52 }
0x1fa8   :  { %v3952_v40 = vadd.f32 1e-05, %v3948_v19 }
0x1faa   :  { %5258 = vrsqrt.f32 %v3952_v40  ;;  %vm3980_vm14 = vweird.f32 %v3952_v40 }
0x1fad   :  { %v3945_v48 = vpop.xlane.xlu2 %3944 }
0x1fae   :  { %v3949_v58 = vmul.f32 %v3945_v48, %v5591_v52 }
0x1fb0   :  { %v5259_v60 = vpop.eup %5258  ;;  %v3953_v49 = vadd.f32 1e-05, %v3949_v58 }
0x1fb1   :  { %v3975_v51 = vmul.f32 %v5259_v60, %v3952_v40  ;;  %vm3981_vm13 = vweird.f32 %v5259_v60 }
0x1fb2   :  { %5260 = vrsqrt.f32 %v3953_v49  ;;  %vm3982_vm15 = vmor %vm3980_vm14, %vm3981_vm13  ;;  %vm3990_vm10 = vweird.f32 %v3953_v49 }
0x1fb3   :  { %v3976_v22 = vmul.f32 %v5259_v60, %v3975_v51 }
0x1fb5   :  { %v3977_v37 = vmul.f32 0.5, %v3976_v22 }
0x1fb7   :  { %v3978_v5 = vsub.f32 1.5, %v3977_v37 }
0x1fb8   :  { %v5261_v63 = vpop.eup %5260 }
0x1fb9   :  { %v3979_v1 = vmul.f32 %v5259_v60, %v3978_v5  ;;  %v3985_v30 = vmul.f32 %v5261_v63, %v3953_v49  ;;  %vm3991_vm1 = vweird.f32 %v5261_v63 }
0x1fba   :  { %vm3992_vm2 = vmor %vm3990_vm10, %vm3991_vm1 }
0x1fbb   :  { %v3986_v2 = vmul.f32 %v5261_v63, %v3985_v30  ;;  %v3983_v43 = vsel %vm3982_vm15, %v5259_v60, %v3979_v1 }
0x1fbc   :  { %v3996_v45 = vmul.f32 %v3983_v43, %v6407_v10  ;;  %v4887_v10 = vld [vmem:[%s6522_s0 + $0x78] sm:$0xff] }
0x1fbd   :  { %v3987_v8 = vmul.f32 0.5, %v3986_v2  ;;  %4164 = vmatpush.bf16.msra.mxu3 %v4887_v10 }
0x1fbe   :  { %v4003_v17 = vmul.f32 %v5019_v21, %v3996_v45 }
0x1fbf   :  { %v3988_v0 = vsub.f32 1.5, %v3987_v8 }
0x1fc0   :  { %v4010_v3 = vadd.f32 %v5020_v9, %v4003_v17 }
0x1fc1   :  { %v3989_v61 = vmul.f32 %v5261_v63, %v3988_v0  ;;  %4165 = vmatpush.bf16.msra.mxu3 %v4886_v56 }
0x1fc3   :  { %v3993_v32 = vsel %vm3992_vm2, %v5261_v63, %v3989_v61 }
0x1fc4   :  { %v3997_v46 = vmul.f32 %v3993_v32, %v6414_v24  ;;  %v4883_v24 = vld [vmem:[%s6522_s0 + $0x58] sm:$0xff] }
0x1fc5   :  { %4166 = vmatpush.bf16.msra.mxu3 %v4885_v59 }
0x1fc6   :  { %v4004_v53 = vmul.f32 %v5019_v21, %v3997_v46 }
0x1fc8   :  { %v4011_v38 = vadd.f32 %v5020_v9, %v4004_v53  ;;  %v5022_v53 = vld [vmem:[%s6524_s21 + $0x1] ss:$0 sm:$0xff] }
0x1fc9   :  { %4167 = vmatpush.bf16.msra.mxu3 %v4884_v11 }
0x1fca   :  { %v4018_v16 = vpack.c.bf16 %v4011_v38, %v4010_v3 }
0x1fcc   :  { %4758 = vmatmul.msk.bf16.gmra.mxu1 %vm396_vm0, %v4018_v16 }
0x1fcd   :  { %4168 = vmatpush.bf16.msra.mxu3 %v4883_v24 }
0x1fd1   :  { %4169 = vmatpush.bf16.msra.mxu3 %v4882_v4 }
0x1fd5   :  { %4170 = vmatpush.bf16.msra.mxu3 %v4881_v14 }
0x1fd9   :  { %4171 = vmatpush.bf16.msra.mxu3 %v4880_v15 }
0x1fe5   :  { %v4051_v23 = vpop.f32.mrf.mxu1 }
0x1fe6   :  { %v4052_v13 = vadd.f32 %v5021_v12, %v4051_v23 }
0x1fe8   :  { %v4065_v7 = vmul.f32 0.044715, %v4052_v13  ;;  %v4061_v34 = vmul.f32 0.5, %v4052_v13 }
0x1fea   :  { %v4069_v20 = vmul.f32 %v4065_v7, %v4052_v13 }
0x1fec   :  { %v4073_v47 = vmul.f32 %v4069_v20, %v4052_v13 }
0x1fed   :  { %v4053_v18 = vpop.f32.mrf.mxu1 }
0x1fee   :  { %v4077_v41 = vadd.f32 %v4073_v47, %v4052_v13  ;;  %v4054_v54 = vadd.f32 %v5021_v12, %v4053_v18 }
0x1ff0   :  { %v4066_v25 = vmul.f32 0.044715, %v4054_v54  ;;  %v4081_v26 = vmul.f32 0.7978846, %v4077_v41  ;;  %v4062_v33 = vmul.f32 0.5, %v4054_v54 }
0x1ff2   :  { %v4070_v27 = vmul.f32 %v4066_v25, %v4054_v54  ;;  %5262 = vtanh.f32 %v4081_v26 }
0x1ff4   :  { %v4074_v6 = vmul.f32 %v4070_v27, %v4054_v54 }
0x1ff6   :  { %v4078_v21 = vadd.f32 %v4074_v6, %v4054_v54 }
0x1ff8   :  { %v4082_v39 = vmul.f32 0.7978846, %v4078_v21  ;;  %v5263_v55 = vpop.eup %5262 }
0x1ff9   :  { %v4089_v31 = vadd.f32 1.0, %v5263_v55 }
0x1ffa   :  { %5264 = vtanh.f32 %v4082_v39 }
0x1ffb   :  { %v4093_v36 = vmul.f32 %v4089_v31, %v4061_v34 }
0x2000   :  { %v5265_v9 = vpop.eup %5264 }
0x2001   :  { %v4090_v44 = vadd.f32 1.0, %v5265_v9 }
0x2003   :  { %v4094_v42 = vmul.f32 %v4090_v44, %v4062_v33 }
0x2005   :  { %v4114_v50 = vpack.c.bf16 %v4094_v42, %v4093_v36 }
0x2007   :  { %4172 = vmatmul.bf16.vlgmr.msra.gmra.mxu3 %v4114_v50  ;;  %v4889_v50 = vld [vmem:[%s5538_s4 + $0x8] sm:$0xff] }
0x2008   :  { %4317 = vmatpush.bf16.msrb.mxu0 %v4889_v50 }
0x2049   :  { %v4056_v62 = vpop.f32.mrf.mxu1 }
0x204a   :  { %v4057_v19 = vadd.f32 %v5021_v12, %v4056_v62  ;;  %v4888_v62 = vld [vmem:[%s5538_s4] sm:$0xff]  ;;  %s6526_s4 = sld [smem:[#allocation26_spill]] }
0x204b   :  { %4318 = vmatpush.bf16.msrb.mxu0 %v4888_v62 }
0x204c   :  { %v4067_v40 = vmul.f32 0.044715, %v4057_v19  ;;  %v4063_v0 = vmul.f32 0.5, %v4057_v19 }
0x204e   :  { %v4071_v48 = vmul.f32 %v4067_v40, %v4057_v19 }
0x2050   :  { %v4075_v58 = vmul.f32 %v4071_v48, %v4057_v19 }
0x2051   :  { %v4058_v60 = vpop.f32.mrf.mxu1 }
0x2052   :  { %v4059_v49 = vadd.f32 %v5021_v12, %v4058_v60  ;;  %v4079_v51 = vadd.f32 %v4075_v58, %v4057_v19 }
0x2054   :  { %v4068_v22 = vmul.f32 0.044715, %v4059_v49  ;;  %v4083_v5 = vmul.f32 0.7978846, %v4079_v51  ;;  %v4064_v45 = vmul.f32 0.5, %v4059_v49 }
0x2056   :  { %v4072_v37 = vmul.f32 %v4068_v22, %v4059_v49  ;;  %5266 = vtanh.f32 %v4083_v5 }
0x2058   :  { %v4076_v63 = vmul.f32 %v4072_v37, %v4059_v49 }
0x205a   :  { %v4080_v1 = vadd.f32 %v4076_v63, %v4059_v49 }
0x205c   :  { %v4084_v30 = vmul.f32 0.7978846, %v4080_v1  ;;  %v5267_v2 = vpop.eup %5266 }
0x205d   :  { %v4091_v43 = vadd.f32 1.0, %v5267_v2 }
0x205e   :  { %5268 = vtanh.f32 %v4084_v30 }
0x205f   :  { %v4095_v32 = vmul.f32 %v4091_v43, %v4063_v0 }
0x2064   :  { %v5269_v8 = vpop.eup %5268 }
0x2065   :  { %v4092_v61 = vadd.f32 1.0, %v5269_v8 }
0x2067   :  { %v4096_v46 = vmul.f32 %v4092_v61, %v4064_v45  ;;  %v5023_v45 = vld [vmem:[%s6525_s9] ss:$0 sm:$0xff] }
0x2069   :  { %v4115_v17 = vpack.c.bf16 %v4096_v46, %v4095_v32 }
0x206b   :  { %4177 = vmatmul.bf16.gmra.mxu3 %v4115_v17 }
0x208a   :  { %v4173_v3 = vpop.f32.mrf.mxu3 }
0x208b   :  { %v4183_v38 = vadd.f32 %v4173_v3, %v6378_v35 }
0x208d   :  { %v4192_v16 = vadd.f32 %v5022_v53, %v4183_v38 }
0x208f   :  { %4196 = vst.msk [vmem:[#allocation4 - $0x4] sm:$0xf0] %vm1785_vm4, %v4192_v16 }
0x2092   :  { %v4175_v10 = vpop.f32.mrf.mxu3 }
0x2093   :  { %v4184_v56 = vadd.f32 %v4175_v10, %v6383_v29 }
0x2095   :  { %v4193_v59 = vadd.f32 %v5022_v53, %v4184_v56 }
0x2097   :  { %4197 = vst.msk [vmem:[#allocation4 + $0x4] sm:$0xff] %vm396_vm0, %v4193_v59 }
0x209e   :  { %v4200_v11 = vld [vmem:[#allocation4] sm:$0xff] }
0x209f   :  { %v4205_v24 = vsel %vm396_vm0, %v4200_v11, 0.0 }
0x20a0   :  { %4206 = vadd.xlane.f32.xlu0 %v4205_v24 }
0x20ee   :  { %v4178_v4 = vpop.f32.mrf.mxu3 }
0x20ef   :  { %v4185_v12 = vadd.f32 %v4178_v4, %v6390_v57 }
0x20f1   :  { %v4194_v14 = vadd.f32 %v5022_v53, %v4185_v12 }
0x20f3   :  { %4198 = vst.msk [vmem:[#allocation4 + $0x8] sm:$0xf0] %vm1785_vm4, %v4194_v14 }
0x20f6   :  { %v4180_v35 = vpop.f32.mrf.mxu3 }
0x20f7   :  { %v4186_v23 = vadd.f32 %v4180_v35, %v6395_v28 }
0x20f9   :  { %v4195_v13 = vadd.f32 %v5022_v53, %v4186_v23  ;;  %v5024_v53 = vld [vmem:[%s6526_s4] ss:$0 sm:$0xff] }
0x20fa   :  { %v4201_v15 = vld [vmem:[#allocation4 + $0x8] sm:$0xff] }
0x20fb   :  { %4199 = vst.msk [vmem:[#allocation4 + $0x10] sm:$0xff] %vm396_vm0, %v4195_v13  ;;  %v4208_v29 = vsel %vm396_vm0, %v4201_v15, 0.0 }
0x20fc   :  { %4209 = vadd.xlane.f32.xlu1 %v4208_v29 }
0x2102   :  { %v4202_v7 = vld [vmem:[#allocation4 + $0x10] sm:$0xff] }
0x2103   :  { %v4211_v20 = vsel %vm396_vm0, %v4202_v7, 0.0 }
0x2104   :  { %4212 = vadd.xlane.f32.xlu2 %v4211_v20 }
0x2113   :  { %v4207_v47 = vpop.xlane.xlu0 %4206 }
0x2114   :  { %v4214_v57 = vmul.f32 %v4207_v47, %v5591_v52 }
0x2116   :  { %v4217_v18 = vsub.f32 %v4200_v11, %v4214_v57 }
0x2118   :  { %v4220_v41 = vmul.f32 %v4217_v18, %v4217_v18 }
0x211a   :  { %v4223_v54 = vsel %vm396_vm0, %v4220_v41, 0.0 }
0x211b   :  { %4224 = vadd.xlane.f32.xlu0 %v4223_v54 }
0x216f   :  { %v4210_v28 = vpop.xlane.xlu1 %4209 }
0x2170   :  { %v4215_v25 = vmul.f32 %v4210_v28, %v5591_v52 }
0x2172   :  { %v4218_v26 = vsub.f32 %v4201_v15, %v4215_v25 }
0x2174   :  { %v4221_v27 = vmul.f32 %v4218_v26, %v4218_v26 }
0x2176   :  { %v4226_v6 = vsel %vm396_vm0, %v4221_v27, 0.0 }
0x2177   :  { %4227 = vadd.xlane.f32.xlu1 %v4226_v6  ;;  %v4213_v21 = vpop.xlane.xlu2 %4212 }
0x2178   :  { %v4216_v39 = vmul.f32 %v4213_v21, %v5591_v52 }
0x217a   :  { %v4219_v55 = vsub.f32 %v4202_v7, %v4216_v39 }
0x217c   :  { %v4222_v31 = vmul.f32 %v4219_v55, %v4219_v55 }
0x217e   :  { %v4229_v9 = vsel %vm396_vm0, %v4222_v31, 0.0 }
0x217f   :  { %4230 = vadd.xlane.f32.xlu2 %v4229_v9 }
0x218e   :  { %v4225_v34 = vpop.xlane.xlu0 %4224 }
0x218f   :  { %v4232_v33 = vmul.f32 %v4225_v34, %v5591_v52 }
0x2191   :  { %v4235_v44 = vadd.f32 1e-05, %v4232_v33 }
0x2193   :  { %5270 = vrsqrt.f32 %v4235_v44  ;;  %vm4244_vm7 = vweird.f32 %v4235_v44 }
0x2199   :  { %v5271_v36 = vpop.eup %5270 }
0x219a   :  { %v4239_v42 = vmul.f32 %v5271_v36, %v4235_v44  ;;  %vm4245_vm4 = vweird.f32 %v5271_v36 }
0x219b   :  { %vm4246_vm8 = vmor %vm4244_vm7, %vm4245_vm4 }
0x219c   :  { %v4240_v19 = vmul.f32 %v5271_v36, %v4239_v42 }
0x219e   :  { %v4241_v60 = vmul.f32 0.5, %v4240_v19 }
0x21a0   :  { %v4242_v49 = vsub.f32 1.5, %v4241_v60 }
0x21a2   :  { %v4243_v63 = vmul.f32 %v5271_v36, %v4242_v49 }
0x21a4   :  { %v4247_v2 = vsel %vm4246_vm8, %v5271_v36, %v4243_v63 }
0x21a5   :  { %v4268_v61 = vmul.f32 %v4247_v2, %v4217_v18 }
0x21a7   :  { %v4274_v3 = vmul.f32 %v5023_v45, %v4268_v61 }
0x21a9   :  { %v4280_v59 = vadd.f32 %v5024_v53, %v4274_v3 }
0x21ea   :  { %v4228_v40 = vpop.xlane.xlu1 %4227 }
0x21eb   :  { %v4233_v48 = vmul.f32 %v4228_v40, %v5591_v52 }
0x21ed   :  { %v4236_v58 = vadd.f32 1e-05, %v4233_v48 }
0x21ef   :  { %5272 = vrsqrt.f32 %v4236_v58  ;;  %vm4254_vm3 = vweird.f32 %v4236_v58 }
0x21f2   :  { %v4231_v51 = vpop.xlane.xlu2 %4230 }
0x21f3   :  { %v4234_v22 = vmul.f32 %v4231_v51, %v5591_v52 }
0x21f5   :  { %v5273_v37 = vpop.eup %5272  ;;  %v4237_v5 = vadd.f32 1e-05, %v4234_v22 }
0x21f6   :  { %v4249_v1 = vmul.f32 %v5273_v37, %v4236_v58  ;;  %vm4255_vm5 = vweird.f32 %v5273_v37 }
0x21f7   :  { %5274 = vrsqrt.f32 %v4237_v5  ;;  %vm4256_vm6 = vmor %vm4254_vm3, %vm4255_vm5  ;;  %vm4264_vm11 = vweird.f32 %v4237_v5 }
0x21f8   :  { %v4250_v30 = vmul.f32 %v5273_v37, %v4249_v1 }
0x21fa   :  { %v4251_v43 = vmul.f32 0.5, %v4250_v30 }
0x21fc   :  { %v4252_v8 = vsub.f32 1.5, %v4251_v43 }
0x21fd   :  { %v5275_v0 = vpop.eup %5274 }
0x21fe   :  { %v4253_v32 = vmul.f32 %v5273_v37, %v4252_v8  ;;  %v4259_v52 = vmul.f32 %v5275_v0, %v4237_v5  ;;  %vm4265_vm9 = vweird.f32 %v5275_v0 }
0x21ff   :  { %vm4266_vm12 = vmor %vm4264_vm11, %vm4265_vm9 }
0x2200   :  { %v4257_v46 = vsel %vm4256_vm6, %v5273_v37, %v4253_v32  ;;  %v4260_v17 = vmul.f32 %v5275_v0, %v4259_v52 }
0x2201   :  { %v4269_v38 = vmul.f32 %v4257_v46, %v4218_v26 }
0x2202   :  { %v4261_v16 = vmul.f32 0.5, %v4260_v17 }
0x2203   :  { %v4275_v10 = vmul.f32 %v5023_v45, %v4269_v38 }
0x2204   :  { %v4262_v56 = vsub.f32 1.5, %v4261_v16 }
0x2205   :  { %v4281_v11 = vadd.f32 %v5024_v53, %v4275_v10 }
0x2206   :  { %v4263_v24 = vmul.f32 %v5275_v0, %v4262_v56 }
0x2207   :  { %v4287_v4 = vpack.c.bf16 %v4281_v11, %v4280_v59 }
0x2208   :  { %v4267_v12 = vsel %vm4266_vm12, %v5275_v0, %v4263_v24 }
0x2209   :  { %4816 = vmatmul.msk.bf16.vlgmr.msrb.gmra.mxu0 %vm396_vm0, %v4287_v4  ;;  %v4270_v14 = vmul.f32 %v4267_v12, %v4219_v55 }
0x220b   :  { %v4276_v35 = vmul.f32 %v5023_v45, %v4270_v14 }
0x220d   :  { %v4282_v23 = vadd.f32 %v5024_v53, %v4276_v35 }
0x220f   :  { %v4288_v13 = vpack.c.bf16 %v4282_v23, %v4282_v23 }
0x2219   :  { %4817 = vmatmul.msk.bf16.gmra.mxu0 %vm396_vm0, %v4288_v13 }
0x221a   :  { %5303 = shalt.err (!%p5300_p4)
}
0x221b   :  { %4343 = dma.vmem_to_hbm [thread:$0]  %s4339_s3, 128, %s4341_s25, [#allocation6]   ;;  %v5025_v15 = vld [vmem:[%s5543_s13] ss:$0 sm:$0xff]  ;;  %vm4329_vm0 = vcmask 392192  }
0x2286   :  { %v4320_v29 = vpop.f32.mrf.mxu0 }
0x2287   :  { %v4321_v7 = vadd.f32 %v5025_v15, %v4320_v29 }
0x2289   :  { %4330 = vst.msk [vmem:[%s5553_s27] sm:$0xff] %vm4329_vm0, %v4321_v7 }
0x228e   :  { %v4322_v20 = vpop.f32.mrf.mxu0 }
0x228f   :  { %v4323_v47 = vadd.f32 %v5025_v15, %v4322_v20 }
0x2291   :  { %4331 = vst.msk [vmem:[%s5553_s27 + $0x8] sm:$0xff] %vm4329_vm0, %v4323_v47 }
0x2296   :  { %v4325_v57 = vpop.f32.mrf.mxu0 }
0x2297   :  { %v4326_v18 = vadd.f32 %v5025_v15, %v4325_v57 }
0x2299   :  { %4332 = vst.msk [vmem:[%s5553_s27 + $0x10] sm:$0xff] %vm4329_vm0, %v4326_v18 }
0x229e   :  { %v4327_v41 = vpop.f32.mrf.mxu0 }
0x229f   :  { %5304 = dma.done.wait [#allocation6], 128  }
0x22a0   :  { %5305 = vsyncadd [#allocation6], 4294967168 }
0x22a1   :  { %4352 = vsyncpa [#allocation6], 1 }

</bundles_post_ra>
